<compile_context>
chip_gen: v7x
topology: tpu7x:2x2x1
jax: 0.10.0
libtpu: 0.0.40
codegen_flags: <defaults>
</compile_context>

<pallas_src>
import numpy as np
import jax
import jax.numpy as jnp
from jax.experimental import pallas as pl
from jax.experimental.pallas import tpu as pltpu

EPS = 1e-5
NEG_SLOPE = 0.2
H0 = W0 = 4          # spatial size forced by fc = Linear(2*2*8, num_classes)
C_IN = 512


# ----------------------------------------------------------------------------
# Fused Pallas kernel: the entire forward pass
# ----------------------------------------------------------------------------
def _fused_cnn_kernel(x_ref, t6_ref, t4_ref, sp_ref, gfc_ref,
                      w1_ref, b1_ref, w2_ref, b2_ref,
                      w3_ref, b3_ref, w4_ref, b4_ref,
                      wfc_ref, bfc_ref, o_ref):

    def leaky(z):
        return jnp.maximum(z, NEG_SLOPE * z)

    def conv_bn_lrelu(x, w_ref, b_ref, t_ref):
        # 3x3 conv (padding=1) as 9 shift-and-matmul taps.
        # BN scale folded into W (bf16); conv-bias + BN shift folded into b (f32).
        xb = x.astype(jnp.bfloat16)
        mp = t_ref.shape[1]
        cout = w_ref.shape[2]
        acc = jnp.zeros((mp, cout), jnp.float32)
        for t in range(9):
            z = jnp.dot(xb, w_ref[t], preferred_element_type=jnp.float32)
            acc = acc + jnp.dot(t_ref[t], z, preferred_element_type=jnp.float32)
        return leaky(acc + b_ref[...])

    x = x_ref[...]                                   # [B*6*6, 512] padded NHWC
    y1 = conv_bn_lrelu(x, w1_ref, b1_ref, t6_ref)    # [B*6*6, 128]  (drop1: identity)
    y2 = conv_bn_lrelu(y1, w2_ref, b2_ref, t6_ref)   # [B*6*6, 64]

    # 2x2 max-pool: 4 candidate gathers (0/1 matmuls into the padded 4x4
    # layout of the 2x2 stage) + elementwise max.
    p = jnp.dot(sp_ref[0], y2, preferred_element_type=jnp.float32)
    for k in range(1, 4):
        p = jnp.maximum(p, jnp.dot(sp_ref[k], y2,
                                   preferred_element_type=jnp.float32))

    y3 = conv_bn_lrelu(p, w3_ref, b3_ref, t4_ref)    # [B*4*4, 16]  (drop3: identity)
    y4 = conv_bn_lrelu(y3, w4_ref, b4_ref, t4_ref)   # [B*4*4, 8]

    # fc on the PyTorch NCHW-flatten order (c*4 + h*2 + w): gather the 4
    # interior rows per image with 0/1 matmuls, matmul the matching fc slice.
    b, nc = o_ref.shape
    acc = jnp.zeros((b, nc), jnp.float32)
    for j in range(4):
        g = jnp.dot(gfc_ref[j], y4, preferred_element_type=jnp.float32)   # [B, 8]
        acc = acc + jnp.dot(g, wfc_ref[j], preferred_element_type=jnp.float32)
    o_ref[...] = acc + bfc_ref[...]                  # final dropout: identity


# ----------------------------------------------------------------------------
# Host-side constant builders (trace-time numpy -> XLA constants)
# ----------------------------------------------------------------------------
def _shift_mats(batch, h, w):
    """[9, M, M] 0/1 matrices: T_t[r_out, r_in]=1 iff r_in is the valid 3x3-tap
    source of r_out.  Border rows (padding) are dropped on both sides."""
    hp, wp = h + 2, w + 2
    mp = batch * hp * wp
    t_mats = np.zeros((9, mp, mp), np.float32)
    for ky in range(3):
        for kx in range(3):
            t = ky * 3 + kx
            for b in range(batch):
                for hh in range(1, h + 1):
                    for ww in range(1, w + 1):
                        hi, wi = hh + ky - 1, ww + kx - 1
                        if 1 <= hi <= h and 1 <= wi <= w:
                            r_out = (b * hp + hh) * wp + ww
                            r_in = (b * hp + hi) * wp + wi
                            t_mats[t, r_out, r_in] = 1.0
    return t_mats


def _pool_mats(batch, h, w):
    """[4, Mo, Mi] selection matrices: candidate (dy,dx) of each 2x2 window,
    written into the zero-padded layout of the pooled stage."""
    hp, wp = h + 2, w + 2
    ho, wo = h // 2, w // 2
    hop, wop = ho + 2, wo + 2
    mi, mo = batch * hp * wp, batch * hop * wop
    s = np.zeros((4, mo, mi), np.float32)
    for dy in range(2):
        for dx in range(2):
            k = dy * 2 + dx
            for b in range(batch):
                for oh in range(ho):
                    for ow in range(wo):
                        r_out = (b * hop + oh + 1) * wop + ow + 1
                        r_in = (b * hp + 2 * oh + dy + 1) * wp + 2 * ow + dx + 1
                        s[k, r_out, r_in] = 1.0
    return s


def _fc_gather_mats(batch, ho, wo):
    """[4, B, Mo] selection matrices picking spatial position (oh, ow) of every
    image out of the padded conv4 output."""
    hop, wop = ho + 2, wo + 2
    mo = batch * hop * wop
    g = np.zeros((4, batch, mo), np.float32)
    for oh in range(ho):
        for ow in range(wo):
            j = oh * wo + ow
            for b in range(batch):
                g[j, b, (b * hop + oh + 1) * wop + ow + 1] = 1.0
    return g


def _full_block(shape):
    n = len(shape)
    return pl.BlockSpec(tuple(shape), lambda i: (0,) * n)


# ----------------------------------------------------------------------------
# Parameter preparation (BN folding, tap reordering, bf16 weights) — done once
# ----------------------------------------------------------------------------
def prepare_kernel_params(p):
    kp = {}
    for idx in ("1", "2", "3", "4"):
        w = p[f"conv{idx}_w"]                              # [Cout, Cin, 3, 3]
        scale = p[f"bn{idx}_gamma"] / jnp.sqrt(p[f"bn{idx}_var"] + EPS)
        bias = p[f"bn{idx}_beta"] + (p[f"conv{idx}_b"] - p[f"bn{idx}_mean"]) * scale
        w = w * scale[:, None, None, None]                 # fold BN scale into W
        cout, cin = w.shape[0], w.shape[1]
        # (ky, kx, cin, cout) tap order -> [9, Cin, Cout], bf16 (MXU-native)
        kp[f"w{idx}"] = jnp.transpose(w, (2, 3, 1, 0)).reshape(9, cin, cout) \
                           .astype(jnp.bfloat16)
        kp[f"b{idx}"] = bias[None, :].astype(jnp.float32)
    # fc weight: PyTorch flatten order f = c*4 + oh*2 + ow  ->  [4, 8, num_classes]
    wfc = p["fc_w"].reshape(-1, 8, 2, 2)                   # [out, c, oh, ow]
    kp["wfc"] = jnp.transpose(wfc, (2, 3, 1, 0)).reshape(4, 8, -1).astype(jnp.float32)
    kp["bfc"] = p["fc_b"][None, :].astype(jnp.float32)
    return kp


# ----------------------------------------------------------------------------
# Forward: one cheap input layout transform + one fused pallas_call
# ----------------------------------------------------------------------------
@jax.jit
def simple_cnn_forward(x_nchw, kp):
    b = x_nchw.shape[0]
    num_classes = kp["bfc"].shape[1]

    # single layout transform of the (tiny) network input:
    # NCHW -> zero-padded NHWC flattened to [B*6*6, 512]
    x = jnp.transpose(x_nchw, (0, 2, 3, 1)).astype(jnp.float32)
    x = jnp.pad(x, ((0, 0), (1, 1), (1, 1), (0, 0)))
    x_flat = x.reshape(b * (H0 + 2) * (W0 + 2), C_IN)

    # 0/1 shift / pool / gather matrices — built with numpy at trace time only
    t6 = jnp.asarray(_shift_mats(b, H0, W0))
    t4 = jnp.asarray(_shift_mats(b, H0 // 2, W0 // 2))
    sp = jnp.asarray(_pool_mats(b, H0, W0))
    gfc = jnp.asarray(_fc_gather_mats(b, H0 // 2, W0 // 2))

    args = (x_flat, t6, t4, sp, gfc,
            kp["w1"], kp["b1"], kp["w2"], kp["b2"],
            kp["w3"], kp["b3"], kp["w4"], kp["b4"],
            kp["wfc"], kp["bfc"])

    return pl.pallas_call(
        _fused_cnn_kernel,
        out_shape=jax.ShapeDtypeStruct((b, num_classes), jnp.float32),
        grid=(1,),
        in_specs=[_full_block(a.shape) for a in args],
        out_specs=_full_block((b, num_classes)),
        compiler_params=pltpu.CompilerParams(dimension_semantics=("arbitrary",)),
    )(*args)


# ----------------------------------------------------------------------------
# Deterministic parameter init + pure-JAX reference for verification
# ----------------------------------------------------------------------------
def init_params(key):
    def nrm(k, shape, s=0.05):
        return s * jax.random.normal(k, shape, dtype=jnp.float32)

    keys = jax.random.split(key, 32)
    ki = iter(range(32))
    p = {}
    for name, cin, cout in (("1", 512, 128), ("2", 128, 64),
                            ("3", 64, 16), ("4", 16, 8)):
        p[f"conv{name}_w"] = nrm(keys[next(ki)], (cout, cin, 3, 3))
        p[f"conv{name}_b"] = nrm(keys[next(ki)], (cout,))
        p[f"bn{name}_gamma"] = 1.0 + nrm(keys[next(ki)], (cout,))
        p[f"bn{name}_beta"] = nrm(keys[next(ki)], (cout,))
        p[f"bn{name}_mean"] = nrm(keys[next(ki)], (cout,))
        p[f"bn{name}_var"] = 1.0 + jnp.abs(nrm(keys[next(ki)], (cout,)))
    p["fc_w"] = nrm(keys[next(ki)], (2, 32))   # PyTorch Linear: [out, in]
    p["fc_b"] = nrm(keys[next(ki)], (2,))
    return p


def reference_forward(x_nchw, p):
    def block(x, idx):
        y = jax.lax.conv_general_dilated(
            x, p[f"conv{idx}_w"], window_strides=(1, 1),
            padding=((1, 1), (1, 1)),
            dimension_numbers=("NCHW", "OIHW", "NCHW"))
        y = y + p[f"conv{idx}_b"][None, :, None, None]
        sc = (p[f"bn{idx}_gamma"] / jnp.sqrt(p[f"bn{idx}_var"] + EPS))
        y = (y - p[f"bn{idx}_mean"][None, :, None, None]) * sc[None, :, None, None] \
            + p[f"bn{idx}_beta"][None, :, None, None]
        return jnp.maximum(y, NEG_SLOPE * y)

    x = block(x_nchw.astype(jnp.float32), "1")
    x = block(x, "2")
    b, c, h, w = x.shape
    x = x.reshape(b, c, h // 2, 2, w // 2, 2).max(axis=(3, 5))
    x = block(x, "3")
    x = block(x, "4")
    flat = x.reshape(b, -1)
    return flat @ p["fc_w"].T + p["fc_b"][None, :]


if __name__ == "__main__":
    key = jax.random.PRNGKey(0)
    k_params, k_x = jax.random.split(key)
    params = init_params(k_params)
    # input shape is dictated by the module: 512 channels, 4x4 spatial
    x = jax.random.normal(k_x, (2, 512, 4, 4), dtype=jnp.float32)

    kparams = prepare_kernel_params(params)
    out = simple_cnn_forward(x, kparams)
    jax.block_until_ready(out)
    assert out.shape == (2, 2)

    # loose-tolerance check vs. a pure-JAX/XLA reference (bf16 conv weights
    # introduce ~1e-2 relative drift; accumulation and epilogues are f32)
    ref = reference_forward(x, params)
    err = float(jnp.max(jnp.abs(out - ref)))
    tol = 5e-2 * (1.0 + float(jnp.max(jnp.abs(ref))))
    assert err < tol, f"mismatch vs reference: max|diff|={err:.4f} tol={tol:.4f}"

    print("KERNEL_OK")
</pallas_src>

<mosaic_0001>
module attributes {stable_mosaic.version = 11 : i64} {
  func.func @_fused_cnn_kernel(%arg0: i32, %arg1: memref<72x512xf32, #tpu.memory_space<vmem>>, %arg2: memref<9x72x72xf32, #tpu.memory_space<vmem>>, %arg3: memref<9x32x32xf32, #tpu.memory_space<vmem>>, %arg4: memref<4x32x72xf32, #tpu.memory_space<vmem>>, %arg5: memref<4x2x32xf32, #tpu.memory_space<vmem>>, %arg6: memref<9x512x128xbf16, #tpu.memory_space<vmem>>, %arg7: memref<1x128xf32, #tpu.memory_space<vmem>>, %arg8: memref<9x128x64xbf16, #tpu.memory_space<vmem>>, %arg9: memref<1x64xf32, #tpu.memory_space<vmem>>, %arg10: memref<9x64x16xbf16, #tpu.memory_space<vmem>>, %arg11: memref<1x16xf32, #tpu.memory_space<vmem>>, %arg12: memref<9x16x8xbf16, #tpu.memory_space<vmem>>, %arg13: memref<1x8xf32, #tpu.memory_space<vmem>>, %arg14: memref<4x8x2xf32, #tpu.memory_space<vmem>>, %arg15: memref<1x2xf32, #tpu.memory_space<vmem>>, %arg16: memref<2x2xf32, #tpu.memory_space<vmem>>) attributes {dimension_semantics = [#tpu.dimension_semantics<arbitrary>], iteration_bounds = array<i64: 1>, scalar_prefetch = 0 : i64, scratch_operands = 0 : i64, tpu.core_type = #tpu.core_type<tc>, window_params = [{pipeline_mode = #tpu.pipeline_mode<synchronous>, transform_indices = @transform_0, window_bounds = array<i64: 72, 512>}, {pipeline_mode = #tpu.pipeline_mode<synchronous>, transform_indices = @transform_1, window_bounds = array<i64: 9, 72, 72>}, {pipeline_mode = #tpu.pipeline_mode<synchronous>, transform_indices = @transform_2, window_bounds = array<i64: 9, 32, 32>}, {pipeline_mode = #tpu.pipeline_mode<synchronous>, transform_indices = @transform_3, window_bounds = array<i64: 4, 32, 72>}, {pipeline_mode = #tpu.pipeline_mode<synchronous>, transform_indices = @transform_4, window_bounds = array<i64: 4, 2, 32>}, {pipeline_mode = #tpu.pipeline_mode<synchronous>, transform_indices = @transform_5, window_bounds = array<i64: 9, 512, 128>}, {pipeline_mode = #tpu.pipeline_mode<synchronous>, transform_indices = @transform_6, window_bounds = array<i64: 1, 128>}, {pipeline_mode = #tpu.pipeline_mode<synchronous>, transform_indices = @transform_7, window_bounds = array<i64: 9, 128, 64>}, {pipeline_mode = #tpu.pipeline_mode<synchronous>, transform_indices = @transform_8, window_bounds = array<i64: 1, 64>}, {pipeline_mode = #tpu.pipeline_mode<synchronous>, transform_indices = @transform_9, window_bounds = array<i64: 9, 64, 16>}, {pipeline_mode = #tpu.pipeline_mode<synchronous>, transform_indices = @transform_10, window_bounds = array<i64: 1, 16>}, {pipeline_mode = #tpu.pipeline_mode<synchronous>, transform_indices = @transform_11, window_bounds = array<i64: 9, 16, 8>}, {pipeline_mode = #tpu.pipeline_mode<synchronous>, transform_indices = @transform_12, window_bounds = array<i64: 1, 8>}, {pipeline_mode = #tpu.pipeline_mode<synchronous>, transform_indices = @transform_13, window_bounds = array<i64: 4, 8, 2>}, {pipeline_mode = #tpu.pipeline_mode<synchronous>, transform_indices = @transform_14, window_bounds = array<i64: 1, 2>}, {pipeline_mode = #tpu.pipeline_mode<synchronous>, transform_indices = @transform_15, window_bounds = array<i64: 2, 2>}]} {
    %c0 = arith.constant 0 : index
    %c0_0 = arith.constant 0 : index
    %0 = vector.load %arg1[%c0, %c0_0] : memref<72x512xf32, #tpu.memory_space<vmem>>, vector<72x512xf32>
    %1 = arith.truncf %0 : vector<72x512xf32> to vector<72x512xbf16>
    %cst = arith.constant 0.000000e+00 : f32
    %2 = vector.broadcast %cst : f32 to vector<72x128xf32>
    %c0_1 = arith.constant 0 : index
    %c0_2 = arith.constant 0 : index
    %c0_3 = arith.constant 0 : index
    %3 = vector.load %arg6[%c0_1, %c0_2, %c0_3] : memref<9x512x128xbf16, #tpu.memory_space<vmem>>, vector<1x512x128xbf16>
    %4 = vector.shape_cast %3 : vector<1x512x128xbf16> to vector<512x128xbf16>
    %cst_4 = arith.constant dense<0.000000e+00> : vector<72x128xf32>
    %5 = tpu.matmul %1, %4, %cst_4 {dimension_numbers = #tpu.dot_dimension_numbers<[1], [0], [0], [1], [0, 0, 1, 1], [], []>} : vector<72x512xbf16>, vector<512x128xbf16>, vector<72x128xf32> -> vector<72x128xf32>
    %c0_5 = arith.constant 0 : index
    %c0_6 = arith.constant 0 : index
    %c0_7 = arith.constant 0 : index
    %6 = vector.load %arg2[%c0_5, %c0_6, %c0_7] : memref<9x72x72xf32, #tpu.memory_space<vmem>>, vector<1x72x72xf32>
    %7 = vector.shape_cast %6 : vector<1x72x72xf32> to vector<72x72xf32>
    %cst_8 = arith.constant dense<0.000000e+00> : vector<72x128xf32>
    %8 = tpu.matmul %7, %5, %cst_8 {dimension_numbers = #tpu.dot_dimension_numbers<[1], [0], [0], [1], [0, 0, 1, 1], [], []>} : vector<72x72xf32>, vector<72x128xf32>, vector<72x128xf32> -> vector<72x128xf32>
    %9 = arith.addf %2, %8 : vector<72x128xf32>
    %c1 = arith.constant 1 : index
    %c0_9 = arith.constant 0 : index
    %c0_10 = arith.constant 0 : index
    %10 = vector.load %arg6[%c1, %c0_9, %c0_10] : memref<9x512x128xbf16, #tpu.memory_space<vmem>>, vector<1x512x128xbf16>
    %11 = vector.shape_cast %10 : vector<1x512x128xbf16> to vector<512x128xbf16>
    %cst_11 = arith.constant dense<0.000000e+00> : vector<72x128xf32>
    %12 = tpu.matmul %1, %11, %cst_11 {dimension_numbers = #tpu.dot_dimension_numbers<[1], [0], [0], [1], [0, 0, 1, 1], [], []>} : vector<72x512xbf16>, vector<512x128xbf16>, vector<72x128xf32> -> vector<72x128xf32>
    %c1_12 = arith.constant 1 : index
    %c0_13 = arith.constant 0 : index
    %c0_14 = arith.constant 0 : index
    %13 = vector.load %arg2[%c1_12, %c0_13, %c0_14] : memref<9x72x72xf32, #tpu.memory_space<vmem>>, vector<1x72x72xf32>
    %14 = vector.shape_cast %13 : vector<1x72x72xf32> to vector<72x72xf32>
    %cst_15 = arith.constant dense<0.000000e+00> : vector<72x128xf32>
    %15 = tpu.matmul %14, %12, %cst_15 {dimension_numbers = #tpu.dot_dimension_numbers<[1], [0], [0], [1], [0, 0, 1, 1], [], []>} : vector<72x72xf32>, vector<72x128xf32>, vector<72x128xf32> -> vector<72x128xf32>
    %16 = arith.addf %9, %15 : vector<72x128xf32>
    %c2 = arith.constant 2 : index
    %c0_16 = arith.constant 0 : index
    %c0_17 = arith.constant 0 : index
    %17 = vector.load %arg6[%c2, %c0_16, %c0_17] : memref<9x512x128xbf16, #tpu.memory_space<vmem>>, vector<1x512x128xbf16>
    %18 = vector.shape_cast %17 : vector<1x512x128xbf16> to vector<512x128xbf16>
    %cst_18 = arith.constant dense<0.000000e+00> : vector<72x128xf32>
    %19 = tpu.matmul %1, %18, %cst_18 {dimension_numbers = #tpu.dot_dimension_numbers<[1], [0], [0], [1], [0, 0, 1, 1], [], []>} : vector<72x512xbf16>, vector<512x128xbf16>, vector<72x128xf32> -> vector<72x128xf32>
    %c2_19 = arith.constant 2 : index
    %c0_20 = arith.constant 0 : index
    %c0_21 = arith.constant 0 : index
    %20 = vector.load %arg2[%c2_19, %c0_20, %c0_21] : memref<9x72x72xf32, #tpu.memory_space<vmem>>, vector<1x72x72xf32>
    %21 = vector.shape_cast %20 : vector<1x72x72xf32> to vector<72x72xf32>
    %cst_22 = arith.constant dense<0.000000e+00> : vector<72x128xf32>
    %22 = tpu.matmul %21, %19, %cst_22 {dimension_numbers = #tpu.dot_dimension_numbers<[1], [0], [0], [1], [0, 0, 1, 1], [], []>} : vector<72x72xf32>, vector<72x128xf32>, vector<72x128xf32> -> vector<72x128xf32>
    %23 = arith.addf %16, %22 : vector<72x128xf32>
    %c3 = arith.constant 3 : index
    %c0_23 = arith.constant 0 : index
    %c0_24 = arith.constant 0 : index
    %24 = vector.load %arg6[%c3, %c0_23, %c0_24] : memref<9x512x128xbf16, #tpu.memory_space<vmem>>, vector<1x512x128xbf16>
    %25 = vector.shape_cast %24 : vector<1x512x128xbf16> to vector<512x128xbf16>
    %cst_25 = arith.constant dense<0.000000e+00> : vector<72x128xf32>
    %26 = tpu.matmul %1, %25, %cst_25 {dimension_numbers = #tpu.dot_dimension_numbers<[1], [0], [0], [1], [0, 0, 1, 1], [], []>} : vector<72x512xbf16>, vector<512x128xbf16>, vector<72x128xf32> -> vector<72x128xf32>
    %c3_26 = arith.constant 3 : index
    %c0_27 = arith.constant 0 : index
    %c0_28 = arith.constant 0 : index
    %27 = vector.load %arg2[%c3_26, %c0_27, %c0_28] : memref<9x72x72xf32, #tpu.memory_space<vmem>>, vector<1x72x72xf32>
    %28 = vector.shape_cast %27 : vector<1x72x72xf32> to vector<72x72xf32>
    %cst_29 = arith.constant dense<0.000000e+00> : vector<72x128xf32>
    %29 = tpu.matmul %28, %26, %cst_29 {dimension_numbers = #tpu.dot_dimension_numbers<[1], [0], [0], [1], [0, 0, 1, 1], [], []>} : vector<72x72xf32>, vector<72x128xf32>, vector<72x128xf32> -> vector<72x128xf32>
    %30 = arith.addf %23, %29 : vector<72x128xf32>
    %c4 = arith.constant 4 : index
    %c0_30 = arith.constant 0 : index
    %c0_31 = arith.constant 0 : index
    %31 = vector.load %arg6[%c4, %c0_30, %c0_31] : memref<9x512x128xbf16, #tpu.memory_space<vmem>>, vector<1x512x128xbf16>
    %32 = vector.shape_cast %31 : vector<1x512x128xbf16> to vector<512x128xbf16>
    %cst_32 = arith.constant dense<0.000000e+00> : vector<72x128xf32>
    %33 = tpu.matmul %1, %32, %cst_32 {dimension_numbers = #tpu.dot_dimension_numbers<[1], [0], [0], [1], [0, 0, 1, 1], [], []>} : vector<72x512xbf16>, vector<512x128xbf16>, vector<72x128xf32> -> vector<72x128xf32>
    %c4_33 = arith.constant 4 : index
    %c0_34 = arith.constant 0 : index
    %c0_35 = arith.constant 0 : index
    %34 = vector.load %arg2[%c4_33, %c0_34, %c0_35] : memref<9x72x72xf32, #tpu.memory_space<vmem>>, vector<1x72x72xf32>
    %35 = vector.shape_cast %34 : vector<1x72x72xf32> to vector<72x72xf32>
    %cst_36 = arith.constant dense<0.000000e+00> : vector<72x128xf32>
    %36 = tpu.matmul %35, %33, %cst_36 {dimension_numbers = #tpu.dot_dimension_numbers<[1], [0], [0], [1], [0, 0, 1, 1], [], []>} : vector<72x72xf32>, vector<72x128xf32>, vector<72x128xf32> -> vector<72x128xf32>
    %37 = arith.addf %30, %36 : vector<72x128xf32>
    %c5 = arith.constant 5 : index
    %c0_37 = arith.constant 0 : index
    %c0_38 = arith.constant 0 : index
    %38 = vector.load %arg6[%c5, %c0_37, %c0_38] : memref<9x512x128xbf16, #tpu.memory_space<vmem>>, vector<1x512x128xbf16>
    %39 = vector.shape_cast %38 : vector<1x512x128xbf16> to vector<512x128xbf16>
    %cst_39 = arith.constant dense<0.000000e+00> : vector<72x128xf32>
    %40 = tpu.matmul %1, %39, %cst_39 {dimension_numbers = #tpu.dot_dimension_numbers<[1], [0], [0], [1], [0, 0, 1, 1], [], []>} : vector<72x512xbf16>, vector<512x128xbf16>, vector<72x128xf32> -> vector<72x128xf32>
    %c5_40 = arith.constant 5 : index
    %c0_41 = arith.constant 0 : index
    %c0_42 = arith.constant 0 : index
    %41 = vector.load %arg2[%c5_40, %c0_41, %c0_42] : memref<9x72x72xf32, #tpu.memory_space<vmem>>, vector<1x72x72xf32>
    %42 = vector.shape_cast %41 : vector<1x72x72xf32> to vector<72x72xf32>
    %cst_43 = arith.constant dense<0.000000e+00> : vector<72x128xf32>
    %43 = tpu.matmul %42, %40, %cst_43 {dimension_numbers = #tpu.dot_dimension_numbers<[1], [0], [0], [1], [0, 0, 1, 1], [], []>} : vector<72x72xf32>, vector<72x128xf32>, vector<72x128xf32> -> vector<72x128xf32>
    %44 = arith.addf %37, %43 : vector<72x128xf32>
    %c6 = arith.constant 6 : index
    %c0_44 = arith.constant 0 : index
    %c0_45 = arith.constant 0 : index
    %45 = vector.load %arg6[%c6, %c0_44, %c0_45] : memref<9x512x128xbf16, #tpu.memory_space<vmem>>, vector<1x512x128xbf16>
    %46 = vector.shape_cast %45 : vector<1x512x128xbf16> to vector<512x128xbf16>
    %cst_46 = arith.constant dense<0.000000e+00> : vector<72x128xf32>
    %47 = tpu.matmul %1, %46, %cst_46 {dimension_numbers = #tpu.dot_dimension_numbers<[1], [0], [0], [1], [0, 0, 1, 1], [], []>} : vector<72x512xbf16>, vector<512x128xbf16>, vector<72x128xf32> -> vector<72x128xf32>
    %c6_47 = arith.constant 6 : index
    %c0_48 = arith.constant 0 : index
    %c0_49 = arith.constant 0 : index
    %48 = vector.load %arg2[%c6_47, %c0_48, %c0_49] : memref<9x72x72xf32, #tpu.memory_space<vmem>>, vector<1x72x72xf32>
    %49 = vector.shape_cast %48 : vector<1x72x72xf32> to vector<72x72xf32>
    %cst_50 = arith.constant dense<0.000000e+00> : vector<72x128xf32>
    %50 = tpu.matmul %49, %47, %cst_50 {dimension_numbers = #tpu.dot_dimension_numbers<[1], [0], [0], [1], [0, 0, 1, 1], [], []>} : vector<72x72xf32>, vector<72x128xf32>, vector<72x128xf32> -> vector<72x128xf32>
    %51 = arith.addf %44, %50 : vector<72x128xf32>
    %c7 = arith.constant 7 : index
    %c0_51 = arith.constant 0 : index
    %c0_52 = arith.constant 0 : index
    %52 = vector.load %arg6[%c7, %c0_51, %c0_52] : memref<9x512x128xbf16, #tpu.memory_space<vmem>>, vector<1x512x128xbf16>
    %53 = vector.shape_cast %52 : vector<1x512x128xbf16> to vector<512x128xbf16>
    %cst_53 = arith.constant dense<0.000000e+00> : vector<72x128xf32>
    %54 = tpu.matmul %1, %53, %cst_53 {dimension_numbers = #tpu.dot_dimension_numbers<[1], [0], [0], [1], [0, 0, 1, 1], [], []>} : vector<72x512xbf16>, vector<512x128xbf16>, vector<72x128xf32> -> vector<72x128xf32>
    %c7_54 = arith.constant 7 : index
    %c0_55 = arith.constant 0 : index
    %c0_56 = arith.constant 0 : index
    %55 = vector.load %arg2[%c7_54, %c0_55, %c0_56] : memref<9x72x72xf32, #tpu.memory_space<vmem>>, vector<1x72x72xf32>
    %56 = vector.shape_cast %55 : vector<1x72x72xf32> to vector<72x72xf32>
    %cst_57 = arith.constant dense<0.000000e+00> : vector<72x128xf32>
    %57 = tpu.matmul %56, %54, %cst_57 {dimension_numbers = #tpu.dot_dimension_numbers<[1], [0], [0], [1], [0, 0, 1, 1], [], []>} : vector<72x72xf32>, vector<72x128xf32>, vector<72x128xf32> -> vector<72x128xf32>
    %58 = arith.addf %51, %57 : vector<72x128xf32>
    %c8 = arith.constant 8 : index
    %c0_58 = arith.constant 0 : index
    %c0_59 = arith.constant 0 : index
    %59 = vector.load %arg6[%c8, %c0_58, %c0_59] : memref<9x512x128xbf16, #tpu.memory_space<vmem>>, vector<1x512x128xbf16>
    %60 = vector.shape_cast %59 : vector<1x512x128xbf16> to vector<512x128xbf16>
    %cst_60 = arith.constant dense<0.000000e+00> : vector<72x128xf32>
    %61 = tpu.matmul %1, %60, %cst_60 {dimension_numbers = #tpu.dot_dimension_numbers<[1], [0], [0], [1], [0, 0, 1, 1], [], []>} : vector<72x512xbf16>, vector<512x128xbf16>, vector<72x128xf32> -> vector<72x128xf32>
    %c8_61 = arith.constant 8 : index
    %c0_62 = arith.constant 0 : index
    %c0_63 = arith.constant 0 : index
    %62 = vector.load %arg2[%c8_61, %c0_62, %c0_63] : memref<9x72x72xf32, #tpu.memory_space<vmem>>, vector<1x72x72xf32>
    %63 = vector.shape_cast %62 : vector<1x72x72xf32> to vector<72x72xf32>
    %cst_64 = arith.constant dense<0.000000e+00> : vector<72x128xf32>
    %64 = tpu.matmul %63, %61, %cst_64 {dimension_numbers = #tpu.dot_dimension_numbers<[1], [0], [0], [1], [0, 0, 1, 1], [], []>} : vector<72x72xf32>, vector<72x128xf32>, vector<72x128xf32> -> vector<72x128xf32>
    %65 = arith.addf %58, %64 : vector<72x128xf32>
    %c0_65 = arith.constant 0 : index
    %c0_66 = arith.constant 0 : index
    %66 = vector.load %arg7[%c0_65, %c0_66] : memref<1x128xf32, #tpu.memory_space<vmem>>, vector<1x128xf32>
    %67 = vector.broadcast %66 : vector<1x128xf32> to vector<72x128xf32>
    %68 = arith.addf %65, %67 : vector<72x128xf32>
    %cst_67 = arith.constant 2.000000e-01 : f32
    %69 = vector.broadcast %cst_67 : f32 to vector<72x128xf32>
    %70 = arith.mulf %69, %68 : vector<72x128xf32>
    %71 = arith.maximumf %68, %70 : vector<72x128xf32>
    %72 = arith.truncf %71 : vector<72x128xf32> to vector<72x128xbf16>
    %cst_68 = arith.constant 0.000000e+00 : f32
    %73 = vector.broadcast %cst_68 : f32 to vector<72x64xf32>
    %c0_69 = arith.constant 0 : index
    %c0_70 = arith.constant 0 : index
    %c0_71 = arith.constant 0 : index
    %74 = vector.load %arg8[%c0_69, %c0_70, %c0_71] : memref<9x128x64xbf16, #tpu.memory_space<vmem>>, vector<1x128x64xbf16>
    %75 = vector.shape_cast %74 : vector<1x128x64xbf16> to vector<128x64xbf16>
    %cst_72 = arith.constant dense<0.000000e+00> : vector<72x64xf32>
    %76 = tpu.matmul %72, %75, %cst_72 {dimension_numbers = #tpu.dot_dimension_numbers<[1], [0], [0], [1], [0, 0, 1, 1], [], []>} : vector<72x128xbf16>, vector<128x64xbf16>, vector<72x64xf32> -> vector<72x64xf32>
    %c0_73 = arith.constant 0 : index
    %c0_74 = arith.constant 0 : index
    %c0_75 = arith.constant 0 : index
    %77 = vector.load %arg2[%c0_73, %c0_74, %c0_75] : memref<9x72x72xf32, #tpu.memory_space<vmem>>, vector<1x72x72xf32>
    %78 = vector.shape_cast %77 : vector<1x72x72xf32> to vector<72x72xf32>
    %cst_76 = arith.constant dense<0.000000e+00> : vector<72x64xf32>
    %79 = tpu.matmul %78, %76, %cst_76 {dimension_numbers = #tpu.dot_dimension_numbers<[1], [0], [0], [1], [0, 0, 1, 1], [], []>} : vector<72x72xf32>, vector<72x64xf32>, vector<72x64xf32> -> vector<72x64xf32>
    %80 = arith.addf %73, %79 : vector<72x64xf32>
    %c1_77 = arith.constant 1 : index
    %c0_78 = arith.constant 0 : index
    %c0_79 = arith.constant 0 : index
    %81 = vector.load %arg8[%c1_77, %c0_78, %c0_79] : memref<9x128x64xbf16, #tpu.memory_space<vmem>>, vector<1x128x64xbf16>
    %82 = vector.shape_cast %81 : vector<1x128x64xbf16> to vector<128x64xbf16>
    %cst_80 = arith.constant dense<0.000000e+00> : vector<72x64xf32>
    %83 = tpu.matmul %72, %82, %cst_80 {dimension_numbers = #tpu.dot_dimension_numbers<[1], [0], [0], [1], [0, 0, 1, 1], [], []>} : vector<72x128xbf16>, vector<128x64xbf16>, vector<72x64xf32> -> vector<72x64xf32>
    %c1_81 = arith.constant 1 : index
    %c0_82 = arith.constant 0 : index
    %c0_83 = arith.constant 0 : index
    %84 = vector.load %arg2[%c1_81, %c0_82, %c0_83] : memref<9x72x72xf32, #tpu.memory_space<vmem>>, vector<1x72x72xf32>
    %85 = vector.shape_cast %84 : vector<1x72x72xf32> to vector<72x72xf32>
    %cst_84 = arith.constant dense<0.000000e+00> : vector<72x64xf32>
    %86 = tpu.matmul %85, %83, %cst_84 {dimension_numbers = #tpu.dot_dimension_numbers<[1], [0], [0], [1], [0, 0, 1, 1], [], []>} : vector<72x72xf32>, vector<72x64xf32>, vector<72x64xf32> -> vector<72x64xf32>
    %87 = arith.addf %80, %86 : vector<72x64xf32>
    %c2_85 = arith.constant 2 : index
    %c0_86 = arith.constant 0 : index
    %c0_87 = arith.constant 0 : index
    %88 = vector.load %arg8[%c2_85, %c0_86, %c0_87] : memref<9x128x64xbf16, #tpu.memory_space<vmem>>, vector<1x128x64xbf16>
    %89 = vector.shape_cast %88 : vector<1x128x64xbf16> to vector<128x64xbf16>
    %cst_88 = arith.constant dense<0.000000e+00> : vector<72x64xf32>
    %90 = tpu.matmul %72, %89, %cst_88 {dimension_numbers = #tpu.dot_dimension_numbers<[1], [0], [0], [1], [0, 0, 1, 1], [], []>} : vector<72x128xbf16>, vector<128x64xbf16>, vector<72x64xf32> -> vector<72x64xf32>
    %c2_89 = arith.constant 2 : index
    %c0_90 = arith.constant 0 : index
    %c0_91 = arith.constant 0 : index
    %91 = vector.load %arg2[%c2_89, %c0_90, %c0_91] : memref<9x72x72xf32, #tpu.memory_space<vmem>>, vector<1x72x72xf32>
    %92 = vector.shape_cast %91 : vector<1x72x72xf32> to vector<72x72xf32>
    %cst_92 = arith.constant dense<0.000000e+00> : vector<72x64xf32>
    %93 = tpu.matmul %92, %90, %cst_92 {dimension_numbers = #tpu.dot_dimension_numbers<[1], [0], [0], [1], [0, 0, 1, 1], [], []>} : vector<72x72xf32>, vector<72x64xf32>, vector<72x64xf32> -> vector<72x64xf32>
    %94 = arith.addf %87, %93 : vector<72x64xf32>
    %c3_93 = arith.constant 3 : index
    %c0_94 = arith.constant 0 : index
    %c0_95 = arith.constant 0 : index
    %95 = vector.load %arg8[%c3_93, %c0_94, %c0_95] : memref<9x128x64xbf16, #tpu.memory_space<vmem>>, vector<1x128x64xbf16>
    %96 = vector.shape_cast %95 : vector<1x128x64xbf16> to vector<128x64xbf16>
    %cst_96 = arith.constant dense<0.000000e+00> : vector<72x64xf32>
    %97 = tpu.matmul %72, %96, %cst_96 {dimension_numbers = #tpu.dot_dimension_numbers<[1], [0], [0], [1], [0, 0, 1, 1], [], []>} : vector<72x128xbf16>, vector<128x64xbf16>, vector<72x64xf32> -> vector<72x64xf32>
    %c3_97 = arith.constant 3 : index
    %c0_98 = arith.constant 0 : index
    %c0_99 = arith.constant 0 : index
    %98 = vector.load %arg2[%c3_97, %c0_98, %c0_99] : memref<9x72x72xf32, #tpu.memory_space<vmem>>, vector<1x72x72xf32>
    %99 = vector.shape_cast %98 : vector<1x72x72xf32> to vector<72x72xf32>
    %cst_100 = arith.constant dense<0.000000e+00> : vector<72x64xf32>
    %100 = tpu.matmul %99, %97, %cst_100 {dimension_numbers = #tpu.dot_dimension_numbers<[1], [0], [0], [1], [0, 0, 1, 1], [], []>} : vector<72x72xf32>, vector<72x64xf32>, vector<72x64xf32> -> vector<72x64xf32>
    %101 = arith.addf %94, %100 : vector<72x64xf32>
    %c4_101 = arith.constant 4 : index
    %c0_102 = arith.constant 0 : index
    %c0_103 = arith.constant 0 : index
    %102 = vector.load %arg8[%c4_101, %c0_102, %c0_103] : memref<9x128x64xbf16, #tpu.memory_space<vmem>>, vector<1x128x64xbf16>
    %103 = vector.shape_cast %102 : vector<1x128x64xbf16> to vector<128x64xbf16>
    %cst_104 = arith.constant dense<0.000000e+00> : vector<72x64xf32>
    %104 = tpu.matmul %72, %103, %cst_104 {dimension_numbers = #tpu.dot_dimension_numbers<[1], [0], [0], [1], [0, 0, 1, 1], [], []>} : vector<72x128xbf16>, vector<128x64xbf16>, vector<72x64xf32> -> vector<72x64xf32>
    %c4_105 = arith.constant 4 : index
    %c0_106 = arith.constant 0 : index
    %c0_107 = arith.constant 0 : index
    %105 = vector.load %arg2[%c4_105, %c0_106, %c0_107] : memref<9x72x72xf32, #tpu.memory_space<vmem>>, vector<1x72x72xf32>
    %106 = vector.shape_cast %105 : vector<1x72x72xf32> to vector<72x72xf32>
    %cst_108 = arith.constant dense<0.000000e+00> : vector<72x64xf32>
    %107 = tpu.matmul %106, %104, %cst_108 {dimension_numbers = #tpu.dot_dimension_numbers<[1], [0], [0], [1], [0, 0, 1, 1], [], []>} : vector<72x72xf32>, vector<72x64xf32>, vector<72x64xf32> -> vector<72x64xf32>
    %108 = arith.addf %101, %107 : vector<72x64xf32>
    %c5_109 = arith.constant 5 : index
    %c0_110 = arith.constant 0 : index
    %c0_111 = arith.constant 0 : index
    %109 = vector.load %arg8[%c5_109, %c0_110, %c0_111] : memref<9x128x64xbf16, #tpu.memory_space<vmem>>, vector<1x128x64xbf16>
    %110 = vector.shape_cast %109 : vector<1x128x64xbf16> to vector<128x64xbf16>
    %cst_112 = arith.constant dense<0.000000e+00> : vector<72x64xf32>
    %111 = tpu.matmul %72, %110, %cst_112 {dimension_numbers = #tpu.dot_dimension_numbers<[1], [0], [0], [1], [0, 0, 1, 1], [], []>} : vector<72x128xbf16>, vector<128x64xbf16>, vector<72x64xf32> -> vector<72x64xf32>
    %c5_113 = arith.constant 5 : index
    %c0_114 = arith.constant 0 : index
    %c0_115 = arith.constant 0 : index
    %112 = vector.load %arg2[%c5_113, %c0_114, %c0_115] : memref<9x72x72xf32, #tpu.memory_space<vmem>>, vector<1x72x72xf32>
    %113 = vector.shape_cast %112 : vector<1x72x72xf32> to vector<72x72xf32>
    %cst_116 = arith.constant dense<0.000000e+00> : vector<72x64xf32>
    %114 = tpu.matmul %113, %111, %cst_116 {dimension_numbers = #tpu.dot_dimension_numbers<[1], [0], [0], [1], [0, 0, 1, 1], [], []>} : vector<72x72xf32>, vector<72x64xf32>, vector<72x64xf32> -> vector<72x64xf32>
    %115 = arith.addf %108, %114 : vector<72x64xf32>
    %c6_117 = arith.constant 6 : index
    %c0_118 = arith.constant 0 : index
    %c0_119 = arith.constant 0 : index
    %116 = vector.load %arg8[%c6_117, %c0_118, %c0_119] : memref<9x128x64xbf16, #tpu.memory_space<vmem>>, vector<1x128x64xbf16>
    %117 = vector.shape_cast %116 : vector<1x128x64xbf16> to vector<128x64xbf16>
    %cst_120 = arith.constant dense<0.000000e+00> : vector<72x64xf32>
    %118 = tpu.matmul %72, %117, %cst_120 {dimension_numbers = #tpu.dot_dimension_numbers<[1], [0], [0], [1], [0, 0, 1, 1], [], []>} : vector<72x128xbf16>, vector<128x64xbf16>, vector<72x64xf32> -> vector<72x64xf32>
    %c6_121 = arith.constant 6 : index
    %c0_122 = arith.constant 0 : index
    %c0_123 = arith.constant 0 : index
    %119 = vector.load %arg2[%c6_121, %c0_122, %c0_123] : memref<9x72x72xf32, #tpu.memory_space<vmem>>, vector<1x72x72xf32>
    %120 = vector.shape_cast %119 : vector<1x72x72xf32> to vector<72x72xf32>
    %cst_124 = arith.constant dense<0.000000e+00> : vector<72x64xf32>
    %121 = tpu.matmul %120, %118, %cst_124 {dimension_numbers = #tpu.dot_dimension_numbers<[1], [0], [0], [1], [0, 0, 1, 1], [], []>} : vector<72x72xf32>, vector<72x64xf32>, vector<72x64xf32> -> vector<72x64xf32>
    %122 = arith.addf %115, %121 : vector<72x64xf32>
    %c7_125 = arith.constant 7 : index
    %c0_126 = arith.constant 0 : index
    %c0_127 = arith.constant 0 : index
    %123 = vector.load %arg8[%c7_125, %c0_126, %c0_127] : memref<9x128x64xbf16, #tpu.memory_space<vmem>>, vector<1x128x64xbf16>
    %124 = vector.shape_cast %123 : vector<1x128x64xbf16> to vector<128x64xbf16>
    %cst_128 = arith.constant dense<0.000000e+00> : vector<72x64xf32>
    %125 = tpu.matmul %72, %124, %cst_128 {dimension_numbers = #tpu.dot_dimension_numbers<[1], [0], [0], [1], [0, 0, 1, 1], [], []>} : vector<72x128xbf16>, vector<128x64xbf16>, vector<72x64xf32> -> vector<72x64xf32>
    %c7_129 = arith.constant 7 : index
    %c0_130 = arith.constant 0 : index
    %c0_131 = arith.constant 0 : index
    %126 = vector.load %arg2[%c7_129, %c0_130, %c0_131] : memref<9x72x72xf32, #tpu.memory_space<vmem>>, vector<1x72x72xf32>
    %127 = vector.shape_cast %126 : vector<1x72x72xf32> to vector<72x72xf32>
    %cst_132 = arith.constant dense<0.000000e+00> : vector<72x64xf32>
    %128 = tpu.matmul %127, %125, %cst_132 {dimension_numbers = #tpu.dot_dimension_numbers<[1], [0], [0], [1], [0, 0, 1, 1], [], []>} : vector<72x72xf32>, vector<72x64xf32>, vector<72x64xf32> -> vector<72x64xf32>
    %129 = arith.addf %122, %128 : vector<72x64xf32>
    %c8_133 = arith.constant 8 : index
    %c0_134 = arith.constant 0 : index
    %c0_135 = arith.constant 0 : index
    %130 = vector.load %arg8[%c8_133, %c0_134, %c0_135] : memref<9x128x64xbf16, #tpu.memory_space<vmem>>, vector<1x128x64xbf16>
    %131 = vector.shape_cast %130 : vector<1x128x64xbf16> to vector<128x64xbf16>
    %cst_136 = arith.constant dense<0.000000e+00> : vector<72x64xf32>
    %132 = tpu.matmul %72, %131, %cst_136 {dimension_numbers = #tpu.dot_dimension_numbers<[1], [0], [0], [1], [0, 0, 1, 1], [], []>} : vector<72x128xbf16>, vector<128x64xbf16>, vector<72x64xf32> -> vector<72x64xf32>
    %c8_137 = arith.constant 8 : index
    %c0_138 = arith.constant 0 : index
    %c0_139 = arith.constant 0 : index
    %133 = vector.load %arg2[%c8_137, %c0_138, %c0_139] : memref<9x72x72xf32, #tpu.memory_space<vmem>>, vector<1x72x72xf32>
    %134 = vector.shape_cast %133 : vector<1x72x72xf32> to vector<72x72xf32>
    %cst_140 = arith.constant dense<0.000000e+00> : vector<72x64xf32>
    %135 = tpu.matmul %134, %132, %cst_140 {dimension_numbers = #tpu.dot_dimension_numbers<[1], [0], [0], [1], [0, 0, 1, 1], [], []>} : vector<72x72xf32>, vector<72x64xf32>, vector<72x64xf32> -> vector<72x64xf32>
    %136 = arith.addf %129, %135 : vector<72x64xf32>
    %c0_141 = arith.constant 0 : index
    %c0_142 = arith.constant 0 : index
    %137 = vector.load %arg9[%c0_141, %c0_142] : memref<1x64xf32, #tpu.memory_space<vmem>>, vector<1x64xf32>
    %138 = vector.broadcast %137 : vector<1x64xf32> to vector<72x64xf32>
    %139 = arith.addf %136, %138 : vector<72x64xf32>
    %cst_143 = arith.constant 2.000000e-01 : f32
    %140 = vector.broadcast %cst_143 : f32 to vector<72x64xf32>
    %141 = arith.mulf %140, %139 : vector<72x64xf32>
    %142 = arith.maximumf %139, %141 : vector<72x64xf32>
    %c0_144 = arith.constant 0 : index
    %c0_145 = arith.constant 0 : index
    %c0_146 = arith.constant 0 : index
    %143 = vector.load %arg4[%c0_144, %c0_145, %c0_146] : memref<4x32x72xf32, #tpu.memory_space<vmem>>, vector<1x32x72xf32>
    %144 = vector.shape_cast %143 : vector<1x32x72xf32> to vector<32x72xf32>
    %cst_147 = arith.constant dense<0.000000e+00> : vector<32x64xf32>
    %145 = tpu.matmul %144, %142, %cst_147 {dimension_numbers = #tpu.dot_dimension_numbers<[1], [0], [0], [1], [0, 0, 1, 1], [], []>} : vector<32x72xf32>, vector<72x64xf32>, vector<32x64xf32> -> vector<32x64xf32>
    %c1_148 = arith.constant 1 : index
    %c0_149 = arith.constant 0 : index
    %c0_150 = arith.constant 0 : index
    %146 = vector.load %arg4[%c1_148, %c0_149, %c0_150] : memref<4x32x72xf32, #tpu.memory_space<vmem>>, vector<1x32x72xf32>
    %147 = vector.shape_cast %146 : vector<1x32x72xf32> to vector<32x72xf32>
    %cst_151 = arith.constant dense<0.000000e+00> : vector<32x64xf32>
    %148 = tpu.matmul %147, %142, %cst_151 {dimension_numbers = #tpu.dot_dimension_numbers<[1], [0], [0], [1], [0, 0, 1, 1], [], []>} : vector<32x72xf32>, vector<72x64xf32>, vector<32x64xf32> -> vector<32x64xf32>
    %149 = arith.maximumf %145, %148 : vector<32x64xf32>
    %c2_152 = arith.constant 2 : index
    %c0_153 = arith.constant 0 : index
    %c0_154 = arith.constant 0 : index
    %150 = vector.load %arg4[%c2_152, %c0_153, %c0_154] : memref<4x32x72xf32, #tpu.memory_space<vmem>>, vector<1x32x72xf32>
    %151 = vector.shape_cast %150 : vector<1x32x72xf32> to vector<32x72xf32>
    %cst_155 = arith.constant dense<0.000000e+00> : vector<32x64xf32>
    %152 = tpu.matmul %151, %142, %cst_155 {dimension_numbers = #tpu.dot_dimension_numbers<[1], [0], [0], [1], [0, 0, 1, 1], [], []>} : vector<32x72xf32>, vector<72x64xf32>, vector<32x64xf32> -> vector<32x64xf32>
    %153 = arith.maximumf %149, %152 : vector<32x64xf32>
    %c3_156 = arith.constant 3 : index
    %c0_157 = arith.constant 0 : index
    %c0_158 = arith.constant 0 : index
    %154 = vector.load %arg4[%c3_156, %c0_157, %c0_158] : memref<4x32x72xf32, #tpu.memory_space<vmem>>, vector<1x32x72xf32>
    %155 = vector.shape_cast %154 : vector<1x32x72xf32> to vector<32x72xf32>
    %cst_159 = arith.constant dense<0.000000e+00> : vector<32x64xf32>
    %156 = tpu.matmul %155, %142, %cst_159 {dimension_numbers = #tpu.dot_dimension_numbers<[1], [0], [0], [1], [0, 0, 1, 1], [], []>} : vector<32x72xf32>, vector<72x64xf32>, vector<32x64xf32> -> vector<32x64xf32>
    %157 = arith.maximumf %153, %156 : vector<32x64xf32>
    %158 = arith.truncf %157 : vector<32x64xf32> to vector<32x64xbf16>
    %cst_160 = arith.constant 0.000000e+00 : f32
    %159 = vector.broadcast %cst_160 : f32 to vector<32x16xf32>
    %c0_161 = arith.constant 0 : index
    %c0_162 = arith.constant 0 : index
    %c0_163 = arith.constant 0 : index
    %160 = vector.load %arg10[%c0_161, %c0_162, %c0_163] : memref<9x64x16xbf16, #tpu.memory_space<vmem>>, vector<1x64x16xbf16>
    %161 = vector.shape_cast %160 : vector<1x64x16xbf16> to vector<64x16xbf16>
    %cst_164 = arith.constant dense<0.000000e+00> : vector<32x16xf32>
    %162 = tpu.matmul %158, %161, %cst_164 {dimension_numbers = #tpu.dot_dimension_numbers<[1], [0], [0], [1], [0, 0, 1, 1], [], []>} : vector<32x64xbf16>, vector<64x16xbf16>, vector<32x16xf32> -> vector<32x16xf32>
    %c0_165 = arith.constant 0 : index
    %c0_166 = arith.constant 0 : index
    %c0_167 = arith.constant 0 : index
    %163 = vector.load %arg3[%c0_165, %c0_166, %c0_167] : memref<9x32x32xf32, #tpu.memory_space<vmem>>, vector<1x32x32xf32>
    %164 = vector.shape_cast %163 : vector<1x32x32xf32> to vector<32x32xf32>
    %cst_168 = arith.constant dense<0.000000e+00> : vector<32x16xf32>
    %165 = tpu.matmul %164, %162, %cst_168 {dimension_numbers = #tpu.dot_dimension_numbers<[1], [0], [0], [1], [0, 0, 1, 1], [], []>} : vector<32x32xf32>, vector<32x16xf32>, vector<32x16xf32> -> vector<32x16xf32>
    %166 = arith.addf %159, %165 : vector<32x16xf32>
    %c1_169 = arith.constant 1 : index
    %c0_170 = arith.constant 0 : index
    %c0_171 = arith.constant 0 : index
    %167 = vector.load %arg10[%c1_169, %c0_170, %c0_171] : memref<9x64x16xbf16, #tpu.memory_space<vmem>>, vector<1x64x16xbf16>
    %168 = vector.shape_cast %167 : vector<1x64x16xbf16> to vector<64x16xbf16>
    %cst_172 = arith.constant dense<0.000000e+00> : vector<32x16xf32>
    %169 = tpu.matmul %158, %168, %cst_172 {dimension_numbers = #tpu.dot_dimension_numbers<[1], [0], [0], [1], [0, 0, 1, 1], [], []>} : vector<32x64xbf16>, vector<64x16xbf16>, vector<32x16xf32> -> vector<32x16xf32>
    %c1_173 = arith.constant 1 : index
    %c0_174 = arith.constant 0 : index
    %c0_175 = arith.constant 0 : index
    %170 = vector.load %arg3[%c1_173, %c0_174, %c0_175] : memref<9x32x32xf32, #tpu.memory_space<vmem>>, vector<1x32x32xf32>
    %171 = vector.shape_cast %170 : vector<1x32x32xf32> to vector<32x32xf32>
    %cst_176 = arith.constant dense<0.000000e+00> : vector<32x16xf32>
    %172 = tpu.matmul %171, %169, %cst_176 {dimension_numbers = #tpu.dot_dimension_numbers<[1], [0], [0], [1], [0, 0, 1, 1], [], []>} : vector<32x32xf32>, vector<32x16xf32>, vector<32x16xf32> -> vector<32x16xf32>
    %173 = arith.addf %166, %172 : vector<32x16xf32>
    %c2_177 = arith.constant 2 : index
    %c0_178 = arith.constant 0 : index
    %c0_179 = arith.constant 0 : index
    %174 = vector.load %arg10[%c2_177, %c0_178, %c0_179] : memref<9x64x16xbf16, #tpu.memory_space<vmem>>, vector<1x64x16xbf16>
    %175 = vector.shape_cast %174 : vector<1x64x16xbf16> to vector<64x16xbf16>
    %cst_180 = arith.constant dense<0.000000e+00> : vector<32x16xf32>
    %176 = tpu.matmul %158, %175, %cst_180 {dimension_numbers = #tpu.dot_dimension_numbers<[1], [0], [0], [1], [0, 0, 1, 1], [], []>} : vector<32x64xbf16>, vector<64x16xbf16>, vector<32x16xf32> -> vector<32x16xf32>
    %c2_181 = arith.constant 2 : index
    %c0_182 = arith.constant 0 : index
    %c0_183 = arith.constant 0 : index
    %177 = vector.load %arg3[%c2_181, %c0_182, %c0_183] : memref<9x32x32xf32, #tpu.memory_space<vmem>>, vector<1x32x32xf32>
    %178 = vector.shape_cast %177 : vector<1x32x32xf32> to vector<32x32xf32>
    %cst_184 = arith.constant dense<0.000000e+00> : vector<32x16xf32>
    %179 = tpu.matmul %178, %176, %cst_184 {dimension_numbers = #tpu.dot_dimension_numbers<[1], [0], [0], [1], [0, 0, 1, 1], [], []>} : vector<32x32xf32>, vector<32x16xf32>, vector<32x16xf32> -> vector<32x16xf32>
    %180 = arith.addf %173, %179 : vector<32x16xf32>
    %c3_185 = arith.constant 3 : index
    %c0_186 = arith.constant 0 : index
    %c0_187 = arith.constant 0 : index
    %181 = vector.load %arg10[%c3_185, %c0_186, %c0_187] : memref<9x64x16xbf16, #tpu.memory_space<vmem>>, vector<1x64x16xbf16>
    %182 = vector.shape_cast %181 : vector<1x64x16xbf16> to vector<64x16xbf16>
    %cst_188 = arith.constant dense<0.000000e+00> : vector<32x16xf32>
    %183 = tpu.matmul %158, %182, %cst_188 {dimension_numbers = #tpu.dot_dimension_numbers<[1], [0], [0], [1], [0, 0, 1, 1], [], []>} : vector<32x64xbf16>, vector<64x16xbf16>, vector<32x16xf32> -> vector<32x16xf32>
    %c3_189 = arith.constant 3 : index
    %c0_190 = arith.constant 0 : index
    %c0_191 = arith.constant 0 : index
    %184 = vector.load %arg3[%c3_189, %c0_190, %c0_191] : memref<9x32x32xf32, #tpu.memory_space<vmem>>, vector<1x32x32xf32>
    %185 = vector.shape_cast %184 : vector<1x32x32xf32> to vector<32x32xf32>
    %cst_192 = arith.constant dense<0.000000e+00> : vector<32x16xf32>
    %186 = tpu.matmul %185, %183, %cst_192 {dimension_numbers = #tpu.dot_dimension_numbers<[1], [0], [0], [1], [0, 0, 1, 1], [], []>} : vector<32x32xf32>, vector<32x16xf32>, vector<32x16xf32> -> vector<32x16xf32>
    %187 = arith.addf %180, %186 : vector<32x16xf32>
    %c4_193 = arith.constant 4 : index
    %c0_194 = arith.constant 0 : index
    %c0_195 = arith.constant 0 : index
    %188 = vector.load %arg10[%c4_193, %c0_194, %c0_195] : memref<9x64x16xbf16, #tpu.memory_space<vmem>>, vector<1x64x16xbf16>
    %189 = vector.shape_cast %188 : vector<1x64x16xbf16> to vector<64x16xbf16>
    %cst_196 = arith.constant dense<0.000000e+00> : vector<32x16xf32>
    %190 = tpu.matmul %158, %189, %cst_196 {dimension_numbers = #tpu.dot_dimension_numbers<[1], [0], [0], [1], [0, 0, 1, 1], [], []>} : vector<32x64xbf16>, vector<64x16xbf16>, vector<32x16xf32> -> vector<32x16xf32>
    %c4_197 = arith.constant 4 : index
    %c0_198 = arith.constant 0 : index
    %c0_199 = arith.constant 0 : index
    %191 = vector.load %arg3[%c4_197, %c0_198, %c0_199] : memref<9x32x32xf32, #tpu.memory_space<vmem>>, vector<1x32x32xf32>
    %192 = vector.shape_cast %191 : vector<1x32x32xf32> to vector<32x32xf32>
    %cst_200 = arith.constant dense<0.000000e+00> : vector<32x16xf32>
    %193 = tpu.matmul %192, %190, %cst_200 {dimension_numbers = #tpu.dot_dimension_numbers<[1], [0], [0], [1], [0, 0, 1, 1], [], []>} : vector<32x32xf32>, vector<32x16xf32>, vector<32x16xf32> -> vector<32x16xf32>
    %194 = arith.addf %187, %193 : vector<32x16xf32>
    %c5_201 = arith.constant 5 : index
    %c0_202 = arith.constant 0 : index
    %c0_203 = arith.constant 0 : index
    %195 = vector.load %arg10[%c5_201, %c0_202, %c0_203] : memref<9x64x16xbf16, #tpu.memory_space<vmem>>, vector<1x64x16xbf16>
    %196 = vector.shape_cast %195 : vector<1x64x16xbf16> to vector<64x16xbf16>
    %cst_204 = arith.constant dense<0.000000e+00> : vector<32x16xf32>
    %197 = tpu.matmul %158, %196, %cst_204 {dimension_numbers = #tpu.dot_dimension_numbers<[1], [0], [0], [1], [0, 0, 1, 1], [], []>} : vector<32x64xbf16>, vector<64x16xbf16>, vector<32x16xf32> -> vector<32x16xf32>
    %c5_205 = arith.constant 5 : index
    %c0_206 = arith.constant 0 : index
    %c0_207 = arith.constant 0 : index
    %198 = vector.load %arg3[%c5_205, %c0_206, %c0_207] : memref<9x32x32xf32, #tpu.memory_space<vmem>>, vector<1x32x32xf32>
    %199 = vector.shape_cast %198 : vector<1x32x32xf32> to vector<32x32xf32>
    %cst_208 = arith.constant dense<0.000000e+00> : vector<32x16xf32>
    %200 = tpu.matmul %199, %197, %cst_208 {dimension_numbers = #tpu.dot_dimension_numbers<[1], [0], [0], [1], [0, 0, 1, 1], [], []>} : vector<32x32xf32>, vector<32x16xf32>, vector<32x16xf32> -> vector<32x16xf32>
    %201 = arith.addf %194, %200 : vector<32x16xf32>
    %c6_209 = arith.constant 6 : index
    %c0_210 = arith.constant 0 : index
    %c0_211 = arith.constant 0 : index
    %202 = vector.load %arg10[%c6_209, %c0_210, %c0_211] : memref<9x64x16xbf16, #tpu.memory_space<vmem>>, vector<1x64x16xbf16>
    %203 = vector.shape_cast %202 : vector<1x64x16xbf16> to vector<64x16xbf16>
    %cst_212 = arith.constant dense<0.000000e+00> : vector<32x16xf32>
    %204 = tpu.matmul %158, %203, %cst_212 {dimension_numbers = #tpu.dot_dimension_numbers<[1], [0], [0], [1], [0, 0, 1, 1], [], []>} : vector<32x64xbf16>, vector<64x16xbf16>, vector<32x16xf32> -> vector<32x16xf32>
    %c6_213 = arith.constant 6 : index
    %c0_214 = arith.constant 0 : index
    %c0_215 = arith.constant 0 : index
    %205 = vector.load %arg3[%c6_213, %c0_214, %c0_215] : memref<9x32x32xf32, #tpu.memory_space<vmem>>, vector<1x32x32xf32>
    %206 = vector.shape_cast %205 : vector<1x32x32xf32> to vector<32x32xf32>
    %cst_216 = arith.constant dense<0.000000e+00> : vector<32x16xf32>
    %207 = tpu.matmul %206, %204, %cst_216 {dimension_numbers = #tpu.dot_dimension_numbers<[1], [0], [0], [1], [0, 0, 1, 1], [], []>} : vector<32x32xf32>, vector<32x16xf32>, vector<32x16xf32> -> vector<32x16xf32>
    %208 = arith.addf %201, %207 : vector<32x16xf32>
    %c7_217 = arith.constant 7 : index
    %c0_218 = arith.constant 0 : index
    %c0_219 = arith.constant 0 : index
    %209 = vector.load %arg10[%c7_217, %c0_218, %c0_219] : memref<9x64x16xbf16, #tpu.memory_space<vmem>>, vector<1x64x16xbf16>
    %210 = vector.shape_cast %209 : vector<1x64x16xbf16> to vector<64x16xbf16>
    %cst_220 = arith.constant dense<0.000000e+00> : vector<32x16xf32>
    %211 = tpu.matmul %158, %210, %cst_220 {dimension_numbers = #tpu.dot_dimension_numbers<[1], [0], [0], [1], [0, 0, 1, 1], [], []>} : vector<32x64xbf16>, vector<64x16xbf16>, vector<32x16xf32> -> vector<32x16xf32>
    %c7_221 = arith.constant 7 : index
    %c0_222 = arith.constant 0 : index
    %c0_223 = arith.constant 0 : index
    %212 = vector.load %arg3[%c7_221, %c0_222, %c0_223] : memref<9x32x32xf32, #tpu.memory_space<vmem>>, vector<1x32x32xf32>
    %213 = vector.shape_cast %212 : vector<1x32x32xf32> to vector<32x32xf32>
    %cst_224 = arith.constant dense<0.000000e+00> : vector<32x16xf32>
    %214 = tpu.matmul %213, %211, %cst_224 {dimension_numbers = #tpu.dot_dimension_numbers<[1], [0], [0], [1], [0, 0, 1, 1], [], []>} : vector<32x32xf32>, vector<32x16xf32>, vector<32x16xf32> -> vector<32x16xf32>
    %215 = arith.addf %208, %214 : vector<32x16xf32>
    %c8_225 = arith.constant 8 : index
    %c0_226 = arith.constant 0 : index
    %c0_227 = arith.constant 0 : index
    %216 = vector.load %arg10[%c8_225, %c0_226, %c0_227] : memref<9x64x16xbf16, #tpu.memory_space<vmem>>, vector<1x64x16xbf16>
    %217 = vector.shape_cast %216 : vector<1x64x16xbf16> to vector<64x16xbf16>
    %cst_228 = arith.constant dense<0.000000e+00> : vector<32x16xf32>
    %218 = tpu.matmul %158, %217, %cst_228 {dimension_numbers = #tpu.dot_dimension_numbers<[1], [0], [0], [1], [0, 0, 1, 1], [], []>} : vector<32x64xbf16>, vector<64x16xbf16>, vector<32x16xf32> -> vector<32x16xf32>
    %c8_229 = arith.constant 8 : index
    %c0_230 = arith.constant 0 : index
    %c0_231 = arith.constant 0 : index
    %219 = vector.load %arg3[%c8_229, %c0_230, %c0_231] : memref<9x32x32xf32, #tpu.memory_space<vmem>>, vector<1x32x32xf32>
    %220 = vector.shape_cast %219 : vector<1x32x32xf32> to vector<32x32xf32>
    %cst_232 = arith.constant dense<0.000000e+00> : vector<32x16xf32>
    %221 = tpu.matmul %220, %218, %cst_232 {dimension_numbers = #tpu.dot_dimension_numbers<[1], [0], [0], [1], [0, 0, 1, 1], [], []>} : vector<32x32xf32>, vector<32x16xf32>, vector<32x16xf32> -> vector<32x16xf32>
    %222 = arith.addf %215, %221 : vector<32x16xf32>
    %c0_233 = arith.constant 0 : index
    %c0_234 = arith.constant 0 : index
    %223 = vector.load %arg11[%c0_233, %c0_234] : memref<1x16xf32, #tpu.memory_space<vmem>>, vector<1x16xf32>
    %224 = vector.broadcast %223 : vector<1x16xf32> to vector<32x16xf32>
    %225 = arith.addf %222, %224 : vector<32x16xf32>
    %cst_235 = arith.constant 2.000000e-01 : f32
    %226 = vector.broadcast %cst_235 : f32 to vector<32x16xf32>
    %227 = arith.mulf %226, %225 : vector<32x16xf32>
    %228 = arith.maximumf %225, %227 : vector<32x16xf32>
    %229 = arith.truncf %228 : vector<32x16xf32> to vector<32x16xbf16>
    %cst_236 = arith.constant 0.000000e+00 : f32
    %230 = vector.broadcast %cst_236 : f32 to vector<32x8xf32>
    %c0_237 = arith.constant 0 : index
    %c0_238 = arith.constant 0 : index
    %c0_239 = arith.constant 0 : index
    %231 = vector.load %arg12[%c0_237, %c0_238, %c0_239] : memref<9x16x8xbf16, #tpu.memory_space<vmem>>, vector<1x16x8xbf16>
    %232 = vector.shape_cast %231 : vector<1x16x8xbf16> to vector<16x8xbf16>
    %cst_240 = arith.constant dense<0.000000e+00> : vector<32x8xf32>
    %233 = tpu.matmul %229, %232, %cst_240 {dimension_numbers = #tpu.dot_dimension_numbers<[1], [0], [0], [1], [0, 0, 1, 1], [], []>} : vector<32x16xbf16>, vector<16x8xbf16>, vector<32x8xf32> -> vector<32x8xf32>
    %c0_241 = arith.constant 0 : index
    %c0_242 = arith.constant 0 : index
    %c0_243 = arith.constant 0 : index
    %234 = vector.load %arg3[%c0_241, %c0_242, %c0_243] : memref<9x32x32xf32, #tpu.memory_space<vmem>>, vector<1x32x32xf32>
    %235 = vector.shape_cast %234 : vector<1x32x32xf32> to vector<32x32xf32>
    %cst_244 = arith.constant dense<0.000000e+00> : vector<32x8xf32>
    %236 = tpu.matmul %235, %233, %cst_244 {dimension_numbers = #tpu.dot_dimension_numbers<[1], [0], [0], [1], [0, 0, 1, 1], [], []>} : vector<32x32xf32>, vector<32x8xf32>, vector<32x8xf32> -> vector<32x8xf32>
    %237 = arith.addf %230, %236 : vector<32x8xf32>
    %c1_245 = arith.constant 1 : index
    %c0_246 = arith.constant 0 : index
    %c0_247 = arith.constant 0 : index
    %238 = vector.load %arg12[%c1_245, %c0_246, %c0_247] : memref<9x16x8xbf16, #tpu.memory_space<vmem>>, vector<1x16x8xbf16>
    %239 = vector.shape_cast %238 : vector<1x16x8xbf16> to vector<16x8xbf16>
    %cst_248 = arith.constant dense<0.000000e+00> : vector<32x8xf32>
    %240 = tpu.matmul %229, %239, %cst_248 {dimension_numbers = #tpu.dot_dimension_numbers<[1], [0], [0], [1], [0, 0, 1, 1], [], []>} : vector<32x16xbf16>, vector<16x8xbf16>, vector<32x8xf32> -> vector<32x8xf32>
    %c1_249 = arith.constant 1 : index
    %c0_250 = arith.constant 0 : index
    %c0_251 = arith.constant 0 : index
    %241 = vector.load %arg3[%c1_249, %c0_250, %c0_251] : memref<9x32x32xf32, #tpu.memory_space<vmem>>, vector<1x32x32xf32>
    %242 = vector.shape_cast %241 : vector<1x32x32xf32> to vector<32x32xf32>
    %cst_252 = arith.constant dense<0.000000e+00> : vector<32x8xf32>
    %243 = tpu.matmul %242, %240, %cst_252 {dimension_numbers = #tpu.dot_dimension_numbers<[1], [0], [0], [1], [0, 0, 1, 1], [], []>} : vector<32x32xf32>, vector<32x8xf32>, vector<32x8xf32> -> vector<32x8xf32>
    %244 = arith.addf %237, %243 : vector<32x8xf32>
    %c2_253 = arith.constant 2 : index
    %c0_254 = arith.constant 0 : index
    %c0_255 = arith.constant 0 : index
    %245 = vector.load %arg12[%c2_253, %c0_254, %c0_255] : memref<9x16x8xbf16, #tpu.memory_space<vmem>>, vector<1x16x8xbf16>
    %246 = vector.shape_cast %245 : vector<1x16x8xbf16> to vector<16x8xbf16>
    %cst_256 = arith.constant dense<0.000000e+00> : vector<32x8xf32>
    %247 = tpu.matmul %229, %246, %cst_256 {dimension_numbers = #tpu.dot_dimension_numbers<[1], [0], [0], [1], [0, 0, 1, 1], [], []>} : vector<32x16xbf16>, vector<16x8xbf16>, vector<32x8xf32> -> vector<32x8xf32>
    %c2_257 = arith.constant 2 : index
    %c0_258 = arith.constant 0 : index
    %c0_259 = arith.constant 0 : index
    %248 = vector.load %arg3[%c2_257, %c0_258, %c0_259] : memref<9x32x32xf32, #tpu.memory_space<vmem>>, vector<1x32x32xf32>
    %249 = vector.shape_cast %248 : vector<1x32x32xf32> to vector<32x32xf32>
    %cst_260 = arith.constant dense<0.000000e+00> : vector<32x8xf32>
    %250 = tpu.matmul %249, %247, %cst_260 {dimension_numbers = #tpu.dot_dimension_numbers<[1], [0], [0], [1], [0, 0, 1, 1], [], []>} : vector<32x32xf32>, vector<32x8xf32>, vector<32x8xf32> -> vector<32x8xf32>
    %251 = arith.addf %244, %250 : vector<32x8xf32>
    %c3_261 = arith.constant 3 : index
    %c0_262 = arith.constant 0 : index
    %c0_263 = arith.constant 0 : index
    %252 = vector.load %arg12[%c3_261, %c0_262, %c0_263] : memref<9x16x8xbf16, #tpu.memory_space<vmem>>, vector<1x16x8xbf16>
    %253 = vector.shape_cast %252 : vector<1x16x8xbf16> to vector<16x8xbf16>
    %cst_264 = arith.constant dense<0.000000e+00> : vector<32x8xf32>
    %254 = tpu.matmul %229, %253, %cst_264 {dimension_numbers = #tpu.dot_dimension_numbers<[1], [0], [0], [1], [0, 0, 1, 1], [], []>} : vector<32x16xbf16>, vector<16x8xbf16>, vector<32x8xf32> -> vector<32x8xf32>
    %c3_265 = arith.constant 3 : index
    %c0_266 = arith.constant 0 : index
    %c0_267 = arith.constant 0 : index
    %255 = vector.load %arg3[%c3_265, %c0_266, %c0_267] : memref<9x32x32xf32, #tpu.memory_space<vmem>>, vector<1x32x32xf32>
    %256 = vector.shape_cast %255 : vector<1x32x32xf32> to vector<32x32xf32>
    %cst_268 = arith.constant dense<0.000000e+00> : vector<32x8xf32>
    %257 = tpu.matmul %256, %254, %cst_268 {dimension_numbers = #tpu.dot_dimension_numbers<[1], [0], [0], [1], [0, 0, 1, 1], [], []>} : vector<32x32xf32>, vector<32x8xf32>, vector<32x8xf32> -> vector<32x8xf32>
    %258 = arith.addf %251, %257 : vector<32x8xf32>
    %c4_269 = arith.constant 4 : index
    %c0_270 = arith.constant 0 : index
    %c0_271 = arith.constant 0 : index
    %259 = vector.load %arg12[%c4_269, %c0_270, %c0_271] : memref<9x16x8xbf16, #tpu.memory_space<vmem>>, vector<1x16x8xbf16>
    %260 = vector.shape_cast %259 : vector<1x16x8xbf16> to vector<16x8xbf16>
    %cst_272 = arith.constant dense<0.000000e+00> : vector<32x8xf32>
    %261 = tpu.matmul %229, %260, %cst_272 {dimension_numbers = #tpu.dot_dimension_numbers<[1], [0], [0], [1], [0, 0, 1, 1], [], []>} : vector<32x16xbf16>, vector<16x8xbf16>, vector<32x8xf32> -> vector<32x8xf32>
    %c4_273 = arith.constant 4 : index
    %c0_274 = arith.constant 0 : index
    %c0_275 = arith.constant 0 : index
    %262 = vector.load %arg3[%c4_273, %c0_274, %c0_275] : memref<9x32x32xf32, #tpu.memory_space<vmem>>, vector<1x32x32xf32>
    %263 = vector.shape_cast %262 : vector<1x32x32xf32> to vector<32x32xf32>
    %cst_276 = arith.constant dense<0.000000e+00> : vector<32x8xf32>
    %264 = tpu.matmul %263, %261, %cst_276 {dimension_numbers = #tpu.dot_dimension_numbers<[1], [0], [0], [1], [0, 0, 1, 1], [], []>} : vector<32x32xf32>, vector<32x8xf32>, vector<32x8xf32> -> vector<32x8xf32>
    %265 = arith.addf %258, %264 : vector<32x8xf32>
    %c5_277 = arith.constant 5 : index
    %c0_278 = arith.constant 0 : index
    %c0_279 = arith.constant 0 : index
    %266 = vector.load %arg12[%c5_277, %c0_278, %c0_279] : memref<9x16x8xbf16, #tpu.memory_space<vmem>>, vector<1x16x8xbf16>
    %267 = vector.shape_cast %266 : vector<1x16x8xbf16> to vector<16x8xbf16>
    %cst_280 = arith.constant dense<0.000000e+00> : vector<32x8xf32>
    %268 = tpu.matmul %229, %267, %cst_280 {dimension_numbers = #tpu.dot_dimension_numbers<[1], [0], [0], [1], [0, 0, 1, 1], [], []>} : vector<32x16xbf16>, vector<16x8xbf16>, vector<32x8xf32> -> vector<32x8xf32>
    %c5_281 = arith.constant 5 : index
    %c0_282 = arith.constant 0 : index
    %c0_283 = arith.constant 0 : index
    %269 = vector.load %arg3[%c5_281, %c0_282, %c0_283] : memref<9x32x32xf32, #tpu.memory_space<vmem>>, vector<1x32x32xf32>
    %270 = vector.shape_cast %269 : vector<1x32x32xf32> to vector<32x32xf32>
    %cst_284 = arith.constant dense<0.000000e+00> : vector<32x8xf32>
    %271 = tpu.matmul %270, %268, %cst_284 {dimension_numbers = #tpu.dot_dimension_numbers<[1], [0], [0], [1], [0, 0, 1, 1], [], []>} : vector<32x32xf32>, vector<32x8xf32>, vector<32x8xf32> -> vector<32x8xf32>
    %272 = arith.addf %265, %271 : vector<32x8xf32>
    %c6_285 = arith.constant 6 : index
    %c0_286 = arith.constant 0 : index
    %c0_287 = arith.constant 0 : index
    %273 = vector.load %arg12[%c6_285, %c0_286, %c0_287] : memref<9x16x8xbf16, #tpu.memory_space<vmem>>, vector<1x16x8xbf16>
    %274 = vector.shape_cast %273 : vector<1x16x8xbf16> to vector<16x8xbf16>
    %cst_288 = arith.constant dense<0.000000e+00> : vector<32x8xf32>
    %275 = tpu.matmul %229, %274, %cst_288 {dimension_numbers = #tpu.dot_dimension_numbers<[1], [0], [0], [1], [0, 0, 1, 1], [], []>} : vector<32x16xbf16>, vector<16x8xbf16>, vector<32x8xf32> -> vector<32x8xf32>
    %c6_289 = arith.constant 6 : index
    %c0_290 = arith.constant 0 : index
    %c0_291 = arith.constant 0 : index
    %276 = vector.load %arg3[%c6_289, %c0_290, %c0_291] : memref<9x32x32xf32, #tpu.memory_space<vmem>>, vector<1x32x32xf32>
    %277 = vector.shape_cast %276 : vector<1x32x32xf32> to vector<32x32xf32>
    %cst_292 = arith.constant dense<0.000000e+00> : vector<32x8xf32>
    %278 = tpu.matmul %277, %275, %cst_292 {dimension_numbers = #tpu.dot_dimension_numbers<[1], [0], [0], [1], [0, 0, 1, 1], [], []>} : vector<32x32xf32>, vector<32x8xf32>, vector<32x8xf32> -> vector<32x8xf32>
    %279 = arith.addf %272, %278 : vector<32x8xf32>
    %c7_293 = arith.constant 7 : index
    %c0_294 = arith.constant 0 : index
    %c0_295 = arith.constant 0 : index
    %280 = vector.load %arg12[%c7_293, %c0_294, %c0_295] : memref<9x16x8xbf16, #tpu.memory_space<vmem>>, vector<1x16x8xbf16>
    %281 = vector.shape_cast %280 : vector<1x16x8xbf16> to vector<16x8xbf16>
    %cst_296 = arith.constant dense<0.000000e+00> : vector<32x8xf32>
    %282 = tpu.matmul %229, %281, %cst_296 {dimension_numbers = #tpu.dot_dimension_numbers<[1], [0], [0], [1], [0, 0, 1, 1], [], []>} : vector<32x16xbf16>, vector<16x8xbf16>, vector<32x8xf32> -> vector<32x8xf32>
    %c7_297 = arith.constant 7 : index
    %c0_298 = arith.constant 0 : index
    %c0_299 = arith.constant 0 : index
    %283 = vector.load %arg3[%c7_297, %c0_298, %c0_299] : memref<9x32x32xf32, #tpu.memory_space<vmem>>, vector<1x32x32xf32>
    %284 = vector.shape_cast %283 : vector<1x32x32xf32> to vector<32x32xf32>
    %cst_300 = arith.constant dense<0.000000e+00> : vector<32x8xf32>
    %285 = tpu.matmul %284, %282, %cst_300 {dimension_numbers = #tpu.dot_dimension_numbers<[1], [0], [0], [1], [0, 0, 1, 1], [], []>} : vector<32x32xf32>, vector<32x8xf32>, vector<32x8xf32> -> vector<32x8xf32>
    %286 = arith.addf %279, %285 : vector<32x8xf32>
    %c8_301 = arith.constant 8 : index
    %c0_302 = arith.constant 0 : index
    %c0_303 = arith.constant 0 : index
    %287 = vector.load %arg12[%c8_301, %c0_302, %c0_303] : memref<9x16x8xbf16, #tpu.memory_space<vmem>>, vector<1x16x8xbf16>
    %288 = vector.shape_cast %287 : vector<1x16x8xbf16> to vector<16x8xbf16>
    %cst_304 = arith.constant dense<0.000000e+00> : vector<32x8xf32>
    %289 = tpu.matmul %229, %288, %cst_304 {dimension_numbers = #tpu.dot_dimension_numbers<[1], [0], [0], [1], [0, 0, 1, 1], [], []>} : vector<32x16xbf16>, vector<16x8xbf16>, vector<32x8xf32> -> vector<32x8xf32>
    %c8_305 = arith.constant 8 : index
    %c0_306 = arith.constant 0 : index
    %c0_307 = arith.constant 0 : index
    %290 = vector.load %arg3[%c8_305, %c0_306, %c0_307] : memref<9x32x32xf32, #tpu.memory_space<vmem>>, vector<1x32x32xf32>
    %291 = vector.shape_cast %290 : vector<1x32x32xf32> to vector<32x32xf32>
    %cst_308 = arith.constant dense<0.000000e+00> : vector<32x8xf32>
    %292 = tpu.matmul %291, %289, %cst_308 {dimension_numbers = #tpu.dot_dimension_numbers<[1], [0], [0], [1], [0, 0, 1, 1], [], []>} : vector<32x32xf32>, vector<32x8xf32>, vector<32x8xf32> -> vector<32x8xf32>
    %293 = arith.addf %286, %292 : vector<32x8xf32>
    %c0_309 = arith.constant 0 : index
    %c0_310 = arith.constant 0 : index
    %294 = vector.load %arg13[%c0_309, %c0_310] : memref<1x8xf32, #tpu.memory_space<vmem>>, vector<1x8xf32>
    %295 = vector.broadcast %294 : vector<1x8xf32> to vector<32x8xf32>
    %296 = arith.addf %293, %295 : vector<32x8xf32>
    %cst_311 = arith.constant 2.000000e-01 : f32
    %297 = vector.broadcast %cst_311 : f32 to vector<32x8xf32>
    %298 = arith.mulf %297, %296 : vector<32x8xf32>
    %299 = arith.maximumf %296, %298 : vector<32x8xf32>
    %cst_312 = arith.constant 0.000000e+00 : f32
    %300 = vector.broadcast %cst_312 : f32 to vector<2x2xf32>
    %c0_313 = arith.constant 0 : index
    %c0_314 = arith.constant 0 : index
    %c0_315 = arith.constant 0 : index
    %301 = vector.load %arg5[%c0_313, %c0_314, %c0_315] : memref<4x2x32xf32, #tpu.memory_space<vmem>>, vector<1x2x32xf32>
    %302 = vector.shape_cast %301 : vector<1x2x32xf32> to vector<2x32xf32>
    %cst_316 = arith.constant dense<0.000000e+00> : vector<2x8xf32>
    %303 = tpu.matmul %302, %299, %cst_316 {dimension_numbers = #tpu.dot_dimension_numbers<[1], [0], [0], [1], [0, 0, 1, 1], [], []>} : vector<2x32xf32>, vector<32x8xf32>, vector<2x8xf32> -> vector<2x8xf32>
    %c0_317 = arith.constant 0 : index
    %c0_318 = arith.constant 0 : index
    %c0_319 = arith.constant 0 : index
    %304 = vector.load %arg14[%c0_317, %c0_318, %c0_319] : memref<4x8x2xf32, #tpu.memory_space<vmem>>, vector<1x8x2xf32>
    %305 = vector.shape_cast %304 : vector<1x8x2xf32> to vector<8x2xf32>
    %cst_320 = arith.constant dense<0.000000e+00> : vector<2x2xf32>
    %306 = tpu.matmul %303, %305, %cst_320 {dimension_numbers = #tpu.dot_dimension_numbers<[1], [0], [0], [1], [0, 0, 1, 1], [], []>} : vector<2x8xf32>, vector<8x2xf32>, vector<2x2xf32> -> vector<2x2xf32>
    %307 = arith.addf %300, %306 : vector<2x2xf32>
    %c1_321 = arith.constant 1 : index
    %c0_322 = arith.constant 0 : index
    %c0_323 = arith.constant 0 : index
    %308 = vector.load %arg5[%c1_321, %c0_322, %c0_323] : memref<4x2x32xf32, #tpu.memory_space<vmem>>, vector<1x2x32xf32>
    %309 = vector.shape_cast %308 : vector<1x2x32xf32> to vector<2x32xf32>
    %cst_324 = arith.constant dense<0.000000e+00> : vector<2x8xf32>
    %310 = tpu.matmul %309, %299, %cst_324 {dimension_numbers = #tpu.dot_dimension_numbers<[1], [0], [0], [1], [0, 0, 1, 1], [], []>} : vector<2x32xf32>, vector<32x8xf32>, vector<2x8xf32> -> vector<2x8xf32>
    %c1_325 = arith.constant 1 : index
    %c0_326 = arith.constant 0 : index
    %c0_327 = arith.constant 0 : index
    %311 = vector.load %arg14[%c1_325, %c0_326, %c0_327] : memref<4x8x2xf32, #tpu.memory_space<vmem>>, vector<1x8x2xf32>
    %312 = vector.shape_cast %311 : vector<1x8x2xf32> to vector<8x2xf32>
    %cst_328 = arith.constant dense<0.000000e+00> : vector<2x2xf32>
    %313 = tpu.matmul %310, %312, %cst_328 {dimension_numbers = #tpu.dot_dimension_numbers<[1], [0], [0], [1], [0, 0, 1, 1], [], []>} : vector<2x8xf32>, vector<8x2xf32>, vector<2x2xf32> -> vector<2x2xf32>
    %314 = arith.addf %307, %313 : vector<2x2xf32>
    %c2_329 = arith.constant 2 : index
    %c0_330 = arith.constant 0 : index
    %c0_331 = arith.constant 0 : index
    %315 = vector.load %arg5[%c2_329, %c0_330, %c0_331] : memref<4x2x32xf32, #tpu.memory_space<vmem>>, vector<1x2x32xf32>
    %316 = vector.shape_cast %315 : vector<1x2x32xf32> to vector<2x32xf32>
    %cst_332 = arith.constant dense<0.000000e+00> : vector<2x8xf32>
    %317 = tpu.matmul %316, %299, %cst_332 {dimension_numbers = #tpu.dot_dimension_numbers<[1], [0], [0], [1], [0, 0, 1, 1], [], []>} : vector<2x32xf32>, vector<32x8xf32>, vector<2x8xf32> -> vector<2x8xf32>
    %c2_333 = arith.constant 2 : index
    %c0_334 = arith.constant 0 : index
    %c0_335 = arith.constant 0 : index
    %318 = vector.load %arg14[%c2_333, %c0_334, %c0_335] : memref<4x8x2xf32, #tpu.memory_space<vmem>>, vector<1x8x2xf32>
    %319 = vector.shape_cast %318 : vector<1x8x2xf32> to vector<8x2xf32>
    %cst_336 = arith.constant dense<0.000000e+00> : vector<2x2xf32>
    %320 = tpu.matmul %317, %319, %cst_336 {dimension_numbers = #tpu.dot_dimension_numbers<[1], [0], [0], [1], [0, 0, 1, 1], [], []>} : vector<2x8xf32>, vector<8x2xf32>, vector<2x2xf32> -> vector<2x2xf32>
    %321 = arith.addf %314, %320 : vector<2x2xf32>
    %c3_337 = arith.constant 3 : index
    %c0_338 = arith.constant 0 : index
    %c0_339 = arith.constant 0 : index
    %322 = vector.load %arg5[%c3_337, %c0_338, %c0_339] : memref<4x2x32xf32, #tpu.memory_space<vmem>>, vector<1x2x32xf32>
    %323 = vector.shape_cast %322 : vector<1x2x32xf32> to vector<2x32xf32>
    %cst_340 = arith.constant dense<0.000000e+00> : vector<2x8xf32>
    %324 = tpu.matmul %323, %299, %cst_340 {dimension_numbers = #tpu.dot_dimension_numbers<[1], [0], [0], [1], [0, 0, 1, 1], [], []>} : vector<2x32xf32>, vector<32x8xf32>, vector<2x8xf32> -> vector<2x8xf32>
    %c3_341 = arith.constant 3 : index
    %c0_342 = arith.constant 0 : index
    %c0_343 = arith.constant 0 : index
    %325 = vector.load %arg14[%c3_341, %c0_342, %c0_343] : memref<4x8x2xf32, #tpu.memory_space<vmem>>, vector<1x8x2xf32>
    %326 = vector.shape_cast %325 : vector<1x8x2xf32> to vector<8x2xf32>
    %cst_344 = arith.constant dense<0.000000e+00> : vector<2x2xf32>
    %327 = tpu.matmul %324, %326, %cst_344 {dimension_numbers = #tpu.dot_dimension_numbers<[1], [0], [0], [1], [0, 0, 1, 1], [], []>} : vector<2x8xf32>, vector<8x2xf32>, vector<2x2xf32> -> vector<2x2xf32>
    %328 = arith.addf %321, %327 : vector<2x2xf32>
    %c0_345 = arith.constant 0 : index
    %c0_346 = arith.constant 0 : index
    %329 = vector.load %arg15[%c0_345, %c0_346] : memref<1x2xf32, #tpu.memory_space<vmem>>, vector<1x2xf32>
    %330 = vector.broadcast %329 : vector<1x2xf32> to vector<2x2xf32>
    %331 = arith.addf %328, %330 : vector<2x2xf32>
    %c0_347 = arith.constant 0 : index
    %c0_348 = arith.constant 0 : index
    %332 = vector.load %arg16[%c0_347, %c0_348] : memref<2x2xf32, #tpu.memory_space<vmem>>, vector<2x2xf32>
    tpu.vector_store %arg16[%c0_347, %c0_348], %331 {strides = array<i32>} : memref<2x2xf32, #tpu.memory_space<vmem>>, vector<2x2xf32>,
    return
  }
  func.func @transform_0(%arg0: i32) -> (i32, i32) {
    %c0_i32 = arith.constant 0 : i32
    %c0_i32_0 = arith.constant 0 : i32
    %c0_i32_1 = arith.constant 0 : i32
    return %c0_i32, %c0_i32_0 : i32, i32
  }
  func.func @transform_1(%arg0: i32) -> (i32, i32, i32) {
    %c0_i32 = arith.constant 0 : i32
    %c0_i32_0 = arith.constant 0 : i32
    %c0_i32_1 = arith.constant 0 : i32
    %c0_i32_2 = arith.constant 0 : i32
    return %c0_i32, %c0_i32_0, %c0_i32_1 : i32, i32, i32
  }
  func.func @transform_2(%arg0: i32) -> (i32, i32, i32) {
    %c0_i32 = arith.constant 0 : i32
    %c0_i32_0 = arith.constant 0 : i32
    %c0_i32_1 = arith.constant 0 : i32
    %c0_i32_2 = arith.constant 0 : i32
    return %c0_i32, %c0_i32_0, %c0_i32_1 : i32, i32, i32
  }
  func.func @transform_3(%arg0: i32) -> (i32, i32, i32) {
    %c0_i32 = arith.constant 0 : i32
    %c0_i32_0 = arith.constant 0 : i32
    %c0_i32_1 = arith.constant 0 : i32
    %c0_i32_2 = arith.constant 0 : i32
    return %c0_i32, %c0_i32_0, %c0_i32_1 : i32, i32, i32
  }
  func.func @transform_4(%arg0: i32) -> (i32, i32, i32) {
    %c0_i32 = arith.constant 0 : i32
    %c0_i32_0 = arith.constant 0 : i32
    %c0_i32_1 = arith.constant 0 : i32
    %c0_i32_2 = arith.constant 0 : i32
    return %c0_i32, %c0_i32_0, %c0_i32_1 : i32, i32, i32
  }
  func.func @transform_5(%arg0: i32) -> (i32, i32, i32) {
    %c0_i32 = arith.constant 0 : i32
    %c0_i32_0 = arith.constant 0 : i32
    %c0_i32_1 = arith.constant 0 : i32
    %c0_i32_2 = arith.constant 0 : i32
    return %c0_i32, %c0_i32_0, %c0_i32_1 : i32, i32, i32
  }
  func.func @transform_6(%arg0: i32) -> (i32, i32) {
    %c0_i32 = arith.constant 0 : i32
    %c0_i32_0 = arith.constant 0 : i32
    %c0_i32_1 = arith.constant 0 : i32
    return %c0_i32, %c0_i32_0 : i32, i32
  }
  func.func @transform_7(%arg0: i32) -> (i32, i32, i32) {
    %c0_i32 = arith.constant 0 : i32
    %c0_i32_0 = arith.constant 0 : i32
    %c0_i32_1 = arith.constant 0 : i32
    %c0_i32_2 = arith.constant 0 : i32
    return %c0_i32, %c0_i32_0, %c0_i32_1 : i32, i32, i32
  }
  func.func @transform_8(%arg0: i32) -> (i32, i32) {
    %c0_i32 = arith.constant 0 : i32
    %c0_i32_0 = arith.constant 0 : i32
    %c0_i32_1 = arith.constant 0 : i32
    return %c0_i32, %c0_i32_0 : i32, i32
  }
  func.func @transform_9(%arg0: i32) -> (i32, i32, i32) {
    %c0_i32 = arith.constant 0 : i32
    %c0_i32_0 = arith.constant 0 : i32
    %c0_i32_1 = arith.constant 0 : i32
    %c0_i32_2 = arith.constant 0 : i32
    return %c0_i32, %c0_i32_0, %c0_i32_1 : i32, i32, i32
  }
  func.func @transform_10(%arg0: i32) -> (i32, i32) {
    %c0_i32 = arith.constant 0 : i32
    %c0_i32_0 = arith.constant 0 : i32
    %c0_i32_1 = arith.constant 0 : i32
    return %c0_i32, %c0_i32_0 : i32, i32
  }
  func.func @transform_11(%arg0: i32) -> (i32, i32, i32) {
    %c0_i32 = arith.constant 0 : i32
    %c0_i32_0 = arith.constant 0 : i32
    %c0_i32_1 = arith.constant 0 : i32
    %c0_i32_2 = arith.constant 0 : i32
    return %c0_i32, %c0_i32_0, %c0_i32_1 : i32, i32, i32
  }
  func.func @transform_12(%arg0: i32) -> (i32, i32) {
    %c0_i32 = arith.constant 0 : i32
    %c0_i32_0 = arith.constant 0 : i32
    %c0_i32_1 = arith.constant 0 : i32
    return %c0_i32, %c0_i32_0 : i32, i32
  }
  func.func @transform_13(%arg0: i32) -> (i32, i32, i32) {
    %c0_i32 = arith.constant 0 : i32
    %c0_i32_0 = arith.constant 0 : i32
    %c0_i32_1 = arith.constant 0 : i32
    %c0_i32_2 = arith.constant 0 : i32
    return %c0_i32, %c0_i32_0, %c0_i32_1 : i32, i32, i32
  }
  func.func @transform_14(%arg0: i32) -> (i32, i32) {
    %c0_i32 = arith.constant 0 : i32
    %c0_i32_0 = arith.constant 0 : i32
    %c0_i32_1 = arith.constant 0 : i32
    return %c0_i32, %c0_i32_0 : i32, i32
  }
  func.func @transform_15(%arg0: i32) -> (i32, i32) {
    %c0_i32 = arith.constant 0 : i32
    %c0_i32_0 = arith.constant 0 : i32
    %c0_i32_1 = arith.constant 0 : i32
    return %c0_i32, %c0_i32_0 : i32, i32
  }
}

</mosaic_0001>

<bundles_post_ra>
// kernel: simple_cnn_forward.1
= control target key start
LH: loop header
LB: loop body
LE: loop exit
PB: predicated region body
PF: predicated region fallthrough
CT: control target
= control target key end

     0   :  { %20 = vsyncpa [#allocation3], 0  ;;  %s20786_s0 = inlined_call_operand.vmem [shape: f32[72,512], index: 0, kind: input, shape index: {}]   ;;  %s20787_s1 = inlined_call_operand.hbm [shape: f32[9,72,72], index: 1, kind: input, shape index: {}]   ;;  %s20788_s2 = inlined_call_operand.vmem [shape: f32[9,32,32], index: 2, kind: input, shape index: {}]   ;;  %s20789_s3 = inlined_call_operand.hbm [shape: f32[4,32,72], index: 3, kind: input, shape index: {}]   ;;  %s20790_s4 = inlined_call_operand.vmem [shape: f32[4,2,32], index: 4, kind: input, shape index: {}]   ;;  %s20791_s5 = inlined_call_operand.vmem [shape: bf16[9,512,128], index: 5, kind: input, shape index: {}]   ;;  %s20792_s6 = inlined_call_operand.vmem [shape: f32[1,128], index: 6, kind: input, shape index: {}]   ;;  %s20793_s7 = inlined_call_operand.vmem [shape: bf16[9,128,64], index: 7, kind: input, shape index: {}]   ;;  %s20794_s8 = inlined_call_operand.vmem [shape: f32[1,64], index: 8, kind: input, shape index: {}]   ;;  %s20795_s9 = inlined_call_operand.vmem [shape: bf16[9,64,16], index: 9, kind: input, shape index: {}]   ;;  %s20796_s10 = inlined_call_operand.vmem [shape: f32[1,16], index: 10, kind: input, shape index: {}]   ;;  %s20797_s11 = inlined_call_operand.vmem [shape: bf16[9,16,8], index: 11, kind: input, shape index: {}]   ;;  %s20798_s12 = inlined_call_operand.vmem [shape: f32[1,8], index: 12, kind: input, shape index: {}]   ;;  %s20799_s13 = inlined_call_operand.vmem [shape: f32[4,8,2], index: 13, kind: input, shape index: {}]   ;;  %s20800_s14 = inlined_call_operand.vmem [shape: f32[1,2], index: 14, kind: input, shape index: {}]   ;;  %s20801_s15 = inlined_call_operand.hbm [shape: f32[2,2], index: 15, kind: output, shape index: {}]  }
   0x1   :  { %21 = vsyncpa [#allocation6], 0 }
   0x2   :  { %22 = vsyncpa [#allocation4], 0  ;;  %s17409_s18 = smov [#allocation2]   ;;  %s17337_s22 = scalar_lea.hbm %s20787_s1, 10368 }
   0x3   :  { %s30_s19 = sshll.u32 %s17409_s18, 4  ;;  %p17338_p0 = scmp.ne.s32.totalorder %s20787_s1, %s17337_s22  ;;  %s31_s19 = int_to_ptr.vmem [resolvable:$true] %s30_s19 }
   0x4   :  { %p17341_p1 = scmp.lt.u32.totalorder %s17337_s22, %s20787_s1 }
   0x6   :  { %p17343_p2 = pnand %p17341_p1, %p17338_p0 }
   0x8   :  { %17346 = shalt.err (!%p17343_p2)
}
   0x9   :  { %s17347_s27 = scalar_lea.vmem %s31_s19, 10368  ;;  %p17352_p4 = scmp.lt.s32.totalorder %s31_s19, %s31_s19 }
   0xa   :  { %p17348_p3 = scmp.ne.s32.totalorder %s31_s19, %s17347_s27  ;;  %p17353_p5 = scmp.lt.s32.totalorder %s17347_s27, %s17347_s27 }
   0xc   :  { %p17354_p6 = por %p17353_p5, %p17352_p4 }
   0xe   :  { %p17355_p7 = pnand %p17354_p6, %p17348_p3 }
  0x10   :  { %17358 = shalt.err (!%p17355_p7)
}
  0x11   :  { %s17410_s28 = smov 128   ;;  %s17411_s29 = smov 8  }
  0x12   :  { %36 = dma.hbm_to_vmem [thread:$0]  %s20787_s1, 10368, %s31_s19, [#allocation3], %s17410_s28, %s17410_s28, %s17411_s29  }
  0x13   :  { %s17412_s17 = smov [#allocation5]   ;;  %s17359_s22 = scalar_lea.hbm %s20789_s3, 2048 }
  0x14   :  { %s44_s18 = sshll.u32 %s17412_s17, 4  ;;  %p17360_p8 = scmp.ne.s32.totalorder %s20789_s3, %s17359_s22  ;;  %s45_s18 = int_to_ptr.vmem [resolvable:$true] %s44_s18 }
  0x15   :  { %p17363_p9 = scmp.lt.u32.totalorder %s17359_s22, %s20789_s3 }
  0x17   :  { %p17365_p10 = pnand %p17363_p9, %p17360_p8 }
  0x19   :  { %17368 = shalt.err (!%p17365_p10)
}
  0x1a   :  { %s17369_s27 = scalar_lea.vmem %s45_s18, 2048  ;;  %p17374_p12 = scmp.lt.s32.totalorder %s45_s18, %s45_s18 }
  0x1b   :  { %p17370_p11 = scmp.ne.s32.totalorder %s45_s18, %s17369_s27  ;;  %p17375_p13 = scmp.lt.s32.totalorder %s17369_s27, %s17369_s27 }
  0x1d   :  { %p17376_p0 = por %p17375_p13, %p17374_p12 }
  0x1f   :  { %p17377_p1 = pnand %p17376_p0, %p17370_p11 }
  0x21   :  { %17380 = shalt.err (!%p17377_p1)
}
  0x22   :  { %50 = dma.hbm_to_vmem [thread:$0]  %s20789_s3, 2048, %s45_s18, [#allocation6], %s17410_s28, %s17410_s28, %s17411_s29  }
  0x23   :  { %17403 = dma.done.wait [#allocation3], 10368  }
  0x24   :  { %17404 = vsyncadd [#allocation3], 4294956928 }
  0x25   :  { %17405 = dma.done.wait [#allocation6], 2048  }
  0x26   :  { %17406 = vsyncadd [#allocation6], 4294965248  ;;  %v16851_v0 = vld [vmem:[%s20791_s5 + $0x40] sm:$0xff]   ;;  %v16855_v4 = vld [vmem:[%s20791_s5 + $0x48] sm:$0xff]   ;;  %vm17414_vm0 = vmmov 0   ;;  %vm956_vm1 = vcmask 588800  }
  0x27   :  { %v16852_v1 = vld [vmem:[%s20791_s5 + $0xc0] sm:$0xff]   ;;  %13049 = vmatprep.subr.bf16.mxu0 %v16851_v0  ;;  %v16856_v5 = vld [vmem:[%s20791_s5 + $0xc8] sm:$0xff]   ;;  %v16859_v8 = vld [vmem:[%s20791_s5 + $0x50] sm:$0xff]   ;;  %vm7941_vm2 = vcmask 523264   ;;  %vm8088_vm3 = vcmask 261120   ;;  %vm9628_vm4 = vcmask 130048  }
  0x28   :  { %v16853_v2 = vld [vmem:[%s20791_s5] sm:$0xff]   ;;  %13095 = vmatprep.subr.bf16.mxu1 %v16852_v1  ;;  %v16857_v6 = vld [vmem:[%s20791_s5 + $0x8] sm:$0xff]   ;;  %v16860_v9 = vld [vmem:[%s20791_s5 + $0xd0] sm:$0xff]   ;;  %vm11112_vm5 = vcmask 64512   ;;  %vm11569_vm6 = vcmask 9216  }
  0x29   :  { %v16854_v3 = vld [vmem:[%s20791_s5 + $0x80] sm:$0xff]   ;;  %13050 = vmatpush3.bf16.msra.mxu0 %v16853_v2  ;;  %v16858_v7 = vld [vmem:[%s20791_s5 + $0x88] sm:$0xff]   ;;  %v16861_v10 = vld [vmem:[%s20791_s5 + $0x10] sm:$0xff]  }
  0x2a   :  { %13096 = vmatpush3.bf16.msra.mxu1 %v16854_v3  ;;  %13051 = vmatprep.subr.bf16.mxu0 %v16855_v4  ;;  %v16862_v11 = vld [vmem:[%s20791_s5 + $0x90] sm:$0xff]   ;;  %v16863_v12 = vld [vmem:[%s20791_s5 + $0x58] sm:$0xff]   ;;  %v16867_v16 = vld [vmem:[%s20791_s5 + $0x60] sm:$0xff]  }
  0x2b   :  { %13097 = vmatprep.subr.bf16.mxu1 %v16856_v5  ;;  %v16864_v13 = vld [vmem:[%s20791_s5 + $0xd8] sm:$0xff]   ;;  %v16868_v17 = vld [vmem:[%s20791_s5 + $0xe0] sm:$0xff]   ;;  %v16871_v20 = vld [vmem:[%s20791_s5 + $0x68] sm:$0xff]  }
  0x2c   :  { %v16865_v14 = vld [vmem:[%s20791_s5 + $0x18] sm:$0xff]   ;;  %v16869_v18 = vld [vmem:[%s20791_s5 + $0x20] sm:$0xff]   ;;  %v16872_v21 = vld [vmem:[%s20791_s5 + $0xe8] sm:$0xff]  }
  0x2d   :  { %13052 = vmatpush3.bf16.msra.mxu0 %v16857_v6  ;;  %v16866_v15 = vld [vmem:[%s20791_s5 + $0x98] sm:$0xff]   ;;  %v16870_v19 = vld [vmem:[%s20791_s5 + $0xa0] sm:$0xff]   ;;  %v16873_v22 = vld [vmem:[%s20791_s5 + $0x28] sm:$0xff]  }
  0x2e   :  { %13098 = vmatpush3.bf16.msra.mxu1 %v16858_v7  ;;  %13053 = vmatprep.subr.bf16.mxu0 %v16859_v8  ;;  %v16874_v23 = vld [vmem:[%s20791_s5 + $0xa8] sm:$0xff]   ;;  %v16875_v24 = vld [vmem:[%s20791_s5 + $0x70] sm:$0xff]   ;;  %v16879_v28 = vld [vmem:[%s20791_s5 + $0x78] sm:$0xff]  }
  0x2f   :  { %13099 = vmatprep.subr.bf16.mxu1 %v16860_v9  ;;  %v16876_v25 = vld [vmem:[%s20791_s5 + $0xf0] sm:$0xff]   ;;  %v16880_v29 = vld [vmem:[%s20791_s5 + $0xf8] sm:$0xff]   ;;  %v81_v32 = vld [vmem:[%s20786_s0 + $0x8] sm:$0xff] }
  0x30   :  { %v16877_v26 = vld [vmem:[%s20791_s5 + $0x30] sm:$0xff]   ;;  %v16881_v30 = vld [vmem:[%s20791_s5 + $0x38] sm:$0xff]   ;;  %v85_v33 = vld [vmem:[%s20786_s0 + $0x28] sm:$0xff] }
  0x31   :  { %13054 = vmatpush3.bf16.msra.mxu0 %v16861_v10  ;;  %v16878_v27 = vld [vmem:[%s20791_s5 + $0xb0] sm:$0xff]   ;;  %v16882_v31 = vld [vmem:[%s20791_s5 + $0xb8] sm:$0xff]   ;;  %v17626_v35 = vpack.c.bf16 %v85_v33, %v81_v32  ;;  %v80_v37 = vld [vmem:[%s20786_s0] sm:$0xff] }
  0x32   :  { %13100 = vmatpush3.bf16.msra.mxu1 %v16862_v11  ;;  %13055 = vmatprep.subr.bf16.mxu0 %v16863_v12  ;;  %v83_v34 = vld [vmem:[%s20786_s0 + $0x18] sm:$0xff]  ;;  %v84_v38 = vld [vmem:[%s20786_s0 + $0x20] sm:$0xff]  ;;  %v82_v41 = vld [vmem:[%s20786_s0 + $0x10] sm:$0xff] }
  0x33   :  { %13101 = vmatprep.subr.bf16.mxu1 %v16864_v13  ;;  %v87_v36 = vld [vmem:[%s20786_s0 + $0x38] sm:$0xff]  ;;  %v17639_v40 = vpack.c.bf16 %v84_v38, %v80_v37  ;;  %v86_v42 = vld [vmem:[%s20786_s0 + $0x30] sm:$0xff]  ;;  %v89_v43 = vld [vmem:[%s20786_s0 + $0x48] sm:$0xff]  ;;  %424 = vmatprep.mubr.bf16.mxu0 %v17626_v35 }
  0x34   :  { %v17637_v39 = vpack.c.bf16 %v87_v36, %v83_v34  ;;  %v17651_v44 = vpack.c.bf16 %v86_v42, %v82_v41  ;;  %v93_v45 = vld [vmem:[%s20786_s0 + $0x68] sm:$0xff]  ;;  %v91_v46 = vld [vmem:[%s20786_s0 + $0x58] sm:$0xff]  ;;  %v88_v50 = vld [vmem:[%s20786_s0 + $0x40] sm:$0xff] }
  0x35   :  { %13056 = vmatpush3.bf16.msra.mxu0 %v16865_v14  ;;  %v95_v47 = vld [vmem:[%s20786_s0 + $0x78] sm:$0xff]  ;;  %v17664_v48 = vpack.c.bf16 %v93_v45, %v89_v43  ;;  %v92_v51 = vld [vmem:[%s20786_s0 + $0x60] sm:$0xff]  ;;  %v90_v52 = vld [vmem:[%s20786_s0 + $0x50] sm:$0xff] }
  0x36   :  { %13102 = vmatpush3.bf16.msra.mxu1 %v16866_v15  ;;  %13057 = vmatprep.subr.bf16.mxu0 %v16867_v16  ;;  %v17666_v49 = vpack.c.bf16 %v95_v47, %v91_v46  ;;  %v94_v53 = vld [vmem:[%s20786_s0 + $0x70] sm:$0xff]  ;;  %v16883_v54 = vld [vmem:[%s20791_s5 + $0x140] sm:$0xff]   ;;  %v17689_v56 = vpack.c.bf16 %v92_v51, %v88_v50  ;;  %v16887_v60 = vld [vmem:[%s20791_s5 + $0x148] sm:$0xff]  }
  0x37   :  { %13103 = vmatprep.subr.bf16.mxu1 %v16868_v17  ;;  %496 = vmatprep.mubr.bf16.mxu1 %v17637_v39  ;;  %v16884_v55 = vld [vmem:[%s20791_s5 + $0x1c0] sm:$0xff]   ;;  %v17694_v58 = vpack.c.bf16 %v94_v53, %v90_v52  ;;  %v16888_v61 = vld [vmem:[%s20791_s5 + $0x1c8] sm:$0xff]   ;;  %v99_v3 = vld [vmem:[%s20786_s0 + $0x98] sm:$0xff] }
  0x38   :  { %v16885_v57 = vld [vmem:[%s20791_s5 + $0x100] sm:$0xff]   ;;  %v16889_v62 = vld [vmem:[%s20791_s5 + $0x108] sm:$0xff]   ;;  %v103_v4 = vld [vmem:[%s20786_s0 + $0xb8] sm:$0xff] }
  0x39   :  { %13058 = vmatpush3.bf16.msra.mxu0 %v16869_v18  ;;  %v16886_v59 = vld [vmem:[%s20791_s5 + $0x180] sm:$0xff]   ;;  %v16890_v63 = vld [vmem:[%s20791_s5 + $0x188] sm:$0xff]   ;;  %v17730_v6 = vpack.c.bf16 %v103_v4, %v99_v3  ;;  %v98_v8 = vld [vmem:[%s20786_s0 + $0x90] sm:$0xff] }
  0x3a   :  { %13104 = vmatpush3.bf16.msra.mxu1 %v16870_v19  ;;  %13059 = vmatprep.subr.bf16.mxu0 %v16871_v20  ;;  %v97_v0 = vld [vmem:[%s20786_s0 + $0x88] sm:$0xff]  ;;  %v96_v5 = vld [vmem:[%s20786_s0 + $0x80] sm:$0xff]  ;;  %v102_v9 = vld [vmem:[%s20786_s0 + $0xb0] sm:$0xff] }
  0x3b   :  { %13105 = vmatprep.subr.bf16.mxu1 %v16872_v21  ;;  %v101_v1 = vld [vmem:[%s20786_s0 + $0xa8] sm:$0xff]  ;;  %v100_v7 = vld [vmem:[%s20786_s0 + $0xa0] sm:$0xff]  ;;  %v16891_v11 = vld [vmem:[%s20791_s5 + $0x150] sm:$0xff]   ;;  %v17748_v12 = vpack.c.bf16 %v102_v9, %v98_v8 }
  0x3c   :  { %v17719_v2 = vpack.c.bf16 %v101_v1, %v97_v0  ;;  %v17742_v10 = vpack.c.bf16 %v100_v7, %v96_v5  ;;  %v16892_v13 = vld [vmem:[%s20791_s5 + $0x1d0] sm:$0xff]   ;;  %v16895_v16 = vld [vmem:[%s20791_s5 + $0x158] sm:$0xff]   ;;  %v105_v20 = vld [vmem:[%s20786_s0 + $0xc8] sm:$0xff]  ;;  %v17413_v0 = vmov 0.0|0.0   ;;  %v17415_v1 = vmov 0.0  }
  0x3d   :  { %13060 = vmatpush3.bf16.msra.mxu0 %v16873_v22  ;;  %v16893_v14 = vld [vmem:[%s20791_s5 + $0x110] sm:$0xff]   ;;  %v16896_v17 = vld [vmem:[%s20791_s5 + $0x1d8] sm:$0xff]   ;;  %v109_v21 = vld [vmem:[%s20786_s0 + $0xe8] sm:$0xff] }
  0x3e   :  { %13106 = vmatpush3.bf16.msra.mxu1 %v16874_v23  ;;  %13061 = vmatprep.subr.bf16.mxu0 %v16875_v24  ;;  %v16894_v15 = vld [vmem:[%s20791_s5 + $0x190] sm:$0xff]   ;;  %v16897_v18 = vld [vmem:[%s20791_s5 + $0x118] sm:$0xff]   ;;  %v17782_v23 = vpack.c.bf16 %v109_v21, %v105_v20  ;;  %v16899_v32 = vld [vmem:[%s20791_s5 + $0x160] sm:$0xff]  }
  0x3f   :  { %13107 = vmatprep.subr.bf16.mxu1 %v16876_v25  ;;  %v16898_v19 = vld [vmem:[%s20791_s5 + $0x198] sm:$0xff]   ;;  %v104_v25 = vld [vmem:[%s20786_s0 + $0xc0] sm:$0xff]  ;;  %v16903_v37 = vld [vmem:[%s20791_s5 + $0x168] sm:$0xff]  }
  0x40   :  { %v107_v22 = vld [vmem:[%s20786_s0 + $0xd8] sm:$0xff]  ;;  %v16900_v33 = vld [vmem:[%s20791_s5 + $0x1e0] sm:$0xff]   ;;  %v16904_v38 = vld [vmem:[%s20791_s5 + $0x1e8] sm:$0xff]  }
  0x41   :  { %13062 = vmatpush3.bf16.msra.mxu0 %v16877_v26  ;;  %v111_v24 = vld [vmem:[%s20786_s0 + $0xf8] sm:$0xff]  ;;  %v108_v26 = vld [vmem:[%s20786_s0 + $0xe0] sm:$0xff]  ;;  %v16905_v41 = vld [vmem:[%s20791_s5 + $0x128] sm:$0xff]  }
  0x42   :  { %13108 = vmatpush3.bf16.msra.mxu1 %v16878_v27  ;;  %13063 = vmatprep.subr.bf16.mxu0 %v16879_v28  ;;  %v17793_v27 = vpack.c.bf16 %v111_v24, %v107_v22  ;;  %v17795_v28 = vpack.c.bf16 %v108_v26, %v104_v25  ;;  %v16901_v34 = vld [vmem:[%s20791_s5 + $0x120] sm:$0xff]   ;;  %v16906_v42 = vld [vmem:[%s20791_s5 + $0x1a8] sm:$0xff]   ;;  %v115_v46 = vld [vmem:[%s20786_s0 + $0x118] sm:$0xff] }
  0x43   :  { %13109 = vmatprep.subr.bf16.mxu1 %v16880_v29  ;;  %v106_v29 = vld [vmem:[%s20786_s0 + $0xd0] sm:$0xff]  ;;  %v16902_v36 = vld [vmem:[%s20791_s5 + $0x1a0] sm:$0xff]   ;;  %v113_v43 = vld [vmem:[%s20786_s0 + $0x108] sm:$0xff]  ;;  %v17847_v51 = vpack.c.bf16 %v115_v46, %v115_v46 }
  0x44   :  { %v17836_v45 = vpack.c.bf16 %v113_v43, %v113_v43  ;;  %v112_v47 = vld [vmem:[%s20786_s0 + $0x100] sm:$0xff]  ;;  %v114_v50 = vld [vmem:[%s20786_s0 + $0x110] sm:$0xff] }
  0x45   :  { %13064 = vmatpush3.bf16.msra.mxu0 %v16881_v30  ;;  %v110_v30 = vld [vmem:[%s20786_s0 + $0xf0] sm:$0xff]  ;;  %v17849_v52 = vpack.c.bf16 %v112_v47, %v112_v47  ;;  %v17851_v53 = vpack.c.bf16 %v114_v50, %v114_v50 }
  0x46   :  { %13110 = vmatpush3.bf16.msra.mxu1 %v16882_v31  ;;  %13141 = vmatprep.subr.bf16.mxu0 %v16883_v54  ;;  %v17804_v31 = vpack.c.bf16 %v110_v30, %v106_v29  ;;  %v16907_v54 = vld [vmem:[%s20791_s5 + $0x170] sm:$0xff]  }
  0x47   :  { %13187 = vmatprep.subr.bf16.mxu1 %v16884_v55  ;;  %v16908_v55 = vld [vmem:[%s20791_s5 + $0x1f0] sm:$0xff]  }
  0x48   :  { %425 = vmatmul.mubr.bf16.vlgmr.msra.gmra.mrb[0].mxu0 %v17639_v40 }
  0x49   :  { %497 = vmatmul.mubr.bf16.vlgmr.msra.gmra.mrb[0].mxu1 %v17651_v44  ;;  %432 = vmatprep.mubr.bf16.mxu0 %v17664_v48 }
  0x4a   :  { %504 = vmatprep.mubr.bf16.mxu1 %v17666_v49  ;;  %13142 = vmatpush3.bf16.msra.mxu0 %v16885_v57  ;;  %v16909_v57 = vld [vmem:[%s20791_s5 + $0x130] sm:$0xff]  }
  0x4b   :  { %13188 = vmatpush3.bf16.msra.mxu1 %v16886_v59  ;;  %13143 = vmatprep.subr.bf16.mxu0 %v16887_v60  ;;  %v16910_v59 = vld [vmem:[%s20791_s5 + $0x1b0] sm:$0xff]   ;;  %v16911_v60 = vld [vmem:[%s20791_s5 + $0x178] sm:$0xff]  }
  0x4c   :  { %13189 = vmatprep.subr.bf16.mxu1 %v16888_v61  ;;  %v16912_v61 = vld [vmem:[%s20791_s5 + $0x1f8] sm:$0xff]  }
  0x4e   :  { %13144 = vmatpush3.bf16.msra.mxu0 %v16889_v62  ;;  %v16913_v62 = vld [vmem:[%s20791_s5 + $0x138] sm:$0xff]  }
  0x4f   :  { %13190 = vmatpush3.bf16.msra.mxu1 %v16890_v63  ;;  %13145 = vmatprep.subr.bf16.mxu0 %v16891_v11  ;;  %v16914_v63 = vld [vmem:[%s20791_s5 + $0x1b8] sm:$0xff]  }
  0x50   :  { %433 = vmatmul.mubr.bf16.gmra.mrb[4].mxu0 %v17689_v56  ;;  %13191 = vmatprep.subr.bf16.mxu1 %v16892_v13 }
  0x51   :  { %505 = vmatmul.mubr.bf16.gmra.mrb[4].mxu1 %v17694_v58  ;;  %440 = vmatprep.mubr.bf16.mxu0 %v17719_v2 }
  0x52   :  { %512 = vmatprep.mubr.bf16.mxu1 %v17730_v6  ;;  %13146 = vmatpush3.bf16.msra.mxu0 %v16893_v14 }
  0x53   :  { %13192 = vmatpush3.bf16.msra.mxu1 %v16894_v15  ;;  %13147 = vmatprep.subr.bf16.mxu0 %v16895_v16 }
  0x54   :  { %13193 = vmatprep.subr.bf16.mxu1 %v16896_v17 }
  0x56   :  { %13148 = vmatpush3.bf16.msra.mxu0 %v16897_v18 }
  0x57   :  { %13194 = vmatpush3.bf16.msra.mxu1 %v16898_v19  ;;  %13149 = vmatprep.subr.bf16.mxu0 %v16899_v32 }
  0x58   :  { %441 = vmatmul.mubr.bf16.gmra.mrb[8].mxu0 %v17742_v10  ;;  %13195 = vmatprep.subr.bf16.mxu1 %v16900_v33 }
  0x59   :  { %513 = vmatmul.mubr.bf16.gmra.mrb[8].mxu1 %v17748_v12  ;;  %448 = vmatprep.mubr.bf16.mxu0 %v17782_v23 }
  0x5a   :  { %520 = vmatprep.mubr.bf16.mxu1 %v17793_v27  ;;  %13150 = vmatpush3.bf16.msra.mxu0 %v16901_v34 }
  0x5b   :  { %13196 = vmatpush3.bf16.msra.mxu1 %v16902_v36  ;;  %13151 = vmatprep.subr.bf16.mxu0 %v16903_v37 }
  0x5c   :  { %13197 = vmatprep.subr.bf16.mxu1 %v16904_v38 }
  0x5e   :  { %13152 = vmatpush3.bf16.msra.mxu0 %v16905_v41 }
  0x5f   :  { %13198 = vmatpush3.bf16.msra.mxu1 %v16906_v42  ;;  %13153 = vmatprep.subr.bf16.mxu0 %v16907_v54 }
  0x60   :  { %449 = vmatmul.mubr.bf16.gmra.mrb[12].mxu0 %v17795_v28  ;;  %13199 = vmatprep.subr.bf16.mxu1 %v16908_v55 }
  0x61   :  { %521 = vmatmul.mubr.bf16.gmra.mrb[12].mxu1 %v17804_v31  ;;  %456 = vmatprep.mubr.bf16.mxu0 %v17836_v45 }
  0x62   :  { %528 = vmatprep.mubr.bf16.mxu1 %v17847_v51  ;;  %13154 = vmatpush3.bf16.msra.mxu0 %v16909_v57 }
  0x63   :  { %13200 = vmatpush3.bf16.msra.mxu1 %v16910_v59  ;;  %13155 = vmatprep.subr.bf16.mxu0 %v16911_v60 }
  0x64   :  { %13201 = vmatprep.subr.bf16.mxu1 %v16912_v61 }
  0x66   :  { %13156 = vmatpush3.bf16.msra.mxu0 %v16913_v62 }
  0x67   :  { %13202 = vmatpush3.bf16.msra.mxu1 %v16914_v63  ;;  %16331 = vmatprep.subr.bf16.mxu0 %v17413_v0 }
  0x68   :  { %457 = vmatmul.mubr.bf16.gmra.mrb[16].mxu0 %v17849_v52  ;;  %16343 = vmatprep.subr.bf16.mxu1 %v17413_v0 }
  0x69   :  { %529 = vmatmul.mubr.bf16.gmra.mrb[16].mxu1 %v17851_v53  ;;  %834 = vmatprep.mubr.bf16.mxu0 %v17626_v35 }
  0x6a   :  { %906 = vmatprep.mubr.bf16.mxu1 %v17637_v39 }
  0x70   :  { %835 = vmatmul.mubr.bf16.vlgmr.msra.gmra.mrb[20].mxu0 %v17639_v40 }
  0x71   :  { %907 = vmatmul.mubr.bf16.vlgmr.msra.gmra.mrb[20].mxu1 %v17651_v44  ;;  %842 = vmatprep.mubr.bf16.mxu0 %v17664_v48 }
  0x72   :  { %914 = vmatprep.mubr.bf16.mxu1 %v17666_v49 }
  0x78   :  { %843 = vmatmul.mubr.bf16.gmra.mrb[24].mxu0 %v17689_v56 }
  0x79   :  { %915 = vmatmul.mubr.bf16.gmra.mrb[24].mxu1 %v17694_v58  ;;  %850 = vmatprep.mubr.bf16.mxu0 %v17719_v2 }
  0x7a   :  { %922 = vmatprep.mubr.bf16.mxu1 %v17730_v6 }
  0x80   :  { %851 = vmatmul.mubr.bf16.gmra.mrb[28].mxu0 %v17742_v10 }
  0x81   :  { %923 = vmatmul.mubr.bf16.gmra.mrb[28].mxu1 %v17748_v12  ;;  %858 = vmatprep.mubr.bf16.mxu0 %v17782_v23 }
  0x82   :  { %930 = vmatprep.mubr.bf16.mxu1 %v17793_v27 }
  0x88   :  { %859 = vmatmul.mubr.bf16.gmra.mrb[32].mxu0 %v17795_v28 }
  0x89   :  { %931 = vmatmul.mubr.bf16.gmra.mrb[32].mxu1 %v17804_v31  ;;  %866 = vmatprep.mubr.bf16.mxu0 %v17836_v45 }
  0x8a   :  { %938 = vmatprep.mubr.bf16.mxu1 %v17847_v51 }
  0x90   :  { %867 = vmatmul.mubr.bf16.gmra.mrb[36].mxu0 %v17849_v52 }
  0x91   :  { %939 = vmatmul.mubr.bf16.gmra.mrb[36].mxu1 %v17851_v53  ;;  %14641 = vmatprep.mubr.msk.f32.mxu0 %vm17414_vm0, %v17415_v1 }
  0x92   :  { %14686 = vmatprep.mubr.msk.f32.mxu1 %vm17414_vm0, %v17415_v1 }
 0x11b   :  { %v13065_v3 = vpop.f32.mrb[0].mxu0 }
 0x11c   :  { %v13111_v4 = vpop.f32.mrb[0].mxu1  ;;  %v13066_v5 = vpop.f32.mrb[1].mxu0 }
 0x11d   :  { %v13067_v7 = vadd.f32 %v13066_v5, %v13065_v3  ;;  %v13112_v8 = vpop.f32.mrb[1].mxu1  ;;  %v13068_v9 = vpop.f32.mrb[2].mxu0 }
 0x11e   :  { %v13113_v11 = vadd.f32 %v13112_v8, %v13111_v4  ;;  %v13114_v13 = vpop.f32.mrb[2].mxu1  ;;  %v13069_v14 = vpop.f32.mrb[3].mxu0 }
 0x11f   :  { %v13070_v15 = vadd.f32 %v13069_v14, %v13068_v9  ;;  %v13115_v16 = vpop.f32.mrb[3].mxu1 }
 0x120   :  { %v499_v17 = vadd.f32 %v13113_v11, %v13067_v7  ;;  %v13116_v18 = vadd.f32 %v13115_v16, %v13114_v13 }
 0x122   :  { %v502_v19 = vadd.f32 %v13116_v18, %v13070_v15 }
 0x123   :  { %v13071_v20 = vpop.f32.mrb[4].mxu0 }
 0x124   :  { %v13117_v21 = vpop.f32.mrb[4].mxu1  ;;  %v13072_v22 = vpop.f32.mrb[5].mxu0  ;;  %v16344_v24 = vpack.c.bf16 %v502_v19, %v499_v17 }
 0x125   :  { %v13073_v25 = vadd.f32 %v13072_v22, %v13071_v20  ;;  %v13118_v26 = vpop.f32.mrb[5].mxu1  ;;  %v13074_v29 = vpop.f32.mrb[6].mxu0 }
 0x126   :  { %v13119_v30 = vadd.f32 %v13118_v26, %v13117_v21  ;;  %v13120_v32 = vpop.f32.mrb[6].mxu1  ;;  %16345 = vmatpush3.bf16.msra.mxu1 %v16344_v24  ;;  %v13075_v33 = vpop.f32.mrb[7].mxu0 }
 0x127   :  { %v13076_v34 = vadd.f32 %v13075_v33, %v13074_v29  ;;  %v13121_v36 = vpop.f32.mrb[7].mxu1  ;;  %16346 = vmatprep.subr.bf16.mxu1 %v17413_v0 }
 0x128   :  { %v507_v37 = vadd.f32 %v13119_v30, %v13073_v25  ;;  %v13122_v38 = vadd.f32 %v13121_v36, %v13120_v32 }
 0x12a   :  { %v510_v41 = vadd.f32 %v13122_v38, %v13076_v34  ;;  %v16915_v34 = vld [vmem:[%s20791_s5 + $0x2c0] sm:$0xff]  }
 0x12b   :  { %v13077_v42 = vpop.f32.mrb[8].mxu0 }
 0x12c   :  { %v13123_v43 = vpop.f32.mrb[8].mxu1  ;;  %v13078_v46 = vpop.f32.mrb[9].mxu0  ;;  %v16347_v47 = vpack.c.bf16 %v510_v41, %v507_v37  ;;  %v536_v41 = vld [vmem:[#allocation2] sm:$0xff] }
 0x12d   :  { %v13079_v50 = vadd.f32 %v13078_v46, %v13077_v42  ;;  %v13124_v54 = vpop.f32.mrb[9].mxu1  ;;  %v13080_v55 = vpop.f32.mrb[10].mxu0  ;;  %v16916_v42 = vld [vmem:[%s20791_s5 + $0x280] sm:$0xff]   ;;  %v16919_v46 = vld [vmem:[%s20791_s5 + $0x2c8] sm:$0xff]  }
 0x12e   :  { %v13125_v57 = vadd.f32 %v13124_v54, %v13123_v43  ;;  %v13126_v59 = vpop.f32.mrb[10].mxu1  ;;  %16348 = vmatpush3.bf16.msra.mxu1 %v16347_v47  ;;  %v13081_v60 = vpop.f32.mrb[11].mxu0  ;;  %v16920_v54 = vld [vmem:[%s20791_s5 + $0x288] sm:$0xff]  }
 0x12f   :  { %v13082_v61 = vadd.f32 %v13081_v60, %v13080_v55  ;;  %v13127_v62 = vpop.f32.mrb[11].mxu1  ;;  %16349 = vmatprep.subr.bf16.mxu1 %v17413_v0 }
 0x130   :  { %v515_v63 = vadd.f32 %v13125_v57, %v13079_v50  ;;  %v13128_v3 = vadd.f32 %v13127_v62, %v13126_v59  ;;  %v537_v50 = vld [vmem:[#allocation2 + $0x8] sm:$0xff]  ;;  %v16923_v57 = vld [vmem:[%s20791_s5 + $0x2d0] sm:$0xff]  }
 0x132   :  { %v518_v4 = vadd.f32 %v13128_v3, %v13082_v61  ;;  %v538_v3 = vld [vmem:[#allocation2 + $0x10] sm:$0xff] }
 0x133   :  { %v13083_v5 = vpop.f32.mrb[12].mxu0 }
 0x134   :  { %v13129_v7 = vpop.f32.mrb[12].mxu1  ;;  %v13084_v8 = vpop.f32.mrb[13].mxu0  ;;  %v16350_v9 = vpack.c.bf16 %v518_v4, %v515_v63  ;;  %v16924_v4 = vld [vmem:[%s20791_s5 + $0x290] sm:$0xff]  }
 0x135   :  { %v13085_v11 = vadd.f32 %v13084_v8, %v13083_v5  ;;  %v13130_v13 = vpop.f32.mrb[13].mxu1  ;;  %v13086_v14 = vpop.f32.mrb[14].mxu0 }
 0x136   :  { %v13131_v15 = vadd.f32 %v13130_v13, %v13129_v7  ;;  %v13132_v16 = vpop.f32.mrb[14].mxu1  ;;  %16351 = vmatpush3.bf16.msra.mxu1 %v16350_v9  ;;  %v13087_v17 = vpop.f32.mrb[15].mxu0  ;;  %v16927_v13 = vld [vmem:[%s20791_s5 + $0x2d8] sm:$0xff]  }
 0x137   :  { %v13088_v18 = vadd.f32 %v13087_v17, %v13086_v14  ;;  %v13133_v19 = vpop.f32.mrb[15].mxu1  ;;  %16352 = vmatprep.subr.bf16.mxu1 %v17413_v0 }
 0x138   :  { %v523_v20 = vadd.f32 %v13131_v15, %v13085_v11  ;;  %v13134_v21 = vadd.f32 %v13133_v19, %v13132_v16  ;;  %v539_v16 = vld [vmem:[#allocation2 + $0x18] sm:$0xff] }
 0x13a   :  { %v526_v22 = vadd.f32 %v13134_v21, %v13088_v18  ;;  %v16928_v18 = vld [vmem:[%s20791_s5 + $0x298] sm:$0xff]  }
 0x13b   :  { %v13089_v25 = vpop.f32.mrb[16].mxu0 }
 0x13c   :  { %v16353_v24 = vpack.c.bf16 %v526_v22, %v523_v20  ;;  %v13135_v26 = vpop.f32.mrb[16].mxu1  ;;  %v13090_v29 = vpop.f32.mrb[17].mxu0  ;;  %v16931_v20 = vld [vmem:[%s20791_s5 + $0x2e0] sm:$0xff]  }
 0x13d   :  { %v13091_v30 = vadd.f32 %v13090_v29, %v13089_v25  ;;  %v13136_v32 = vpop.f32.mrb[17].mxu1  ;;  %v13092_v33 = vpop.f32.mrb[18].mxu0 }
 0x13e   :  { %16354 = vmatpush3.bf16.msra.mxu1 %v16353_v24  ;;  %v13137_v36 = vadd.f32 %v13136_v32, %v13135_v26  ;;  %v13138_v37 = vpop.f32.mrb[18].mxu1  ;;  %v13093_v38 = vpop.f32.mrb[19].mxu0 }
 0x13f   :  { %14684 = vmatprep.subr.mxu1 %v17415_v1  ;;  %v13139_v43 = vpop.f32.mrb[19].mxu1 }
 0x140   :  { %v531_v47 = vadd.f32 %v13137_v36, %v13091_v30  ;;  %v540_v30 = vld [vmem:[#allocation2 + $0x20] sm:$0xff] }
 0x141   :  { %v16932_v36 = vld [vmem:[%s20791_s5 + $0x2a0] sm:$0xff]  }
 0x142   :  { %14685 = vmatpush3.msra.mxu1 %v531_v47 }
 0x143   :  { %14687 = vmatmul.mubr.msk.f32.vlgmr.msra.gmra.mrb[40].mxu1 %vm956_vm1, %v536_v41  ;;  %13315 = vmatprep.subr.bf16.mxu1 %v16915_v34  ;;  %v13157_v55 = vpop.f32.mrb[20].mxu0  ;;  %v16935_v41 = vld [vmem:[%s20791_s5 + $0x2e8] sm:$0xff]  }
 0x144   :  { %14689 = vmatprep.mubr.msk.f32.mxu1 %vm17414_vm0, %v17415_v1  ;;  %13316 = vmatpush3.bf16.msra.mxu1 %v16916_v42  ;;  %v13203_v59 = vpop.f32.mrb[20].mxu1  ;;  %v13158_v60 = vpop.f32.mrb[21].mxu0 }
 0x145   :  { %13317 = vmatprep.subr.bf16.mxu1 %v16919_v46  ;;  %v13159_v61 = vadd.f32 %v13158_v60, %v13157_v55  ;;  %v13204_v62 = vpop.f32.mrb[21].mxu1  ;;  %v13160_v63 = vpop.f32.mrb[22].mxu0  ;;  %v541_v46 = vld [vmem:[#allocation2 + $0x28] sm:$0xff]  ;;  %v16939_v55 = vld [vmem:[%s20791_s5 + $0x2f0] sm:$0xff]  }
 0x146   :  { %v13205_v5 = vadd.f32 %v13204_v62, %v13203_v59  ;;  %v13206_v7 = vpop.f32.mrb[22].mxu1  ;;  %v13161_v8 = vpop.f32.mrb[23].mxu0 }
 0x147   :  { %14690 = vmatmul.mubr.msk.f32.gmra.mrb[42].mxu1 %vm956_vm1, %v537_v50  ;;  %v13162_v9 = vadd.f32 %v13161_v8, %v13160_v63  ;;  %v13207_v11 = vpop.f32.mrb[23].mxu1  ;;  %v16936_v50 = vld [vmem:[%s20791_s5 + $0x2a8] sm:$0xff]   ;;  %v16940_v8 = vld [vmem:[%s20791_s5 + $0x2b0] sm:$0xff]  }
 0x148   :  { %14692 = vmatprep.mubr.msk.f32.mxu1 %vm17414_vm0, %v17415_v1  ;;  %13318 = vmatpush3.bf16.msra.mxu1 %v16920_v54  ;;  %v909_v14 = vadd.f32 %v13205_v5, %v13159_v61  ;;  %v13208_v15 = vadd.f32 %v13207_v11, %v13206_v7 }
 0x149   :  { %13319 = vmatprep.subr.bf16.mxu1 %v16923_v57 }
 0x14a   :  { %v912_v17 = vadd.f32 %v13208_v15, %v13162_v9 }
 0x14b   :  { %14693 = vmatmul.mubr.msk.f32.gmra.mrb[44].mxu1 %vm956_vm1, %v538_v3  ;;  %v13163_v19 = vpop.f32.mrb[24].mxu0  ;;  %v542_v3 = vld [vmem:[#allocation2 + $0x30] sm:$0xff] }
 0x14c   :  { %14695 = vmatprep.mubr.msk.f32.mxu1 %vm17414_vm0, %v17415_v1  ;;  %13320 = vmatpush3.bf16.msra.mxu1 %v16924_v4  ;;  %v13209_v21 = vpop.f32.mrb[24].mxu1  ;;  %v13164_v22 = vpop.f32.mrb[25].mxu0  ;;  %v16332_v24 = vpack.c.bf16 %v912_v17, %v909_v14 }
 0x14d   :  { %13321 = vmatprep.subr.bf16.mxu1 %v16927_v13  ;;  %v13165_v25 = vadd.f32 %v13164_v22, %v13163_v19  ;;  %v13210_v26 = vpop.f32.mrb[25].mxu1  ;;  %v13166_v29 = vpop.f32.mrb[26].mxu0  ;;  %v16943_v13 = vld [vmem:[%s20791_s5 + $0x2f8] sm:$0xff]  }
 0x14e   :  { %v13211_v32 = vadd.f32 %v13210_v26, %v13209_v21  ;;  %v13212_v33 = vpop.f32.mrb[26].mxu1  ;;  %16333 = vmatpush3.bf16.msra.mxu0 %v16332_v24  ;;  %v13167_v34 = vpop.f32.mrb[27].mxu0  ;;  %v16944_v19 = vld [vmem:[%s20791_s5 + $0x2b8] sm:$0xff]  }
 0x14f   :  { %14696 = vmatmul.mubr.msk.f32.gmra.mrb[46].mxu1 %vm956_vm1, %v539_v16  ;;  %v13168_v37 = vadd.f32 %v13167_v34, %v13166_v29  ;;  %v13213_v38 = vpop.f32.mrb[27].mxu1  ;;  %16334 = vmatprep.subr.bf16.mxu0 %v17413_v0  ;;  %v543_v16 = vld [vmem:[#allocation2 + $0x38] sm:$0xff] }
 0x150   :  { %14698 = vmatprep.mubr.msk.f32.mxu1 %vm17414_vm0, %v17415_v1  ;;  %v917_v42 = vadd.f32 %v13211_v32, %v13165_v25  ;;  %v13214_v43 = vadd.f32 %v13213_v38, %v13212_v33  ;;  %13322 = vmatpush3.bf16.msra.mxu1 %v16928_v18 }
 0x151   :  { %13323 = vmatprep.subr.bf16.mxu1 %v16931_v20 }
 0x152   :  { %v920_v47 = vadd.f32 %v13214_v43, %v13168_v37 }
 0x153   :  { %14699 = vmatmul.mubr.msk.f32.gmra.mrb[48].mxu1 %vm956_vm1, %v540_v30  ;;  %v13169_v54 = vpop.f32.mrb[28].mxu0 }
 0x154   :  { %14701 = vmatprep.mubr.msk.f32.mxu1 %vm17414_vm0, %v17415_v1  ;;  %v13215_v57 = vpop.f32.mrb[28].mxu1  ;;  %v13170_v59 = vpop.f32.mrb[29].mxu0  ;;  %v16335_v60 = vpack.c.bf16 %v920_v47, %v917_v42  ;;  %13324 = vmatpush3.bf16.msra.mxu1 %v16932_v36  ;;  %v544_v36 = vld [vmem:[#allocation2 + $0x40] sm:$0xff] }
 0x155   :  { %v13171_v61 = vadd.f32 %v13170_v59, %v13169_v54  ;;  %v13216_v62 = vpop.f32.mrb[29].mxu1  ;;  %v13172_v63 = vpop.f32.mrb[30].mxu0  ;;  %13325 = vmatprep.subr.bf16.mxu1 %v16935_v41 }
 0x156   :  { %v13217_v4 = vadd.f32 %v13216_v62, %v13215_v57  ;;  %v13218_v5 = vpop.f32.mrb[30].mxu1  ;;  %16336 = vmatpush3.bf16.msra.mxu0 %v16335_v60  ;;  %v13173_v7 = vpop.f32.mrb[31].mxu0  ;;  %v16917_v57 = vld [vmem:[%s20791_s5 + $0x240] sm:$0xff]   ;;  %v947_v62 = vld [vmem:[#allocation2 + $0x48] sm:$0xff] }
 0x157   :  { %14702 = vmatmul.mubr.msk.f32.gmra.mrb[50].mxu1 %vm956_vm1, %v541_v46  ;;  %v13174_v9 = vadd.f32 %v13173_v7, %v13172_v63  ;;  %v13219_v11 = vpop.f32.mrb[31].mxu1  ;;  %16337 = vmatprep.subr.bf16.mxu0 %v17413_v0  ;;  %v16918_v63 = vld [vmem:[%s20791_s5 + $0x200] sm:$0xff]   ;;  %v948_v7 = vld [vmem:[#allocation2 + $0x50] sm:$0xff] }
 0x158   :  { %14704 = vmatprep.mubr.msk.f32.mxu1 %vm17414_vm0, %v17415_v1  ;;  %v925_v14 = vadd.f32 %v13217_v4, %v13171_v61  ;;  %v13220_v15 = vadd.f32 %v13219_v11, %v13218_v5  ;;  %13326 = vmatpush3.bf16.msra.mxu1 %v16936_v50  ;;  %v16921_v4 = vld [vmem:[%s20791_s5 + $0x248] sm:$0xff]   ;;  %v949_v11 = vld [vmem:[#allocation2 + $0x58] sm:$0xff] }
 0x159   :  { %13327 = vmatprep.subr.bf16.mxu1 %v16939_v55 }
 0x15a   :  { %v928_v17 = vadd.f32 %v13220_v15, %v13174_v9  ;;  %v16925_v9 = vld [vmem:[%s20791_s5 + $0x250] sm:$0xff]   ;;  %v950_v15 = vld [vmem:[#allocation2 + $0x60] sm:$0xff] }
 0x15b   :  { %14705 = vmatmul.mubr.msk.f32.gmra.mrb[52].mxu1 %vm956_vm1, %v542_v3  ;;  %v13175_v18 = vpop.f32.mrb[32].mxu0 }
 0x15c   :  { %14707 = vmatprep.mubr.msk.f32.mxu1 %vm17414_vm0, %v17415_v1  ;;  %v13221_v20 = vpop.f32.mrb[32].mxu1  ;;  %v13176_v21 = vpop.f32.mrb[33].mxu0  ;;  %v16338_v22 = vpack.c.bf16 %v928_v17, %v925_v14  ;;  %13328 = vmatpush3.bf16.msra.mxu1 %v16940_v8  ;;  %v16922_v8 = vld [vmem:[%s20791_s5 + $0x208] sm:$0xff]   ;;  %v16929_v14 = vld [vmem:[%s20791_s5 + $0x258] sm:$0xff]   ;;  %v16933_v17 = vld [vmem:[%s20791_s5 + $0x260] sm:$0xff]  }
 0x15d   :  { %v13177_v24 = vadd.f32 %v13176_v21, %v13175_v18  ;;  %v13222_v25 = vpop.f32.mrb[33].mxu1  ;;  %v13178_v26 = vpop.f32.mrb[34].mxu0  ;;  %13329 = vmatprep.subr.bf16.mxu1 %v16943_v13  ;;  %v16926_v13 = vld [vmem:[%s20791_s5 + $0x210] sm:$0xff]   ;;  %v951_v18 = vld [vmem:[#allocation2 + $0x68] sm:$0xff] }
 0x15e   :  { %v13223_v29 = vadd.f32 %v13222_v25, %v13221_v20  ;;  %v13224_v30 = vpop.f32.mrb[34].mxu1  ;;  %16339 = vmatpush3.bf16.msra.mxu0 %v16338_v22  ;;  %v13179_v32 = vpop.f32.mrb[35].mxu0  ;;  %v16937_v20 = vld [vmem:[%s20791_s5 + $0x268] sm:$0xff]   ;;  %v952_v21 = vld [vmem:[#allocation2 + $0x70] sm:$0xff]  ;;  %v953_v25 = vld [vmem:[#allocation2 + $0x78] sm:$0xff] }
 0x15f   :  { %14708 = vmatmul.mubr.msk.f32.gmra.mrb[54].mxu1 %vm956_vm1, %v543_v16  ;;  %v13180_v33 = vadd.f32 %v13179_v32, %v13178_v26  ;;  %v13225_v34 = vpop.f32.mrb[35].mxu1  ;;  %16340 = vmatprep.subr.bf16.mxu0 %v17413_v0  ;;  %v16930_v16 = vld [vmem:[%s20791_s5 + $0x218] sm:$0xff]   ;;  %v16938_v22 = vld [vmem:[%s20791_s5 + $0x228] sm:$0xff]   ;;  %v16942_v26 = vld [vmem:[%s20791_s5 + $0x230] sm:$0xff]  }
 0x160   :  { %14710 = vmatprep.mubr.msk.f32.mxu1 %vm17414_vm0, %v17415_v1  ;;  %v933_v37 = vadd.f32 %v13223_v29, %v13177_v24  ;;  %v13226_v38 = vadd.f32 %v13225_v34, %v13224_v30  ;;  %13330 = vmatpush3.bf16.msra.mxu1 %v16944_v19  ;;  %v16934_v19 = vld [vmem:[%s20791_s5 + $0x220] sm:$0xff]   ;;  %v16941_v24 = vld [vmem:[%s20791_s5 + $0x270] sm:$0xff]   ;;  %v16945_v29 = vld [vmem:[%s20791_s5 + $0x278] sm:$0xff]  }
 0x161   :  { %v954_v30 = vld [vmem:[#allocation2 + $0x80] sm:$0xff]  ;;  %v16946_v32 = vld [vmem:[%s20791_s5 + $0x238] sm:$0xff]  }
 0x162   :  { %v936_v41 = vadd.f32 %v13226_v38, %v13180_v33  ;;  %v955_v33 = vld [vmem:[#allocation2 + $0x88] sm:$0xff]  ;;  %v16947_v34 = vld [vmem:[%s20791_s5 + $0x340] sm:$0xff]  }
 0x163   :  { %14711 = vmatmul.mubr.msk.f32.gmra.mrb[56].mxu1 %vm956_vm1, %v544_v36  ;;  %v13181_v42 = vpop.f32.mrb[36].mxu0  ;;  %v16948_v36 = vld [vmem:[%s20791_s5 + $0x300] sm:$0xff]   ;;  %13379 = vmatprep.subr.bf16.mxu1 %v16947_v34  ;;  %v16952_v38 = vld [vmem:[%s20791_s5 + $0x308] sm:$0xff]  }
 0x164   :  { %1592 = vmatprep.mubr.bf16.mxu1 %v17637_v39  ;;  %v13227_v43 = vpop.f32.mrb[36].mxu1  ;;  %v13182_v46 = vpop.f32.mrb[37].mxu0  ;;  %v16341_v47 = vpack.c.bf16 %v936_v41, %v933_v37  ;;  %v16950_v37 = vld [vmem:[%s20791_s5 + $0x348] sm:$0xff]   ;;  %v16954_v41 = vld [vmem:[%s20791_s5 + $0x350] sm:$0xff]  }
 0x165   :  { %v13183_v50 = vadd.f32 %v13182_v46, %v13181_v42  ;;  %v13228_v54 = vpop.f32.mrb[37].mxu1  ;;  %v13184_v55 = vpop.f32.mrb[38].mxu0  ;;  %v16956_v42 = vld [vmem:[%s20791_s5 + $0x310] sm:$0xff]  }
 0x166   :  { %v13229_v59 = vadd.f32 %v13228_v54, %v13227_v43  ;;  %v13230_v60 = vpop.f32.mrb[38].mxu1  ;;  %16342 = vmatpush3.bf16.msra.mxu0 %v16341_v47  ;;  %v13185_v61 = vpop.f32.mrb[39].mxu0  ;;  %v16958_v43 = vld [vmem:[%s20791_s5 + $0x358] sm:$0xff]   ;;  %v16962_v54 = vld [vmem:[%s20791_s5 + $0x360] sm:$0xff]  }
 0x167   :  { %1593 = vmatmul.mubr.bf16.vlgmr.msra.gmra.mrb[60].mxu1 %v17651_v44  ;;  %v13231_v3 = vpop.f32.mrb[39].mxu1  ;;  %14639 = vmatprep.subr.mxu0 %v17415_v1  ;;  %v16960_v47 = vld [vmem:[%s20791_s5 + $0x318] sm:$0xff]   ;;  %v16966_v60 = vld [vmem:[%s20791_s5 + $0x368] sm:$0xff]  }
 0x168   :  { %1600 = vmatprep.mubr.bf16.mxu1 %v17666_v49  ;;  %v941_v5 = vadd.f32 %v13229_v59, %v13183_v50  ;;  %13380 = vmatpush3.bf16.msra.mxu1 %v16948_v36  ;;  %v16970_v3 = vld [vmem:[%s20791_s5 + $0x370] sm:$0xff]  }
 0x169   :  { %13381 = vmatprep.subr.bf16.mxu1 %v16950_v37 }
 0x16a   :  { %14640 = vmatpush3.msra.mxu0 %v941_v5  ;;  %v16972_v5 = vld [vmem:[%s20791_s5 + $0x330] sm:$0xff]  }
 0x16b   :  { %14642 = vmatmul.mubr.msk.f32.vlgmr.msra.gmra.mrb[40].mxu0 %vm956_vm1, %v947_v62  ;;  %13269 = vmatprep.subr.bf16.mxu0 %v16917_v57  ;;  %v16964_v57 = vld [vmem:[%s20791_s5 + $0x320] sm:$0xff]   ;;  %v16968_v62 = vld [vmem:[%s20791_s5 + $0x328] sm:$0xff]  }
 0x16c   :  { %14644 = vmatprep.mubr.msk.f32.mxu0 %vm17414_vm0, %v17415_v1  ;;  %13270 = vmatpush3.bf16.msra.mxu0 %v16918_v63 }
 0x16d   :  { %13271 = vmatprep.subr.bf16.mxu0 %v16921_v4  ;;  %13382 = vmatpush3.bf16.msra.mxu1 %v16952_v38 }
 0x16e   :  { %13383 = vmatprep.subr.bf16.mxu1 %v16954_v41 }
 0x16f   :  { %1601 = vmatmul.mubr.bf16.gmra.mrb[64].mxu1 %v17694_v58  ;;  %14645 = vmatmul.mubr.msk.f32.gmra.mrb[42].mxu0 %vm956_vm1, %v948_v7 }
 0x170   :  { %1608 = vmatprep.mubr.bf16.mxu1 %v17730_v6  ;;  %14647 = vmatprep.mubr.msk.f32.mxu0 %vm17414_vm0, %v17415_v1 }
 0x171   :  { %13272 = vmatpush3.bf16.msra.mxu0 %v16922_v8  ;;  %13384 = vmatpush3.bf16.msra.mxu1 %v16956_v42  ;;  %v16974_v8 = vld [vmem:[%s20791_s5 + $0x378] sm:$0xff]  }
 0x172   :  { %13273 = vmatprep.subr.bf16.mxu0 %v16925_v9  ;;  %13385 = vmatprep.subr.bf16.mxu1 %v16958_v43 }
 0x173   :  { %14648 = vmatmul.mubr.msk.f32.gmra.mrb[44].mxu0 %vm956_vm1, %v949_v11  ;;  %v16976_v11 = vld [vmem:[%s20791_s5 + $0x338] sm:$0xff]  }
 0x174   :  { %14650 = vmatprep.mubr.msk.f32.mxu0 %vm17414_vm0, %v17415_v1 }
 0x175   :  { %13274 = vmatpush3.bf16.msra.mxu0 %v16926_v13  ;;  %13386 = vmatpush3.bf16.msra.mxu1 %v16960_v47 }
 0x176   :  { %13275 = vmatprep.subr.bf16.mxu0 %v16929_v14  ;;  %13387 = vmatprep.subr.bf16.mxu1 %v16962_v54 }
 0x177   :  { %1609 = vmatmul.mubr.bf16.gmra.mrb[68].mxu1 %v17748_v12  ;;  %14651 = vmatmul.mubr.msk.f32.gmra.mrb[46].mxu0 %vm956_vm1, %v950_v15 }
 0x178   :  { %1616 = vmatprep.mubr.bf16.mxu1 %v17793_v27  ;;  %14653 = vmatprep.mubr.msk.f32.mxu0 %vm17414_vm0, %v17415_v1 }
 0x179   :  { %13276 = vmatpush3.bf16.msra.mxu0 %v16930_v16  ;;  %13388 = vmatpush3.bf16.msra.mxu1 %v16964_v57 }
 0x17a   :  { %13277 = vmatprep.subr.bf16.mxu0 %v16933_v17  ;;  %13389 = vmatprep.subr.bf16.mxu1 %v16966_v60 }
 0x17b   :  { %14654 = vmatmul.mubr.msk.f32.gmra.mrb[48].mxu0 %vm956_vm1, %v951_v18 }
 0x17c   :  { %14656 = vmatprep.mubr.msk.f32.mxu0 %vm17414_vm0, %v17415_v1 }
 0x17d   :  { %13278 = vmatpush3.bf16.msra.mxu0 %v16934_v19  ;;  %13390 = vmatpush3.bf16.msra.mxu1 %v16968_v62 }
 0x17e   :  { %13279 = vmatprep.subr.bf16.mxu0 %v16937_v20  ;;  %13391 = vmatprep.subr.bf16.mxu1 %v16970_v3 }
 0x17f   :  { %1617 = vmatmul.mubr.bf16.gmra.mrb[72].mxu1 %v17804_v31  ;;  %14657 = vmatmul.mubr.msk.f32.gmra.mrb[50].mxu0 %vm956_vm1, %v952_v21 }
 0x180   :  { %1624 = vmatprep.mubr.bf16.mxu1 %v17847_v51  ;;  %14659 = vmatprep.mubr.msk.f32.mxu0 %vm17414_vm0, %v17415_v1 }
 0x181   :  { %13280 = vmatpush3.bf16.msra.mxu0 %v16938_v22  ;;  %13392 = vmatpush3.bf16.msra.mxu1 %v16972_v5 }
 0x182   :  { %13281 = vmatprep.subr.bf16.mxu0 %v16941_v24  ;;  %13393 = vmatprep.subr.bf16.mxu1 %v16974_v8 }
 0x183   :  { %14660 = vmatmul.mubr.msk.f32.gmra.mrb[52].mxu0 %vm956_vm1, %v953_v25 }
 0x184   :  { %14662 = vmatprep.mubr.msk.f32.mxu0 %vm17414_vm0, %v17415_v1 }
 0x185   :  { %13282 = vmatpush3.bf16.msra.mxu0 %v16942_v26  ;;  %13394 = vmatpush3.bf16.msra.mxu1 %v16976_v11 }
 0x186   :  { %13283 = vmatprep.subr.bf16.mxu0 %v16945_v29  ;;  %16367 = vmatprep.subr.bf16.mxu1 %v17413_v0 }
 0x187   :  { %1625 = vmatmul.mubr.bf16.gmra.mrb[76].mxu1 %v17851_v53  ;;  %14663 = vmatmul.mubr.msk.f32.gmra.mrb[54].mxu0 %vm956_vm1, %v954_v30 }
 0x188   :  { %2077 = vmatprep.mubr.bf16.mxu1 %v17626_v35  ;;  %14665 = vmatprep.mubr.msk.f32.mxu0 %vm17414_vm0, %v17415_v1 }
 0x189   :  { %13284 = vmatpush3.bf16.msra.mxu0 %v16946_v32 }
 0x18a   :  { %16355 = vmatprep.subr.bf16.mxu0 %v17413_v0 }
 0x18b   :  { %14666 = vmatmul.mubr.msk.f32.gmra.mrb[56].mxu0 %vm956_vm1, %v955_v33 }
 0x18c   :  { %1520 = vmatprep.mubr.bf16.mxu0 %v17626_v35 }
 0x18f   :  { %1521 = vmatmul.mubr.bf16.vlgmr.msra.gmra.mrb[60].mxu0 %v17639_v40  ;;  %2078 = vmatmul.mubr.bf16.vlgmr.msra.gmra.mrb[80].mxu1 %v17639_v40 }
 0x190   :  { %1528 = vmatprep.mubr.bf16.mxu0 %v17664_v48  ;;  %2085 = vmatprep.mubr.bf16.mxu1 %v17664_v48 }
 0x197   :  { %1529 = vmatmul.mubr.bf16.gmra.mrb[64].mxu0 %v17689_v56  ;;  %2086 = vmatmul.mubr.bf16.gmra.mrb[84].mxu1 %v17689_v56 }
 0x198   :  { %1536 = vmatprep.mubr.bf16.mxu0 %v17719_v2  ;;  %2093 = vmatprep.mubr.bf16.mxu1 %v17719_v2 }
 0x19f   :  { %1537 = vmatmul.mubr.bf16.gmra.mrb[68].mxu0 %v17742_v10  ;;  %2094 = vmatmul.mubr.bf16.gmra.mrb[88].mxu1 %v17742_v10 }
 0x1a0   :  { %1544 = vmatprep.mubr.bf16.mxu0 %v17782_v23  ;;  %2101 = vmatprep.mubr.bf16.mxu1 %v17782_v23 }
 0x1a7   :  { %1545 = vmatmul.mubr.bf16.gmra.mrb[72].mxu0 %v17795_v28  ;;  %2102 = vmatmul.mubr.bf16.gmra.mrb[92].mxu1 %v17795_v28 }
 0x1a8   :  { %1552 = vmatprep.mubr.bf16.mxu0 %v17836_v45  ;;  %2109 = vmatprep.mubr.bf16.mxu1 %v17836_v45 }
 0x1af   :  { %1553 = vmatmul.mubr.bf16.gmra.mrb[76].mxu0 %v17849_v52  ;;  %2110 = vmatmul.mubr.bf16.gmra.mrb[96].mxu1 %v17849_v52 }
 0x1b0   :  { %14731 = vmatprep.mubr.msk.f32.mxu0 %vm17414_vm0, %v17415_v1  ;;  %14776 = vmatprep.mubr.msk.f32.mxu1 %vm17414_vm0, %v17415_v1 }
 0x216   :  { %v1187_v46 = vpop.f32.mrb[40].mxu1 }
 0x217   :  { %v14688_v50 = vpop.f32.mrb[41].mxu1 }
 0x21a   :  { %v1192_v55 = vpop.f32.mrb[42].mxu1 }
 0x21b   :  { %v14691_v59 = vpop.f32.mrb[43].mxu1 }
 0x21e   :  { %v1197_v61 = vpop.f32.mrb[44].mxu1 }
 0x21f   :  { %v14694_v63 = vpop.f32.mrb[45].mxu1 }
 0x222   :  { %v1202_v4 = vpop.f32.mrb[46].mxu1 }
 0x223   :  { %v14697_v7 = vpop.f32.mrb[47].mxu1 }
 0x226   :  { %v1207_v9 = vpop.f32.mrb[48].mxu1 }
 0x227   :  { %v14700_v13 = vpop.f32.mrb[49].mxu1 }
 0x22a   :  { %v1212_v14 = vpop.f32.mrb[50].mxu1 }
 0x22b   :  { %v14703_v15 = vpop.f32.mrb[51].mxu1 }
 0x22e   :  { %v1217_v16 = vpop.f32.mrb[52].mxu1 }
 0x22f   :  { %v14706_v17 = vpop.f32.mrb[53].mxu1 }
 0x232   :  { %v1222_v18 = vpop.f32.mrb[54].mxu1 }
 0x233   :  { %v14709_v19 = vpop.f32.mrb[55].mxu1 }
 0x236   :  { %v1227_v20 = vpop.f32.mrb[56].mxu1 }
 0x237   :  { %v14712_v21 = vpop.f32.mrb[57].mxu1 }
 0x23a   :  { %v13331_v22 = vpop.f32.mrb[60].mxu1 }
 0x23b   :  { %v13332_v24 = vpop.f32.mrb[61].mxu1 }
 0x23c   :  { %v18139_v25 = vadd.f32 %v13332_v24, %v13331_v22  ;;  %v13334_v26 = vpop.f32.mrb[62].mxu1 }
 0x23d   :  { %v13335_v29 = vpop.f32.mrb[63].mxu1 }
 0x23e   :  { %v13336_v30 = vadd.f32 %v13335_v29, %v13334_v26  ;;  %v1050_v32 = vpop.f32.mrb[40].mxu0 }
 0x23f   :  { %v18142_v33 = vadd.f32 %v1187_v46, %v1050_v32  ;;  %v14643_v34 = vpop.f32.mrb[41].mxu0 }
 0x242   :  { %v13337_v36 = vpop.f32.mrb[64].mxu1  ;;  %v1055_v37 = vpop.f32.mrb[42].mxu0 }
 0x243   :  { %v13338_v38 = vpop.f32.mrb[65].mxu1  ;;  %v18145_v41 = vadd.f32 %v1192_v55, %v1055_v37  ;;  %v14646_v42 = vpop.f32.mrb[43].mxu0 }
 0x244   :  { %v13339_v43 = vadd.f32 %v13338_v38, %v13337_v36  ;;  %v13340_v47 = vpop.f32.mrb[66].mxu1 }
 0x245   :  { %v13341_v50 = vpop.f32.mrb[67].mxu1 }
 0x246   :  { %v13342_v54 = vadd.f32 %v13341_v50, %v13340_v47  ;;  %v1060_v57 = vpop.f32.mrb[44].mxu0 }
 0x247   :  { %v18148_v59 = vadd.f32 %v1197_v61, %v1060_v57  ;;  %v14649_v46 = vpop.f32.mrb[45].mxu0 }
 0x24a   :  { %v13343_v60 = vpop.f32.mrb[68].mxu1  ;;  %v1065_v62 = vpop.f32.mrb[46].mxu0 }
 0x24b   :  { %v13344_v63 = vpop.f32.mrb[69].mxu1  ;;  %v18151_v3 = vadd.f32 %v1202_v4, %v1065_v62  ;;  %v14652_v55 = vpop.f32.mrb[47].mxu0 }
 0x24c   :  { %v13345_v5 = vadd.f32 %v13344_v63, %v13343_v60  ;;  %v13346_v7 = vpop.f32.mrb[70].mxu1 }
 0x24d   :  { %v13347_v8 = vpop.f32.mrb[71].mxu1 }
 0x24e   :  { %v13348_v11 = vadd.f32 %v13347_v8, %v13346_v7  ;;  %v1070_v13 = vpop.f32.mrb[48].mxu0 }
 0x24f   :  { %v18155_v15 = vadd.f32 %v1207_v9, %v1070_v13  ;;  %v14655_v61 = vpop.f32.mrb[49].mxu0 }
 0x252   :  { %v13349_v17 = vpop.f32.mrb[72].mxu1  ;;  %v1075_v19 = vpop.f32.mrb[50].mxu0 }
 0x253   :  { %v13350_v21 = vpop.f32.mrb[73].mxu1  ;;  %v18157_v22 = vadd.f32 %v1212_v14, %v1075_v19  ;;  %v14658_v24 = vpop.f32.mrb[51].mxu0 }
 0x254   :  { %v13351_v4 = vadd.f32 %v13350_v21, %v13349_v17  ;;  %v13352_v26 = vpop.f32.mrb[74].mxu1 }
 0x255   :  { %v13353_v29 = vpop.f32.mrb[75].mxu1 }
 0x256   :  { %v13354_v32 = vadd.f32 %v13353_v29, %v13352_v26  ;;  %v1080_v34 = vpop.f32.mrb[52].mxu0 }
 0x257   :  { %v18159_v36 = vadd.f32 %v1217_v16, %v1080_v34  ;;  %v14661_v37 = vpop.f32.mrb[53].mxu0 }
 0x25a   :  { %v13355_v38 = vpop.f32.mrb[76].mxu1  ;;  %v1085_v42 = vpop.f32.mrb[54].mxu0 }
 0x25b   :  { %v13356_v47 = vpop.f32.mrb[77].mxu1  ;;  %v18161_v9 = vadd.f32 %v1222_v18, %v1085_v42  ;;  %v14664_v50 = vpop.f32.mrb[55].mxu0 }
 0x25c   :  { %v13357_v57 = vadd.f32 %v13356_v47, %v13355_v38  ;;  %v13358_v46 = vpop.f32.mrb[78].mxu1 }
 0x25d   :  { %v13359_v60 = vpop.f32.mrb[79].mxu1 }
 0x25e   :  { %v1090_v14 = vpop.f32.mrb[56].mxu0 }
 0x25f   :  { %v18163_v62 = vadd.f32 %v1227_v20, %v1090_v14  ;;  %v14667_v63 = vpop.f32.mrb[57].mxu0 }
 0x262   :  { %v13285_v55 = vpop.f32.mrb[60].mxu0 }
 0x263   :  { %v13286_v7 = vpop.f32.mrb[61].mxu0 }
 0x264   :  { %v13287_v8 = vadd.f32 %v13286_v7, %v13285_v55  ;;  %v13288_v13 = vpop.f32.mrb[62].mxu0 }
 0x265   :  { %v13289_v16 = vpop.f32.mrb[63].mxu0 }
 0x266   :  { %v1595_v61 = vadd.f32 %v18139_v25, %v13287_v8  ;;  %v13290_v17 = vadd.f32 %v13289_v16, %v13288_v13 }
 0x268   :  { %v1598_v19 = vadd.f32 %v13336_v30, %v13290_v17 }
 0x26a   :  { %v13291_v21 = vpop.f32.mrb[64].mxu0  ;;  %v16356_v18 = vpack.c.bf16 %v1598_v19, %v1595_v61 }
 0x26b   :  { %v13292_v24 = vpop.f32.mrb[65].mxu0 }
 0x26c   :  { %v13293_v26 = vadd.f32 %v13292_v24, %v13291_v21  ;;  %v13294_v29 = vpop.f32.mrb[66].mxu0  ;;  %16357 = vmatpush3.bf16.msra.mxu0 %v16356_v18 }
 0x26d   :  { %v13295_v34 = vpop.f32.mrb[67].mxu0  ;;  %16358 = vmatprep.subr.bf16.mxu0 %v17413_v0 }
 0x26e   :  { %v1603_v20 = vadd.f32 %v13339_v43, %v13293_v26  ;;  %v13296_v37 = vadd.f32 %v13295_v34, %v13294_v29  ;;  %v1633_v34 = vld [vmem:[#allocation2 + $0x90] sm:$0xff] }
 0x270   :  { %v1606_v38 = vadd.f32 %v13342_v54, %v13296_v37  ;;  %v16957_v37 = vld [vmem:[%s20791_s5 + $0x3d0] sm:$0xff]  }
 0x272   :  { %v13297_v42 = vpop.f32.mrb[68].mxu0  ;;  %v16359_v47 = vpack.c.bf16 %v1606_v38, %v1603_v20  ;;  %v1634_v20 = vld [vmem:[#allocation2 + $0x98] sm:$0xff]  ;;  %v1635_v38 = vld [vmem:[#allocation2 + $0xa0] sm:$0xff] }
 0x273   :  { %v13298_v50 = vpop.f32.mrb[69].mxu0 }
 0x274   :  { %v13299_v46 = vadd.f32 %v13298_v50, %v13297_v42  ;;  %v13300_v60 = vpop.f32.mrb[70].mxu0  ;;  %16360 = vmatpush3.bf16.msra.mxu0 %v16359_v47  ;;  %v16959_v42 = vld [vmem:[%s20791_s5 + $0x390] sm:$0xff]   ;;  %v16961_v47 = vld [vmem:[%s20791_s5 + $0x3d8] sm:$0xff]   ;;  %v1636_v50 = vld [vmem:[#allocation2 + $0xa8] sm:$0xff] }
 0x275   :  { %v13301_v25 = vpop.f32.mrb[71].mxu0  ;;  %16361 = vmatprep.subr.bf16.mxu0 %v17413_v0 }
 0x276   :  { %v1611_v30 = vadd.f32 %v13345_v5, %v13299_v46  ;;  %v13302_v14 = vadd.f32 %v13301_v25, %v13300_v60  ;;  %v16963_v46 = vld [vmem:[%s20791_s5 + $0x398] sm:$0xff]   ;;  %v16965_v60 = vld [vmem:[%s20791_s5 + $0x3e0] sm:$0xff]   ;;  %v1637_v25 = vld [vmem:[#allocation2 + $0xb0] sm:$0xff] }
 0x278   :  { %v1614_v63 = vadd.f32 %v13348_v11, %v13302_v14  ;;  %v16949_v11 = vld [vmem:[%s20791_s5 + $0x3c0] sm:$0xff]   ;;  %v16969_v14 = vld [vmem:[%s20791_s5 + $0x3e8] sm:$0xff]  }
 0x27a   :  { %v13303_v55 = vpop.f32.mrb[72].mxu0  ;;  %v16362_v7 = vpack.c.bf16 %v1614_v63, %v1611_v30  ;;  %v16967_v30 = vld [vmem:[%s20791_s5 + $0x3a0] sm:$0xff]   ;;  %v1638_v63 = vld [vmem:[#allocation2 + $0xb8] sm:$0xff] }
 0x27b   :  { %v13304_v8 = vpop.f32.mrb[73].mxu0 }
 0x27c   :  { %v13305_v13 = vadd.f32 %v13304_v8, %v13303_v55  ;;  %v13306_v16 = vpop.f32.mrb[74].mxu0  ;;  %16363 = vmatpush3.bf16.msra.mxu0 %v16362_v7  ;;  %v16971_v55 = vld [vmem:[%s20791_s5 + $0x3a8] sm:$0xff]   ;;  %v16973_v7 = vld [vmem:[%s20791_s5 + $0x3f0] sm:$0xff]   ;;  %v1639_v8 = vld [vmem:[#allocation2 + $0xc0] sm:$0xff] }
 0x27d   :  { %v13307_v43 = vpop.f32.mrb[75].mxu0  ;;  %16364 = vmatprep.subr.bf16.mxu0 %v17413_v0 }
 0x27e   :  { %v1619_v54 = vadd.f32 %v13351_v4, %v13305_v13  ;;  %v13308_v61 = vadd.f32 %v13307_v43, %v13306_v16  ;;  %v16951_v4 = vld [vmem:[%s20791_s5 + $0x380] sm:$0xff]   ;;  %v16975_v13 = vld [vmem:[%s20791_s5 + $0x3b0] sm:$0xff]   ;;  %v16977_v16 = vld [vmem:[%s20791_s5 + $0x3f8] sm:$0xff]  }
 0x27f   :  { %v1640_v43 = vld [vmem:[#allocation2 + $0xc8] sm:$0xff] }
 0x280   :  { %v1622_v17 = vadd.f32 %v13354_v32, %v13308_v61  ;;  %v16953_v32 = vld [vmem:[%s20791_s5 + $0x3c8] sm:$0xff]   ;;  %v1641_v61 = vld [vmem:[#allocation2 + $0xd0] sm:$0xff] }
 0x282   :  { %v13309_v19 = vpop.f32.mrb[76].mxu0  ;;  %v16365_v21 = vpack.c.bf16 %v1622_v17, %v1619_v54  ;;  %v16978_v54 = vld [vmem:[%s20791_s5 + $0x3b8] sm:$0xff]   ;;  %v13395_v17 = vpop.f32.mrb[80].mxu1 }
 0x283   :  { %v13310_v18 = vpop.f32.mrb[77].mxu0 }
 0x284   :  { %v13311_v24 = vadd.f32 %v13310_v18, %v13309_v19  ;;  %v13312_v26 = vpop.f32.mrb[78].mxu0  ;;  %16366 = vmatpush3.bf16.msra.mxu0 %v16365_v21  ;;  %v13396_v19 = vpop.f32.mrb[81].mxu1 }
 0x285   :  { %v13313_v5 = vpop.f32.mrb[79].mxu0  ;;  %14729 = vmatprep.subr.mxu0 %v17415_v1  ;;  %v18254_v21 = vadd.f32 %v13396_v19, %v13395_v17  ;;  %v13398_v18 = vpop.f32.mrb[82].mxu1  ;;  %v16986_v17 = vld [vmem:[%s20791_s5 + $0x450] sm:$0xff]  }
 0x286   :  { %v1627_v29 = vadd.f32 %v13357_v57, %v13311_v24  ;;  %v16955_v57 = vld [vmem:[%s20791_s5 + $0x388] sm:$0xff]   ;;  %v13399_v24 = vpop.f32.mrb[83].mxu1  ;;  %v16988_v19 = vld [vmem:[%s20791_s5 + $0x410] sm:$0xff]  }
 0x287   :  { %v18256_v26 = vadd.f32 %v13399_v24, %v13398_v18  ;;  %v13401_v5 = vpop.f32.mrb[84].mxu1  ;;  %v16990_v18 = vld [vmem:[%s20791_s5 + $0x458] sm:$0xff]  }
 0x288   :  { %14730 = vmatpush3.msra.mxu0 %v1627_v29  ;;  %v16992_v24 = vld [vmem:[%s20791_s5 + $0x418] sm:$0xff]  }
 0x289   :  { %14732 = vmatmul.mubr.msk.f32.vlgmr.msra.gmra.mrb[58].mxu0 %vm956_vm1, %v1633_v34  ;;  %13425 = vmatprep.subr.bf16.mxu0 %v16949_v11  ;;  %v13402_v11 = vpop.f32.mrb[85].mxu1 }
 0x28a   :  { %14734 = vmatprep.mubr.msk.f32.mxu0 %vm17414_vm0, %v17415_v1  ;;  %13426 = vmatpush3.bf16.msra.mxu0 %v16951_v4  ;;  %v18258_v29 = vadd.f32 %v13402_v11, %v13401_v5  ;;  %v13404_v34 = vpop.f32.mrb[86].mxu1  ;;  %v16994_v5 = vld [vmem:[%s20791_s5 + $0x460] sm:$0xff]  }
 0x28b   :  { %13427 = vmatprep.subr.bf16.mxu0 %v16953_v32  ;;  %v13405_v4 = vpop.f32.mrb[87].mxu1  ;;  %v16996_v11 = vld [vmem:[%s20791_s5 + $0x420] sm:$0xff]  }
 0x28c   :  { %v18260_v32 = vadd.f32 %v13405_v4, %v13404_v34  ;;  %v16998_v34 = vld [vmem:[%s20791_s5 + $0x468] sm:$0xff]  }
 0x28d   :  { %14735 = vmatmul.mubr.msk.f32.gmra.mrb[80].mxu0 %vm956_vm1, %v1634_v20  ;;  %v13407_v20 = vpop.f32.mrb[88].mxu1  ;;  %v17000_v4 = vld [vmem:[%s20791_s5 + $0x428] sm:$0xff]  }
 0x28e   :  { %14737 = vmatprep.mubr.msk.f32.mxu0 %vm17414_vm0, %v17415_v1  ;;  %13428 = vmatpush3.bf16.msra.mxu0 %v16955_v57  ;;  %v13408_v57 = vpop.f32.mrb[89].mxu1 }
 0x28f   :  { %13429 = vmatprep.subr.bf16.mxu0 %v16957_v37  ;;  %v18262_v37 = vadd.f32 %v13408_v57, %v13407_v20  ;;  %v17002_v20 = vld [vmem:[%s20791_s5 + $0x470] sm:$0xff]  }
 0x290   :  { %v17004_v57 = vld [vmem:[%s20791_s5 + $0x430] sm:$0xff]  }
 0x291   :  { %14738 = vmatmul.mubr.msk.f32.gmra.mrb[82].mxu0 %vm956_vm1, %v1635_v38  ;;  %v13410_v38 = vpop.f32.mrb[90].mxu1 }
 0x292   :  { %14740 = vmatprep.mubr.msk.f32.mxu0 %vm17414_vm0, %v17415_v1  ;;  %13430 = vmatpush3.bf16.msra.mxu0 %v16959_v42  ;;  %v13411_v42 = vpop.f32.mrb[91].mxu1 }
 0x293   :  { %13431 = vmatprep.subr.bf16.mxu0 %v16961_v47  ;;  %v18264_v47 = vadd.f32 %v13411_v42, %v13410_v38  ;;  %v17006_v38 = vld [vmem:[%s20791_s5 + $0x478] sm:$0xff]  }
 0x294   :  { %v17008_v42 = vld [vmem:[%s20791_s5 + $0x438] sm:$0xff]  }
 0x295   :  { %14741 = vmatmul.mubr.msk.f32.gmra.mrb[84].mxu0 %vm956_vm1, %v1636_v50  ;;  %v13413_v50 = vpop.f32.mrb[92].mxu1 }
 0x296   :  { %14743 = vmatprep.mubr.msk.f32.mxu0 %vm17414_vm0, %v17415_v1  ;;  %13432 = vmatpush3.bf16.msra.mxu0 %v16963_v46  ;;  %v13414_v46 = vpop.f32.mrb[93].mxu1 }
 0x297   :  { %13433 = vmatprep.subr.bf16.mxu0 %v16965_v60  ;;  %v18266_v60 = vadd.f32 %v13414_v46, %v13413_v50 }
 0x299   :  { %14744 = vmatmul.mubr.msk.f32.gmra.mrb[86].mxu0 %vm956_vm1, %v1637_v25  ;;  %v13416_v25 = vpop.f32.mrb[94].mxu1 }
 0x29a   :  { %14746 = vmatprep.mubr.msk.f32.mxu0 %vm17414_vm0, %v17415_v1  ;;  %13434 = vmatpush3.bf16.msra.mxu0 %v16967_v30  ;;  %v13417_v30 = vpop.f32.mrb[95].mxu1 }
 0x29b   :  { %13435 = vmatprep.subr.bf16.mxu0 %v16969_v14  ;;  %v18268_v14 = vadd.f32 %v13417_v30, %v13416_v25 }
 0x29d   :  { %14747 = vmatmul.mubr.msk.f32.gmra.mrb[88].mxu0 %vm956_vm1, %v1638_v63  ;;  %v13419_v63 = vpop.f32.mrb[96].mxu1 }
 0x29e   :  { %14749 = vmatprep.mubr.msk.f32.mxu0 %vm17414_vm0, %v17415_v1  ;;  %13436 = vmatpush3.bf16.msra.mxu0 %v16971_v55  ;;  %v13420_v55 = vpop.f32.mrb[97].mxu1 }
 0x29f   :  { %13437 = vmatprep.subr.bf16.mxu0 %v16973_v7  ;;  %v18270_v7 = vadd.f32 %v13420_v55, %v13419_v63 }
 0x2a1   :  { %14750 = vmatmul.mubr.msk.f32.gmra.mrb[90].mxu0 %vm956_vm1, %v1639_v8  ;;  %v13422_v8 = vpop.f32.mrb[98].mxu1 }
 0x2a2   :  { %14752 = vmatprep.mubr.msk.f32.mxu0 %vm17414_vm0, %v17415_v1  ;;  %13438 = vmatpush3.bf16.msra.mxu0 %v16975_v13  ;;  %v13423_v13 = vpop.f32.mrb[99].mxu1 }
 0x2a3   :  { %13439 = vmatprep.subr.bf16.mxu0 %v16977_v16  ;;  %v16979_v16 = vld [vmem:[%s20791_s5 + $0x440] sm:$0xff]  }
 0x2a5   :  { %14753 = vmatmul.mubr.msk.f32.gmra.mrb[92].mxu0 %vm956_vm1, %v1640_v43  ;;  %v16980_v43 = vld [vmem:[%s20791_s5 + $0x400] sm:$0xff]  }
 0x2a6   :  { %14755 = vmatprep.mubr.msk.f32.mxu0 %vm17414_vm0, %v17415_v1  ;;  %13440 = vmatpush3.bf16.msra.mxu0 %v16978_v54  ;;  %v16982_v54 = vld [vmem:[%s20791_s5 + $0x448] sm:$0xff]  }
 0x2a7   :  { %13489 = vmatprep.subr.bf16.mxu0 %v16979_v16 }
 0x2a9   :  { %14756 = vmatmul.mubr.msk.f32.gmra.mrb[94].mxu0 %vm956_vm1, %v1641_v61  ;;  %v16984_v61 = vld [vmem:[%s20791_s5 + $0x408] sm:$0xff]  }
 0x2aa   :  { %2149 = vmatprep.mubr.bf16.mxu0 %v17637_v39 }
 0x2ad   :  { %2150 = vmatmul.mubr.bf16.vlgmr.msra.gmra.mrb[96].mxu0 %v17651_v44 }
 0x2ae   :  { %2157 = vmatprep.mubr.bf16.mxu0 %v17666_v49  ;;  %13490 = vmatpush3.bf16.msra.mxu0 %v16980_v43 }
 0x2af   :  { %13491 = vmatprep.subr.bf16.mxu0 %v16982_v54 }
 0x2b2   :  { %13492 = vmatpush3.bf16.msra.mxu0 %v16984_v61 }
 0x2b3   :  { %13493 = vmatprep.subr.bf16.mxu0 %v16986_v17 }
 0x2b5   :  { %2158 = vmatmul.mubr.bf16.gmra.mrb[100].mxu0 %v17694_v58 }
 0x2b6   :  { %2165 = vmatprep.mubr.bf16.mxu0 %v17730_v6  ;;  %13494 = vmatpush3.bf16.msra.mxu0 %v16988_v19 }
 0x2b7   :  { %13495 = vmatprep.subr.bf16.mxu0 %v16990_v18 }
 0x2ba   :  { %13496 = vmatpush3.bf16.msra.mxu0 %v16992_v24 }
 0x2bb   :  { %13497 = vmatprep.subr.bf16.mxu0 %v16994_v5 }
 0x2bd   :  { %2166 = vmatmul.mubr.bf16.gmra.mrb[104].mxu0 %v17748_v12 }
 0x2be   :  { %2173 = vmatprep.mubr.bf16.mxu0 %v17793_v27  ;;  %13498 = vmatpush3.bf16.msra.mxu0 %v16996_v11 }
 0x2bf   :  { %13499 = vmatprep.subr.bf16.mxu0 %v16998_v34 }
 0x2c2   :  { %13500 = vmatpush3.bf16.msra.mxu0 %v17000_v4 }
 0x2c3   :  { %13501 = vmatprep.subr.bf16.mxu0 %v17002_v20 }
 0x2c5   :  { %2174 = vmatmul.mubr.bf16.gmra.mrb[108].mxu0 %v17804_v31 }
 0x2c6   :  { %2181 = vmatprep.mubr.bf16.mxu0 %v17847_v51  ;;  %13502 = vmatpush3.bf16.msra.mxu0 %v17004_v57 }
 0x2c7   :  { %13503 = vmatprep.subr.bf16.mxu0 %v17006_v38 }
 0x2ca   :  { %13504 = vmatpush3.bf16.msra.mxu0 %v17008_v42 }
 0x2cb   :  { %16379 = vmatprep.subr.bf16.mxu0 %v17413_v0 }
 0x2cd   :  { %2182 = vmatmul.mubr.bf16.gmra.mrb[112].mxu0 %v17851_v53 }
 0x2ce   :  { %2634 = vmatprep.mubr.bf16.mxu0 %v17626_v35 }
 0x2d5   :  { %2635 = vmatmul.mubr.bf16.vlgmr.msra.gmra.mrb[116].mxu0 %v17639_v40 }
 0x2d6   :  { %2642 = vmatprep.mubr.bf16.mxu0 %v17664_v48 }
 0x2dd   :  { %2643 = vmatmul.mubr.bf16.gmra.mrb[120].mxu0 %v17689_v56 }
 0x2de   :  { %2650 = vmatprep.mubr.bf16.mxu0 %v17719_v2 }
 0x2e5   :  { %2651 = vmatmul.mubr.bf16.gmra.mrb[124].mxu0 %v17742_v10 }
 0x2e6   :  { %2658 = vmatprep.mubr.bf16.mxu0 %v17782_v23 }
 0x2ed   :  { %2659 = vmatmul.mubr.bf16.gmra.mrb[128].mxu0 %v17795_v28 }
 0x2ee   :  { %2666 = vmatprep.mubr.bf16.mxu0 %v17836_v45 }
 0x2f5   :  { %2667 = vmatmul.mubr.bf16.gmra.mrb[132].mxu0 %v17849_v52 }
 0x2f6   :  { %14821 = vmatprep.mubr.msk.f32.mxu0 %vm17414_vm0, %v17415_v1 }
 0x35c   :  { %v1735_v50 = vpop.f32.mrb[58].mxu0 }
 0x35d   :  { %v18328_v46 = vadd.f32 %v1735_v50, %v18142_v33  ;;  %v14733_v25 = vpop.f32.mrb[59].mxu0 }
 0x360   :  { %v1740_v30 = vpop.f32.mrb[80].mxu0 }
 0x361   :  { %v18332_v63 = vadd.f32 %v1740_v30, %v18145_v41  ;;  %v14736_v55 = vpop.f32.mrb[81].mxu0 }
 0x364   :  { %v1745_v8 = vpop.f32.mrb[82].mxu0 }
 0x365   :  { %v18336_v13 = vadd.f32 %v1745_v8, %v18148_v59  ;;  %v14739_v16 = vpop.f32.mrb[83].mxu0 }
 0x368   :  { %v1750_v43 = vpop.f32.mrb[84].mxu0 }
 0x369   :  { %v18340_v33 = vadd.f32 %v1750_v43, %v18151_v3  ;;  %v14742_v54 = vpop.f32.mrb[85].mxu0 }
 0x36c   :  { %v1755_v41 = vpop.f32.mrb[86].mxu0 }
 0x36d   :  { %v18345_v61 = vadd.f32 %v1755_v41, %v18155_v15  ;;  %v14745_v17 = vpop.f32.mrb[87].mxu0 }
 0x370   :  { %v1760_v19 = vpop.f32.mrb[88].mxu0 }
 0x371   :  { %v18348_v59 = vadd.f32 %v1760_v19, %v18157_v22  ;;  %v14748_v18 = vpop.f32.mrb[89].mxu0 }
 0x374   :  { %v1765_v24 = vpop.f32.mrb[90].mxu0 }
 0x375   :  { %v18351_v5 = vadd.f32 %v1765_v24, %v18159_v36  ;;  %v14751_v3 = vpop.f32.mrb[91].mxu0 }
 0x378   :  { %v1770_v11 = vpop.f32.mrb[92].mxu0 }
 0x379   :  { %v18354_v34 = vadd.f32 %v1770_v11, %v18161_v9  ;;  %v14754_v4 = vpop.f32.mrb[93].mxu0 }
 0x37c   :  { %v1775_v20 = vpop.f32.mrb[94].mxu0 }
 0x37d   :  { %v18357_v15 = vadd.f32 %v1775_v20, %v18163_v62  ;;  %v14757_v57 = vpop.f32.mrb[95].mxu0 }
 0x380   :  { %v13441_v38 = vpop.f32.mrb[96].mxu0 }
 0x381   :  { %v13442_v42 = vpop.f32.mrb[97].mxu0 }
 0x382   :  { %v13443_v22 = vadd.f32 %v13442_v42, %v13441_v38  ;;  %v13444_v50 = vpop.f32.mrb[98].mxu0 }
 0x383   :  { %v13445_v25 = vpop.f32.mrb[99].mxu0 }
 0x384   :  { %v2152_v30 = vadd.f32 %v13443_v22, %v18254_v21  ;;  %v13446_v36 = vadd.f32 %v13445_v25, %v13444_v50 }
 0x386   :  { %v2155_v55 = vadd.f32 %v13446_v36, %v18256_v26 }
 0x388   :  { %v13447_v8 = vpop.f32.mrb[100].mxu0  ;;  %v16368_v16 = vpack.c.bf16 %v2155_v55, %v2152_v30 }
 0x389   :  { %v13448_v9 = vpop.f32.mrb[101].mxu0 }
 0x38a   :  { %v13449_v43 = vadd.f32 %v13448_v9, %v13447_v8  ;;  %v13450_v54 = vpop.f32.mrb[102].mxu0  ;;  %16369 = vmatpush3.bf16.msra.mxu1 %v16368_v16 }
 0x38b   :  { %v13451_v41 = vpop.f32.mrb[103].mxu0  ;;  %16370 = vmatprep.subr.bf16.mxu1 %v17413_v0 }
 0x38c   :  { %v2160_v62 = vadd.f32 %v13449_v43, %v18258_v29  ;;  %v13452_v17 = vadd.f32 %v13451_v41, %v13450_v54  ;;  %v16981_v43 = vld [vmem:[%s20791_s5 + $0x4c0] sm:$0xff]   ;;  %v2190_v41 = vld [vmem:[#allocation2 + $0xd8] sm:$0xff] }
 0x38e   :  { %v2163_v19 = vadd.f32 %v13452_v17, %v18260_v32  ;;  %v16989_v17 = vld [vmem:[%s20791_s5 + $0x4d0] sm:$0xff]  }
 0x390   :  { %v13453_v18 = vpop.f32.mrb[104].mxu0  ;;  %v16371_v24 = vpack.c.bf16 %v2163_v19, %v2160_v62  ;;  %v2191_v62 = vld [vmem:[#allocation2 + $0xe0] sm:$0xff]  ;;  %v2192_v19 = vld [vmem:[#allocation2 + $0xe8] sm:$0xff] }
 0x391   :  { %v13454_v21 = vpop.f32.mrb[105].mxu0 }
 0x392   :  { %v13455_v3 = vadd.f32 %v13454_v21, %v13453_v18  ;;  %v13456_v11 = vpop.f32.mrb[106].mxu0  ;;  %16372 = vmatpush3.bf16.msra.mxu1 %v16371_v24  ;;  %v16991_v18 = vld [vmem:[%s20791_s5 + $0x490] sm:$0xff]   ;;  %v16993_v24 = vld [vmem:[%s20791_s5 + $0x4d8] sm:$0xff]  }
 0x393   :  { %v13457_v26 = vpop.f32.mrb[107].mxu0  ;;  %16373 = vmatprep.subr.bf16.mxu1 %v17413_v0  ;;  %v2193_v21 = vld [vmem:[#allocation2 + $0xf0] sm:$0xff] }
 0x394   :  { %v2168_v4 = vadd.f32 %v13455_v3, %v18262_v37  ;;  %v13458_v20 = vadd.f32 %v13457_v26, %v13456_v11  ;;  %v16995_v3 = vld [vmem:[%s20791_s5 + $0x498] sm:$0xff]   ;;  %v16997_v11 = vld [vmem:[%s20791_s5 + $0x4e0] sm:$0xff]  }
 0x395   :  { %v2194_v26 = vld [vmem:[#allocation2 + $0xf8] sm:$0xff] }
 0x396   :  { %v2171_v57 = vadd.f32 %v13458_v20, %v18264_v47  ;;  %v17001_v20 = vld [vmem:[%s20791_s5 + $0x4e8] sm:$0xff]  }
 0x398   :  { %v13459_v38 = vpop.f32.mrb[108].mxu0  ;;  %v16374_v42 = vpack.c.bf16 %v2171_v57, %v2168_v4  ;;  %v16999_v4 = vld [vmem:[%s20791_s5 + $0x4a0] sm:$0xff]  }
 0x399   :  { %v13460_v29 = vpop.f32.mrb[109].mxu0  ;;  %v2195_v57 = vld [vmem:[#allocation2 + $0x100] sm:$0xff] }
 0x39a   :  { %v13461_v22 = vadd.f32 %v13460_v29, %v13459_v38  ;;  %v13462_v50 = vpop.f32.mrb[110].mxu0  ;;  %16375 = vmatpush3.bf16.msra.mxu1 %v16374_v42  ;;  %v17003_v38 = vld [vmem:[%s20791_s5 + $0x4a8] sm:$0xff]   ;;  %v17005_v42 = vld [vmem:[%s20791_s5 + $0x4f0] sm:$0xff]  }
 0x39b   :  { %v13463_v32 = vpop.f32.mrb[111].mxu0  ;;  %16376 = vmatprep.subr.bf16.mxu1 %v17413_v0  ;;  %v2196_v29 = vld [vmem:[#allocation2 + $0x108] sm:$0xff] }
 0x39c   :  { %v2176_v25 = vadd.f32 %v13461_v22, %v18266_v60  ;;  %v13464_v30 = vadd.f32 %v13463_v32, %v13462_v50  ;;  %v16983_v60 = vld [vmem:[%s20791_s5 + $0x480] sm:$0xff]   ;;  %v17007_v22 = vld [vmem:[%s20791_s5 + $0x4b0] sm:$0xff]   ;;  %v17009_v50 = vld [vmem:[%s20791_s5 + $0x4f8] sm:$0xff]  }
 0x39d   :  { %v2197_v32 = vld [vmem:[#allocation2 + $0x110] sm:$0xff] }
 0x39e   :  { %v2179_v36 = vadd.f32 %v13464_v30, %v18268_v14  ;;  %v16985_v14 = vld [vmem:[%s20791_s5 + $0x4c8] sm:$0xff]   ;;  %v2198_v30 = vld [vmem:[#allocation2 + $0x118] sm:$0xff] }
 0x3a0   :  { %v13465_v55 = vpop.f32.mrb[112].mxu0  ;;  %v16377_v8 = vpack.c.bf16 %v2179_v36, %v2176_v25  ;;  %v17010_v25 = vld [vmem:[%s20791_s5 + $0x4b8] sm:$0xff]  }
 0x3a1   :  { %v13466_v37 = vpop.f32.mrb[113].mxu0 }
 0x3a2   :  { %v13467_v16 = vadd.f32 %v13466_v37, %v13465_v55  ;;  %v13468_v9 = vpop.f32.mrb[114].mxu0  ;;  %16378 = vmatpush3.bf16.msra.mxu1 %v16377_v8 }
 0x3a3   :  { %v13469_v47 = vpop.f32.mrb[115].mxu0  ;;  %14774 = vmatprep.subr.mxu1 %v17415_v1 }
 0x3a4   :  { %v2184_v54 = vadd.f32 %v13467_v16, %v18270_v7  ;;  %v16987_v7 = vld [vmem:[%s20791_s5 + $0x488] sm:$0xff]  }
 0x3a6   :  { %14775 = vmatpush3.msra.mxu1 %v2184_v54 }
 0x3a7   :  { %14777 = vmatmul.mubr.msk.f32.vlgmr.msra.gmra.mrb[58].mxu1 %vm956_vm1, %v2190_v41  ;;  %13535 = vmatprep.subr.bf16.mxu1 %v16981_v43 }
 0x3a8   :  { %14779 = vmatprep.mubr.msk.f32.mxu1 %vm17414_vm0, %v17415_v1  ;;  %13536 = vmatpush3.bf16.msra.mxu1 %v16983_v60  ;;  %v13505_v36 = vpop.f32.mrb[116].mxu0 }
 0x3a9   :  { %13537 = vmatprep.subr.bf16.mxu1 %v16985_v14  ;;  %v13506_v55 = vpop.f32.mrb[117].mxu0 }
 0x3aa   :  { %v18456_v8 = vadd.f32 %v13506_v55, %v13505_v36  ;;  %v13508_v37 = vpop.f32.mrb[118].mxu0  ;;  %v17018_v36 = vld [vmem:[%s20791_s5 + $0x550] sm:$0xff]  }
 0x3ab   :  { %14780 = vmatmul.mubr.msk.f32.gmra.mrb[100].mxu1 %vm956_vm1, %v2191_v62  ;;  %v13509_v16 = vpop.f32.mrb[119].mxu0  ;;  %v17020_v55 = vld [vmem:[%s20791_s5 + $0x510] sm:$0xff]  }
 0x3ac   :  { %14782 = vmatprep.mubr.msk.f32.mxu1 %vm17414_vm0, %v17415_v1  ;;  %13538 = vmatpush3.bf16.msra.mxu1 %v16987_v7  ;;  %v18458_v9 = vadd.f32 %v13509_v16, %v13508_v37  ;;  %v17022_v37 = vld [vmem:[%s20791_s5 + $0x558] sm:$0xff]  }
 0x3ad   :  { %13539 = vmatprep.subr.bf16.mxu1 %v16989_v17  ;;  %v17024_v16 = vld [vmem:[%s20791_s5 + $0x518] sm:$0xff]  }
 0x3af   :  { %14783 = vmatmul.mubr.msk.f32.gmra.mrb[102].mxu1 %vm956_vm1, %v2192_v19 }
 0x3b0   :  { %14785 = vmatprep.mubr.msk.f32.mxu1 %vm17414_vm0, %v17415_v1  ;;  %13540 = vmatpush3.bf16.msra.mxu1 %v16991_v18  ;;  %v13511_v47 = vpop.f32.mrb[120].mxu0 }
 0x3b1   :  { %13541 = vmatprep.subr.bf16.mxu1 %v16993_v24  ;;  %v13512_v43 = vpop.f32.mrb[121].mxu0 }
 0x3b2   :  { %v18460_v54 = vadd.f32 %v13512_v43, %v13511_v47  ;;  %v13514_v41 = vpop.f32.mrb[122].mxu0  ;;  %v17026_v47 = vld [vmem:[%s20791_s5 + $0x560] sm:$0xff]  }
 0x3b3   :  { %14786 = vmatmul.mubr.msk.f32.gmra.mrb[104].mxu1 %vm956_vm1, %v2193_v21  ;;  %v13515_v60 = vpop.f32.mrb[123].mxu0  ;;  %v17028_v43 = vld [vmem:[%s20791_s5 + $0x520] sm:$0xff]  }
 0x3b4   :  { %14788 = vmatprep.mubr.msk.f32.mxu1 %vm17414_vm0, %v17415_v1  ;;  %13542 = vmatpush3.bf16.msra.mxu1 %v16995_v3  ;;  %v18462_v14 = vadd.f32 %v13515_v60, %v13514_v41  ;;  %v17030_v41 = vld [vmem:[%s20791_s5 + $0x568] sm:$0xff]  }
 0x3b5   :  { %13543 = vmatprep.subr.bf16.mxu1 %v16997_v11  ;;  %v17032_v60 = vld [vmem:[%s20791_s5 + $0x528] sm:$0xff]  }
 0x3b7   :  { %14789 = vmatmul.mubr.msk.f32.gmra.mrb[106].mxu1 %vm956_vm1, %v2194_v26 }
 0x3b8   :  { %14791 = vmatprep.mubr.msk.f32.mxu1 %vm17414_vm0, %v17415_v1  ;;  %13544 = vmatpush3.bf16.msra.mxu1 %v16999_v4  ;;  %v13517_v62 = vpop.f32.mrb[124].mxu0 }
 0x3b9   :  { %13545 = vmatprep.subr.bf16.mxu1 %v17001_v20  ;;  %v13518_v7 = vpop.f32.mrb[125].mxu0 }
 0x3ba   :  { %v18464_v17 = vadd.f32 %v13518_v7, %v13517_v62  ;;  %v13520_v19 = vpop.f32.mrb[126].mxu0  ;;  %v17034_v62 = vld [vmem:[%s20791_s5 + $0x570] sm:$0xff]  }
 0x3bb   :  { %14792 = vmatmul.mubr.msk.f32.gmra.mrb[108].mxu1 %vm956_vm1, %v2195_v57  ;;  %v13521_v18 = vpop.f32.mrb[127].mxu0  ;;  %v17036_v7 = vld [vmem:[%s20791_s5 + $0x530] sm:$0xff]  }
 0x3bc   :  { %14794 = vmatprep.mubr.msk.f32.mxu1 %vm17414_vm0, %v17415_v1  ;;  %13546 = vmatpush3.bf16.msra.mxu1 %v17003_v38  ;;  %v18466_v24 = vadd.f32 %v13521_v18, %v13520_v19  ;;  %v17038_v19 = vld [vmem:[%s20791_s5 + $0x578] sm:$0xff]  }
 0x3bd   :  { %13547 = vmatprep.subr.bf16.mxu1 %v17005_v42  ;;  %v17040_v18 = vld [vmem:[%s20791_s5 + $0x538] sm:$0xff]  }
 0x3bf   :  { %14795 = vmatmul.mubr.msk.f32.gmra.mrb[110].mxu1 %vm956_vm1, %v2196_v29 }
 0x3c0   :  { %14797 = vmatprep.mubr.msk.f32.mxu1 %vm17414_vm0, %v17415_v1  ;;  %13548 = vmatpush3.bf16.msra.mxu1 %v17007_v22  ;;  %v13523_v21 = vpop.f32.mrb[128].mxu0 }
 0x3c1   :  { %13549 = vmatprep.subr.bf16.mxu1 %v17009_v50  ;;  %v13524_v3 = vpop.f32.mrb[129].mxu0  ;;  %v17011_v50 = vld [vmem:[%s20791_s5 + $0x540] sm:$0xff]  }
 0x3c2   :  { %v18468_v11 = vadd.f32 %v13524_v3, %v13523_v21  ;;  %v13526_v26 = vpop.f32.mrb[130].mxu0 }
 0x3c3   :  { %14798 = vmatmul.mubr.msk.f32.gmra.mrb[112].mxu1 %vm956_vm1, %v2197_v32  ;;  %v13527_v4 = vpop.f32.mrb[131].mxu0  ;;  %v17012_v32 = vld [vmem:[%s20791_s5 + $0x500] sm:$0xff]  }
 0x3c4   :  { %14800 = vmatprep.mubr.msk.f32.mxu1 %vm17414_vm0, %v17415_v1  ;;  %13550 = vmatpush3.bf16.msra.mxu1 %v17010_v25  ;;  %v18470_v20 = vadd.f32 %v13527_v4, %v13526_v26  ;;  %v17014_v25 = vld [vmem:[%s20791_s5 + $0x548] sm:$0xff]  }
 0x3c5   :  { %13599 = vmatprep.subr.bf16.mxu1 %v17011_v50 }
 0x3c7   :  { %14801 = vmatmul.mubr.msk.f32.gmra.mrb[114].mxu1 %vm956_vm1, %v2198_v30  ;;  %v17016_v30 = vld [vmem:[%s20791_s5 + $0x508] sm:$0xff]  }
 0x3c8   :  { %2706 = vmatprep.mubr.bf16.mxu1 %v17637_v39  ;;  %v13529_v57 = vpop.f32.mrb[132].mxu0 }
 0x3c9   :  { %v13530_v38 = vpop.f32.mrb[133].mxu0 }
 0x3ca   :  { %v18472_v42 = vadd.f32 %v13530_v38, %v13529_v57  ;;  %v13532_v29 = vpop.f32.mrb[134].mxu0 }
 0x3cb   :  { %2707 = vmatmul.mubr.bf16.vlgmr.msra.gmra.mrb[116].mxu1 %v17651_v44  ;;  %v13533_v22 = vpop.f32.mrb[135].mxu0 }
 0x3cc   :  { %2714 = vmatprep.mubr.bf16.mxu1 %v17666_v49  ;;  %13600 = vmatpush3.bf16.msra.mxu1 %v17012_v32 }
 0x3cd   :  { %13601 = vmatprep.subr.bf16.mxu1 %v17014_v25 }
 0x3d0   :  { %13602 = vmatpush3.bf16.msra.mxu1 %v17016_v30 }
 0x3d1   :  { %13603 = vmatprep.subr.bf16.mxu1 %v17018_v36 }
 0x3d3   :  { %2715 = vmatmul.mubr.bf16.gmra.mrb[120].mxu1 %v17694_v58 }
 0x3d4   :  { %2722 = vmatprep.mubr.bf16.mxu1 %v17730_v6  ;;  %13604 = vmatpush3.bf16.msra.mxu1 %v17020_v55 }
 0x3d5   :  { %13605 = vmatprep.subr.bf16.mxu1 %v17022_v37 }
 0x3d8   :  { %13606 = vmatpush3.bf16.msra.mxu1 %v17024_v16 }
 0x3d9   :  { %13607 = vmatprep.subr.bf16.mxu1 %v17026_v47 }
 0x3db   :  { %2723 = vmatmul.mubr.bf16.gmra.mrb[124].mxu1 %v17748_v12 }
 0x3dc   :  { %2730 = vmatprep.mubr.bf16.mxu1 %v17793_v27  ;;  %13608 = vmatpush3.bf16.msra.mxu1 %v17028_v43 }
 0x3dd   :  { %13609 = vmatprep.subr.bf16.mxu1 %v17030_v41 }
 0x3e0   :  { %13610 = vmatpush3.bf16.msra.mxu1 %v17032_v60 }
 0x3e1   :  { %13611 = vmatprep.subr.bf16.mxu1 %v17034_v62 }
 0x3e3   :  { %2731 = vmatmul.mubr.bf16.gmra.mrb[128].mxu1 %v17804_v31 }
 0x3e4   :  { %2738 = vmatprep.mubr.bf16.mxu1 %v17847_v51  ;;  %13612 = vmatpush3.bf16.msra.mxu1 %v17036_v7 }
 0x3e5   :  { %13613 = vmatprep.subr.bf16.mxu1 %v17038_v19 }
 0x3e8   :  { %13614 = vmatpush3.bf16.msra.mxu1 %v17040_v18 }
 0x3e9   :  { %16391 = vmatprep.subr.bf16.mxu1 %v17413_v0 }
 0x3eb   :  { %2739 = vmatmul.mubr.bf16.gmra.mrb[132].mxu1 %v17851_v53 }
 0x3ec   :  { %3191 = vmatprep.mubr.bf16.mxu1 %v17626_v35 }
 0x3f3   :  { %3192 = vmatmul.mubr.bf16.vlgmr.msra.gmra.mrb[136].mxu1 %v17639_v40 }
 0x3f4   :  { %3199 = vmatprep.mubr.bf16.mxu1 %v17664_v48 }
 0x3fb   :  { %3200 = vmatmul.mubr.bf16.gmra.mrb[140].mxu1 %v17689_v56 }
 0x3fc   :  { %3207 = vmatprep.mubr.bf16.mxu1 %v17719_v2 }
 0x403   :  { %3208 = vmatmul.mubr.bf16.gmra.mrb[144].mxu1 %v17742_v10 }
 0x404   :  { %3215 = vmatprep.mubr.bf16.mxu1 %v17782_v23 }
 0x40b   :  { %3216 = vmatmul.mubr.bf16.gmra.mrb[148].mxu1 %v17795_v28 }
 0x40c   :  { %3223 = vmatprep.mubr.bf16.mxu1 %v17836_v45 }
 0x413   :  { %3224 = vmatmul.mubr.bf16.gmra.mrb[152].mxu1 %v17849_v52 }
 0x414   :  { %14866 = vmatprep.mubr.msk.f32.mxu1 %vm17414_vm0, %v17415_v1 }
 0x47a   :  { %v2292_v21 = vpop.f32.mrb[58].mxu1 }
 0x47b   :  { %v18530_v3 = vadd.f32 %v2292_v21, %v18328_v46  ;;  %v14778_v26 = vpop.f32.mrb[59].mxu1 }
 0x47e   :  { %v2297_v4 = vpop.f32.mrb[100].mxu1 }
 0x47f   :  { %v18534_v57 = vadd.f32 %v2297_v4, %v18332_v63  ;;  %v14781_v38 = vpop.f32.mrb[101].mxu1 }
 0x482   :  { %v2302_v29 = vpop.f32.mrb[102].mxu1 }
 0x483   :  { %v18538_v22 = vadd.f32 %v2302_v29, %v18336_v13  ;;  %v14784_v50 = vpop.f32.mrb[103].mxu1 }
 0x486   :  { %v2307_v32 = vpop.f32.mrb[104].mxu1 }
 0x487   :  { %v18542_v46 = vadd.f32 %v2307_v32, %v18340_v33  ;;  %v14787_v25 = vpop.f32.mrb[105].mxu1 }
 0x48a   :  { %v2312_v63 = vpop.f32.mrb[106].mxu1 }
 0x48b   :  { %v18547_v30 = vadd.f32 %v2312_v63, %v18345_v61  ;;  %v14790_v36 = vpop.f32.mrb[107].mxu1 }
 0x48e   :  { %v2317_v55 = vpop.f32.mrb[108].mxu1 }
 0x48f   :  { %v18550_v13 = vadd.f32 %v2317_v55, %v18348_v59  ;;  %v14793_v37 = vpop.f32.mrb[109].mxu1 }
 0x492   :  { %v2322_v16 = vpop.f32.mrb[110].mxu1 }
 0x493   :  { %v18553_v47 = vadd.f32 %v2322_v16, %v18351_v5  ;;  %v14796_v33 = vpop.f32.mrb[111].mxu1 }
 0x496   :  { %v2327_v43 = vpop.f32.mrb[112].mxu1 }
 0x497   :  { %v18556_v41 = vadd.f32 %v2327_v43, %v18354_v34  ;;  %v14799_v60 = vpop.f32.mrb[113].mxu1 }
 0x49a   :  { %v2332_v62 = vpop.f32.mrb[114].mxu1 }
 0x49b   :  { %v18559_v61 = vadd.f32 %v2332_v62, %v18357_v15  ;;  %v14802_v7 = vpop.f32.mrb[115].mxu1 }
 0x49e   :  { %v13551_v19 = vpop.f32.mrb[116].mxu1 }
 0x49f   :  { %v13552_v18 = vpop.f32.mrb[117].mxu1 }
 0x4a0   :  { %v13553_v59 = vadd.f32 %v13552_v18, %v13551_v19  ;;  %v13554_v21 = vpop.f32.mrb[118].mxu1 }
 0x4a1   :  { %v13555_v26 = vpop.f32.mrb[119].mxu1 }
 0x4a2   :  { %v2709_v4 = vadd.f32 %v13553_v59, %v18456_v8  ;;  %v13556_v5 = vadd.f32 %v13555_v26, %v13554_v21 }
 0x4a4   :  { %v2712_v38 = vadd.f32 %v13556_v5, %v18458_v9 }
 0x4a6   :  { %v13557_v29 = vpop.f32.mrb[120].mxu1  ;;  %v16380_v50 = vpack.c.bf16 %v2712_v38, %v2709_v4 }
 0x4a7   :  { %v13558_v34 = vpop.f32.mrb[121].mxu1 }
 0x4a8   :  { %v13559_v32 = vadd.f32 %v13558_v34, %v13557_v29  ;;  %v13560_v25 = vpop.f32.mrb[122].mxu1  ;;  %16381 = vmatpush3.bf16.msra.mxu0 %v16380_v50 }
 0x4a9   :  { %v13561_v63 = vpop.f32.mrb[123].mxu1  ;;  %16382 = vmatprep.subr.bf16.mxu0 %v17413_v0 }
 0x4aa   :  { %v2717_v15 = vadd.f32 %v13559_v32, %v18460_v54  ;;  %v13562_v36 = vadd.f32 %v13561_v63, %v13560_v25  ;;  %v17013_v32 = vld [vmem:[%s20791_s5 + $0x5c0] sm:$0xff]  }
 0x4ab   :  { %v2747_v63 = vld [vmem:[#allocation2 + $0x120] sm:$0xff] }
 0x4ac   :  { %v2720_v55 = vadd.f32 %v13562_v36, %v18462_v14  ;;  %v17021_v36 = vld [vmem:[%s20791_s5 + $0x5d0] sm:$0xff]  }
 0x4ae   :  { %v13563_v37 = vpop.f32.mrb[124].mxu1  ;;  %v16383_v16 = vpack.c.bf16 %v2720_v55, %v2717_v15  ;;  %v2748_v15 = vld [vmem:[#allocation2 + $0x128] sm:$0xff]  ;;  %v2749_v55 = vld [vmem:[#allocation2 + $0x130] sm:$0xff] }
 0x4af   :  { %v13564_v8 = vpop.f32.mrb[125].mxu1 }
 0x4b0   :  { %v13565_v33 = vadd.f32 %v13564_v8, %v13563_v37  ;;  %v13566_v43 = vpop.f32.mrb[126].mxu1  ;;  %16384 = vmatpush3.bf16.msra.mxu0 %v16383_v16  ;;  %v17023_v37 = vld [vmem:[%s20791_s5 + $0x590] sm:$0xff]   ;;  %v17025_v16 = vld [vmem:[%s20791_s5 + $0x5d8] sm:$0xff]  }
 0x4b1   :  { %v13567_v9 = vpop.f32.mrb[127].mxu1  ;;  %16385 = vmatprep.subr.bf16.mxu0 %v17413_v0  ;;  %v2750_v8 = vld [vmem:[#allocation2 + $0x138] sm:$0xff] }
 0x4b2   :  { %v2725_v60 = vadd.f32 %v13565_v33, %v18464_v17  ;;  %v13568_v62 = vadd.f32 %v13567_v9, %v13566_v43  ;;  %v17027_v33 = vld [vmem:[%s20791_s5 + $0x598] sm:$0xff]   ;;  %v17029_v43 = vld [vmem:[%s20791_s5 + $0x5e0] sm:$0xff]  }
 0x4b3   :  { %v2751_v9 = vld [vmem:[#allocation2 + $0x140] sm:$0xff] }
 0x4b4   :  { %v2728_v7 = vadd.f32 %v13568_v62, %v18466_v24  ;;  %v17033_v62 = vld [vmem:[%s20791_s5 + $0x5e8] sm:$0xff]  }
 0x4b6   :  { %v13569_v19 = vpop.f32.mrb[128].mxu1  ;;  %v16386_v18 = vpack.c.bf16 %v2728_v7, %v2725_v60  ;;  %v17031_v60 = vld [vmem:[%s20791_s5 + $0x5a0] sm:$0xff]   ;;  %v2752_v7 = vld [vmem:[#allocation2 + $0x148] sm:$0xff] }
 0x4b7   :  { %v13570_v54 = vpop.f32.mrb[129].mxu1 }
 0x4b8   :  { %v13571_v59 = vadd.f32 %v13570_v54, %v13569_v19  ;;  %v13572_v21 = vpop.f32.mrb[130].mxu1  ;;  %16387 = vmatpush3.bf16.msra.mxu0 %v16386_v18  ;;  %v17035_v19 = vld [vmem:[%s20791_s5 + $0x5a8] sm:$0xff]   ;;  %v17037_v18 = vld [vmem:[%s20791_s5 + $0x5f0] sm:$0xff]  }
 0x4b9   :  { %v13573_v14 = vpop.f32.mrb[131].mxu1  ;;  %16388 = vmatprep.subr.bf16.mxu0 %v17413_v0  ;;  %v2753_v54 = vld [vmem:[#allocation2 + $0x150] sm:$0xff] }
 0x4ba   :  { %v2733_v26 = vadd.f32 %v13571_v59, %v18468_v11  ;;  %v13574_v4 = vadd.f32 %v13573_v14, %v13572_v21  ;;  %v17015_v11 = vld [vmem:[%s20791_s5 + $0x580] sm:$0xff]   ;;  %v17039_v59 = vld [vmem:[%s20791_s5 + $0x5b0] sm:$0xff]   ;;  %v17041_v21 = vld [vmem:[%s20791_s5 + $0x5f8] sm:$0xff]  }
 0x4bb   :  { %v2754_v14 = vld [vmem:[#allocation2 + $0x158] sm:$0xff] }
 0x4bc   :  { %v2736_v5 = vadd.f32 %v13574_v4, %v18470_v20  ;;  %v17017_v20 = vld [vmem:[%s20791_s5 + $0x5c8] sm:$0xff]   ;;  %v2755_v4 = vld [vmem:[#allocation2 + $0x160] sm:$0xff] }
 0x4be   :  { %v13575_v38 = vpop.f32.mrb[132].mxu1  ;;  %v16389_v29 = vpack.c.bf16 %v2736_v5, %v2733_v26  ;;  %v17042_v26 = vld [vmem:[%s20791_s5 + $0x5b8] sm:$0xff]  }
 0x4bf   :  { %v13576_v17 = vpop.f32.mrb[133].mxu1 }
 0x4c0   :  { %v13577_v50 = vadd.f32 %v13576_v17, %v13575_v38  ;;  %v13578_v34 = vpop.f32.mrb[134].mxu1  ;;  %16390 = vmatpush3.bf16.msra.mxu0 %v16389_v29 }
 0x4c1   :  { %v13579_v24 = vpop.f32.mrb[135].mxu1  ;;  %14819 = vmatprep.subr.mxu0 %v17415_v1 }
 0x4c2   :  { %v2741_v25 = vadd.f32 %v13577_v50, %v18472_v42  ;;  %v17019_v42 = vld [vmem:[%s20791_s5 + $0x588] sm:$0xff]  }
 0x4c4   :  { %14820 = vmatpush3.msra.mxu0 %v2741_v25 }
 0x4c5   :  { %14822 = vmatmul.mubr.msk.f32.vlgmr.msra.gmra.mrb[136].mxu0 %vm956_vm1, %v2747_v63  ;;  %13645 = vmatprep.subr.bf16.mxu0 %v17013_v32 }
 0x4c6   :  { %14824 = vmatprep.mubr.msk.f32.mxu0 %vm17414_vm0, %v17415_v1  ;;  %13646 = vmatpush3.bf16.msra.mxu0 %v17015_v11  ;;  %v13615_v5 = vpop.f32.mrb[136].mxu1 }
 0x4c7   :  { %13647 = vmatprep.subr.bf16.mxu0 %v17017_v20  ;;  %v13616_v38 = vpop.f32.mrb[137].mxu1 }
 0x4c8   :  { %v18658_v29 = vadd.f32 %v13616_v38, %v13615_v5  ;;  %v13618_v17 = vpop.f32.mrb[138].mxu1  ;;  %v17050_v5 = vld [vmem:[%s20791_s5 + $0x650] sm:$0xff]  }
 0x4c9   :  { %14825 = vmatmul.mubr.msk.f32.gmra.mrb[138].mxu0 %vm956_vm1, %v2748_v15  ;;  %v13619_v50 = vpop.f32.mrb[139].mxu1  ;;  %v17052_v38 = vld [vmem:[%s20791_s5 + $0x610] sm:$0xff]  }
 0x4ca   :  { %14827 = vmatprep.mubr.msk.f32.mxu0 %vm17414_vm0, %v17415_v1  ;;  %13648 = vmatpush3.bf16.msra.mxu0 %v17019_v42  ;;  %v18660_v34 = vadd.f32 %v13619_v50, %v13618_v17  ;;  %v17054_v17 = vld [vmem:[%s20791_s5 + $0x658] sm:$0xff]  }
 0x4cb   :  { %13649 = vmatprep.subr.bf16.mxu0 %v17021_v36  ;;  %v17056_v50 = vld [vmem:[%s20791_s5 + $0x618] sm:$0xff]  }
 0x4cd   :  { %14828 = vmatmul.mubr.msk.f32.gmra.mrb[140].mxu0 %vm956_vm1, %v2749_v55 }
 0x4ce   :  { %14830 = vmatprep.mubr.msk.f32.mxu0 %vm17414_vm0, %v17415_v1  ;;  %13650 = vmatpush3.bf16.msra.mxu0 %v17023_v37  ;;  %v13621_v24 = vpop.f32.mrb[140].mxu1 }
 0x4cf   :  { %13651 = vmatprep.subr.bf16.mxu0 %v17025_v16  ;;  %v13622_v32 = vpop.f32.mrb[141].mxu1 }
 0x4d0   :  { %v18662_v25 = vadd.f32 %v13622_v32, %v13621_v24  ;;  %v13624_v63 = vpop.f32.mrb[142].mxu1  ;;  %v17058_v24 = vld [vmem:[%s20791_s5 + $0x660] sm:$0xff]  }
 0x4d1   :  { %14831 = vmatmul.mubr.msk.f32.gmra.mrb[142].mxu0 %vm956_vm1, %v2750_v8  ;;  %v13625_v11 = vpop.f32.mrb[143].mxu1  ;;  %v17060_v32 = vld [vmem:[%s20791_s5 + $0x620] sm:$0xff]  }
 0x4d2   :  { %14833 = vmatprep.mubr.msk.f32.mxu0 %vm17414_vm0, %v17415_v1  ;;  %13652 = vmatpush3.bf16.msra.mxu0 %v17027_v33  ;;  %v18664_v20 = vadd.f32 %v13625_v11, %v13624_v63  ;;  %v17062_v63 = vld [vmem:[%s20791_s5 + $0x668] sm:$0xff]  }
 0x4d3   :  { %13653 = vmatprep.subr.bf16.mxu0 %v17029_v43  ;;  %v17064_v11 = vld [vmem:[%s20791_s5 + $0x628] sm:$0xff]  }
 0x4d5   :  { %14834 = vmatmul.mubr.msk.f32.gmra.mrb[144].mxu0 %vm956_vm1, %v2751_v9 }
 0x4d6   :  { %14836 = vmatprep.mubr.msk.f32.mxu0 %vm17414_vm0, %v17415_v1  ;;  %13654 = vmatpush3.bf16.msra.mxu0 %v17031_v60  ;;  %v13627_v15 = vpop.f32.mrb[144].mxu1 }
 0x4d7   :  { %13655 = vmatprep.subr.bf16.mxu0 %v17033_v62  ;;  %v13628_v42 = vpop.f32.mrb[145].mxu1 }
 0x4d8   :  { %v18666_v36 = vadd.f32 %v13628_v42, %v13627_v15  ;;  %v13630_v55 = vpop.f32.mrb[146].mxu1  ;;  %v17066_v15 = vld [vmem:[%s20791_s5 + $0x670] sm:$0xff]  }
 0x4d9   :  { %14837 = vmatmul.mubr.msk.f32.gmra.mrb[146].mxu0 %vm956_vm1, %v2752_v7  ;;  %v13631_v37 = vpop.f32.mrb[147].mxu1  ;;  %v17068_v42 = vld [vmem:[%s20791_s5 + $0x630] sm:$0xff]  }
 0x4da   :  { %14839 = vmatprep.mubr.msk.f32.mxu0 %vm17414_vm0, %v17415_v1  ;;  %13656 = vmatpush3.bf16.msra.mxu0 %v17035_v19  ;;  %v18668_v16 = vadd.f32 %v13631_v37, %v13630_v55  ;;  %v17070_v55 = vld [vmem:[%s20791_s5 + $0x678] sm:$0xff]  }
 0x4db   :  { %13657 = vmatprep.subr.bf16.mxu0 %v17037_v18  ;;  %v17072_v37 = vld [vmem:[%s20791_s5 + $0x638] sm:$0xff]  }
 0x4dd   :  { %14840 = vmatmul.mubr.msk.f32.gmra.mrb[148].mxu0 %vm956_vm1, %v2753_v54 }
 0x4de   :  { %14842 = vmatprep.mubr.msk.f32.mxu0 %vm17414_vm0, %v17415_v1  ;;  %13658 = vmatpush3.bf16.msra.mxu0 %v17039_v59  ;;  %v13633_v8 = vpop.f32.mrb[148].mxu1 }
 0x4df   :  { %13659 = vmatprep.subr.bf16.mxu0 %v17041_v21  ;;  %v13634_v33 = vpop.f32.mrb[149].mxu1  ;;  %v17043_v21 = vld [vmem:[%s20791_s5 + $0x640] sm:$0xff]  }
 0x4e0   :  { %v18670_v43 = vadd.f32 %v13634_v33, %v13633_v8  ;;  %v13636_v9 = vpop.f32.mrb[150].mxu1 }
 0x4e1   :  { %14843 = vmatmul.mubr.msk.f32.gmra.mrb[150].mxu0 %vm956_vm1, %v2754_v14  ;;  %v13637_v60 = vpop.f32.mrb[151].mxu1  ;;  %v17044_v14 = vld [vmem:[%s20791_s5 + $0x600] sm:$0xff]  }
 0x4e2   :  { %14845 = vmatprep.mubr.msk.f32.mxu0 %vm17414_vm0, %v17415_v1  ;;  %13660 = vmatpush3.bf16.msra.mxu0 %v17042_v26  ;;  %v18672_v62 = vadd.f32 %v13637_v60, %v13636_v9  ;;  %v17046_v26 = vld [vmem:[%s20791_s5 + $0x648] sm:$0xff]  }
 0x4e3   :  { %13709 = vmatprep.subr.bf16.mxu0 %v17043_v21 }
 0x4e5   :  { %14846 = vmatmul.mubr.msk.f32.gmra.mrb[152].mxu0 %vm956_vm1, %v2755_v4  ;;  %v17048_v4 = vld [vmem:[%s20791_s5 + $0x608] sm:$0xff]  }
 0x4e6   :  { %3263 = vmatprep.mubr.bf16.mxu0 %v17637_v39  ;;  %v13639_v7 = vpop.f32.mrb[152].mxu1 }
 0x4e7   :  { %v13640_v19 = vpop.f32.mrb[153].mxu1 }
 0x4e8   :  { %v18674_v18 = vadd.f32 %v13640_v19, %v13639_v7  ;;  %v13642_v54 = vpop.f32.mrb[154].mxu1 }
 0x4e9   :  { %3264 = vmatmul.mubr.bf16.vlgmr.msra.gmra.mrb[156].mxu0 %v17651_v44  ;;  %v13643_v59 = vpop.f32.mrb[155].mxu1 }
 0x4ea   :  { %3271 = vmatprep.mubr.bf16.mxu0 %v17666_v49  ;;  %13710 = vmatpush3.bf16.msra.mxu0 %v17044_v14 }
 0x4eb   :  { %13711 = vmatprep.subr.bf16.mxu0 %v17046_v26 }
 0x4ee   :  { %13712 = vmatpush3.bf16.msra.mxu0 %v17048_v4 }
 0x4ef   :  { %13713 = vmatprep.subr.bf16.mxu0 %v17050_v5 }
 0x4f1   :  { %3272 = vmatmul.mubr.bf16.gmra.mrb[160].mxu0 %v17694_v58 }
 0x4f2   :  { %3279 = vmatprep.mubr.bf16.mxu0 %v17730_v6  ;;  %13714 = vmatpush3.bf16.msra.mxu0 %v17052_v38 }
 0x4f3   :  { %13715 = vmatprep.subr.bf16.mxu0 %v17054_v17 }
 0x4f6   :  { %13716 = vmatpush3.bf16.msra.mxu0 %v17056_v50 }
 0x4f7   :  { %13717 = vmatprep.subr.bf16.mxu0 %v17058_v24 }
 0x4f9   :  { %3280 = vmatmul.mubr.bf16.gmra.mrb[164].mxu0 %v17748_v12 }
 0x4fa   :  { %3287 = vmatprep.mubr.bf16.mxu0 %v17793_v27  ;;  %13718 = vmatpush3.bf16.msra.mxu0 %v17060_v32 }
 0x4fb   :  { %13719 = vmatprep.subr.bf16.mxu0 %v17062_v63 }
 0x4fe   :  { %13720 = vmatpush3.bf16.msra.mxu0 %v17064_v11 }
 0x4ff   :  { %13721 = vmatprep.subr.bf16.mxu0 %v17066_v15 }
 0x501   :  { %3288 = vmatmul.mubr.bf16.gmra.mrb[168].mxu0 %v17804_v31 }
 0x502   :  { %3295 = vmatprep.mubr.bf16.mxu0 %v17847_v51  ;;  %13722 = vmatpush3.bf16.msra.mxu0 %v17068_v42 }
 0x503   :  { %13723 = vmatprep.subr.bf16.mxu0 %v17070_v55 }
 0x506   :  { %13724 = vmatpush3.bf16.msra.mxu0 %v17072_v37 }
 0x507   :  { %16403 = vmatprep.subr.bf16.mxu0 %v17413_v0 }
 0x509   :  { %3296 = vmatmul.mubr.bf16.gmra.mrb[172].mxu0 %v17851_v53 }
 0x50a   :  { %3748 = vmatprep.mubr.bf16.mxu0 %v17626_v35 }
 0x511   :  { %3749 = vmatmul.mubr.bf16.vlgmr.msra.gmra.mrb[176].mxu0 %v17639_v40 }
 0x512   :  { %3756 = vmatprep.mubr.bf16.mxu0 %v17664_v48 }
 0x519   :  { %3757 = vmatmul.mubr.bf16.gmra.mrb[180].mxu0 %v17689_v56 }
 0x51a   :  { %3764 = vmatprep.mubr.bf16.mxu0 %v17719_v2 }
 0x521   :  { %3765 = vmatmul.mubr.bf16.gmra.mrb[184].mxu0 %v17742_v10 }
 0x522   :  { %3772 = vmatprep.mubr.bf16.mxu0 %v17782_v23 }
 0x529   :  { %3773 = vmatmul.mubr.bf16.gmra.mrb[188].mxu0 %v17795_v28 }
 0x52a   :  { %3780 = vmatprep.mubr.bf16.mxu0 %v17836_v45 }
 0x531   :  { %3781 = vmatmul.mubr.bf16.gmra.mrb[192].mxu0 %v17849_v52 }
 0x532   :  { %14911 = vmatprep.mubr.msk.f32.mxu0 %vm17414_vm0, %v17415_v1 }
 0x598   :  { %v2849_v8 = vpop.f32.mrb[136].mxu0 }
 0x599   :  { %v18732_v33 = vadd.f32 %v2849_v8, %v18530_v3  ;;  %v14823_v9 = vpop.f32.mrb[137].mxu0 }
 0x59c   :  { %v2854_v60 = vpop.f32.mrb[138].mxu0 }
 0x59d   :  { %v18736_v7 = vadd.f32 %v2854_v60, %v18534_v57  ;;  %v14826_v19 = vpop.f32.mrb[139].mxu0 }
 0x5a0   :  { %v2859_v54 = vpop.f32.mrb[140].mxu0 }
 0x5a1   :  { %v18740_v59 = vadd.f32 %v2859_v54, %v18538_v22  ;;  %v14829_v21 = vpop.f32.mrb[141].mxu0 }
 0x5a4   :  { %v2864_v14 = vpop.f32.mrb[142].mxu0 }
 0x5a5   :  { %v18744_v3 = vadd.f32 %v2864_v14, %v18542_v46  ;;  %v14832_v26 = vpop.f32.mrb[143].mxu0 }
 0x5a8   :  { %v2869_v57 = vpop.f32.mrb[144].mxu0 }
 0x5a9   :  { %v18749_v4 = vadd.f32 %v2869_v57, %v18547_v30  ;;  %v14835_v5 = vpop.f32.mrb[145].mxu0 }
 0x5ac   :  { %v2874_v38 = vpop.f32.mrb[146].mxu0 }
 0x5ad   :  { %v18752_v22 = vadd.f32 %v2874_v38, %v18550_v13  ;;  %v14838_v17 = vpop.f32.mrb[147].mxu0 }
 0x5b0   :  { %v2879_v50 = vpop.f32.mrb[148].mxu0 }
 0x5b1   :  { %v18755_v24 = vadd.f32 %v2879_v50, %v18553_v47  ;;  %v14841_v46 = vpop.f32.mrb[149].mxu0 }
 0x5b4   :  { %v2884_v32 = vpop.f32.mrb[150].mxu0 }
 0x5b5   :  { %v18758_v63 = vadd.f32 %v2884_v32, %v18556_v41  ;;  %v14844_v11 = vpop.f32.mrb[151].mxu0 }
 0x5b8   :  { %v2889_v15 = vpop.f32.mrb[152].mxu0 }
 0x5b9   :  { %v18761_v30 = vadd.f32 %v2889_v15, %v18559_v61  ;;  %v14847_v42 = vpop.f32.mrb[153].mxu0 }
 0x5bc   :  { %v13661_v55 = vpop.f32.mrb[156].mxu0 }
 0x5bd   :  { %v13662_v37 = vpop.f32.mrb[157].mxu0 }
 0x5be   :  { %v13663_v13 = vadd.f32 %v13662_v37, %v13661_v55  ;;  %v13664_v8 = vpop.f32.mrb[158].mxu0 }
 0x5bf   :  { %v13665_v9 = vpop.f32.mrb[159].mxu0 }
 0x5c0   :  { %v3266_v60 = vadd.f32 %v13663_v13, %v18658_v29  ;;  %v13666_v47 = vadd.f32 %v13665_v9, %v13664_v8 }
 0x5c2   :  { %v3269_v19 = vadd.f32 %v13666_v47, %v18660_v34 }
 0x5c4   :  { %v13667_v54 = vpop.f32.mrb[160].mxu0  ;;  %v16392_v21 = vpack.c.bf16 %v3269_v19, %v3266_v60 }
 0x5c5   :  { %v13668_v41 = vpop.f32.mrb[161].mxu0 }
 0x5c6   :  { %v13669_v14 = vadd.f32 %v13668_v41, %v13667_v54  ;;  %v13670_v26 = vpop.f32.mrb[162].mxu0  ;;  %16393 = vmatpush3.bf16.msra.mxu1 %v16392_v21 }
 0x5c7   :  { %v13671_v57 = vpop.f32.mrb[163].mxu0  ;;  %16394 = vmatprep.subr.bf16.mxu1 %v17413_v0 }
 0x5c8   :  { %v3274_v61 = vadd.f32 %v13669_v14, %v18662_v25  ;;  %v13672_v5 = vadd.f32 %v13671_v57, %v13670_v26  ;;  %v17045_v14 = vld [vmem:[%s20791_s5 + $0x6c0] sm:$0xff]   ;;  %v3304_v57 = vld [vmem:[#allocation2 + $0x168] sm:$0xff] }
 0x5ca   :  { %v3277_v38 = vadd.f32 %v13672_v5, %v18664_v20  ;;  %v17053_v5 = vld [vmem:[%s20791_s5 + $0x6d0] sm:$0xff]  }
 0x5cc   :  { %v13673_v17 = vpop.f32.mrb[164].mxu0  ;;  %v16395_v50 = vpack.c.bf16 %v3277_v38, %v3274_v61  ;;  %v3305_v61 = vld [vmem:[#allocation2 + $0x170] sm:$0xff]  ;;  %v3306_v38 = vld [vmem:[#allocation2 + $0x178] sm:$0xff] }
 0x5cd   :  { %v13674_v29 = vpop.f32.mrb[165].mxu0 }
 0x5ce   :  { %v13675_v46 = vadd.f32 %v13674_v29, %v13673_v17  ;;  %v13676_v32 = vpop.f32.mrb[166].mxu0  ;;  %16396 = vmatpush3.bf16.msra.mxu1 %v16395_v50  ;;  %v17055_v17 = vld [vmem:[%s20791_s5 + $0x690] sm:$0xff]   ;;  %v17057_v50 = vld [vmem:[%s20791_s5 + $0x6d8] sm:$0xff]   ;;  %v3307_v29 = vld [vmem:[#allocation2 + $0x180] sm:$0xff] }
 0x5cf   :  { %v13677_v34 = vpop.f32.mrb[167].mxu0  ;;  %16397 = vmatprep.subr.bf16.mxu1 %v17413_v0 }
 0x5d0   :  { %v3282_v11 = vadd.f32 %v13675_v46, %v18666_v36  ;;  %v13678_v15 = vadd.f32 %v13677_v34, %v13676_v32  ;;  %v17059_v46 = vld [vmem:[%s20791_s5 + $0x698] sm:$0xff]   ;;  %v17061_v32 = vld [vmem:[%s20791_s5 + $0x6e0] sm:$0xff]   ;;  %v3308_v34 = vld [vmem:[#allocation2 + $0x188] sm:$0xff] }
 0x5d2   :  { %v3285_v42 = vadd.f32 %v13678_v15, %v18668_v16  ;;  %v17065_v15 = vld [vmem:[%s20791_s5 + $0x6e8] sm:$0xff]  }
 0x5d4   :  { %v13679_v55 = vpop.f32.mrb[168].mxu0  ;;  %v16398_v37 = vpack.c.bf16 %v3285_v42, %v3282_v11  ;;  %v17063_v11 = vld [vmem:[%s20791_s5 + $0x6a0] sm:$0xff]   ;;  %v3309_v42 = vld [vmem:[#allocation2 + $0x190] sm:$0xff] }
 0x5d5   :  { %v13680_v25 = vpop.f32.mrb[169].mxu0 }
 0x5d6   :  { %v13681_v13 = vadd.f32 %v13680_v25, %v13679_v55  ;;  %v13682_v8 = vpop.f32.mrb[170].mxu0  ;;  %16399 = vmatpush3.bf16.msra.mxu1 %v16398_v37  ;;  %v17067_v55 = vld [vmem:[%s20791_s5 + $0x6a8] sm:$0xff]   ;;  %v17069_v37 = vld [vmem:[%s20791_s5 + $0x6f0] sm:$0xff]   ;;  %v3310_v25 = vld [vmem:[#allocation2 + $0x198] sm:$0xff] }
 0x5d7   :  { %v13683_v20 = vpop.f32.mrb[171].mxu0  ;;  %16400 = vmatprep.subr.bf16.mxu1 %v17413_v0 }
 0x5d8   :  { %v3290_v9 = vadd.f32 %v13681_v13, %v18670_v43  ;;  %v13684_v60 = vadd.f32 %v13683_v20, %v13682_v8  ;;  %v17047_v43 = vld [vmem:[%s20791_s5 + $0x680] sm:$0xff]   ;;  %v17071_v13 = vld [vmem:[%s20791_s5 + $0x6b0] sm:$0xff]   ;;  %v17073_v8 = vld [vmem:[%s20791_s5 + $0x6f8] sm:$0xff]  }
 0x5d9   :  { %v3311_v20 = vld [vmem:[#allocation2 + $0x1a0] sm:$0xff] }
 0x5da   :  { %v3293_v47 = vadd.f32 %v13684_v60, %v18672_v62  ;;  %v17049_v62 = vld [vmem:[%s20791_s5 + $0x6c8] sm:$0xff]  }
 0x5db   :  { %v3312_v60 = vld [vmem:[#allocation2 + $0x1a8] sm:$0xff] }
 0x5dc   :  { %v13685_v19 = vpop.f32.mrb[172].mxu0  ;;  %v16401_v54 = vpack.c.bf16 %v3293_v47, %v3290_v9  ;;  %v17074_v9 = vld [vmem:[%s20791_s5 + $0x6b8] sm:$0xff]  }
 0x5dd   :  { %v13686_v36 = vpop.f32.mrb[173].mxu0 }
 0x5de   :  { %v13687_v21 = vadd.f32 %v13686_v36, %v13685_v19  ;;  %v13688_v41 = vpop.f32.mrb[174].mxu0  ;;  %16402 = vmatpush3.bf16.msra.mxu1 %v16401_v54 }
 0x5df   :  { %v13689_v16 = vpop.f32.mrb[175].mxu0  ;;  %14864 = vmatprep.subr.mxu1 %v17415_v1 }
 0x5e0   :  { %v3298_v26 = vadd.f32 %v13687_v21, %v18674_v18  ;;  %v17051_v18 = vld [vmem:[%s20791_s5 + $0x688] sm:$0xff]  }
 0x5e2   :  { %14865 = vmatpush3.msra.mxu1 %v3298_v26 }
 0x5e3   :  { %14867 = vmatmul.mubr.msk.f32.vlgmr.msra.gmra.mrb[156].mxu1 %vm956_vm1, %v3304_v57  ;;  %13755 = vmatprep.subr.bf16.mxu1 %v17045_v14 }
 0x5e4   :  { %14869 = vmatprep.mubr.msk.f32.mxu1 %vm17414_vm0, %v17415_v1  ;;  %13756 = vmatpush3.bf16.msra.mxu1 %v17047_v43  ;;  %v13725_v47 = vpop.f32.mrb[176].mxu0 }
 0x5e5   :  { %13757 = vmatprep.subr.bf16.mxu1 %v17049_v62  ;;  %v13726_v19 = vpop.f32.mrb[177].mxu0 }
 0x5e6   :  { %v18860_v54 = vadd.f32 %v13726_v19, %v13725_v47  ;;  %v13728_v36 = vpop.f32.mrb[178].mxu0  ;;  %v17082_v47 = vld [vmem:[%s20791_s5 + $0x750] sm:$0xff]  }
 0x5e7   :  { %14870 = vmatmul.mubr.msk.f32.gmra.mrb[158].mxu1 %vm956_vm1, %v3305_v61  ;;  %v13729_v21 = vpop.f32.mrb[179].mxu0  ;;  %v17084_v19 = vld [vmem:[%s20791_s5 + $0x710] sm:$0xff]  }
 0x5e8   :  { %14872 = vmatprep.mubr.msk.f32.mxu1 %vm17414_vm0, %v17415_v1  ;;  %13758 = vmatpush3.bf16.msra.mxu1 %v17051_v18  ;;  %v18862_v41 = vadd.f32 %v13729_v21, %v13728_v36  ;;  %v17086_v36 = vld [vmem:[%s20791_s5 + $0x758] sm:$0xff]  }
 0x5e9   :  { %13759 = vmatprep.subr.bf16.mxu1 %v17053_v5  ;;  %v17088_v21 = vld [vmem:[%s20791_s5 + $0x718] sm:$0xff]  }
 0x5eb   :  { %14873 = vmatmul.mubr.msk.f32.gmra.mrb[160].mxu1 %vm956_vm1, %v3306_v38 }
 0x5ec   :  { %14875 = vmatprep.mubr.msk.f32.mxu1 %vm17414_vm0, %v17415_v1  ;;  %13760 = vmatpush3.bf16.msra.mxu1 %v17055_v17  ;;  %v13731_v16 = vpop.f32.mrb[180].mxu0 }
 0x5ed   :  { %13761 = vmatprep.subr.bf16.mxu1 %v17057_v50  ;;  %v13732_v14 = vpop.f32.mrb[181].mxu0 }
 0x5ee   :  { %v18864_v26 = vadd.f32 %v13732_v14, %v13731_v16  ;;  %v13734_v57 = vpop.f32.mrb[182].mxu0  ;;  %v17090_v16 = vld [vmem:[%s20791_s5 + $0x760] sm:$0xff]  }
 0x5ef   :  { %14876 = vmatmul.mubr.msk.f32.gmra.mrb[162].mxu1 %vm956_vm1, %v3307_v29  ;;  %v13735_v43 = vpop.f32.mrb[183].mxu0  ;;  %v17092_v14 = vld [vmem:[%s20791_s5 + $0x720] sm:$0xff]  }
 0x5f0   :  { %14878 = vmatprep.mubr.msk.f32.mxu1 %vm17414_vm0, %v17415_v1  ;;  %13762 = vmatpush3.bf16.msra.mxu1 %v17059_v46  ;;  %v18866_v62 = vadd.f32 %v13735_v43, %v13734_v57  ;;  %v17094_v57 = vld [vmem:[%s20791_s5 + $0x768] sm:$0xff]  }
 0x5f1   :  { %13763 = vmatprep.subr.bf16.mxu1 %v17061_v32  ;;  %v17096_v43 = vld [vmem:[%s20791_s5 + $0x728] sm:$0xff]  }
 0x5f3   :  { %14879 = vmatmul.mubr.msk.f32.gmra.mrb[164].mxu1 %vm956_vm1, %v3308_v34 }
 0x5f4   :  { %14881 = vmatprep.mubr.msk.f32.mxu1 %vm17414_vm0, %v17415_v1  ;;  %13764 = vmatpush3.bf16.msra.mxu1 %v17063_v11  ;;  %v13737_v61 = vpop.f32.mrb[184].mxu0 }
 0x5f5   :  { %13765 = vmatprep.subr.bf16.mxu1 %v17065_v15  ;;  %v13738_v18 = vpop.f32.mrb[185].mxu0 }
 0x5f6   :  { %v18868_v5 = vadd.f32 %v13738_v18, %v13737_v61  ;;  %v13740_v38 = vpop.f32.mrb[186].mxu0  ;;  %v17098_v61 = vld [vmem:[%s20791_s5 + $0x770] sm:$0xff]  }
 0x5f7   :  { %14882 = vmatmul.mubr.msk.f32.gmra.mrb[166].mxu1 %vm956_vm1, %v3309_v42  ;;  %v13741_v17 = vpop.f32.mrb[187].mxu0  ;;  %v17100_v18 = vld [vmem:[%s20791_s5 + $0x730] sm:$0xff]  }
 0x5f8   :  { %14884 = vmatprep.mubr.msk.f32.mxu1 %vm17414_vm0, %v17415_v1  ;;  %13766 = vmatpush3.bf16.msra.mxu1 %v17067_v55  ;;  %v18870_v50 = vadd.f32 %v13741_v17, %v13740_v38  ;;  %v17102_v38 = vld [vmem:[%s20791_s5 + $0x778] sm:$0xff]  }
 0x5f9   :  { %13767 = vmatprep.subr.bf16.mxu1 %v17069_v37  ;;  %v17104_v17 = vld [vmem:[%s20791_s5 + $0x738] sm:$0xff]  }
 0x5fb   :  { %14885 = vmatmul.mubr.msk.f32.gmra.mrb[168].mxu1 %vm956_vm1, %v3310_v25 }
 0x5fc   :  { %14887 = vmatprep.mubr.msk.f32.mxu1 %vm17414_vm0, %v17415_v1  ;;  %13768 = vmatpush3.bf16.msra.mxu1 %v17071_v13  ;;  %v13743_v29 = vpop.f32.mrb[188].mxu0 }
 0x5fd   :  { %13769 = vmatprep.subr.bf16.mxu1 %v17073_v8  ;;  %v13744_v46 = vpop.f32.mrb[189].mxu0  ;;  %v17075_v8 = vld [vmem:[%s20791_s5 + $0x740] sm:$0xff]  }
 0x5fe   :  { %v18872_v32 = vadd.f32 %v13744_v46, %v13743_v29  ;;  %v13746_v34 = vpop.f32.mrb[190].mxu0 }
 0x5ff   :  { %14888 = vmatmul.mubr.msk.f32.gmra.mrb[170].mxu1 %vm956_vm1, %v3311_v20  ;;  %v13747_v11 = vpop.f32.mrb[191].mxu0  ;;  %v17076_v20 = vld [vmem:[%s20791_s5 + $0x700] sm:$0xff]  }
 0x600   :  { %14890 = vmatprep.mubr.msk.f32.mxu1 %vm17414_vm0, %v17415_v1  ;;  %13770 = vmatpush3.bf16.msra.mxu1 %v17074_v9  ;;  %v18874_v15 = vadd.f32 %v13747_v11, %v13746_v34  ;;  %v17078_v9 = vld [vmem:[%s20791_s5 + $0x748] sm:$0xff]  }
 0x601   :  { %13819 = vmatprep.subr.bf16.mxu1 %v17075_v8 }
 0x603   :  { %14891 = vmatmul.mubr.msk.f32.gmra.mrb[172].mxu1 %vm956_vm1, %v3312_v60  ;;  %v17080_v60 = vld [vmem:[%s20791_s5 + $0x708] sm:$0xff]  }
 0x604   :  { %3820 = vmatprep.mubr.bf16.mxu1 %v17637_v39  ;;  %v13749_v42 = vpop.f32.mrb[192].mxu0 }
 0x605   :  { %v13750_v55 = vpop.f32.mrb[193].mxu0 }
 0x606   :  { %v18876_v37 = vadd.f32 %v13750_v55, %v13749_v42  ;;  %v13752_v25 = vpop.f32.mrb[194].mxu0 }
 0x607   :  { %3821 = vmatmul.mubr.bf16.vlgmr.msra.gmra.mrb[176].mxu1 %v17651_v44  ;;  %v13753_v13 = vpop.f32.mrb[195].mxu0 }
 0x608   :  { %3828 = vmatprep.mubr.bf16.mxu1 %v17666_v49  ;;  %13820 = vmatpush3.bf16.msra.mxu1 %v17076_v20 }
 0x609   :  { %13821 = vmatprep.subr.bf16.mxu1 %v17078_v9 }
 0x60c   :  { %13822 = vmatpush3.bf16.msra.mxu1 %v17080_v60 }
 0x60d   :  { %13823 = vmatprep.subr.bf16.mxu1 %v17082_v47 }
 0x60f   :  { %3829 = vmatmul.mubr.bf16.gmra.mrb[180].mxu1 %v17694_v58 }
 0x610   :  { %3836 = vmatprep.mubr.bf16.mxu1 %v17730_v6  ;;  %13824 = vmatpush3.bf16.msra.mxu1 %v17084_v19 }
 0x611   :  { %13825 = vmatprep.subr.bf16.mxu1 %v17086_v36 }
 0x614   :  { %13826 = vmatpush3.bf16.msra.mxu1 %v17088_v21 }
 0x615   :  { %13827 = vmatprep.subr.bf16.mxu1 %v17090_v16 }
 0x617   :  { %3837 = vmatmul.mubr.bf16.gmra.mrb[184].mxu1 %v17748_v12 }
 0x618   :  { %3844 = vmatprep.mubr.bf16.mxu1 %v17793_v27  ;;  %13828 = vmatpush3.bf16.msra.mxu1 %v17092_v14 }
 0x619   :  { %13829 = vmatprep.subr.bf16.mxu1 %v17094_v57 }
 0x61c   :  { %13830 = vmatpush3.bf16.msra.mxu1 %v17096_v43 }
 0x61d   :  { %13831 = vmatprep.subr.bf16.mxu1 %v17098_v61 }
 0x61f   :  { %3845 = vmatmul.mubr.bf16.gmra.mrb[188].mxu1 %v17804_v31 }
 0x620   :  { %3852 = vmatprep.mubr.bf16.mxu1 %v17847_v51  ;;  %13832 = vmatpush3.bf16.msra.mxu1 %v17100_v18 }
 0x621   :  { %13833 = vmatprep.subr.bf16.mxu1 %v17102_v38 }
 0x624   :  { %13834 = vmatpush3.bf16.msra.mxu1 %v17104_v17 }
 0x625   :  { %16415 = vmatprep.subr.bf16.mxu1 %v17413_v0 }
 0x627   :  { %3853 = vmatmul.mubr.bf16.gmra.mrb[192].mxu1 %v17851_v53 }
 0x628   :  { %4305 = vmatprep.mubr.bf16.mxu1 %v17626_v35 }
 0x62f   :  { %4306 = vmatmul.mubr.bf16.vlgmr.msra.gmra.mrb[196].mxu1 %v17639_v40 }
 0x630   :  { %4313 = vmatprep.mubr.bf16.mxu1 %v17664_v48 }
 0x637   :  { %4314 = vmatmul.mubr.bf16.gmra.mrb[200].mxu1 %v17689_v56 }
 0x638   :  { %4321 = vmatprep.mubr.bf16.mxu1 %v17719_v2 }
 0x63f   :  { %4322 = vmatmul.mubr.bf16.gmra.mrb[204].mxu1 %v17742_v10 }
 0x640   :  { %4329 = vmatprep.mubr.bf16.mxu1 %v17782_v23 }
 0x647   :  { %4330 = vmatmul.mubr.bf16.gmra.mrb[208].mxu1 %v17795_v28 }
 0x648   :  { %4337 = vmatprep.mubr.bf16.mxu1 %v17836_v45 }
 0x64f   :  { %4338 = vmatmul.mubr.bf16.gmra.mrb[212].mxu1 %v17849_v52 }
 0x650   :  { %14956 = vmatprep.mubr.msk.f32.mxu1 %vm17414_vm0, %v17415_v1 }
 0x6b6   :  { %v3406_v29 = vpop.f32.mrb[156].mxu1 }
 0x6b7   :  { %v18934_v46 = vadd.f32 %v3406_v29, %v18732_v33  ;;  %v14868_v34 = vpop.f32.mrb[157].mxu1 }
 0x6ba   :  { %v3411_v11 = vpop.f32.mrb[158].mxu1 }
 0x6bb   :  { %v18938_v42 = vadd.f32 %v3411_v11, %v18736_v7  ;;  %v14871_v55 = vpop.f32.mrb[159].mxu1 }
 0x6be   :  { %v3416_v25 = vpop.f32.mrb[160].mxu1 }
 0x6bf   :  { %v18942_v13 = vadd.f32 %v3416_v25, %v18740_v59  ;;  %v14874_v8 = vpop.f32.mrb[161].mxu1 }
 0x6c2   :  { %v3421_v20 = vpop.f32.mrb[162].mxu1 }
 0x6c3   :  { %v18946_v33 = vadd.f32 %v3421_v20, %v18744_v3  ;;  %v14877_v9 = vpop.f32.mrb[163].mxu1 }
 0x6c6   :  { %v3426_v7 = vpop.f32.mrb[164].mxu1 }
 0x6c7   :  { %v18951_v60 = vadd.f32 %v3426_v7, %v18749_v4  ;;  %v14880_v47 = vpop.f32.mrb[165].mxu1 }
 0x6ca   :  { %v3431_v19 = vpop.f32.mrb[166].mxu1 }
 0x6cb   :  { %v18954_v59 = vadd.f32 %v3431_v19, %v18752_v22  ;;  %v14883_v36 = vpop.f32.mrb[167].mxu1 }
 0x6ce   :  { %v3436_v21 = vpop.f32.mrb[168].mxu1 }
 0x6cf   :  { %v18957_v16 = vadd.f32 %v3436_v21, %v18755_v24  ;;  %v14886_v3 = vpop.f32.mrb[169].mxu1 }
 0x6d2   :  { %v3441_v14 = vpop.f32.mrb[170].mxu1 }
 0x6d3   :  { %v18960_v57 = vadd.f32 %v3441_v14, %v18758_v63  ;;  %v14889_v43 = vpop.f32.mrb[171].mxu1 }
 0x6d6   :  { %v3446_v61 = vpop.f32.mrb[172].mxu1 }
 0x6d7   :  { %v18963_v4 = vadd.f32 %v3446_v61, %v18761_v30  ;;  %v14892_v18 = vpop.f32.mrb[173].mxu1 }
 0x6da   :  { %v13771_v38 = vpop.f32.mrb[176].mxu1 }
 0x6db   :  { %v13772_v17 = vpop.f32.mrb[177].mxu1 }
 0x6dc   :  { %v13773_v22 = vadd.f32 %v13772_v17, %v13771_v38  ;;  %v13774_v29 = vpop.f32.mrb[178].mxu1 }
 0x6dd   :  { %v13775_v34 = vpop.f32.mrb[179].mxu1 }
 0x6de   :  { %v3823_v11 = vadd.f32 %v13773_v22, %v18860_v54  ;;  %v13776_v24 = vadd.f32 %v13775_v34, %v13774_v29 }
 0x6e0   :  { %v3826_v55 = vadd.f32 %v13776_v24, %v18862_v41 }
 0x6e2   :  { %v13777_v25 = vpop.f32.mrb[180].mxu1  ;;  %v16404_v8 = vpack.c.bf16 %v3826_v55, %v3823_v11 }
 0x6e3   :  { %v13778_v63 = vpop.f32.mrb[181].mxu1 }
 0x6e4   :  { %v13779_v20 = vadd.f32 %v13778_v63, %v13777_v25  ;;  %v13780_v9 = vpop.f32.mrb[182].mxu1  ;;  %16405 = vmatpush3.bf16.msra.mxu0 %v16404_v8 }
 0x6e5   :  { %v13781_v7 = vpop.f32.mrb[183].mxu1  ;;  %16406 = vmatprep.subr.bf16.mxu0 %v17413_v0 }
 0x6e6   :  { %v3831_v30 = vadd.f32 %v13779_v20, %v18864_v26  ;;  %v13782_v47 = vadd.f32 %v13781_v7, %v13780_v9  ;;  %v17077_v20 = vld [vmem:[%s20791_s5 + $0x7c0] sm:$0xff]   ;;  %v3861_v7 = vld [vmem:[#allocation2 + $0x1b0] sm:$0xff] }
 0x6e8   :  { %v3834_v19 = vadd.f32 %v13782_v47, %v18866_v62  ;;  %v17085_v47 = vld [vmem:[%s20791_s5 + $0x7d0] sm:$0xff]  }
 0x6ea   :  { %v13783_v36 = vpop.f32.mrb[184].mxu1  ;;  %v16407_v21 = vpack.c.bf16 %v3834_v19, %v3831_v30  ;;  %v3862_v30 = vld [vmem:[#allocation2 + $0x1b8] sm:$0xff]  ;;  %v3863_v19 = vld [vmem:[#allocation2 + $0x1c0] sm:$0xff] }
 0x6eb   :  { %v13784_v54 = vpop.f32.mrb[185].mxu1 }
 0x6ec   :  { %v13785_v3 = vadd.f32 %v13784_v54, %v13783_v36  ;;  %v13786_v14 = vpop.f32.mrb[186].mxu1  ;;  %16408 = vmatpush3.bf16.msra.mxu0 %v16407_v21  ;;  %v17087_v36 = vld [vmem:[%s20791_s5 + $0x790] sm:$0xff]   ;;  %v17089_v21 = vld [vmem:[%s20791_s5 + $0x7d8] sm:$0xff]   ;;  %v3864_v54 = vld [vmem:[#allocation2 + $0x1c8] sm:$0xff] }
 0x6ed   :  { %v13787_v41 = vpop.f32.mrb[187].mxu1  ;;  %16409 = vmatprep.subr.bf16.mxu0 %v17413_v0 }
 0x6ee   :  { %v3839_v43 = vadd.f32 %v13785_v3, %v18868_v5  ;;  %v13788_v61 = vadd.f32 %v13787_v41, %v13786_v14  ;;  %v17091_v3 = vld [vmem:[%s20791_s5 + $0x798] sm:$0xff]   ;;  %v17093_v14 = vld [vmem:[%s20791_s5 + $0x7e0] sm:$0xff]   ;;  %v3865_v41 = vld [vmem:[#allocation2 + $0x1d0] sm:$0xff] }
 0x6f0   :  { %v3842_v18 = vadd.f32 %v13788_v61, %v18870_v50  ;;  %v17097_v61 = vld [vmem:[%s20791_s5 + $0x7e8] sm:$0xff]  }
 0x6f2   :  { %v13789_v38 = vpop.f32.mrb[188].mxu1  ;;  %v16410_v17 = vpack.c.bf16 %v3842_v18, %v3839_v43  ;;  %v17095_v43 = vld [vmem:[%s20791_s5 + $0x7a0] sm:$0xff]   ;;  %v3866_v18 = vld [vmem:[#allocation2 + $0x1d8] sm:$0xff] }
 0x6f3   :  { %v13790_v26 = vpop.f32.mrb[189].mxu1 }
 0x6f4   :  { %v13792_v22 = vpop.f32.mrb[190].mxu1  ;;  %16411 = vmatpush3.bf16.msra.mxu0 %v16410_v17  ;;  %v13791_v62 = vadd.f32 %v13790_v26, %v13789_v38  ;;  %v17099_v38 = vld [vmem:[%s20791_s5 + $0x7a8] sm:$0xff]   ;;  %v17101_v17 = vld [vmem:[%s20791_s5 + $0x7f0] sm:$0xff]   ;;  %v3867_v26 = vld [vmem:[#allocation2 + $0x1e0] sm:$0xff] }
 0x6f5   :  { %v13793_v29 = vpop.f32.mrb[191].mxu1  ;;  %16412 = vmatprep.subr.bf16.mxu0 %v17413_v0 }
 0x6f6   :  { %v3847_v34 = vadd.f32 %v13791_v62, %v18872_v32  ;;  %v13794_v11 = vadd.f32 %v13793_v29, %v13792_v22  ;;  %v17079_v32 = vld [vmem:[%s20791_s5 + $0x780] sm:$0xff]   ;;  %v17103_v22 = vld [vmem:[%s20791_s5 + $0x7b0] sm:$0xff]   ;;  %v17105_v62 = vld [vmem:[%s20791_s5 + $0x7f8] sm:$0xff]  }
 0x6f7   :  { %v3868_v29 = vld [vmem:[#allocation2 + $0x1e8] sm:$0xff] }
 0x6f8   :  { %v3850_v24 = vadd.f32 %v13794_v11, %v18874_v15  ;;  %v17081_v15 = vld [vmem:[%s20791_s5 + $0x7c8] sm:$0xff]   ;;  %v3869_v11 = vld [vmem:[#allocation2 + $0x1f0] sm:$0xff] }
 0x6fa   :  { %v13795_v55 = vpop.f32.mrb[192].mxu1  ;;  %v16413_v25 = vpack.c.bf16 %v3850_v24, %v3847_v34  ;;  %v17106_v34 = vld [vmem:[%s20791_s5 + $0x7b8] sm:$0xff]  }
 0x6fb   :  { %v13796_v5 = vpop.f32.mrb[193].mxu1 }
 0x6fc   :  { %v13797_v8 = vadd.f32 %v13796_v5, %v13795_v55  ;;  %v13798_v63 = vpop.f32.mrb[194].mxu1  ;;  %16414 = vmatpush3.bf16.msra.mxu0 %v16413_v25 }
 0x6fd   :  { %v13799_v50 = vpop.f32.mrb[195].mxu1  ;;  %14909 = vmatprep.subr.mxu0 %v17415_v1 }
 0x6fe   :  { %v3855_v9 = vadd.f32 %v13797_v8, %v18876_v37  ;;  %v17083_v37 = vld [vmem:[%s20791_s5 + $0x788] sm:$0xff]  }
 0x700   :  { %14910 = vmatpush3.msra.mxu0 %v3855_v9 }
 0x701   :  { %14912 = vmatmul.mubr.msk.f32.vlgmr.msra.gmra.mrb[154].mxu0 %vm956_vm1, %v3861_v7  ;;  %13865 = vmatprep.subr.bf16.mxu0 %v17077_v20 }
 0x702   :  { %14914 = vmatprep.mubr.msk.f32.mxu0 %vm17414_vm0, %v17415_v1  ;;  %13866 = vmatpush3.bf16.msra.mxu0 %v17079_v32  ;;  %v13835_v24 = vpop.f32.mrb[196].mxu1 }
 0x703   :  { %13867 = vmatprep.subr.bf16.mxu0 %v17081_v15  ;;  %v13836_v55 = vpop.f32.mrb[197].mxu1 }
 0x704   :  { %v19062_v25 = vadd.f32 %v13836_v55, %v13835_v24  ;;  %v13838_v5 = vpop.f32.mrb[198].mxu1  ;;  %v17116_v24 = vld [vmem:[%s20791_s5 + $0x810] sm:$0xff]   ;;  %v17118_v55 = vld [vmem:[%s20791_s5 + $0x858] sm:$0xff]  }
 0x705   :  { %14915 = vmatmul.mubr.msk.f32.gmra.mrb[196].mxu0 %vm956_vm1, %v3862_v30  ;;  %v13839_v8 = vpop.f32.mrb[199].mxu1 }
 0x706   :  { %14917 = vmatprep.mubr.msk.f32.mxu0 %vm17414_vm0, %v17415_v1  ;;  %13868 = vmatpush3.bf16.msra.mxu0 %v17083_v37  ;;  %v19064_v63 = vadd.f32 %v13839_v8, %v13838_v5  ;;  %v17120_v5 = vld [vmem:[%s20791_s5 + $0x818] sm:$0xff]   ;;  %v17122_v8 = vld [vmem:[%s20791_s5 + $0x860] sm:$0xff]  }
 0x707   :  { %13869 = vmatprep.subr.bf16.mxu0 %v17085_v47 }
 0x709   :  { %14918 = vmatmul.mubr.msk.f32.gmra.mrb[198].mxu0 %vm956_vm1, %v3863_v19 }
 0x70a   :  { %14920 = vmatprep.mubr.msk.f32.mxu0 %vm17414_vm0, %v17415_v1  ;;  %13870 = vmatpush3.bf16.msra.mxu0 %v17087_v36  ;;  %v13841_v50 = vpop.f32.mrb[200].mxu1 }
 0x70b   :  { %13871 = vmatprep.subr.bf16.mxu0 %v17089_v21  ;;  %v13842_v20 = vpop.f32.mrb[201].mxu1 }
 0x70c   :  { %v19066_v9 = vadd.f32 %v13842_v20, %v13841_v50  ;;  %v13844_v7 = vpop.f32.mrb[202].mxu1  ;;  %v17124_v50 = vld [vmem:[%s20791_s5 + $0x820] sm:$0xff]   ;;  %v17126_v20 = vld [vmem:[%s20791_s5 + $0x868] sm:$0xff]  }
 0x70d   :  { %14921 = vmatmul.mubr.msk.f32.gmra.mrb[200].mxu0 %vm956_vm1, %v3864_v54  ;;  %v13845_v32 = vpop.f32.mrb[203].mxu1 }
 0x70e   :  { %14923 = vmatprep.mubr.msk.f32.mxu0 %vm17414_vm0, %v17415_v1  ;;  %13872 = vmatpush3.bf16.msra.mxu0 %v17091_v3  ;;  %v19068_v15 = vadd.f32 %v13845_v32, %v13844_v7  ;;  %v17128_v7 = vld [vmem:[%s20791_s5 + $0x828] sm:$0xff]   ;;  %v17130_v32 = vld [vmem:[%s20791_s5 + $0x870] sm:$0xff]  }
 0x70f   :  { %13873 = vmatprep.subr.bf16.mxu0 %v17093_v14 }
 0x711   :  { %14924 = vmatmul.mubr.msk.f32.gmra.mrb[202].mxu0 %vm956_vm1, %v3865_v41 }
 0x712   :  { %14926 = vmatprep.mubr.msk.f32.mxu0 %vm17414_vm0, %v17415_v1  ;;  %13874 = vmatpush3.bf16.msra.mxu0 %v17095_v43  ;;  %v13847_v30 = vpop.f32.mrb[204].mxu1 }
 0x713   :  { %13875 = vmatprep.subr.bf16.mxu0 %v17097_v61  ;;  %v13848_v37 = vpop.f32.mrb[205].mxu1 }
 0x714   :  { %v19070_v47 = vadd.f32 %v13848_v37, %v13847_v30  ;;  %v17132_v30 = vld [vmem:[%s20791_s5 + $0x830] sm:$0xff]   ;;  %v17134_v37 = vld [vmem:[%s20791_s5 + $0x878] sm:$0xff]  }
 0x715   :  { %14927 = vmatmul.mubr.msk.f32.gmra.mrb[204].mxu0 %vm956_vm1, %v3866_v18 }
 0x716   :  { %14929 = vmatprep.mubr.msk.f32.mxu0 %vm17414_vm0, %v17415_v1  ;;  %13876 = vmatpush3.bf16.msra.mxu0 %v17099_v38 }
 0x717   :  { %13877 = vmatprep.subr.bf16.mxu0 %v17101_v17 }
 0x719   :  { %14930 = vmatmul.mubr.msk.f32.gmra.mrb[206].mxu0 %vm956_vm1, %v3867_v26 }
 0x71a   :  { %14932 = vmatprep.mubr.msk.f32.mxu0 %vm17414_vm0, %v17415_v1  ;;  %13878 = vmatpush3.bf16.msra.mxu0 %v17103_v22  ;;  %v17107_v22 = vld [vmem:[%s20791_s5 + $0x840] sm:$0xff]  }
 0x71b   :  { %13879 = vmatprep.subr.bf16.mxu0 %v17105_v62  ;;  %v17108_v62 = vld [vmem:[%s20791_s5 + $0x800] sm:$0xff]  }
 0x71d   :  { %14933 = vmatmul.mubr.msk.f32.gmra.mrb[208].mxu0 %vm956_vm1, %v3868_v29  ;;  %v17110_v29 = vld [vmem:[%s20791_s5 + $0x848] sm:$0xff]  }
 0x71e   :  { %14935 = vmatprep.mubr.msk.f32.mxu0 %vm17414_vm0, %v17415_v1  ;;  %13880 = vmatpush3.bf16.msra.mxu0 %v17106_v34  ;;  %v17112_v34 = vld [vmem:[%s20791_s5 + $0x808] sm:$0xff]  }
 0x71f   :  { %13929 = vmatprep.subr.bf16.mxu0 %v17107_v22 }
 0x721   :  { %14936 = vmatmul.mubr.msk.f32.gmra.mrb[210].mxu0 %vm956_vm1, %v3869_v11  ;;  %v17114_v11 = vld [vmem:[%s20791_s5 + $0x850] sm:$0xff]  }
 0x722   :  { %4377 = vmatprep.mubr.bf16.mxu0 %v17637_v39 }
 0x725   :  { %4378 = vmatmul.mubr.bf16.vlgmr.msra.gmra.mrb[212].mxu0 %v17651_v44 }
 0x726   :  { %4385 = vmatprep.mubr.bf16.mxu0 %v17666_v49  ;;  %13930 = vmatpush3.bf16.msra.mxu0 %v17108_v62 }
 0x727   :  { %13931 = vmatprep.subr.bf16.mxu0 %v17110_v29 }
 0x72a   :  { %13932 = vmatpush3.bf16.msra.mxu0 %v17112_v34 }
 0x72b   :  { %13933 = vmatprep.subr.bf16.mxu0 %v17114_v11 }
 0x72d   :  { %4386 = vmatmul.mubr.bf16.gmra.mrb[216].mxu0 %v17694_v58 }
 0x72e   :  { %4393 = vmatprep.mubr.bf16.mxu0 %v17730_v6  ;;  %13934 = vmatpush3.bf16.msra.mxu0 %v17116_v24 }
 0x72f   :  { %13935 = vmatprep.subr.bf16.mxu0 %v17118_v55 }
 0x732   :  { %13936 = vmatpush3.bf16.msra.mxu0 %v17120_v5 }
 0x733   :  { %13937 = vmatprep.subr.bf16.mxu0 %v17122_v8 }
 0x735   :  { %4394 = vmatmul.mubr.bf16.gmra.mrb[220].mxu0 %v17748_v12 }
 0x736   :  { %4401 = vmatprep.mubr.bf16.mxu0 %v17793_v27  ;;  %13938 = vmatpush3.bf16.msra.mxu0 %v17124_v50 }
 0x737   :  { %13939 = vmatprep.subr.bf16.mxu0 %v17126_v20 }
 0x73a   :  { %13940 = vmatpush3.bf16.msra.mxu0 %v17128_v7 }
 0x73b   :  { %13941 = vmatprep.subr.bf16.mxu0 %v17130_v32 }
 0x73d   :  { %4402 = vmatmul.mubr.bf16.gmra.mrb[224].mxu0 %v17804_v31 }
 0x73e   :  { %4409 = vmatprep.mubr.bf16.mxu0 %v17847_v51  ;;  %13942 = vmatpush3.bf16.msra.mxu0 %v17132_v30 }
 0x73f   :  { %13943 = vmatprep.subr.bf16.mxu0 %v17134_v37 }
 0x745   :  { %4410 = vmatmul.mubr.bf16.gmra.mrb[228].mxu0 %v17851_v53 }
 0x746   :  { %4862 = vmatprep.mubr.bf16.mxu0 %v17626_v35  ;;  %v13850_v35 = vpop.f32.mrb[206].mxu1 }
 0x747   :  { %v13851_v19 = vpop.f32.mrb[207].mxu1 }
 0x748   :  { %v19072_v36 = vadd.f32 %v13851_v19, %v13850_v35  ;;  %v13853_v21 = vpop.f32.mrb[208].mxu1  ;;  %v17136_v35 = vld [vmem:[%s20791_s5 + $0x838] sm:$0xff]  }
 0x749   :  { %v13854_v54 = vpop.f32.mrb[209].mxu1  ;;  %13944 = vmatpush3.bf16.msra.mxu0 %v17136_v35 }
 0x74a   :  { %v19074_v3 = vadd.f32 %v13854_v54, %v13853_v21  ;;  %v13856_v14 = vpop.f32.mrb[210].mxu1  ;;  %16427 = vmatprep.subr.bf16.mxu0 %v17413_v0 }
 0x74b   :  { %v13857_v41 = vpop.f32.mrb[211].mxu1 }
 0x74c   :  { %v19076_v43 = vadd.f32 %v13857_v41, %v13856_v14  ;;  %v13859_v61 = vpop.f32.mrb[212].mxu1 }
 0x74d   :  { %v13860_v18 = vpop.f32.mrb[213].mxu1  ;;  %4863 = vmatmul.mubr.bf16.vlgmr.msra.gmra.mrb[232].mxu0 %v17639_v40 }
 0x74e   :  { %v19078_v38 = vadd.f32 %v13860_v18, %v13859_v61  ;;  %v13862_v17 = vpop.f32.mrb[214].mxu1  ;;  %4870 = vmatprep.mubr.bf16.mxu0 %v17664_v48 }
 0x74f   :  { %v13863_v26 = vpop.f32.mrb[215].mxu1 }
 0x755   :  { %4871 = vmatmul.mubr.bf16.gmra.mrb[236].mxu0 %v17689_v56 }
 0x756   :  { %4878 = vmatprep.mubr.bf16.mxu0 %v17719_v2 }
 0x75d   :  { %4879 = vmatmul.mubr.bf16.gmra.mrb[240].mxu0 %v17742_v10 }
 0x75e   :  { %4886 = vmatprep.mubr.bf16.mxu0 %v17782_v23 }
 0x765   :  { %4887 = vmatmul.mubr.bf16.gmra.mrb[244].mxu0 %v17795_v28 }
 0x766   :  { %4894 = vmatprep.mubr.bf16.mxu0 %v17836_v45 }
 0x76d   :  { %4895 = vmatmul.mubr.bf16.gmra.mrb[248].mxu0 %v17849_v52 }
 0x76e   :  { %15001 = vmatprep.mubr.msk.f32.mxu0 %vm17414_vm0, %v17415_v1 }
 0x7d4   :  { %v3963_v19 = vpop.f32.mrb[154].mxu0 }
 0x7d5   :  { %v14913_v21 = vpop.f32.mrb[155].mxu0  ;;  %v19136_v54 = vadd.f32 %v3963_v19, %v18934_v46 }
 0x7d8   :  { %v3968_v14 = vpop.f32.mrb[196].mxu0 }
 0x7d9   :  { %v19140_v40 = vadd.f32 %v3968_v14, %v18938_v42  ;;  %v14916_v48 = vpop.f32.mrb[197].mxu0 }
 0x7dc   :  { %v3973_v56 = vpop.f32.mrb[198].mxu0 }
 0x7dd   :  { %v19144_v2 = vadd.f32 %v3973_v56, %v18942_v13  ;;  %v14919_v10 = vpop.f32.mrb[199].mxu0 }
 0x7e0   :  { %v3978_v23 = vpop.f32.mrb[200].mxu0 }
 0x7e1   :  { %v19148_v46 = vadd.f32 %v3978_v23, %v18946_v33  ;;  %v14922_v41 = vpop.f32.mrb[201].mxu0 }
 0x7e4   :  { %v3983_v28 = vpop.f32.mrb[202].mxu0 }
 0x7e5   :  { %v19153_v42 = vadd.f32 %v3983_v28, %v18951_v60  ;;  %v14925_v45 = vpop.f32.mrb[203].mxu0 }
 0x7e8   :  { %v3988_v61 = vpop.f32.mrb[204].mxu0 }
 0x7e9   :  { %v19156_v13 = vadd.f32 %v3988_v61, %v18954_v59  ;;  %v14928_v18 = vpop.f32.mrb[205].mxu0 }
 0x7ec   :  { %v3993_v17 = vpop.f32.mrb[206].mxu0 }
 0x7ed   :  { %v19159_v52 = vadd.f32 %v3993_v17, %v18957_v16  ;;  %v14931_v33 = vpop.f32.mrb[207].mxu0 }
 0x7f0   :  { %v3998_v26 = vpop.f32.mrb[208].mxu0 }
 0x7f1   :  { %v19162_v22 = vadd.f32 %v3998_v26, %v18960_v57  ;;  %v14934_v62 = vpop.f32.mrb[209].mxu0 }
 0x7f4   :  { %v4003_v29 = vpop.f32.mrb[210].mxu0 }
 0x7f5   :  { %v19165_v60 = vadd.f32 %v4003_v29, %v18963_v4  ;;  %v14937_v34 = vpop.f32.mrb[211].mxu0 }
 0x7f8   :  { %v13881_v11 = vpop.f32.mrb[212].mxu0 }
 0x7f9   :  { %v13882_v24 = vpop.f32.mrb[213].mxu0 }
 0x7fa   :  { %v13883_v59 = vadd.f32 %v13882_v24, %v13881_v11  ;;  %v13884_v55 = vpop.f32.mrb[214].mxu0  ;;  %v17109_v24 = vld [vmem:[%s20791_s5 + $0x8c0] sm:$0xff]  }
 0x7fb   :  { %v13885_v5 = vpop.f32.mrb[215].mxu0 }
 0x7fc   :  { %v4380_v8 = vadd.f32 %v13883_v59, %v19062_v25  ;;  %v13886_v16 = vadd.f32 %v13885_v5, %v13884_v55  ;;  %v4418_v55 = vld [vmem:[#allocation2 + $0x1f8] sm:$0xff]  ;;  %v4419_v5 = vld [vmem:[#allocation2 + $0x200] sm:$0xff] }
 0x7fe   :  { %v4383_v50 = vadd.f32 %v13886_v16, %v19064_v63  ;;  %v4420_v16 = vld [vmem:[#allocation2 + $0x208] sm:$0xff] }
 0x800   :  { %v13887_v20 = vpop.f32.mrb[216].mxu0  ;;  %v16416_v7 = vpack.c.bf16 %v4383_v50, %v4380_v8  ;;  %v17117_v8 = vld [vmem:[%s20791_s5 + $0x8d0] sm:$0xff]  }
 0x801   :  { %v13888_v57 = vpop.f32.mrb[217].mxu0  ;;  %v17119_v50 = vld [vmem:[%s20791_s5 + $0x890] sm:$0xff]  }
 0x802   :  { %v13889_v32 = vadd.f32 %v13888_v57, %v13887_v20  ;;  %v13890_v30 = vpop.f32.mrb[218].mxu0  ;;  %16417 = vmatpush3.bf16.msra.mxu1 %v16416_v7  ;;  %v17121_v20 = vld [vmem:[%s20791_s5 + $0x8d8] sm:$0xff]   ;;  %v4421_v7 = vld [vmem:[#allocation2 + $0x210] sm:$0xff] }
 0x803   :  { %v13891_v37 = vpop.f32.mrb[219].mxu0  ;;  %16418 = vmatprep.subr.bf16.mxu1 %v17413_v0  ;;  %v17123_v57 = vld [vmem:[%s20791_s5 + $0x898] sm:$0xff]  }
 0x804   :  { %v4388_v4 = vadd.f32 %v13889_v32, %v19066_v9  ;;  %v13892_v35 = vadd.f32 %v13891_v37, %v13890_v30  ;;  %v17125_v32 = vld [vmem:[%s20791_s5 + $0x8e0] sm:$0xff]   ;;  %v4422_v30 = vld [vmem:[#allocation2 + $0x218] sm:$0xff] }
 0x805   :  { %v17127_v37 = vld [vmem:[%s20791_s5 + $0x8a0] sm:$0xff]  }
 0x806   :  { %v4391_v19 = vadd.f32 %v13892_v35, %v19068_v15  ;;  %v4423_v35 = vld [vmem:[#allocation2 + $0x220] sm:$0xff] }
 0x808   :  { %v13893_v21 = vpop.f32.mrb[220].mxu0  ;;  %v16419_v14 = vpack.c.bf16 %v4391_v19, %v4388_v4  ;;  %v17129_v4 = vld [vmem:[%s20791_s5 + $0x8e8] sm:$0xff]  }
 0x809   :  { %v13894_v25 = vpop.f32.mrb[221].mxu0  ;;  %v17131_v19 = vld [vmem:[%s20791_s5 + $0x8a8] sm:$0xff]  }
 0x80a   :  { %v13896_v48 = vpop.f32.mrb[222].mxu0  ;;  %16420 = vmatpush3.bf16.msra.mxu1 %v16419_v14  ;;  %v13895_v63 = vadd.f32 %v13894_v25, %v13893_v21  ;;  %v17133_v21 = vld [vmem:[%s20791_s5 + $0x8f0] sm:$0xff]   ;;  %v4424_v14 = vld [vmem:[#allocation2 + $0x228] sm:$0xff] }
 0x80b   :  { %v13897_v56 = vpop.f32.mrb[223].mxu0  ;;  %16421 = vmatprep.subr.bf16.mxu1 %v17413_v0  ;;  %v17135_v25 = vld [vmem:[%s20791_s5 + $0x8b0] sm:$0xff]  }
 0x80c   :  { %v13898_v10 = vadd.f32 %v13897_v56, %v13896_v48  ;;  %v4396_v23 = vadd.f32 %v13895_v63, %v19070_v47  ;;  %v17137_v48 = vld [vmem:[%s20791_s5 + $0x8f8] sm:$0xff]   ;;  %v4425_v63 = vld [vmem:[#allocation2 + $0x230] sm:$0xff] }
 0x80d   :  { %v17138_v56 = vld [vmem:[%s20791_s5 + $0x8b8] sm:$0xff]  }
 0x80e   :  { %v4399_v41 = vadd.f32 %v13898_v10, %v19072_v36  ;;  %v4426_v10 = vld [vmem:[#allocation2 + $0x238] sm:$0xff] }
 0x810   :  { %v13899_v28 = vpop.f32.mrb[224].mxu0  ;;  %v16422_v45 = vpack.c.bf16 %v4399_v41, %v4396_v23 }
 0x811   :  { %v13900_v9 = vpop.f32.mrb[225].mxu0 }
 0x812   :  { %v13901_v61 = vadd.f32 %v13900_v9, %v13899_v28  ;;  %v13902_v18 = vpop.f32.mrb[226].mxu0  ;;  %16423 = vmatpush3.bf16.msra.mxu1 %v16422_v45 }
 0x813   :  { %v13903_v15 = vpop.f32.mrb[227].mxu0  ;;  %16424 = vmatprep.subr.bf16.mxu1 %v17413_v0 }
 0x814   :  { %v4404_v17 = vadd.f32 %v13901_v61, %v19074_v3  ;;  %v13904_v33 = vadd.f32 %v13903_v15, %v13902_v18  ;;  %v17111_v3 = vld [vmem:[%s20791_s5 + $0x880] sm:$0xff]  }
 0x816   :  { %v4407_v26 = vadd.f32 %v13904_v33, %v19076_v43  ;;  %v17113_v43 = vld [vmem:[%s20791_s5 + $0x8c8] sm:$0xff]  }
 0x818   :  { %v13905_v62 = vpop.f32.mrb[228].mxu0  ;;  %v16425_v29 = vpack.c.bf16 %v4407_v26, %v4404_v17 }
 0x819   :  { %v13906_v34 = vpop.f32.mrb[229].mxu0 }
 0x81a   :  { %v13907_v47 = vadd.f32 %v13906_v34, %v13905_v62  ;;  %v13908_v11 = vpop.f32.mrb[230].mxu0  ;;  %16426 = vmatpush3.bf16.msra.mxu1 %v16425_v29 }
 0x81b   :  { %v13909_v36 = vpop.f32.mrb[231].mxu0  ;;  %14954 = vmatprep.subr.mxu1 %v17415_v1 }
 0x81c   :  { %v4412_v59 = vadd.f32 %v13907_v47, %v19078_v38  ;;  %v17115_v38 = vld [vmem:[%s20791_s5 + $0x888] sm:$0xff]  }
 0x81e   :  { %14955 = vmatpush3.msra.mxu1 %v4412_v59 }
 0x81f   :  { %14957 = vmatmul.mubr.msk.f32.vlgmr.msra.gmra.mrb[174].mxu1 %vm956_vm1, %v4418_v55  ;;  %13975 = vmatprep.subr.bf16.mxu1 %v17109_v24  ;;  %v17139_v55 = vld [vmem:[%s20793_s7] sm:$0xff]  }
 0x820   :  { %14959 = vmatprep.mubr.msk.f32.mxu1 %vm17414_vm0, %v17415_v1  ;;  %13976 = vmatpush3.bf16.msra.mxu1 %v17111_v3  ;;  %v17141_v3 = vld [vmem:[%s20793_s7 + $0x8] sm:$0xff]  }
 0x821   :  { %13977 = vmatprep.subr.bf16.mxu1 %v17113_v43  ;;  %v17143_v43 = vld [vmem:[%s20793_s7 + $0x10] sm:$0xff]  }
 0x823   :  { %14960 = vmatmul.mubr.msk.f32.gmra.mrb[216].mxu1 %vm956_vm1, %v4419_v5  ;;  %v17145_v5 = vld [vmem:[%s20793_s7 + $0x18] sm:$0xff]  }
 0x824   :  { %14962 = vmatprep.mubr.msk.f32.mxu1 %vm17414_vm0, %v17415_v1  ;;  %13978 = vmatpush3.bf16.msra.mxu1 %v17115_v38 }
 0x825   :  { %13979 = vmatprep.subr.bf16.mxu1 %v17117_v8 }
 0x827   :  { %14963 = vmatmul.mubr.msk.f32.gmra.mrb[218].mxu1 %vm956_vm1, %v4420_v16 }
 0x828   :  { %14965 = vmatprep.mubr.msk.f32.mxu1 %vm17414_vm0, %v17415_v1  ;;  %13980 = vmatpush3.bf16.msra.mxu1 %v17119_v50 }
 0x829   :  { %13981 = vmatprep.subr.bf16.mxu1 %v17121_v20 }
 0x82b   :  { %14966 = vmatmul.mubr.msk.f32.gmra.mrb[220].mxu1 %vm956_vm1, %v4421_v7 }
 0x82c   :  { %14968 = vmatprep.mubr.msk.f32.mxu1 %vm17414_vm0, %v17415_v1  ;;  %13982 = vmatpush3.bf16.msra.mxu1 %v17123_v57 }
 0x82d   :  { %13983 = vmatprep.subr.bf16.mxu1 %v17125_v32 }
 0x82f   :  { %14969 = vmatmul.mubr.msk.f32.gmra.mrb[222].mxu1 %vm956_vm1, %v4422_v30 }
 0x830   :  { %14971 = vmatprep.mubr.msk.f32.mxu1 %vm17414_vm0, %v17415_v1  ;;  %13984 = vmatpush3.bf16.msra.mxu1 %v17127_v37 }
 0x831   :  { %13985 = vmatprep.subr.bf16.mxu1 %v17129_v4 }
 0x833   :  { %14972 = vmatmul.mubr.msk.f32.gmra.mrb[224].mxu1 %vm956_vm1, %v4423_v35 }
 0x834   :  { %14974 = vmatprep.mubr.msk.f32.mxu1 %vm17414_vm0, %v17415_v1  ;;  %13986 = vmatpush3.bf16.msra.mxu1 %v17131_v19 }
 0x835   :  { %13987 = vmatprep.subr.bf16.mxu1 %v17133_v21 }
 0x837   :  { %14975 = vmatmul.mubr.msk.f32.gmra.mrb[226].mxu1 %vm956_vm1, %v4424_v14 }
 0x838   :  { %14977 = vmatprep.mubr.msk.f32.mxu1 %vm17414_vm0, %v17415_v1  ;;  %13988 = vmatpush3.bf16.msra.mxu1 %v17135_v25 }
 0x839   :  { %13989 = vmatprep.subr.bf16.mxu1 %v17137_v48 }
 0x83b   :  { %14978 = vmatmul.mubr.msk.f32.gmra.mrb[228].mxu1 %vm956_vm1, %v4425_v63 }
 0x83c   :  { %14980 = vmatprep.mubr.msk.f32.mxu1 %vm17414_vm0, %v17415_v1  ;;  %13990 = vmatpush3.bf16.msra.mxu1 %v17138_v56 }
 0x83d   :  { %15028 = vmatprep.subr.bf16.mxu1 %v17415_v1 }
 0x83f   :  { %14981 = vmatmul.mubr.msk.f32.gmra.mrb[230].mxu1 %vm956_vm1, %v4426_v10 }
 0x840   :  { %4934 = vmatprep.mubr.bf16.mxu1 %v17637_v39  ;;  %v13945_v39 = vpop.f32.mrb[232].mxu0 }
 0x843   :  { %4935 = vmatmul.mubr.bf16.vlgmr.msra.gmra.mrb[232].mxu1 %v17651_v44  ;;  %v13946_v44 = vpop.f32.mrb[233].mxu0 }
 0x844   :  { %4942 = vmatprep.mubr.bf16.mxu1 %v17666_v49  ;;  %v19266_v49 = vadd.f32 %v13946_v44, %v13945_v39  ;;  %15029 = vmatpush3.bf16.msra.mxu1 %v17139_v55 }
 0x845   :  { %15030 = vmatprep.subr.bf16.mxu1 %v17415_v1 }
 0x848   :  { %15031 = vmatpush3.bf16.msra.mxu1 %v17141_v3 }
 0x849   :  { %15032 = vmatprep.subr.bf16.mxu1 %v17415_v1 }
 0x84b   :  { %4943 = vmatmul.mubr.bf16.gmra.mrb[236].mxu1 %v17694_v58  ;;  %v13948_v58 = vpop.f32.mrb[234].mxu0 }
 0x84c   :  { %4950 = vmatprep.mubr.bf16.mxu1 %v17730_v6  ;;  %v13949_v23 = vpop.f32.mrb[235].mxu0  ;;  %15033 = vmatpush3.bf16.msra.mxu1 %v17143_v43 }
 0x84d   :  { %v19268_v6 = vadd.f32 %v13949_v23, %v13948_v58  ;;  %15034 = vmatprep.subr.bf16.mxu1 %v17415_v1 }
 0x850   :  { %15035 = vmatpush3.bf16.msra.mxu1 %v17145_v5 }
 0x851   :  { %15036 = vmatprep.subr.bf16.mxu1 %v17415_v1 }
 0x853   :  { %4951 = vmatmul.mubr.bf16.gmra.mrb[240].mxu1 %v17748_v12  ;;  %v13951_v12 = vpop.f32.mrb[236].mxu0 }
 0x854   :  { %4958 = vmatprep.mubr.bf16.mxu1 %v17793_v27  ;;  %v13952_v41 = vpop.f32.mrb[237].mxu0 }
 0x855   :  { %v19270_v27 = vadd.f32 %v13952_v41, %v13951_v12 }
 0x85b   :  { %4959 = vmatmul.mubr.bf16.gmra.mrb[244].mxu1 %v17804_v31  ;;  %v13954_v31 = vpop.f32.mrb[238].mxu0 }
 0x85c   :  { %4966 = vmatprep.mubr.bf16.mxu1 %v17847_v51  ;;  %v13955_v28 = vpop.f32.mrb[239].mxu0 }
 0x85d   :  { %v19272_v51 = vadd.f32 %v13955_v28, %v13954_v31 }
 0x863   :  { %4967 = vmatmul.mubr.bf16.gmra.mrb[248].mxu1 %v17851_v53  ;;  %v13957_v53 = vpop.f32.mrb[240].mxu0 }
 0x864   :  { %15044 = vmatprep.mubr.msk.bf16.mxu1 %vm17414_vm0, %v17415_v1  ;;  %v13958_v45 = vpop.f32.mrb[241].mxu0 }
 0x865   :  { %v13960_v9 = vpop.f32.mrb[242].mxu0  ;;  %v19274_v61 = vadd.f32 %v13958_v45, %v13957_v53 }
 0x866   :  { %v13961_v18 = vpop.f32.mrb[243].mxu0 }
 0x867   :  { %v19276_v15 = vadd.f32 %v13961_v18, %v13960_v9  ;;  %v13963_v17 = vpop.f32.mrb[244].mxu0 }
 0x868   :  { %v13964_v33 = vpop.f32.mrb[245].mxu0 }
 0x869   :  { %v13966_v26 = vpop.f32.mrb[246].mxu0  ;;  %v19278_v62 = vadd.f32 %v13964_v33, %v13963_v17 }
 0x86a   :  { %v13967_v29 = vpop.f32.mrb[247].mxu0 }
 0x86b   :  { %v19280_v34 = vadd.f32 %v13967_v29, %v13966_v26  ;;  %v13969_v47 = vpop.f32.mrb[248].mxu0 }
 0x86c   :  { %v13970_v11 = vpop.f32.mrb[249].mxu0 }
 0x86d   :  { %v13972_v36 = vpop.f32.mrb[250].mxu0  ;;  %v19282_v24 = vadd.f32 %v13970_v11, %v13969_v47 }
 0x86e   :  { %v13973_v59 = vpop.f32.mrb[251].mxu0 }
 0x8f2   :  { %v4520_v38 = vpop.f32.mrb[174].mxu1 }
 0x8f3   :  { %v14958_v8 = vpop.f32.mrb[175].mxu1  ;;  %v19301_v16 = vadd.f32 %v4520_v38, %v19136_v54 }
 0x8f6   :  { %v4525_v50 = vpop.f32.mrb[216].mxu1 }
 0x8f7   :  { %v14961_v20 = vpop.f32.mrb[217].mxu1  ;;  %v19304_v7 = vadd.f32 %v4525_v50, %v19140_v40 }
 0x8fa   :  { %v4530_v57 = vpop.f32.mrb[218].mxu1 }
 0x8fb   :  { %v14964_v32 = vpop.f32.mrb[219].mxu1  ;;  %v19307_v30 = vadd.f32 %v4530_v57, %v19144_v2 }
 0x8fe   :  { %v4535_v37 = vpop.f32.mrb[220].mxu1 }
 0x8ff   :  { %v14967_v4 = vpop.f32.mrb[221].mxu1  ;;  %v19310_v35 = vadd.f32 %v4535_v37, %v19148_v46 }
 0x902   :  { %v4540_v19 = vpop.f32.mrb[222].mxu1 }
 0x903   :  { %v14970_v21 = vpop.f32.mrb[223].mxu1  ;;  %v19313_v54 = vadd.f32 %v4540_v19, %v19153_v42 }
 0x906   :  { %v4545_v14 = vpop.f32.mrb[224].mxu1 }
 0x907   :  { %v14973_v25 = vpop.f32.mrb[225].mxu1  ;;  %v19316_v40 = vadd.f32 %v4545_v14, %v19156_v13  ;;  %v4975_v14 = vld [vmem:[#allocation2 + $0x240] sm:$0xff] }
 0x908   :  { %v17140_v25 = vld [vmem:[%s20793_s7 + $0x40] sm:$0xff]  }
 0x90a   :  { %v4550_v48 = vpop.f32.mrb[226].mxu1 }
 0x90b   :  { %v14976_v63 = vpop.f32.mrb[227].mxu1  ;;  %v19319_v2 = vadd.f32 %v4550_v48, %v19159_v52  ;;  %v17144_v48 = vld [vmem:[%s20793_s7 + $0x50] sm:$0xff]  }
 0x90c   :  { %v4978_v63 = vld [vmem:[#allocation2 + $0x258] sm:$0xff] }
 0x90e   :  { %v4555_v56 = vpop.f32.mrb[228].mxu1 }
 0x90f   :  { %v14979_v10 = vpop.f32.mrb[229].mxu1  ;;  %v19322_v46 = vadd.f32 %v4555_v56, %v19162_v22  ;;  %v17146_v56 = vld [vmem:[%s20793_s7 + $0x58] sm:$0xff]  }
 0x910   :  { %v4979_v10 = vld [vmem:[#allocation2 + $0x260] sm:$0xff] }
 0x912   :  { %v4560_v39 = vpop.f32.mrb[230].mxu1 }
 0x913   :  { %v14982_v44 = vpop.f32.mrb[231].mxu1  ;;  %v19325_v42 = vadd.f32 %v4560_v39, %v19165_v60  ;;  %v4980_v39 = vld [vmem:[#allocation2 + $0x268] sm:$0xff] }
 0x914   :  { %v4981_v44 = vld [vmem:[#allocation2 + $0x270] sm:$0xff] }
 0x916   :  { %v13991_v58 = vpop.f32.mrb[232].mxu1 }
 0x917   :  { %v13992_v23 = vpop.f32.mrb[233].mxu1 }
 0x918   :  { %v13993_v12 = vadd.f32 %v13992_v23, %v13991_v58  ;;  %v13994_v13 = vpop.f32.mrb[234].mxu1  ;;  %v4982_v58 = vld [vmem:[#allocation2 + $0x278] sm:$0xff]  ;;  %v4983_v23 = vld [vmem:[#allocation2 + $0x280] sm:$0xff] }
 0x919   :  { %v13995_v41 = vpop.f32.mrb[235].mxu1 }
 0x91a   :  { %v4937_v31 = vadd.f32 %v13993_v12, %v19266_v49  ;;  %v13996_v28 = vadd.f32 %v13995_v41, %v13994_v13  ;;  %v17147_v12 = vld [vmem:[%s20793_s7 + $0x20] sm:$0xff]   ;;  %v17149_v41 = vld [vmem:[%s20793_s7 + $0x28] sm:$0xff]  }
 0x91b   :  { %v17148_v13 = vld [vmem:[%s20793_s7 + $0x60] sm:$0xff]   ;;  %15037 = vmatpush3.bf16.msra.mxu1 %v17147_v12 }
 0x91c   :  { %v4940_v52 = vadd.f32 %v13996_v28, %v19268_v6  ;;  %15038 = vmatprep.subr.bf16.mxu1 %v17415_v1  ;;  %v17151_v28 = vld [vmem:[%s20793_s7 + $0x30] sm:$0xff]  }
 0x91e   :  { %v13997_v53 = vpop.f32.mrb[236].mxu1  ;;  %v16428_v45 = vpack.c.bf16 %v4940_v52, %v4937_v31  ;;  %v17150_v31 = vld [vmem:[%s20793_s7 + $0x68] sm:$0xff]   ;;  %v17152_v52 = vld [vmem:[%s20793_s7 + $0x70] sm:$0xff]  }
 0x91f   :  { %v13998_v9 = vpop.f32.mrb[237].mxu1  ;;  %15039 = vmatpush3.bf16.msra.mxu1 %v17149_v41 }
 0x920   :  { %v13999_v22 = vadd.f32 %v13998_v9, %v13997_v53  ;;  %v14000_v18 = vpop.f32.mrb[238].mxu1  ;;  %16429 = vmatpush3.bf16.msra.mxu0 %v16428_v45  ;;  %15040 = vmatprep.subr.bf16.mxu1 %v17415_v1  ;;  %v17153_v53 = vld [vmem:[%s20793_s7 + $0x38] sm:$0xff]  }
 0x921   :  { %v14001_v17 = vpop.f32.mrb[239].mxu1  ;;  %16430 = vmatprep.subr.bf16.mxu0 %v17413_v0  ;;  %v17154_v45 = vld [vmem:[%s20793_s7 + $0x78] sm:$0xff]  }
 0x922   :  { %v4945_v60 = vadd.f32 %v13999_v22, %v19270_v27  ;;  %v14002_v33 = vadd.f32 %v14001_v17, %v14000_v18  ;;  %v19419_v22 = vld [vmem:[%s20792_s6] ss:$0 sm:$0xff] }
 0x923   :  { %15041 = vmatpush3.bf16.msra.mxu1 %v17151_v28 }
 0x924   :  { %v4948_v26 = vadd.f32 %v14002_v33, %v19272_v51  ;;  %15042 = vmatprep.subr.bf16.mxu1 %v17415_v1 }
 0x926   :  { %v16431_v29 = vpack.c.bf16 %v4948_v26, %v4945_v60  ;;  %v14003_v47 = vpop.f32.mrb[240].mxu1 }
 0x927   :  { %v14004_v49 = vpop.f32.mrb[241].mxu1  ;;  %15043 = vmatpush3.bf16.msra.mxu1 %v17153_v53 }
 0x928   :  { %v14005_v11 = vadd.f32 %v14004_v49, %v14003_v47  ;;  %v14006_v36 = vpop.f32.mrb[242].mxu1  ;;  %16432 = vmatpush3.bf16.msra.mxu0 %v16431_v29  ;;  %16439 = vmatprep.subr.bf16.mxu1 %v17413_v0 }
 0x929   :  { %v14007_v6 = vpop.f32.mrb[243].mxu1  ;;  %16433 = vmatprep.subr.bf16.mxu0 %v17413_v0 }
 0x92a   :  { %v4953_v59 = vadd.f32 %v14005_v11, %v19274_v61  ;;  %v14008_v55 = vadd.f32 %v14007_v6, %v14006_v36 }
 0x92c   :  { %v4956_v3 = vadd.f32 %v14008_v55, %v19276_v15 }
 0x92e   :  { %v16434_v43 = vpack.c.bf16 %v4956_v3, %v4953_v59  ;;  %v14009_v5 = vpop.f32.mrb[244].mxu1 }
 0x92f   :  { %v14010_v27 = vpop.f32.mrb[245].mxu1 }
 0x930   :  { %v14011_v38 = vadd.f32 %v14010_v27, %v14009_v5  ;;  %v14012_v8 = vpop.f32.mrb[246].mxu1  ;;  %16435 = vmatpush3.bf16.msra.mxu0 %v16434_v43 }
 0x931   :  { %v14013_v51 = vpop.f32.mrb[247].mxu1  ;;  %16436 = vmatprep.subr.bf16.mxu0 %v17413_v0 }
 0x932   :  { %v4961_v50 = vadd.f32 %v14011_v38, %v19278_v62  ;;  %v14014_v20 = vadd.f32 %v14013_v51, %v14012_v8  ;;  %v4976_v62 = vld [vmem:[#allocation2 + $0x248] sm:$0xff] }
 0x934   :  { %v4964_v57 = vadd.f32 %v14014_v20, %v19280_v34  ;;  %v17142_v34 = vld [vmem:[%s20793_s7 + $0x48] sm:$0xff]  }
 0x936   :  { %v16437_v32 = vpack.c.bf16 %v4964_v57, %v4961_v50  ;;  %v14015_v37 = vpop.f32.mrb[248].mxu1 }
 0x937   :  { %v14016_v61 = vpop.f32.mrb[249].mxu1 }
 0x938   :  { %v14017_v4 = vadd.f32 %v14016_v61, %v14015_v37  ;;  %v14018_v19 = vpop.f32.mrb[250].mxu1  ;;  %16438 = vmatpush3.bf16.msra.mxu0 %v16437_v32 }
 0x939   :  { %v14019_v15 = vpop.f32.mrb[251].mxu1  ;;  %14999 = vmatprep.subr.mxu0 %v17415_v1 }
 0x93a   :  { %v4969_v21 = vadd.f32 %v14017_v4, %v19282_v24  ;;  %v4977_v24 = vld [vmem:[#allocation2 + $0x250] sm:$0xff] }
 0x93c   :  { %15000 = vmatpush3.msra.mxu0 %v4969_v21 }
 0x93d   :  { %15002 = vmatmul.mubr.msk.f32.vlgmr.msra.gmra.mrb[252].mxu0 %vm956_vm1, %v4975_v14  ;;  %15064 = vmatprep.subr.bf16.mxu0 %v17415_v1 }
 0x93e   :  { %15004 = vmatprep.mubr.msk.f32.mxu0 %vm17414_vm0, %v17415_v1  ;;  %15065 = vmatpush3.bf16.msra.mxu0 %v17140_v25 }
 0x93f   :  { %15066 = vmatprep.subr.bf16.mxu0 %v17415_v1 }
 0x941   :  { %15005 = vmatmul.mubr.msk.f32.gmra.mrb[254].mxu0 %vm956_vm1, %v4976_v62 }
 0x942   :  { %15007 = vmatprep.mubr.msk.f32.mxu0 %vm17414_vm0, %v17415_v1  ;;  %15067 = vmatpush3.bf16.msra.mxu0 %v17142_v34 }
 0x943   :  { %15068 = vmatprep.subr.bf16.mxu0 %v17415_v1 }
 0x945   :  { %15008 = vmatmul.mubr.msk.f32.gmra.mrb[0].mxu0 %vm956_vm1, %v4977_v24 }
 0x946   :  { %15010 = vmatprep.mubr.msk.f32.mxu0 %vm17414_vm0, %v17415_v1  ;;  %15069 = vmatpush3.bf16.msra.mxu0 %v17144_v48 }
 0x947   :  { %15070 = vmatprep.subr.bf16.mxu0 %v17415_v1 }
 0x949   :  { %15011 = vmatmul.mubr.msk.f32.gmra.mrb[2].mxu0 %vm956_vm1, %v4978_v63 }
 0x94a   :  { %15013 = vmatprep.mubr.msk.f32.mxu0 %vm17414_vm0, %v17415_v1  ;;  %15071 = vmatpush3.bf16.msra.mxu0 %v17146_v56 }
 0x94b   :  { %15072 = vmatprep.subr.bf16.mxu0 %v17415_v1 }
 0x94d   :  { %15014 = vmatmul.mubr.msk.f32.gmra.mrb[4].mxu0 %vm956_vm1, %v4979_v10 }
 0x94e   :  { %15016 = vmatprep.mubr.msk.f32.mxu0 %vm17414_vm0, %v17415_v1  ;;  %15073 = vmatpush3.bf16.msra.mxu0 %v17148_v13 }
 0x94f   :  { %15074 = vmatprep.subr.bf16.mxu0 %v17415_v1 }
 0x951   :  { %15017 = vmatmul.mubr.msk.f32.gmra.mrb[6].mxu0 %vm956_vm1, %v4980_v39 }
 0x952   :  { %15019 = vmatprep.mubr.msk.f32.mxu0 %vm17414_vm0, %v17415_v1  ;;  %15075 = vmatpush3.bf16.msra.mxu0 %v17150_v31 }
 0x953   :  { %15076 = vmatprep.subr.bf16.mxu0 %v17415_v1 }
 0x955   :  { %15020 = vmatmul.mubr.msk.f32.gmra.mrb[8].mxu0 %vm956_vm1, %v4981_v44 }
 0x956   :  { %15022 = vmatprep.mubr.msk.f32.mxu0 %vm17414_vm0, %v17415_v1  ;;  %15077 = vmatpush3.bf16.msra.mxu0 %v17152_v52 }
 0x957   :  { %15078 = vmatprep.subr.bf16.mxu0 %v17415_v1 }
 0x959   :  { %15023 = vmatmul.mubr.msk.f32.gmra.mrb[10].mxu0 %vm956_vm1, %v4982_v58 }
 0x95a   :  { %15025 = vmatprep.mubr.msk.f32.mxu0 %vm17414_vm0, %v17415_v1  ;;  %15079 = vmatpush3.bf16.msra.mxu0 %v17154_v45 }
 0x95b   :  { %16451 = vmatprep.subr.bf16.mxu0 %v17413_v0 }
 0x95d   :  { %15026 = vmatmul.mubr.msk.f32.gmra.mrb[12].mxu0 %vm956_vm1, %v4983_v23 }
 0x95e   :  { %15080 = vmatprep.mubr.msk.bf16.mxu0 %vm17414_vm0, %v17415_v1 }
 0xa10   :  { %v5077_v9 = vpop.f32.mrb[252].mxu0 }
 0xa11   :  { %v5121_v18 = vadd.f32 %v5077_v9, %v19301_v16  ;;  %v15003_v17 = vpop.f32.mrb[253].mxu0 }
 0xa13   :  { %v5137_v60 = vadd.f32 %v19419_v22, %v5121_v18 }
 0xa14   :  { %v5082_v33 = vpop.f32.mrb[254].mxu0 }
 0xa15   :  { %v5122_v26 = vadd.f32 %v5082_v33, %v19304_v7  ;;  %v15006_v29 = vpop.f32.mrb[255].mxu0  ;;  %v5146_v47 = vmul.f32 0.2, %v5137_v60 }
 0xa17   :  { %v5138_v49 = vadd.f32 %v19419_v22, %v5122_v26  ;;  %v5155_v55 = vmax.f32 %v5137_v60, %v5146_v47 }
 0xa18   :  { %v5087_v11 = vpop.f32.mrb[0].mxu0 }
 0xa19   :  { %v5147_v36 = vmul.f32 0.2, %v5138_v49  ;;  %v5123_v6 = vadd.f32 %v5087_v11, %v19307_v30  ;;  %v15009_v59 = vpop.f32.mrb[1].mxu0 }
 0xa1b   :  { %v5156_v3 = vmax.f32 %v5138_v49, %v5147_v36  ;;  %v5139_v43 = vadd.f32 %v19419_v22, %v5123_v6 }
 0xa1c   :  { %v5092_v16 = vpop.f32.mrb[2].mxu0 }
 0xa1d   :  { %v19427_v5 = vpack.c.bf16 %v5156_v3, %v5155_v55  ;;  %v5124_v27 = vadd.f32 %v5092_v16, %v19310_v35  ;;  %v15012_v38 = vpop.f32.mrb[3].mxu0  ;;  %v5148_v7 = vmul.f32 0.2, %v5139_v43 }
 0xa1f   :  { %v5140_v8 = vadd.f32 %v19419_v22, %v5124_v27  ;;  %15045 = vmatmul.mubr.bf16.vlgmr.msra.gmra.mrb[252].mxu1 %v19427_v5  ;;  %15081 = vmatmul.mubr.bf16.vlgmr.msra.gmra.mrb[16].mxu0 %v19427_v5  ;;  %v5157_v35 = vmax.f32 %v5139_v43, %v5148_v7 }
 0xa20   :  { %v5097_v51 = vpop.f32.mrb[4].mxu0  ;;  %15048 = vmatprep.mubr.msk.bf16.mxu1 %vm17414_vm0, %v17415_v1  ;;  %15084 = vmatprep.mubr.msk.bf16.mxu0 %vm17414_vm0, %v17415_v1 }
 0xa21   :  { %v5149_v30 = vmul.f32 0.2, %v5140_v8  ;;  %v5125_v50 = vadd.f32 %v5097_v51, %v19313_v54  ;;  %v15015_v20 = vpop.f32.mrb[5].mxu0 }
 0xa23   :  { %v5158_v57 = vmax.f32 %v5140_v8, %v5149_v30  ;;  %v5141_v32 = vadd.f32 %v19419_v22, %v5125_v50 }
 0xa24   :  { %v5102_v37 = vpop.f32.mrb[6].mxu0 }
 0xa25   :  { %v19439_v61 = vpack.c.bf16 %v5158_v57, %v5157_v35  ;;  %v5126_v4 = vadd.f32 %v5102_v37, %v19316_v40  ;;  %v15018_v19 = vpop.f32.mrb[7].mxu0  ;;  %v5150_v15 = vmul.f32 0.2, %v5141_v32 }
 0xa27   :  { %v5142_v21 = vadd.f32 %v19419_v22, %v5126_v4  ;;  %15049 = vmatmul.mubr.bf16.gmra.mrb[0].mxu1 %v19439_v61  ;;  %15085 = vmatmul.mubr.bf16.gmra.mrb[20].mxu0 %v19439_v61  ;;  %v5159_v40 = vmax.f32 %v5141_v32, %v5150_v15 }
 0xa28   :  { %v5107_v14 = vpop.f32.mrb[8].mxu0  ;;  %15052 = vmatprep.mubr.msk.bf16.mxu1 %vm17414_vm0, %v17415_v1  ;;  %15088 = vmatprep.mubr.msk.bf16.mxu0 %vm17414_vm0, %v17415_v1 }
 0xa29   :  { %v5151_v54 = vmul.f32 0.2, %v5142_v21  ;;  %v5127_v25 = vadd.f32 %v5107_v14, %v19319_v2  ;;  %v15021_v62 = vpop.f32.mrb[9].mxu0 }
 0xa2b   :  { %v5160_v34 = vmax.f32 %v5142_v21, %v5151_v54  ;;  %v5143_v24 = vadd.f32 %v19419_v22, %v5127_v25 }
 0xa2c   :  { %v5112_v48 = vpop.f32.mrb[10].mxu0 }
 0xa2d   :  { %v19451_v63 = vpack.c.bf16 %v5160_v34, %v5159_v40  ;;  %v5128_v56 = vadd.f32 %v5112_v48, %v19322_v46  ;;  %v15024_v10 = vpop.f32.mrb[11].mxu0  ;;  %v5152_v39 = vmul.f32 0.2, %v5143_v24 }
 0xa2f   :  { %v5144_v44 = vadd.f32 %v19419_v22, %v5128_v56  ;;  %15053 = vmatmul.mubr.bf16.gmra.mrb[4].mxu1 %v19451_v63  ;;  %15089 = vmatmul.mubr.bf16.gmra.mrb[24].mxu0 %v19451_v63  ;;  %v5161_v46 = vmax.f32 %v5143_v24, %v5152_v39  ;;  %v17155_v56 = vld [vmem:[%s20793_s7 + $0x80] sm:$0xff]  }
 0xa30   :  { %v5117_v58 = vpop.f32.mrb[12].mxu0  ;;  %15056 = vmatprep.mubr.msk.bf16.mxu1 %vm17414_vm0, %v17415_v1  ;;  %15092 = vmatprep.mubr.msk.bf16.mxu0 %vm17414_vm0, %v17415_v1 }
 0xa31   :  { %v5153_v2 = vmul.f32 0.2, %v5144_v44  ;;  %v5129_v23 = vadd.f32 %v5117_v58, %v19325_v42  ;;  %v15027_v12 = vpop.f32.mrb[13].mxu0  ;;  %v17257_v58 = vld [vmem:[#allocation2] sm:$0xff] }
 0xa32   :  { %v17156_v12 = vld [vmem:[%s20793_s7 + $0x88] sm:$0xff]  }
 0xa33   :  { %v5162_v13 = vmax.f32 %v5144_v44, %v5153_v2  ;;  %v5145_v41 = vadd.f32 %v19419_v22, %v5129_v23  ;;  %v17256_v44 = vld [vmem:[#allocation2 + $0x48] sm:$0xff] }
 0xa35   :  { %v19463_v31 = vpack.c.bf16 %v5162_v13, %v5161_v46  ;;  %v5154_v28 = vmul.f32 0.2, %v5145_v41  ;;  %v17258_v46 = vld [vmem:[#allocation2 + $0x50] sm:$0xff]  ;;  %v17259_v13 = vld [vmem:[#allocation2 + $0x8] sm:$0xff] }
 0xa37   :  { %15057 = vmatmul.mubr.bf16.gmra.mrb[8].mxu1 %v19463_v31  ;;  %15093 = vmatmul.mubr.bf16.gmra.mrb[28].mxu0 %v19463_v31  ;;  %v5163_v52 = vmax.f32 %v5145_v41, %v5154_v28  ;;  %v17157_v41 = vld [vmem:[%s20793_s7 + $0x90] sm:$0xff]   ;;  %v17260_v28 = vld [vmem:[#allocation2 + $0x58] sm:$0xff] }
 0xa38   :  { %15060 = vmatprep.mubr.msk.bf16.mxu1 %vm17414_vm0, %v17415_v1  ;;  %15096 = vmatprep.mubr.msk.bf16.mxu0 %vm17414_vm0, %v17415_v1 }
 0xa39   :  { %v19471_v42 = vpack.c.bf16 %v5163_v52, %v5163_v52  ;;  %v17261_v52 = vld [vmem:[#allocation2 + $0x10] sm:$0xff] }
 0xa3f   :  { %15061 = vmatmul.mubr.bf16.gmra.mrb[12].mxu1 %v19471_v42  ;;  %15097 = vmatmul.mubr.bf16.gmra.mrb[32].mxu0 %v19471_v42 }
 0xa40   :  { %15118 = vmatprep.mubr.msk.f32.mxu1 %vm17414_vm0, %v17415_v1  ;;  %15163 = vmatprep.mubr.msk.f32.mxu0 %vm17414_vm0, %v17415_v1 }
 0xaf2   :  { %v5267_v53 = vpop.f32.mrb[252].mxu1  ;;  %v5404_v45 = vpop.f32.mrb[16].mxu0 }
 0xaf3   :  { %v15046_v9 = vpop.f32.mrb[253].mxu1  ;;  %v15082_v22 = vpop.f32.mrb[17].mxu0 }
 0xaf4   :  { %v5270_v18 = vpop.f32.mrb[254].mxu1  ;;  %v5407_v17 = vpop.f32.mrb[18].mxu0  ;;  %v17263_v9 = vld [vmem:[#allocation2 + $0x18] sm:$0xff]  ;;  %v17159_v22 = vld [vmem:[%s20793_s7 + $0xa0] sm:$0xff]  }
 0xaf5   :  { %v16452_v60 = vpack.c.bf16 %v5270_v18, %v5267_v53  ;;  %v16440_v33 = vpack.c.bf16 %v5407_v17, %v5404_v45  ;;  %v15047_v26 = vpop.f32.mrb[255].mxu1  ;;  %v15083_v29 = vpop.f32.mrb[19].mxu0  ;;  %v17158_v53 = vld [vmem:[%s20793_s7 + $0x98] sm:$0xff]   ;;  %v17262_v45 = vld [vmem:[#allocation2 + $0x60] sm:$0xff]  ;;  %v17264_v18 = vld [vmem:[#allocation2 + $0x68] sm:$0xff] }
 0xaf6   :  { %v17265_v17 = vld [vmem:[#allocation2 + $0x20] sm:$0xff]  ;;  %v17267_v26 = vld [vmem:[#allocation2 + $0x28] sm:$0xff]  ;;  %v17161_v29 = vld [vmem:[%s20793_s7 + $0xb0] sm:$0xff]  }
 0xaf7   :  { %16441 = vmatpush3.bf16.msra.mxu1 %v16440_v33  ;;  %16453 = vmatpush3.bf16.msra.mxu0 %v16452_v60  ;;  %v17160_v60 = vld [vmem:[%s20793_s7 + $0xa8] sm:$0xff]   ;;  %v17266_v33 = vld [vmem:[#allocation2 + $0x70] sm:$0xff] }
 0xaf8   :  { %16442 = vmatprep.subr.bf16.mxu1 %v17413_v0  ;;  %16454 = vmatprep.subr.bf16.mxu0 %v17413_v0 }
 0xafa   :  { %v5275_v47 = vpop.f32.mrb[0].mxu1  ;;  %v5412_v49 = vpop.f32.mrb[20].mxu0 }
 0xafb   :  { %v15050_v11 = vpop.f32.mrb[1].mxu1  ;;  %v15086_v36 = vpop.f32.mrb[21].mxu0 }
 0xafc   :  { %v5278_v6 = vpop.f32.mrb[2].mxu1  ;;  %v5415_v59 = vpop.f32.mrb[22].mxu0  ;;  %v17162_v11 = vld [vmem:[%s20793_s7 + $0xb8] sm:$0xff]   ;;  %v17270_v36 = vld [vmem:[#allocation2 + $0x80] sm:$0xff] }
 0xafd   :  { %v16455_v55 = vpack.c.bf16 %v5278_v6, %v5275_v47  ;;  %v16443_v3 = vpack.c.bf16 %v5415_v59, %v5412_v49  ;;  %v15051_v43 = vpop.f32.mrb[3].mxu1  ;;  %v15087_v16 = vpop.f32.mrb[23].mxu0  ;;  %v17268_v47 = vld [vmem:[#allocation2 + $0x78] sm:$0xff]  ;;  %v17269_v49 = vld [vmem:[#allocation2 + $0x30] sm:$0xff]  ;;  %v17272_v59 = vld [vmem:[#allocation2 + $0x88] sm:$0xff] }
 0xafe   :  { %v17271_v6 = vld [vmem:[#allocation2 + $0x38] sm:$0xff]  ;;  %v17164_v43 = vld [vmem:[%s20793_s7 + $0xc8] sm:$0xff]   ;;  %v17165_v16 = vld [vmem:[%s20793_s7 + $0xd0] sm:$0xff]  }
 0xaff   :  { %16444 = vmatpush3.bf16.msra.mxu1 %v16443_v3  ;;  %16456 = vmatpush3.bf16.msra.mxu0 %v16455_v55  ;;  %v17273_v55 = vld [vmem:[#allocation2 + $0x40] sm:$0xff] }
 0xb00   :  { %16445 = vmatprep.subr.bf16.mxu1 %v17413_v0  ;;  %16457 = vmatprep.subr.bf16.mxu0 %v17413_v0  ;;  %v17163_v3 = vld [vmem:[%s20793_s7 + $0xc0] sm:$0xff]  }
 0xb02   :  { %v5283_v27 = vpop.f32.mrb[4].mxu1  ;;  %v5420_v38 = vpop.f32.mrb[24].mxu0 }
 0xb03   :  { %v15054_v7 = vpop.f32.mrb[5].mxu1  ;;  %v15090_v8 = vpop.f32.mrb[25].mxu0 }
 0xb04   :  { %v5286_v51 = vpop.f32.mrb[6].mxu1  ;;  %v5423_v30 = vpop.f32.mrb[26].mxu0  ;;  %v17168_v7 = vld [vmem:[%s20793_s7 + $0xe8] sm:$0xff]   ;;  %v17169_v8 = vld [vmem:[%s20793_s7 + $0xf0] sm:$0xff]  }
 0xb05   :  { %v16458_v50 = vpack.c.bf16 %v5286_v51, %v5283_v27  ;;  %v16446_v20 = vpack.c.bf16 %v5423_v30, %v5420_v38  ;;  %v15055_v35 = vpop.f32.mrb[7].mxu1  ;;  %v15091_v57 = vpop.f32.mrb[27].mxu0  ;;  %v17166_v27 = vld [vmem:[%s20793_s7 + $0xd8] sm:$0xff]   ;;  %v17167_v38 = vld [vmem:[%s20793_s7 + $0xe0] sm:$0xff]  }
 0xb06   :  { %v17170_v51 = vld [vmem:[%s20793_s7 + $0xf8] sm:$0xff]   ;;  %v17171_v30 = vld [vmem:[%s20793_s7 + $0x100] sm:$0xff]  }
 0xb07   :  { %16447 = vmatpush3.bf16.msra.mxu1 %v16446_v20  ;;  %16459 = vmatpush3.bf16.msra.mxu0 %v16458_v50  ;;  %v17172_v50 = vld [vmem:[%s20793_s7 + $0x108] sm:$0xff]   ;;  %v17173_v20 = vld [vmem:[%s20793_s7 + $0x110] sm:$0xff]   ;;  %v17174_v35 = vld [vmem:[%s20793_s7 + $0x118] sm:$0xff]  }
 0xb08   :  { %16448 = vmatprep.subr.bf16.mxu1 %v17413_v0  ;;  %16460 = vmatprep.subr.bf16.mxu0 %v17413_v0  ;;  %v17175_v57 = vld [vmem:[%s20793_s7 + $0x120] sm:$0xff]  }
 0xb0a   :  { %v5291_v32 = vpop.f32.mrb[8].mxu1  ;;  %v5428_v37 = vpop.f32.mrb[28].mxu0 }
 0xb0b   :  { %v15058_v4 = vpop.f32.mrb[9].mxu1  ;;  %v15094_v19 = vpop.f32.mrb[29].mxu0 }
 0xb0c   :  { %v5294_v15 = vpop.f32.mrb[10].mxu1  ;;  %v5431_v21 = vpop.f32.mrb[30].mxu0  ;;  %v17178_v4 = vld [vmem:[%s20793_s7 + $0x138] sm:$0xff]   ;;  %v17179_v19 = vld [vmem:[%s20793_s7 + $0x140] sm:$0xff]  }
 0xb0d   :  { %v16461_v14 = vpack.c.bf16 %v5294_v15, %v5291_v32  ;;  %v16449_v54 = vpack.c.bf16 %v5431_v21, %v5428_v37  ;;  %v15059_v25 = vpop.f32.mrb[11].mxu1  ;;  %v15095_v62 = vpop.f32.mrb[31].mxu0  ;;  %v17176_v32 = vld [vmem:[%s20793_s7 + $0x128] sm:$0xff]   ;;  %v17177_v37 = vld [vmem:[%s20793_s7 + $0x130] sm:$0xff]  }
 0xb0e   :  { %v17180_v15 = vld [vmem:[%s20793_s7 + $0x148] sm:$0xff]   ;;  %v17181_v21 = vld [vmem:[%s20793_s7 + $0x150] sm:$0xff]  }
 0xb0f   :  { %16450 = vmatpush3.bf16.msra.mxu1 %v16449_v54  ;;  %16462 = vmatpush3.bf16.msra.mxu0 %v16461_v14  ;;  %v17182_v14 = vld [vmem:[%s20793_s7 + $0x158] sm:$0xff]   ;;  %v17183_v54 = vld [vmem:[%s20793_s7 + $0x160] sm:$0xff]   ;;  %v17184_v25 = vld [vmem:[%s20793_s7 + $0x168] sm:$0xff]  }
 0xb10   :  { %15116 = vmatprep.subr.mxu1 %v17415_v1  ;;  %15161 = vmatprep.subr.mxu0 %v17415_v1  ;;  %v17185_v62 = vld [vmem:[%s20793_s7 + $0x170] sm:$0xff]  }
 0xb12   :  { %v5299_v40 = vpop.f32.mrb[12].mxu1  ;;  %v5436_v34 = vpop.f32.mrb[32].mxu0 }
 0xb13   :  { %v15062_v24 = vpop.f32.mrb[13].mxu1  ;;  %v15098_v48 = vpop.f32.mrb[33].mxu0  ;;  %15117 = vmatpush3.msra.mxu1 %v5436_v34  ;;  %15162 = vmatpush3.msra.mxu0 %v5299_v40  ;;  %v17186_v40 = vld [vmem:[%s20793_s7 + $0x178] sm:$0xff]   ;;  %v17187_v34 = vld [vmem:[%s20793_s7 + $0x180] sm:$0xff]  }
 0xb14   :  { %v5302_v10 = vpop.f32.mrb[14].mxu1  ;;  %v5439_v39 = vpop.f32.mrb[34].mxu0  ;;  %15119 = vmatmul.mubr.msk.f32.vlgmr.msra.gmra.mrb[16].mxu1 %vm956_vm1, %v17256_v44  ;;  %15164 = vmatmul.mubr.msk.f32.vlgmr.msra.gmra.mrb[14].mxu0 %vm956_vm1, %v17257_v58  ;;  %v17188_v24 = vld [vmem:[%s20793_s7 + $0x188] sm:$0xff]   ;;  %v17189_v48 = vld [vmem:[%s20793_s7 + $0x190] sm:$0xff]   ;;  %v17194_v58 = vld [vmem:[%s20793_s7 + $0x1b8] sm:$0xff]  }
 0xb15   :  { %v15063_v2 = vpop.f32.mrb[15].mxu1  ;;  %v15099_v23 = vpop.f32.mrb[35].mxu0  ;;  %15121 = vmatprep.mubr.msk.f32.mxu1 %vm17414_vm0, %v17415_v1  ;;  %15166 = vmatprep.mubr.msk.f32.mxu0 %vm17414_vm0, %v17415_v1  ;;  %v17191_v10 = vld [vmem:[%s20793_s7 + $0x1a0] sm:$0xff]   ;;  %v17192_v39 = vld [vmem:[%s20793_s7 + $0x1a8] sm:$0xff]   ;;  %v17193_v44 = vld [vmem:[%s20793_s7 + $0x1b0] sm:$0xff]  }
 0xb16   :  { %15190 = vmatprep.subr.bf16.mxu1 %v17415_v1  ;;  %16463 = vmatprep.subr.bf16.mxu0 %v17413_v0  ;;  %v17195_v2 = vld [vmem:[%s20793_s7 + $0x1c0] sm:$0xff]   ;;  %v17196_v23 = vld [vmem:[%s20793_s7 + $0x1c8] sm:$0xff]  }
 0xb17   :  { %15191 = vmatpush3.bf16.msra.mxu1 %v17155_v56  ;;  %v17190_v56 = vld [vmem:[%s20793_s7 + $0x198] sm:$0xff]  }
 0xb18   :  { %15122 = vmatmul.mubr.msk.f32.gmra.mrb[18].mxu1 %vm956_vm1, %v17258_v46  ;;  %15167 = vmatmul.mubr.msk.f32.gmra.mrb[36].mxu0 %vm956_vm1, %v17259_v13  ;;  %v17198_v46 = vld [vmem:[%s20793_s7 + $0x1d8] sm:$0xff]   ;;  %v17199_v13 = vld [vmem:[%s20793_s7 + $0x1e0] sm:$0xff]  }
 0xb19   :  { %15124 = vmatprep.mubr.msk.f32.mxu1 %vm17414_vm0, %v17415_v1  ;;  %15169 = vmatprep.mubr.msk.f32.mxu0 %vm17414_vm0, %v17415_v1 }
 0xb1a   :  { %15192 = vmatprep.subr.bf16.mxu1 %v17415_v1 }
 0xb1b   :  { %15193 = vmatpush3.bf16.msra.mxu1 %v17156_v12  ;;  %v17197_v12 = vld [vmem:[%s20793_s7 + $0x1d0] sm:$0xff]  }
 0xb1c   :  { %15125 = vmatmul.mubr.msk.f32.gmra.mrb[20].mxu1 %vm956_vm1, %v17260_v28  ;;  %15170 = vmatmul.mubr.msk.f32.gmra.mrb[38].mxu0 %vm956_vm1, %v17261_v52 }
 0xb1d   :  { %15127 = vmatprep.mubr.msk.f32.mxu1 %vm17414_vm0, %v17415_v1  ;;  %15172 = vmatprep.mubr.msk.f32.mxu0 %vm17414_vm0, %v17415_v1 }
 0xb1e   :  { %15194 = vmatprep.subr.bf16.mxu1 %v17415_v1 }
 0xb1f   :  { %15195 = vmatpush3.bf16.msra.mxu1 %v17157_v41 }
 0xb20   :  { %15128 = vmatmul.mubr.msk.f32.gmra.mrb[22].mxu1 %vm956_vm1, %v17262_v45  ;;  %15173 = vmatmul.mubr.msk.f32.gmra.mrb[40].mxu0 %vm956_vm1, %v17263_v9  ;;  %v17200_v9 = vld [vmem:[%s20793_s7 + $0x1e8] sm:$0xff]  }
 0xb21   :  { %15130 = vmatprep.mubr.msk.f32.mxu1 %vm17414_vm0, %v17415_v1  ;;  %15175 = vmatprep.mubr.msk.f32.mxu0 %vm17414_vm0, %v17415_v1 }
 0xb22   :  { %15196 = vmatprep.subr.bf16.mxu1 %v17415_v1 }
 0xb23   :  { %15197 = vmatpush3.bf16.msra.mxu1 %v17158_v53 }
 0xb24   :  { %15131 = vmatmul.mubr.msk.f32.gmra.mrb[24].mxu1 %vm956_vm1, %v17264_v18  ;;  %15176 = vmatmul.mubr.msk.f32.gmra.mrb[42].mxu0 %vm956_vm1, %v17265_v17 }
 0xb25   :  { %15133 = vmatprep.mubr.msk.f32.mxu1 %vm17414_vm0, %v17415_v1  ;;  %15178 = vmatprep.mubr.msk.f32.mxu0 %vm17414_vm0, %v17415_v1 }
 0xb26   :  { %15198 = vmatprep.subr.bf16.mxu1 %v17415_v1 }
 0xb27   :  { %15199 = vmatpush3.bf16.msra.mxu1 %v17159_v22 }
 0xb28   :  { %15134 = vmatmul.mubr.msk.f32.gmra.mrb[26].mxu1 %vm956_vm1, %v17266_v33  ;;  %15179 = vmatmul.mubr.msk.f32.gmra.mrb[44].mxu0 %vm956_vm1, %v17267_v26  ;;  %v17201_v26 = vld [vmem:[%s20793_s7 + $0x1f0] sm:$0xff]  }
 0xb29   :  { %15136 = vmatprep.mubr.msk.f32.mxu1 %vm17414_vm0, %v17415_v1  ;;  %15181 = vmatprep.mubr.msk.f32.mxu0 %vm17414_vm0, %v17415_v1 }
 0xb2a   :  { %15200 = vmatprep.subr.bf16.mxu1 %v17415_v1 }
 0xb2b   :  { %15201 = vmatpush3.bf16.msra.mxu1 %v17160_v60 }
 0xb2c   :  { %15137 = vmatmul.mubr.msk.f32.gmra.mrb[28].mxu1 %vm956_vm1, %v17268_v47  ;;  %15182 = vmatmul.mubr.msk.f32.gmra.mrb[46].mxu0 %vm956_vm1, %v17269_v49 }
 0xb2d   :  { %15139 = vmatprep.mubr.msk.f32.mxu1 %vm17414_vm0, %v17415_v1  ;;  %15184 = vmatprep.mubr.msk.f32.mxu0 %vm17414_vm0, %v17415_v1 }
 0xb2e   :  { %15202 = vmatprep.subr.bf16.mxu1 %v17415_v1 }
 0xb2f   :  { %15203 = vmatpush3.bf16.msra.mxu1 %v17161_v29 }
 0xb30   :  { %15140 = vmatmul.mubr.msk.f32.gmra.mrb[30].mxu1 %vm956_vm1, %v17270_v36  ;;  %15185 = vmatmul.mubr.msk.f32.gmra.mrb[48].mxu0 %vm956_vm1, %v17271_v6  ;;  %v17202_v6 = vld [vmem:[%s20793_s7 + $0x1f8] sm:$0xff]  }
 0xb31   :  { %15142 = vmatprep.mubr.msk.f32.mxu1 %vm17414_vm0, %v17415_v1  ;;  %15187 = vmatprep.mubr.msk.f32.mxu0 %vm17414_vm0, %v17415_v1 }
 0xb32   :  { %15204 = vmatprep.subr.bf16.mxu1 %v17415_v1 }
 0xb33   :  { %15205 = vmatpush3.bf16.msra.mxu1 %v17162_v11 }
 0xb34   :  { %15143 = vmatmul.mubr.msk.f32.gmra.mrb[32].mxu1 %vm956_vm1, %v17272_v59  ;;  %15188 = vmatmul.mubr.msk.f32.gmra.mrb[50].mxu0 %vm956_vm1, %v17273_v55 }
 0xb35   :  { %15206 = vmatprep.mubr.msk.bf16.mxu1 %vm17414_vm0, %v17415_v1  ;;  %15271 = vmatprep.subr.bf16.mxu1 %v17415_v1 }
 0xb36   :  { %15244 = vmatprep.mubr.msk.f32.mxu0 %vm17414_vm0, %v17415_v1 }
 0xb38   :  { %15207 = vmatmul.mubr.bf16.vlgmr.msra.gmra.mrb[36].mxu1 %v19427_v5 }
 0xb39   :  { %15210 = vmatprep.mubr.msk.bf16.mxu1 %vm17414_vm0, %v17415_v1  ;;  %15272 = vmatpush3.bf16.msra.mxu1 %v17163_v3 }
 0xb3a   :  { %15273 = vmatprep.subr.bf16.mxu1 %v17415_v1 }
 0xb3d   :  { %15274 = vmatpush3.bf16.msra.mxu1 %v17164_v43 }
 0xb3e   :  { %15275 = vmatprep.subr.bf16.mxu1 %v17415_v1 }
 0xb40   :  { %15211 = vmatmul.mubr.bf16.gmra.mrb[40].mxu1 %v19439_v61 }
 0xb41   :  { %15214 = vmatprep.mubr.msk.bf16.mxu1 %vm17414_vm0, %v17415_v1  ;;  %15276 = vmatpush3.bf16.msra.mxu1 %v17165_v16 }
 0xb42   :  { %15277 = vmatprep.subr.bf16.mxu1 %v17415_v1 }
 0xb45   :  { %15278 = vmatpush3.bf16.msra.mxu1 %v17166_v27 }
 0xb46   :  { %15279 = vmatprep.subr.bf16.mxu1 %v17415_v1 }
 0xb48   :  { %15215 = vmatmul.mubr.bf16.gmra.mrb[44].mxu1 %v19451_v63 }
 0xb49   :  { %15218 = vmatprep.mubr.msk.bf16.mxu1 %vm17414_vm0, %v17415_v1  ;;  %15280 = vmatpush3.bf16.msra.mxu1 %v17167_v38 }
 0xb4a   :  { %15281 = vmatprep.subr.bf16.mxu1 %v17415_v1 }
 0xb4d   :  { %15282 = vmatpush3.bf16.msra.mxu1 %v17168_v7 }
 0xb4e   :  { %15283 = vmatprep.subr.bf16.mxu1 %v17415_v1 }
 0xb50   :  { %15219 = vmatmul.mubr.bf16.gmra.mrb[48].mxu1 %v19463_v31 }
 0xb51   :  { %15222 = vmatprep.mubr.msk.bf16.mxu1 %vm17414_vm0, %v17415_v1  ;;  %15284 = vmatpush3.bf16.msra.mxu1 %v17169_v8 }
 0xb52   :  { %15285 = vmatprep.subr.bf16.mxu1 %v17415_v1 }
 0xb55   :  { %15286 = vmatpush3.bf16.msra.mxu1 %v17170_v51 }
 0xb56   :  { %15352 = vmatprep.subr.bf16.mxu1 %v17415_v1 }
 0xb58   :  { %15223 = vmatmul.mubr.bf16.gmra.mrb[52].mxu1 %v19471_v42 }
 0xb59   :  { %15287 = vmatprep.mubr.msk.bf16.mxu1 %vm17414_vm0, %v17415_v1 }
 0xb60   :  { %15288 = vmatmul.mubr.bf16.vlgmr.msra.gmra.mrb[60].mxu1 %v19427_v5 }
 0xb61   :  { %15291 = vmatprep.mubr.msk.bf16.mxu1 %vm17414_vm0, %v17415_v1  ;;  %15353 = vmatpush3.bf16.msra.mxu1 %v17171_v30 }
 0xb62   :  { %15354 = vmatprep.subr.bf16.mxu1 %v17415_v1 }
 0xb65   :  { %15355 = vmatpush3.bf16.msra.mxu1 %v17172_v50 }
 0xb66   :  { %15356 = vmatprep.subr.bf16.mxu1 %v17415_v1 }
 0xb68   :  { %15292 = vmatmul.mubr.bf16.gmra.mrb[64].mxu1 %v19439_v61 }
 0xb69   :  { %15295 = vmatprep.mubr.msk.bf16.mxu1 %vm17414_vm0, %v17415_v1  ;;  %15357 = vmatpush3.bf16.msra.mxu1 %v17173_v20 }
 0xb6a   :  { %15358 = vmatprep.subr.bf16.mxu1 %v17415_v1 }
 0xb6d   :  { %15359 = vmatpush3.bf16.msra.mxu1 %v17174_v35 }
 0xb6e   :  { %15360 = vmatprep.subr.bf16.mxu1 %v17415_v1 }
 0xb70   :  { %15296 = vmatmul.mubr.bf16.gmra.mrb[68].mxu1 %v19451_v63 }
 0xb71   :  { %15299 = vmatprep.mubr.msk.bf16.mxu1 %vm17414_vm0, %v17415_v1  ;;  %15361 = vmatpush3.bf16.msra.mxu1 %v17175_v57 }
 0xb72   :  { %15362 = vmatprep.subr.bf16.mxu1 %v17415_v1 }
 0xb75   :  { %15363 = vmatpush3.bf16.msra.mxu1 %v17176_v32  ;;  %v17203_v32 = vld [vmem:[%s20793_s7 + $0x200] sm:$0xff]  }
 0xb76   :  { %15364 = vmatprep.subr.bf16.mxu1 %v17415_v1 }
 0xb78   :  { %15300 = vmatmul.mubr.bf16.gmra.mrb[72].mxu1 %v19463_v31 }
 0xb79   :  { %15303 = vmatprep.mubr.msk.bf16.mxu1 %vm17414_vm0, %v17415_v1  ;;  %15365 = vmatpush3.bf16.msra.mxu1 %v17177_v37 }
 0xb7a   :  { %15366 = vmatprep.subr.bf16.mxu1 %v17415_v1 }
 0xb7d   :  { %15367 = vmatpush3.bf16.msra.mxu1 %v17178_v4 }
 0xb7e   :  { %15433 = vmatprep.subr.bf16.mxu1 %v17415_v1 }
 0xb80   :  { %15304 = vmatmul.mubr.bf16.gmra.mrb[76].mxu1 %v19471_v42 }
 0xb81   :  { %15368 = vmatprep.mubr.msk.bf16.mxu1 %vm17414_vm0, %v17415_v1 }
 0xb88   :  { %15369 = vmatmul.mubr.bf16.vlgmr.msra.gmra.mrb[80].mxu1 %v19427_v5 }
 0xb89   :  { %15372 = vmatprep.mubr.msk.bf16.mxu1 %vm17414_vm0, %v17415_v1  ;;  %15434 = vmatpush3.bf16.msra.mxu1 %v17179_v19 }
 0xb8a   :  { %15435 = vmatprep.subr.bf16.mxu1 %v17415_v1 }
 0xb8d   :  { %15436 = vmatpush3.bf16.msra.mxu1 %v17180_v15 }
 0xb8e   :  { %15437 = vmatprep.subr.bf16.mxu1 %v17415_v1 }
 0xb90   :  { %15373 = vmatmul.mubr.bf16.gmra.mrb[84].mxu1 %v19439_v61 }
 0xb91   :  { %15376 = vmatprep.mubr.msk.bf16.mxu1 %vm17414_vm0, %v17415_v1  ;;  %15438 = vmatpush3.bf16.msra.mxu1 %v17181_v21 }
 0xb92   :  { %15439 = vmatprep.subr.bf16.mxu1 %v17415_v1 }
 0xb95   :  { %15440 = vmatpush3.bf16.msra.mxu1 %v17182_v14  ;;  %v17204_v14 = vld [vmem:[%s20793_s7 + $0x208] sm:$0xff]  }
 0xb96   :  { %15441 = vmatprep.subr.bf16.mxu1 %v17415_v1 }
 0xb98   :  { %15377 = vmatmul.mubr.bf16.gmra.mrb[88].mxu1 %v19451_v63 }
 0xb99   :  { %15380 = vmatprep.mubr.msk.bf16.mxu1 %vm17414_vm0, %v17415_v1  ;;  %15442 = vmatpush3.bf16.msra.mxu1 %v17183_v54 }
 0xb9a   :  { %15443 = vmatprep.subr.bf16.mxu1 %v17415_v1 }
 0xb9d   :  { %15444 = vmatpush3.bf16.msra.mxu1 %v17184_v25 }
 0xb9e   :  { %15445 = vmatprep.subr.bf16.mxu1 %v17415_v1 }
 0xba0   :  { %15381 = vmatmul.mubr.bf16.gmra.mrb[92].mxu1 %v19463_v31 }
 0xba1   :  { %15384 = vmatprep.mubr.msk.bf16.mxu1 %vm17414_vm0, %v17415_v1  ;;  %15446 = vmatpush3.bf16.msra.mxu1 %v17185_v62 }
 0xba2   :  { %15447 = vmatprep.subr.bf16.mxu1 %v17415_v1 }
 0xba5   :  { %15448 = vmatpush3.bf16.msra.mxu1 %v17186_v40 }
 0xba6   :  { %15514 = vmatprep.subr.bf16.mxu1 %v17415_v1 }
 0xba8   :  { %15385 = vmatmul.mubr.bf16.gmra.mrb[96].mxu1 %v19471_v42 }
 0xba9   :  { %15449 = vmatprep.mubr.msk.bf16.mxu1 %vm17414_vm0, %v17415_v1 }
 0xbb0   :  { %15450 = vmatmul.mubr.bf16.vlgmr.msra.gmra.mrb[56].mxu1 %v19427_v5 }
 0xbb1   :  { %15453 = vmatprep.mubr.msk.bf16.mxu1 %vm17414_vm0, %v17415_v1  ;;  %15515 = vmatpush3.bf16.msra.mxu1 %v17187_v34 }
 0xbb2   :  { %15516 = vmatprep.subr.bf16.mxu1 %v17415_v1 }
 0xbb5   :  { %15517 = vmatpush3.bf16.msra.mxu1 %v17188_v24  ;;  %v17205_v24 = vld [vmem:[%s20793_s7 + $0x210] sm:$0xff]  }
 0xbb6   :  { %15518 = vmatprep.subr.bf16.mxu1 %v17415_v1 }
 0xbb8   :  { %15454 = vmatmul.mubr.bf16.gmra.mrb[100].mxu1 %v19439_v61 }
 0xbb9   :  { %15457 = vmatprep.mubr.msk.bf16.mxu1 %vm17414_vm0, %v17415_v1  ;;  %15519 = vmatpush3.bf16.msra.mxu1 %v17189_v48 }
 0xbba   :  { %15520 = vmatprep.subr.bf16.mxu1 %v17415_v1 }
 0xbbd   :  { %15521 = vmatpush3.bf16.msra.mxu1 %v17190_v56 }
 0xbbe   :  { %15522 = vmatprep.subr.bf16.mxu1 %v17415_v1 }
 0xbc0   :  { %15458 = vmatmul.mubr.bf16.gmra.mrb[104].mxu1 %v19451_v63 }
 0xbc1   :  { %15461 = vmatprep.mubr.msk.bf16.mxu1 %vm17414_vm0, %v17415_v1  ;;  %15523 = vmatpush3.bf16.msra.mxu1 %v17191_v10 }
 0xbc2   :  { %15524 = vmatprep.subr.bf16.mxu1 %v17415_v1 }
 0xbc5   :  { %15525 = vmatpush3.bf16.msra.mxu1 %v17192_v39 }
 0xbc6   :  { %15526 = vmatprep.subr.bf16.mxu1 %v17415_v1 }
 0xbc8   :  { %15462 = vmatmul.mubr.bf16.gmra.mrb[108].mxu1 %v19463_v31 }
 0xbc9   :  { %15465 = vmatprep.mubr.msk.bf16.mxu1 %vm17414_vm0, %v17415_v1  ;;  %15527 = vmatpush3.bf16.msra.mxu1 %v17193_v44 }
 0xbca   :  { %15528 = vmatprep.subr.bf16.mxu1 %v17415_v1 }
 0xbcd   :  { %15529 = vmatpush3.bf16.msra.mxu1 %v17194_v58  ;;  %v17206_v58 = vld [vmem:[%s20793_s7 + $0x218] sm:$0xff]  }
 0xbce   :  { %15595 = vmatprep.subr.bf16.mxu1 %v17415_v1 }
 0xbd0   :  { %15466 = vmatmul.mubr.bf16.gmra.mrb[112].mxu1 %v19471_v42 }
 0xbd1   :  { %15530 = vmatprep.mubr.msk.bf16.mxu1 %vm17414_vm0, %v17415_v1 }
 0xbd8   :  { %15531 = vmatmul.mubr.bf16.vlgmr.msra.gmra.mrb[116].mxu1 %v19427_v5 }
 0xbd9   :  { %15534 = vmatprep.mubr.msk.bf16.mxu1 %vm17414_vm0, %v17415_v1  ;;  %15596 = vmatpush3.bf16.msra.mxu1 %v17195_v2 }
 0xbda   :  { %15597 = vmatprep.subr.bf16.mxu1 %v17415_v1 }
 0xbdd   :  { %15598 = vmatpush3.bf16.msra.mxu1 %v17196_v23 }
 0xbde   :  { %15599 = vmatprep.subr.bf16.mxu1 %v17415_v1 }
 0xbe0   :  { %15535 = vmatmul.mubr.bf16.gmra.mrb[120].mxu1 %v19439_v61 }
 0xbe1   :  { %15538 = vmatprep.mubr.msk.bf16.mxu1 %vm17414_vm0, %v17415_v1  ;;  %15600 = vmatpush3.bf16.msra.mxu1 %v17197_v12 }
 0xbe2   :  { %15601 = vmatprep.subr.bf16.mxu1 %v17415_v1 }
 0xbe5   :  { %15602 = vmatpush3.bf16.msra.mxu1 %v17198_v46 }
 0xbe6   :  { %15603 = vmatprep.subr.bf16.mxu1 %v17415_v1 }
 0xbe7   :  { %v5508_v41 = vpop.f32.mrb[16].mxu1  ;;  %v5618_v28 = vpop.f32.mrb[14].mxu0 }
 0xbe8   :  { %v15120_v52 = vpop.f32.mrb[17].mxu1  ;;  %v19788_v53 = vadd.f32 %v5618_v28, %v5508_v41  ;;  %15539 = vmatmul.mubr.bf16.gmra.mrb[124].mxu1 %v19451_v63  ;;  %v15165_v45 = vpop.f32.mrb[15].mxu0  ;;  %v17207_v41 = vld [vmem:[%s20793_s7 + $0x220] sm:$0xff]   ;;  %v17208_v28 = vld [vmem:[%s20793_s7 + $0x228] sm:$0xff]  }
 0xbe9   :  { %15542 = vmatprep.mubr.msk.bf16.mxu1 %vm17414_vm0, %v17415_v1  ;;  %15604 = vmatpush3.bf16.msra.mxu1 %v17199_v13 }
 0xbea   :  { %15605 = vmatprep.subr.bf16.mxu1 %v17415_v1 }
 0xbeb   :  { %v5513_v22 = vpop.f32.mrb[18].mxu1  ;;  %v5623_v18 = vpop.f32.mrb[36].mxu0 }
 0xbec   :  { %v15123_v17 = vpop.f32.mrb[19].mxu1  ;;  %v19797_v60 = vadd.f32 %v5623_v18, %v5513_v22  ;;  %v15168_v33 = vpop.f32.mrb[37].mxu0 }
 0xbed   :  { %15606 = vmatpush3.bf16.msra.mxu1 %v17200_v9  ;;  %v17209_v17 = vld [vmem:[%s20793_s7 + $0x230] sm:$0xff]   ;;  %v17210_v33 = vld [vmem:[%s20793_s7 + $0x238] sm:$0xff]  }
 0xbee   :  { %15607 = vmatprep.subr.bf16.mxu1 %v17415_v1 }
 0xbef   :  { %v5518_v29 = vpop.f32.mrb[20].mxu1  ;;  %v5628_v47 = vpop.f32.mrb[38].mxu0 }
 0xbf0   :  { %v15126_v49 = vpop.f32.mrb[21].mxu1  ;;  %v19803_v11 = vadd.f32 %v5628_v47, %v5518_v29  ;;  %15543 = vmatmul.mubr.bf16.gmra.mrb[128].mxu1 %v19463_v31  ;;  %v15171_v36 = vpop.f32.mrb[39].mxu0 }
 0xbf1   :  { %15546 = vmatprep.mubr.msk.bf16.mxu1 %vm17414_vm0, %v17415_v1  ;;  %15608 = vmatpush3.bf16.msra.mxu1 %v17201_v26 }
 0xbf2   :  { %15609 = vmatprep.subr.bf16.mxu1 %v17415_v1 }
 0xbf3   :  { %v5523_v59 = vpop.f32.mrb[22].mxu1  ;;  %v5633_v55 = vpop.f32.mrb[40].mxu0 }
 0xbf4   :  { %v15129_v3 = vpop.f32.mrb[23].mxu1  ;;  %v19812_v43 = vadd.f32 %v5633_v55, %v5523_v59  ;;  %v15174_v16 = vpop.f32.mrb[41].mxu0 }
 0xbf5   :  { %15610 = vmatpush3.bf16.msra.mxu1 %v17202_v6 }
 0xbf6   :  { %15676 = vmatprep.subr.bf16.mxu1 %v17415_v1 }
 0xbf7   :  { %v5528_v27 = vpop.f32.mrb[24].mxu1  ;;  %v5638_v38 = vpop.f32.mrb[42].mxu0 }
 0xbf8   :  { %v15132_v7 = vpop.f32.mrb[25].mxu1  ;;  %v19815_v8 = vadd.f32 %v5638_v38, %v5528_v27  ;;  %15547 = vmatmul.mubr.bf16.gmra.mrb[132].mxu1 %v19471_v42  ;;  %v15177_v51 = vpop.f32.mrb[43].mxu0 }
 0xbf9   :  { %15611 = vmatprep.mubr.msk.bf16.mxu1 %vm17414_vm0, %v17415_v1  ;;  %v17274_v51 = vld [vmem:[#allocation2 + $0x90] sm:$0xff] }
 0xbfb   :  { %v5533_v30 = vpop.f32.mrb[26].mxu1  ;;  %v5643_v50 = vpop.f32.mrb[44].mxu0 }
 0xbfc   :  { %v15135_v20 = vpop.f32.mrb[27].mxu1  ;;  %v19820_v35 = vadd.f32 %v5643_v50, %v5533_v30  ;;  %v15180_v57 = vpop.f32.mrb[45].mxu0 }
 0xbfd   :  { %v17276_v57 = vld [vmem:[#allocation2 + $0xa0] sm:$0xff] }
 0xbff   :  { %v5538_v37 = vpop.f32.mrb[28].mxu1  ;;  %v5648_v4 = vpop.f32.mrb[46].mxu0 }
 0xc00   :  { %v15138_v19 = vpop.f32.mrb[29].mxu1  ;;  %v19825_v15 = vadd.f32 %v5648_v4, %v5538_v37  ;;  %15612 = vmatmul.mubr.bf16.vlgmr.msra.gmra.mrb[136].mxu1 %v19427_v5  ;;  %v15183_v21 = vpop.f32.mrb[47].mxu0 }
 0xc01   :  { %15615 = vmatprep.mubr.msk.bf16.mxu1 %vm17414_vm0, %v17415_v1  ;;  %15677 = vmatpush3.bf16.msra.mxu1 %v17203_v32 }
 0xc02   :  { %15678 = vmatprep.subr.bf16.mxu1 %v17415_v1 }
 0xc03   :  { %v5543_v54 = vpop.f32.mrb[30].mxu1  ;;  %v5653_v25 = vpop.f32.mrb[48].mxu0 }
 0xc04   :  { %v15141_v62 = vpop.f32.mrb[31].mxu1  ;;  %v19834_v40 = vadd.f32 %v5653_v25, %v5543_v54  ;;  %v15186_v34 = vpop.f32.mrb[49].mxu0 }
 0xc05   :  { %15679 = vmatpush3.bf16.msra.mxu1 %v17204_v14  ;;  %v17278_v14 = vld [vmem:[#allocation2 + $0xb0] sm:$0xff] }
 0xc06   :  { %15680 = vmatprep.subr.bf16.mxu1 %v17415_v1 }
 0xc07   :  { %v5548_v48 = vpop.f32.mrb[32].mxu1  ;;  %v5658_v56 = vpop.f32.mrb[50].mxu0 }
 0xc08   :  { %v15144_v10 = vpop.f32.mrb[33].mxu1  ;;  %v19840_v39 = vadd.f32 %v5658_v56, %v5548_v48  ;;  %15616 = vmatmul.mubr.bf16.gmra.mrb[140].mxu1 %v19439_v61  ;;  %v15189_v44 = vpop.f32.mrb[51].mxu0  ;;  %v17280_v48 = vld [vmem:[#allocation2 + $0xc0] sm:$0xff] }
 0xc09   :  { %15619 = vmatprep.mubr.msk.bf16.mxu1 %vm17414_vm0, %v17415_v1  ;;  %15681 = vmatpush3.bf16.msra.mxu1 %v17205_v24 }
 0xc0a   :  { %15682 = vmatprep.subr.bf16.mxu1 %v17415_v1 }
 0xc0b   :  { %v5761_v2 = vpop.f32.mrb[36].mxu1 }
 0xc0c   :  { %v15208_v23 = vpop.f32.mrb[37].mxu1 }
 0xc0d   :  { %v5764_v12 = vpop.f32.mrb[38].mxu1  ;;  %15683 = vmatpush3.bf16.msra.mxu1 %v17206_v58  ;;  %v17282_v23 = vld [vmem:[#allocation2 + $0xd0] sm:$0xff] }
 0xc0e   :  { %v16464_v46 = vpack.c.bf16 %v5764_v12, %v5761_v2  ;;  %v15209_v13 = vpop.f32.mrb[39].mxu1  ;;  %15684 = vmatprep.subr.bf16.mxu1 %v17415_v1 }
 0xc10   :  { %16465 = vmatpush3.bf16.msra.mxu0 %v16464_v46  ;;  %15620 = vmatmul.mubr.bf16.gmra.mrb[144].mxu1 %v19451_v63 }
 0xc11   :  { %16466 = vmatprep.subr.bf16.mxu0 %v17413_v0  ;;  %15623 = vmatprep.mubr.msk.bf16.mxu1 %vm17414_vm0, %v17415_v1 }
 0xc12   :  { %15685 = vmatpush3.bf16.msra.mxu1 %v17207_v41 }
 0xc13   :  { %v5769_v52 = vpop.f32.mrb[40].mxu1  ;;  %15686 = vmatprep.subr.bf16.mxu1 %v17415_v1 }
 0xc14   :  { %v15212_v45 = vpop.f32.mrb[41].mxu1 }
 0xc15   :  { %v5772_v9 = vpop.f32.mrb[42].mxu1 }
 0xc16   :  { %v16467_v22 = vpack.c.bf16 %v5772_v9, %v5769_v52  ;;  %v15213_v18 = vpop.f32.mrb[43].mxu1  ;;  %15687 = vmatpush3.bf16.msra.mxu1 %v17208_v28  ;;  %v17283_v52 = vld [vmem:[#allocation2 + $0xd8] sm:$0xff]  ;;  %v17284_v9 = vld [vmem:[#allocation2 + $0xe0] sm:$0xff] }
 0xc17   :  { %15688 = vmatprep.subr.bf16.mxu1 %v17415_v1 }
 0xc18   :  { %16468 = vmatpush3.bf16.msra.mxu0 %v16467_v22  ;;  %15624 = vmatmul.mubr.bf16.gmra.mrb[148].mxu1 %v19463_v31 }
 0xc19   :  { %16469 = vmatprep.subr.bf16.mxu0 %v17413_v0  ;;  %15627 = vmatprep.mubr.msk.bf16.mxu1 %vm17414_vm0, %v17415_v1 }
 0xc1a   :  { %15689 = vmatpush3.bf16.msra.mxu1 %v17209_v17  ;;  %v17285_v17 = vld [vmem:[#allocation2 + $0xe8] sm:$0xff] }
 0xc1b   :  { %v5777_v26 = vpop.f32.mrb[44].mxu1  ;;  %15690 = vmatprep.subr.bf16.mxu1 %v17415_v1 }
 0xc1c   :  { %v15216_v29 = vpop.f32.mrb[45].mxu1 }
 0xc1d   :  { %v5780_v47 = vpop.f32.mrb[46].mxu1 }
 0xc1e   :  { %v16470_v49 = vpack.c.bf16 %v5780_v47, %v5777_v26  ;;  %v15217_v36 = vpop.f32.mrb[47].mxu1  ;;  %15691 = vmatpush3.bf16.msra.mxu1 %v17210_v33  ;;  %v17286_v47 = vld [vmem:[#allocation2 + $0xf0] sm:$0xff] }
 0xc20   :  { %16471 = vmatpush3.bf16.msra.mxu0 %v16470_v49  ;;  %15628 = vmatmul.mubr.bf16.gmra.mrb[152].mxu1 %v19471_v42 }
 0xc21   :  { %16472 = vmatprep.subr.bf16.mxu0 %v17413_v0  ;;  %15692 = vmatprep.mubr.msk.bf16.mxu1 %vm17414_vm0, %v17415_v1 }
 0xc23   :  { %v5785_v6 = vpop.f32.mrb[48].mxu1 }
 0xc24   :  { %v15220_v59 = vpop.f32.mrb[49].mxu1 }
 0xc25   :  { %v5788_v55 = vpop.f32.mrb[50].mxu1 }
 0xc26   :  { %v16473_v3 = vpack.c.bf16 %v5788_v55, %v5785_v6  ;;  %v15221_v16 = vpop.f32.mrb[51].mxu1  ;;  %v17287_v6 = vld [vmem:[#allocation2 + $0xf8] sm:$0xff] }
 0xc27   :  { %v17288_v16 = vld [vmem:[#allocation2 + $0x100] sm:$0xff] }
 0xc28   :  { %16474 = vmatpush3.bf16.msra.mxu0 %v16473_v3  ;;  %15693 = vmatmul.mubr.bf16.vlgmr.msra.gmra.mrb[156].mxu1 %v19427_v5  ;;  %v17275_v5 = vld [vmem:[#allocation2 + $0x98] sm:$0xff] }
 0xc29   :  { %15242 = vmatprep.subr.mxu0 %v17415_v1  ;;  %15696 = vmatprep.mubr.msk.bf16.mxu1 %vm17414_vm0, %v17415_v1 }
 0xc2b   :  { %v5793_v27 = vpop.f32.mrb[52].mxu1 }
 0xc2c   :  { %v15224_v38 = vpop.f32.mrb[53].mxu1  ;;  %15243 = vmatpush3.msra.mxu0 %v5793_v27 }
 0xc2d   :  { %v5796_v7 = vpop.f32.mrb[54].mxu1  ;;  %15245 = vmatmul.mubr.msk.f32.vlgmr.msra.gmra.mrb[52].mxu0 %vm956_vm1, %v17274_v51  ;;  %16475 = vmatprep.subr.bf16.mxu0 %v17413_v0 }
 0xc2e   :  { %v15225_v30 = vpop.f32.mrb[55].mxu1  ;;  %15247 = vmatprep.mubr.msk.f32.mxu0 %vm17414_vm0, %v17415_v1  ;;  %v17289_v7 = vld [vmem:[#allocation2 + $0x108] sm:$0xff] }
 0xc30   :  { %15697 = vmatmul.mubr.bf16.gmra.mrb[160].mxu1 %v19439_v61  ;;  %v17277_v61 = vld [vmem:[#allocation2 + $0xa8] sm:$0xff] }
 0xc31   :  { %15248 = vmatmul.mubr.msk.f32.gmra.mrb[54].mxu0 %vm956_vm1, %v17275_v5  ;;  %15700 = vmatprep.mubr.msk.bf16.mxu1 %vm17414_vm0, %v17415_v1 }
 0xc32   :  { %15250 = vmatprep.mubr.msk.f32.mxu0 %vm17414_vm0, %v17415_v1 }
 0xc33   :  { %v6017_v50 = vpop.f32.mrb[60].mxu1 }
 0xc34   :  { %v15289_v20 = vpop.f32.mrb[61].mxu1 }
 0xc35   :  { %15251 = vmatmul.mubr.msk.f32.gmra.mrb[56].mxu0 %vm956_vm1, %v17276_v57  ;;  %v6020_v32 = vpop.f32.mrb[62].mxu1 }
 0xc36   :  { %v16476_v37 = vpack.c.bf16 %v6020_v32, %v6017_v50  ;;  %v15290_v4 = vpop.f32.mrb[63].mxu1  ;;  %15253 = vmatprep.mubr.msk.f32.mxu0 %vm17414_vm0, %v17415_v1  ;;  %v17290_v50 = vld [vmem:[#allocation2 + $0x110] sm:$0xff]  ;;  %v17291_v32 = vld [vmem:[#allocation2 + $0x118] sm:$0xff] }
 0xc38   :  { %16477 = vmatpush3.bf16.msra.mxu0 %v16476_v37  ;;  %15701 = vmatmul.mubr.bf16.gmra.mrb[164].mxu1 %v19451_v63  ;;  %v17279_v63 = vld [vmem:[#allocation2 + $0xb8] sm:$0xff] }
 0xc39   :  { %15254 = vmatmul.mubr.msk.f32.gmra.mrb[60].mxu0 %vm956_vm1, %v17277_v61  ;;  %16478 = vmatprep.subr.bf16.mxu0 %v17413_v0 }
 0xc3a   :  { %15256 = vmatprep.mubr.msk.f32.mxu0 %vm17414_vm0, %v17415_v1  ;;  %15704 = vmatprep.mubr.msk.bf16.mxu1 %vm17414_vm0, %v17415_v1 }
 0xc3b   :  { %v6025_v19 = vpop.f32.mrb[64].mxu1 }
 0xc3c   :  { %v15293_v21 = vpop.f32.mrb[65].mxu1 }
 0xc3d   :  { %15257 = vmatmul.mubr.msk.f32.gmra.mrb[62].mxu0 %vm956_vm1, %v17278_v14  ;;  %v6028_v54 = vpop.f32.mrb[66].mxu1 }
 0xc3e   :  { %v16479_v25 = vpack.c.bf16 %v6028_v54, %v6025_v19  ;;  %v15294_v62 = vpop.f32.mrb[67].mxu1  ;;  %15259 = vmatprep.mubr.msk.f32.mxu0 %vm17414_vm0, %v17415_v1  ;;  %v17292_v54 = vld [vmem:[#allocation2 + $0x120] sm:$0xff] }
 0xc3f   :  { %v17293_v62 = vld [vmem:[#allocation2 + $0x128] sm:$0xff] }
 0xc40   :  { %16480 = vmatpush3.bf16.msra.mxu0 %v16479_v25  ;;  %15705 = vmatmul.mubr.bf16.gmra.mrb[168].mxu1 %v19463_v31  ;;  %v17281_v31 = vld [vmem:[#allocation2 + $0xc8] sm:$0xff] }
 0xc41   :  { %15260 = vmatmul.mubr.msk.f32.gmra.mrb[64].mxu0 %vm956_vm1, %v17279_v63  ;;  %16481 = vmatprep.subr.bf16.mxu0 %v17413_v0 }
 0xc42   :  { %15262 = vmatprep.mubr.msk.f32.mxu0 %vm17414_vm0, %v17415_v1  ;;  %15708 = vmatprep.mubr.msk.bf16.mxu1 %vm17414_vm0, %v17415_v1 }
 0xc43   :  { %v6033_v34 = vpop.f32.mrb[68].mxu1 }
 0xc44   :  { %v15297_v24 = vpop.f32.mrb[69].mxu1 }
 0xc45   :  { %15263 = vmatmul.mubr.msk.f32.gmra.mrb[66].mxu0 %vm956_vm1, %v17280_v48  ;;  %v6036_v56 = vpop.f32.mrb[70].mxu1  ;;  %v17294_v24 = vld [vmem:[#allocation2 + $0x130] sm:$0xff] }
 0xc46   :  { %v16482_v10 = vpack.c.bf16 %v6036_v56, %v6033_v34  ;;  %v15298_v44 = vpop.f32.mrb[71].mxu1  ;;  %15265 = vmatprep.mubr.msk.f32.mxu0 %vm17414_vm0, %v17415_v1 }
 0xc47   :  { %v17295_v44 = vld [vmem:[#allocation2 + $0x138] sm:$0xff] }
 0xc48   :  { %16483 = vmatpush3.bf16.msra.mxu0 %v16482_v10  ;;  %15709 = vmatmul.mubr.bf16.gmra.mrb[176].mxu1 %v19471_v42 }
 0xc49   :  { %15266 = vmatmul.mubr.msk.f32.gmra.mrb[68].mxu0 %vm956_vm1, %v17281_v31  ;;  %16484 = vmatprep.subr.bf16.mxu0 %v17413_v0 }
 0xc4a   :  { %15268 = vmatprep.mubr.msk.f32.mxu0 %vm17414_vm0, %v17415_v1 }
 0xc4b   :  { %v6041_v58 = vpop.f32.mrb[72].mxu1 }
 0xc4c   :  { %v15301_v2 = vpop.f32.mrb[73].mxu1 }
 0xc4d   :  { %15269 = vmatmul.mubr.msk.f32.gmra.mrb[70].mxu0 %vm956_vm1, %v17282_v23  ;;  %v6044_v12 = vpop.f32.mrb[74].mxu1  ;;  %v17296_v2 = vld [vmem:[#allocation2 + $0x140] sm:$0xff] }
 0xc4e   :  { %v16485_v46 = vpack.c.bf16 %v6044_v12, %v6041_v58  ;;  %v15302_v13 = vpop.f32.mrb[75].mxu1  ;;  %15325 = vmatprep.mubr.msk.f32.mxu0 %vm17414_vm0, %v17415_v1 }
 0xc4f   :  { %v17297_v13 = vld [vmem:[#allocation2 + $0x148] sm:$0xff] }
 0xc50   :  { %16486 = vmatpush3.bf16.msra.mxu0 %v16485_v46 }
 0xc51   :  { %15323 = vmatprep.subr.mxu0 %v17415_v1 }
 0xc53   :  { %v6049_v42 = vpop.f32.mrb[76].mxu1 }
 0xc54   :  { %v15305_v41 = vpop.f32.mrb[77].mxu1  ;;  %15324 = vmatpush3.msra.mxu0 %v6049_v42 }
 0xc55   :  { %v6052_v28 = vpop.f32.mrb[78].mxu1  ;;  %15326 = vmatmul.mubr.msk.f32.vlgmr.msra.gmra.mrb[72].mxu0 %vm956_vm1, %v17283_v52  ;;  %16487 = vmatprep.subr.bf16.mxu0 %v17413_v0 }
 0xc56   :  { %v15306_v45 = vpop.f32.mrb[79].mxu1  ;;  %15328 = vmatprep.mubr.msk.f32.mxu0 %vm17414_vm0, %v17415_v1  ;;  %v17298_v28 = vld [vmem:[#allocation2 + $0x150] sm:$0xff] }
 0xc59   :  { %15329 = vmatmul.mubr.msk.f32.gmra.mrb[74].mxu0 %vm956_vm1, %v17284_v9 }
 0xc5a   :  { %15331 = vmatprep.mubr.msk.f32.mxu0 %vm17414_vm0, %v17415_v1 }
 0xc5b   :  { %v6273_v22 = vpop.f32.mrb[80].mxu1 }
 0xc5c   :  { %v15370_v18 = vpop.f32.mrb[81].mxu1 }
 0xc5d   :  { %15332 = vmatmul.mubr.msk.f32.gmra.mrb[76].mxu0 %vm956_vm1, %v17285_v17  ;;  %v6276_v33 = vpop.f32.mrb[82].mxu1 }
 0xc5e   :  { %v16488_v26 = vpack.c.bf16 %v6276_v33, %v6273_v22  ;;  %v15371_v29 = vpop.f32.mrb[83].mxu1  ;;  %15334 = vmatprep.mubr.msk.f32.mxu0 %vm17414_vm0, %v17415_v1  ;;  %v17299_v22 = vld [vmem:[#allocation2 + $0x158] sm:$0xff]  ;;  %v17300_v33 = vld [vmem:[#allocation2 + $0x160] sm:$0xff] }
 0xc60   :  { %16489 = vmatpush3.bf16.msra.mxu0 %v16488_v26 }
 0xc61   :  { %15335 = vmatmul.mubr.msk.f32.gmra.mrb[78].mxu0 %vm956_vm1, %v17286_v47  ;;  %16490 = vmatprep.subr.bf16.mxu0 %v17413_v0 }
 0xc62   :  { %15337 = vmatprep.mubr.msk.f32.mxu0 %vm17414_vm0, %v17415_v1 }
 0xc63   :  { %v6281_v49 = vpop.f32.mrb[84].mxu1 }
 0xc64   :  { %v15374_v36 = vpop.f32.mrb[85].mxu1 }
 0xc65   :  { %15338 = vmatmul.mubr.msk.f32.gmra.mrb[58].mxu0 %vm956_vm1, %v17287_v6  ;;  %v6284_v59 = vpop.f32.mrb[86].mxu1 }
 0xc66   :  { %v16491_v55 = vpack.c.bf16 %v6284_v59, %v6281_v49  ;;  %v15375_v3 = vpop.f32.mrb[87].mxu1  ;;  %15340 = vmatprep.mubr.msk.f32.mxu0 %vm17414_vm0, %v17415_v1  ;;  %v17301_v59 = vld [vmem:[#allocation2 + $0x168] sm:$0xff] }
 0xc67   :  { %v17302_v3 = vld [vmem:[#allocation2 + $0x170] sm:$0xff] }
 0xc68   :  { %16492 = vmatpush3.bf16.msra.mxu0 %v16491_v55 }
 0xc69   :  { %15341 = vmatmul.mubr.msk.f32.gmra.mrb[80].mxu0 %vm956_vm1, %v17288_v16  ;;  %16493 = vmatprep.subr.bf16.mxu0 %v17413_v0 }
 0xc6a   :  { %15343 = vmatprep.mubr.msk.f32.mxu0 %vm17414_vm0, %v17415_v1 }
 0xc6b   :  { %v6289_v27 = vpop.f32.mrb[88].mxu1 }
 0xc6c   :  { %v15378_v38 = vpop.f32.mrb[89].mxu1 }
 0xc6d   :  { %15344 = vmatmul.mubr.msk.f32.gmra.mrb[82].mxu0 %vm956_vm1, %v17289_v7  ;;  %v6292_v51 = vpop.f32.mrb[90].mxu1  ;;  %v17303_v38 = vld [vmem:[#allocation2 + $0x178] sm:$0xff] }
 0xc6e   :  { %v16494_v30 = vpack.c.bf16 %v6292_v51, %v6289_v27  ;;  %v15379_v5 = vpop.f32.mrb[91].mxu1  ;;  %15346 = vmatprep.mubr.msk.f32.mxu0 %vm17414_vm0, %v17415_v1 }
 0xc6f   :  { %v17304_v5 = vld [vmem:[#allocation2 + $0x180] sm:$0xff] }
 0xc70   :  { %16495 = vmatpush3.bf16.msra.mxu0 %v16494_v30 }
 0xc71   :  { %15347 = vmatmul.mubr.msk.f32.gmra.mrb[84].mxu0 %vm956_vm1, %v17290_v50  ;;  %16496 = vmatprep.subr.bf16.mxu0 %v17413_v0 }
 0xc72   :  { %15349 = vmatprep.mubr.msk.f32.mxu0 %vm17414_vm0, %v17415_v1 }
 0xc73   :  { %v6297_v20 = vpop.f32.mrb[92].mxu1 }
 0xc74   :  { %v15382_v57 = vpop.f32.mrb[93].mxu1 }
 0xc75   :  { %15350 = vmatmul.mubr.msk.f32.gmra.mrb[86].mxu0 %vm956_vm1, %v17291_v32  ;;  %v6300_v37 = vpop.f32.mrb[94].mxu1  ;;  %v17305_v57 = vld [vmem:[#allocation2 + $0x188] sm:$0xff] }
 0xc76   :  { %v16497_v4 = vpack.c.bf16 %v6300_v37, %v6297_v20  ;;  %v15383_v61 = vpop.f32.mrb[95].mxu1  ;;  %15406 = vmatprep.mubr.msk.f32.mxu0 %vm17414_vm0, %v17415_v1 }
 0xc77   :  { %v17306_v61 = vld [vmem:[#allocation2 + $0x190] sm:$0xff] }
 0xc78   :  { %16498 = vmatpush3.bf16.msra.mxu0 %v16497_v4 }
 0xc79   :  { %15404 = vmatprep.subr.mxu0 %v17415_v1 }
 0xc7b   :  { %v6305_v19 = vpop.f32.mrb[96].mxu1 }
 0xc7c   :  { %v15386_v21 = vpop.f32.mrb[97].mxu1  ;;  %15405 = vmatpush3.msra.mxu0 %v6305_v19 }
 0xc7d   :  { %v6308_v14 = vpop.f32.mrb[98].mxu1  ;;  %15407 = vmatmul.mubr.msk.f32.vlgmr.msra.gmra.mrb[88].mxu0 %vm956_vm1, %v17292_v54  ;;  %16499 = vmatprep.subr.bf16.mxu0 %v17413_v0 }
 0xc7e   :  { %v15387_v25 = vpop.f32.mrb[99].mxu1  ;;  %15409 = vmatprep.mubr.msk.f32.mxu0 %vm17414_vm0, %v17415_v1  ;;  %v17307_v14 = vld [vmem:[#allocation2 + $0x198] sm:$0xff] }
 0xc81   :  { %15410 = vmatmul.mubr.msk.f32.gmra.mrb[90].mxu0 %vm956_vm1, %v17293_v62 }
 0xc82   :  { %15412 = vmatprep.mubr.msk.f32.mxu0 %vm17414_vm0, %v17415_v1 }
 0xc83   :  { %v6529_v63 = vpop.f32.mrb[56].mxu1 }
 0xc84   :  { %v15451_v34 = vpop.f32.mrb[57].mxu1 }
 0xc85   :  { %15413 = vmatmul.mubr.msk.f32.gmra.mrb[92].mxu0 %vm956_vm1, %v17294_v24  ;;  %v6532_v48 = vpop.f32.mrb[58].mxu1 }
 0xc86   :  { %v16500_v56 = vpack.c.bf16 %v6532_v48, %v6529_v63  ;;  %v15452_v10 = vpop.f32.mrb[59].mxu1  ;;  %15415 = vmatprep.mubr.msk.f32.mxu0 %vm17414_vm0, %v17415_v1  ;;  %v17308_v63 = vld [vmem:[#allocation2 + $0x1a0] sm:$0xff]  ;;  %v17309_v48 = vld [vmem:[#allocation2 + $0x1a8] sm:$0xff] }
 0xc88   :  { %16501 = vmatpush3.bf16.msra.mxu0 %v16500_v56 }
 0xc89   :  { %15416 = vmatmul.mubr.msk.f32.gmra.mrb[94].mxu0 %vm956_vm1, %v17295_v44  ;;  %16502 = vmatprep.subr.bf16.mxu0 %v17413_v0 }
 0xc8a   :  { %15418 = vmatprep.mubr.msk.f32.mxu0 %vm17414_vm0, %v17415_v1 }
 0xc8b   :  { %v6537_v31 = vpop.f32.mrb[100].mxu1 }
 0xc8c   :  { %v15455_v58 = vpop.f32.mrb[101].mxu1 }
 0xc8d   :  { %15419 = vmatmul.mubr.msk.f32.gmra.mrb[96].mxu0 %vm956_vm1, %v17296_v2  ;;  %v6540_v23 = vpop.f32.mrb[102].mxu1 }
 0xc8e   :  { %v16503_v12 = vpack.c.bf16 %v6540_v23, %v6537_v31  ;;  %v15456_v46 = vpop.f32.mrb[103].mxu1  ;;  %15421 = vmatprep.mubr.msk.f32.mxu0 %vm17414_vm0, %v17415_v1  ;;  %v17310_v23 = vld [vmem:[#allocation2 + $0x1b0] sm:$0xff] }
 0xc8f   :  { %v17311_v46 = vld [vmem:[#allocation2 + $0x1b8] sm:$0xff] }
 0xc90   :  { %16504 = vmatpush3.bf16.msra.mxu0 %v16503_v12 }
 0xc91   :  { %15422 = vmatmul.mubr.msk.f32.gmra.mrb[98].mxu0 %vm956_vm1, %v17297_v13  ;;  %16505 = vmatprep.subr.bf16.mxu0 %v17413_v0 }
 0xc92   :  { %15424 = vmatprep.mubr.msk.f32.mxu0 %vm17414_vm0, %v17415_v1 }
 0xc93   :  { %v6545_v42 = vpop.f32.mrb[104].mxu1 }
 0xc94   :  { %v15459_v41 = vpop.f32.mrb[105].mxu1 }
 0xc95   :  { %15425 = vmatmul.mubr.msk.f32.gmra.mrb[100].mxu0 %vm956_vm1, %v17298_v28  ;;  %v6548_v52 = vpop.f32.mrb[106].mxu1  ;;  %v17312_v41 = vld [vmem:[#allocation2 + $0x1c0] sm:$0xff] }
 0xc96   :  { %v16506_v45 = vpack.c.bf16 %v6548_v52, %v6545_v42  ;;  %v15460_v9 = vpop.f32.mrb[107].mxu1  ;;  %15427 = vmatprep.mubr.msk.f32.mxu0 %vm17414_vm0, %v17415_v1 }
 0xc97   :  { %v17313_v9 = vld [vmem:[#allocation2 + $0x1c8] sm:$0xff] }
 0xc98   :  { %16507 = vmatpush3.bf16.msra.mxu0 %v16506_v45 }
 0xc99   :  { %15428 = vmatmul.mubr.msk.f32.gmra.mrb[102].mxu0 %vm956_vm1, %v17299_v22  ;;  %16508 = vmatprep.subr.bf16.mxu0 %v17413_v0 }
 0xc9a   :  { %15430 = vmatprep.mubr.msk.f32.mxu0 %vm17414_vm0, %v17415_v1 }
 0xc9b   :  { %v6553_v18 = vpop.f32.mrb[108].mxu1 }
 0xc9c   :  { %v15463_v17 = vpop.f32.mrb[109].mxu1 }
 0xc9d   :  { %15431 = vmatmul.mubr.msk.f32.gmra.mrb[104].mxu0 %vm956_vm1, %v17300_v33  ;;  %v6556_v26 = vpop.f32.mrb[110].mxu1  ;;  %v17314_v17 = vld [vmem:[#allocation2 + $0x1d0] sm:$0xff] }
 0xc9e   :  { %v16509_v29 = vpack.c.bf16 %v6556_v26, %v6553_v18  ;;  %v15464_v47 = vpop.f32.mrb[111].mxu1  ;;  %15487 = vmatprep.mubr.msk.f32.mxu0 %vm17414_vm0, %v17415_v1 }
 0xc9f   :  { %v17315_v47 = vld [vmem:[#allocation2 + $0x1d8] sm:$0xff] }
 0xca0   :  { %16510 = vmatpush3.bf16.msra.mxu0 %v16509_v29 }
 0xca1   :  { %15485 = vmatprep.subr.mxu0 %v17415_v1 }
 0xca3   :  { %v6561_v49 = vpop.f32.mrb[112].mxu1 }
 0xca4   :  { %v15467_v36 = vpop.f32.mrb[113].mxu1  ;;  %15486 = vmatpush3.msra.mxu0 %v6561_v49 }
 0xca5   :  { %v6564_v6 = vpop.f32.mrb[114].mxu1  ;;  %15488 = vmatmul.mubr.msk.f32.vlgmr.msra.gmra.mrb[106].mxu0 %vm956_vm1, %v17301_v59  ;;  %16511 = vmatprep.subr.bf16.mxu0 %v17413_v0 }
 0xca6   :  { %v15468_v55 = vpop.f32.mrb[115].mxu1  ;;  %15490 = vmatprep.mubr.msk.f32.mxu0 %vm17414_vm0, %v17415_v1  ;;  %v17316_v6 = vld [vmem:[#allocation2 + $0x1e0] sm:$0xff] }
 0xca9   :  { %15491 = vmatmul.mubr.msk.f32.gmra.mrb[108].mxu0 %vm956_vm1, %v17302_v3 }
 0xcaa   :  { %15493 = vmatprep.mubr.msk.f32.mxu0 %vm17414_vm0, %v17415_v1 }
 0xcab   :  { %v6785_v16 = vpop.f32.mrb[116].mxu1 }
 0xcac   :  { %v15532_v27 = vpop.f32.mrb[117].mxu1 }
 0xcad   :  { %15494 = vmatmul.mubr.msk.f32.gmra.mrb[110].mxu0 %vm956_vm1, %v17303_v38  ;;  %v6788_v7 = vpop.f32.mrb[118].mxu1 }
 0xcae   :  { %v16512_v51 = vpack.c.bf16 %v6788_v7, %v6785_v16  ;;  %v15533_v30 = vpop.f32.mrb[119].mxu1  ;;  %15496 = vmatprep.mubr.msk.f32.mxu0 %vm17414_vm0, %v17415_v1  ;;  %v17317_v16 = vld [vmem:[#allocation2 + $0x1e8] sm:$0xff]  ;;  %v17318_v7 = vld [vmem:[#allocation2 + $0x1f0] sm:$0xff] }
 0xcb0   :  { %16513 = vmatpush3.bf16.msra.mxu0 %v16512_v51 }
 0xcb1   :  { %15497 = vmatmul.mubr.msk.f32.gmra.mrb[112].mxu0 %vm956_vm1, %v17304_v5  ;;  %16514 = vmatprep.subr.bf16.mxu0 %v17413_v0 }
 0xcb2   :  { %15499 = vmatprep.mubr.msk.f32.mxu0 %vm17414_vm0, %v17415_v1 }
 0xcb3   :  { %v6793_v50 = vpop.f32.mrb[120].mxu1 }
 0xcb4   :  { %v15536_v20 = vpop.f32.mrb[121].mxu1 }
 0xcb5   :  { %15500 = vmatmul.mubr.msk.f32.gmra.mrb[114].mxu0 %vm956_vm1, %v17305_v57  ;;  %v6796_v32 = vpop.f32.mrb[122].mxu1 }
 0xcb6   :  { %v16515_v37 = vpack.c.bf16 %v6796_v32, %v6793_v50  ;;  %v15537_v4 = vpop.f32.mrb[123].mxu1  ;;  %15502 = vmatprep.mubr.msk.f32.mxu0 %vm17414_vm0, %v17415_v1  ;;  %v17319_v32 = vld [vmem:[#allocation2 + $0x1f8] sm:$0xff] }
 0xcb7   :  { %v17320_v4 = vld [vmem:[#allocation2 + $0x200] sm:$0xff] }
 0xcb8   :  { %16516 = vmatpush3.bf16.msra.mxu0 %v16515_v37 }
 0xcb9   :  { %15503 = vmatmul.mubr.msk.f32.gmra.mrb[116].mxu0 %vm956_vm1, %v17306_v61  ;;  %16517 = vmatprep.subr.bf16.mxu0 %v17413_v0 }
 0xcba   :  { %15505 = vmatprep.mubr.msk.f32.mxu0 %vm17414_vm0, %v17415_v1 }
 0xcbb   :  { %v6801_v19 = vpop.f32.mrb[124].mxu1 }
 0xcbc   :  { %v15540_v21 = vpop.f32.mrb[125].mxu1 }
 0xcbd   :  { %15506 = vmatmul.mubr.msk.f32.gmra.mrb[118].mxu0 %vm956_vm1, %v17307_v14  ;;  %v6804_v54 = vpop.f32.mrb[126].mxu1  ;;  %v17321_v21 = vld [vmem:[#allocation2 + $0x208] sm:$0xff] }
 0xcbe   :  { %v16518_v25 = vpack.c.bf16 %v6804_v54, %v6801_v19  ;;  %v15541_v62 = vpop.f32.mrb[127].mxu1  ;;  %15508 = vmatprep.mubr.msk.f32.mxu0 %vm17414_vm0, %v17415_v1 }
 0xcc0   :  { %16519 = vmatpush3.bf16.msra.mxu0 %v16518_v25 }
 0xcc1   :  { %15509 = vmatmul.mubr.msk.f32.gmra.mrb[120].mxu0 %vm956_vm1, %v17308_v63  ;;  %16520 = vmatprep.subr.bf16.mxu0 %v17413_v0 }
 0xcc2   :  { %15511 = vmatprep.mubr.msk.f32.mxu0 %vm17414_vm0, %v17415_v1 }
 0xcc3   :  { %v6809_v34 = vpop.f32.mrb[128].mxu1 }
 0xcc4   :  { %v15544_v24 = vpop.f32.mrb[129].mxu1 }
 0xcc5   :  { %15512 = vmatmul.mubr.msk.f32.gmra.mrb[122].mxu0 %vm956_vm1, %v17309_v48  ;;  %v6812_v56 = vpop.f32.mrb[130].mxu1 }
 0xcc6   :  { %v16521_v10 = vpack.c.bf16 %v6812_v56, %v6809_v34  ;;  %v15545_v44 = vpop.f32.mrb[131].mxu1  ;;  %15568 = vmatprep.mubr.msk.f32.mxu0 %vm17414_vm0, %v17415_v1  ;;  %v17322_v34 = vld [vmem:[#allocation2 + $0x210] sm:$0xff] }
 0xcc8   :  { %16522 = vmatpush3.bf16.msra.mxu0 %v16521_v10 }
 0xcc9   :  { %15566 = vmatprep.subr.mxu0 %v17415_v1 }
 0xccb   :  { %v6817_v31 = vpop.f32.mrb[132].mxu1 }
 0xccc   :  { %v15548_v58 = vpop.f32.mrb[133].mxu1  ;;  %15567 = vmatpush3.msra.mxu0 %v6817_v31  ;;  %v17323_v31 = vld [vmem:[#allocation2 + $0x218] sm:$0xff] }
 0xccd   :  { %v6820_v2 = vpop.f32.mrb[134].mxu1  ;;  %15569 = vmatmul.mubr.msk.f32.vlgmr.msra.gmra.mrb[124].mxu0 %vm956_vm1, %v17310_v23  ;;  %16523 = vmatprep.subr.bf16.mxu0 %v17413_v0 }
 0xcce   :  { %v15549_v12 = vpop.f32.mrb[135].mxu1  ;;  %15571 = vmatprep.mubr.msk.f32.mxu0 %vm17414_vm0, %v17415_v1 }
 0xcd1   :  { %15572 = vmatmul.mubr.msk.f32.gmra.mrb[126].mxu0 %vm956_vm1, %v17311_v46 }
 0xcd2   :  { %15574 = vmatprep.mubr.msk.f32.mxu0 %vm17414_vm0, %v17415_v1 }
 0xcd3   :  { %v7041_v13 = vpop.f32.mrb[136].mxu1 }
 0xcd4   :  { %v15613_v42 = vpop.f32.mrb[137].mxu1 }
 0xcd5   :  { %15575 = vmatmul.mubr.msk.f32.gmra.mrb[128].mxu0 %vm956_vm1, %v17312_v41  ;;  %v7044_v28 = vpop.f32.mrb[138].mxu1 }
 0xcd6   :  { %v16524_v52 = vpack.c.bf16 %v7044_v28, %v7041_v13  ;;  %v15614_v45 = vpop.f32.mrb[139].mxu1  ;;  %15577 = vmatprep.mubr.msk.f32.mxu0 %vm17414_vm0, %v17415_v1  ;;  %v17324_v13 = vld [vmem:[#allocation2 + $0x220] sm:$0xff] }
 0xcd7   :  { %v17325_v45 = vld [vmem:[#allocation2 + $0x228] sm:$0xff] }
 0xcd8   :  { %16525 = vmatpush3.bf16.msra.mxu0 %v16524_v52 }
 0xcd9   :  { %15578 = vmatmul.mubr.msk.f32.gmra.mrb[130].mxu0 %vm956_vm1, %v17313_v9  ;;  %16526 = vmatprep.subr.bf16.mxu0 %v17413_v0 }
 0xcda   :  { %15580 = vmatprep.mubr.msk.f32.mxu0 %vm17414_vm0, %v17415_v1 }
 0xcdb   :  { %v7049_v22 = vpop.f32.mrb[140].mxu1 }
 0xcdc   :  { %v15617_v18 = vpop.f32.mrb[141].mxu1 }
 0xcdd   :  { %15581 = vmatmul.mubr.msk.f32.gmra.mrb[132].mxu0 %vm956_vm1, %v17314_v17  ;;  %v7052_v33 = vpop.f32.mrb[142].mxu1 }
 0xcde   :  { %v16527_v26 = vpack.c.bf16 %v7052_v33, %v7049_v22  ;;  %v15618_v29 = vpop.f32.mrb[143].mxu1  ;;  %15583 = vmatprep.mubr.msk.f32.mxu0 %vm17414_vm0, %v17415_v1 }
 0xce0   :  { %16528 = vmatpush3.bf16.msra.mxu0 %v16527_v26  ;;  %v17326_v26 = vld [vmem:[#allocation2 + $0x230] sm:$0xff] }
 0xce1   :  { %15584 = vmatmul.mubr.msk.f32.gmra.mrb[134].mxu0 %vm956_vm1, %v17315_v47  ;;  %16529 = vmatprep.subr.bf16.mxu0 %v17413_v0 }
 0xce2   :  { %15586 = vmatprep.mubr.msk.f32.mxu0 %vm17414_vm0, %v17415_v1 }
 0xce3   :  { %v7057_v49 = vpop.f32.mrb[144].mxu1 }
 0xce4   :  { %v15621_v36 = vpop.f32.mrb[145].mxu1 }
 0xce5   :  { %15587 = vmatmul.mubr.msk.f32.gmra.mrb[136].mxu0 %vm956_vm1, %v17316_v6  ;;  %v7060_v59 = vpop.f32.mrb[146].mxu1  ;;  %v17327_v6 = vld [vmem:[#allocation2 + $0x238] sm:$0xff] }
 0xce6   :  { %v16530_v55 = vpack.c.bf16 %v7060_v59, %v7057_v49  ;;  %v15622_v3 = vpop.f32.mrb[147].mxu1  ;;  %15589 = vmatprep.mubr.msk.f32.mxu0 %vm17414_vm0, %v17415_v1 }
 0xce8   :  { %16531 = vmatpush3.bf16.msra.mxu0 %v16530_v55 }
 0xce9   :  { %15590 = vmatmul.mubr.msk.f32.gmra.mrb[138].mxu0 %vm956_vm1, %v17317_v16  ;;  %16532 = vmatprep.subr.bf16.mxu0 %v17413_v0 }
 0xcea   :  { %15592 = vmatprep.mubr.msk.f32.mxu0 %vm17414_vm0, %v17415_v1 }
 0xceb   :  { %v7065_v27 = vpop.f32.mrb[148].mxu1 }
 0xcec   :  { %v15625_v38 = vpop.f32.mrb[149].mxu1 }
 0xced   :  { %15593 = vmatmul.mubr.msk.f32.gmra.mrb[140].mxu0 %vm956_vm1, %v17318_v7  ;;  %v7068_v51 = vpop.f32.mrb[150].mxu1 }
 0xcee   :  { %v16533_v30 = vpack.c.bf16 %v7068_v51, %v7065_v27  ;;  %v15626_v5 = vpop.f32.mrb[151].mxu1  ;;  %15649 = vmatprep.mubr.msk.f32.mxu0 %vm17414_vm0, %v17415_v1 }
 0xcf0   :  { %16534 = vmatpush3.bf16.msra.mxu0 %v16533_v30 }
 0xcf1   :  { %15647 = vmatprep.subr.mxu0 %v17415_v1 }
 0xcf3   :  { %v7073_v50 = vpop.f32.mrb[152].mxu1 }
 0xcf4   :  { %v15629_v20 = vpop.f32.mrb[153].mxu1  ;;  %15648 = vmatpush3.msra.mxu0 %v7073_v50  ;;  %v17328_v50 = vld [vmem:[#allocation2 + $0x240] sm:$0xff] }
 0xcf5   :  { %v7076_v57 = vpop.f32.mrb[154].mxu1  ;;  %15650 = vmatmul.mubr.msk.f32.vlgmr.msra.gmra.mrb[142].mxu0 %vm956_vm1, %v17319_v32  ;;  %16535 = vmatprep.subr.bf16.mxu0 %v17413_v0 }
 0xcf6   :  { %v15630_v37 = vpop.f32.mrb[155].mxu1  ;;  %15652 = vmatprep.mubr.msk.f32.mxu0 %vm17414_vm0, %v17415_v1 }
 0xcf7   :  { %v17329_v37 = vld [vmem:[#allocation2 + $0x248] sm:$0xff] }
 0xcf9   :  { %15653 = vmatmul.mubr.msk.f32.gmra.mrb[144].mxu0 %vm956_vm1, %v17320_v4 }
 0xcfa   :  { %15655 = vmatprep.mubr.msk.f32.mxu0 %vm17414_vm0, %v17415_v1 }
 0xcfb   :  { %v7297_v61 = vpop.f32.mrb[156].mxu1 }
 0xcfc   :  { %v15694_v19 = vpop.f32.mrb[157].mxu1 }
 0xcfd   :  { %15656 = vmatmul.mubr.msk.f32.gmra.mrb[146].mxu0 %vm956_vm1, %v17321_v21  ;;  %v7300_v14 = vpop.f32.mrb[158].mxu1  ;;  %v17331_v21 = vld [vmem:[#allocation2 + $0x258] sm:$0xff] }
 0xcfe   :  { %v16536_v54 = vpack.c.bf16 %v7300_v14, %v7297_v61  ;;  %v15695_v25 = vpop.f32.mrb[159].mxu1  ;;  %15658 = vmatprep.mubr.msk.f32.mxu0 %vm17414_vm0, %v17415_v1 }
 0xcff   :  { %v17332_v25 = vld [vmem:[#allocation2 + $0x260] sm:$0xff] }
 0xd00   :  { %v5865_v62 = vpop.f32.mrb[52].mxu0  ;;  %16537 = vmatpush3.bf16.msra.mxu0 %v16536_v54 }
 0xd01   :  { %v20062_v63 = vadd.f32 %v5865_v62, %v19788_v53  ;;  %15659 = vmatmul.mubr.msk.f32.gmra.mrb[148].mxu0 %vm956_vm1, %v17322_v34  ;;  %v15246_v24 = vpop.f32.mrb[53].mxu0  ;;  %16538 = vmatprep.subr.bf16.mxu0 %v17413_v0 }
 0xd02   :  { %15661 = vmatprep.mubr.msk.f32.mxu0 %vm17414_vm0, %v17415_v1  ;;  %v17333_v24 = vld [vmem:[#allocation2 + $0x268] sm:$0xff] }
 0xd03   :  { %v7305_v48 = vpop.f32.mrb[160].mxu1 }
 0xd04   :  { %v5870_v56 = vpop.f32.mrb[54].mxu0  ;;  %v15698_v10 = vpop.f32.mrb[161].mxu1 }
 0xd05   :  { %v20069_v44 = vadd.f32 %v5870_v56, %v19797_v60  ;;  %15662 = vmatmul.mubr.msk.f32.gmra.mrb[150].mxu0 %vm956_vm1, %v17323_v31  ;;  %v7308_v53 = vpop.f32.mrb[162].mxu1  ;;  %v15249_v58 = vpop.f32.mrb[55].mxu0 }
 0xd06   :  { %v16539_v2 = vpack.c.bf16 %v7308_v53, %v7305_v48  ;;  %v15699_v23 = vpop.f32.mrb[163].mxu1  ;;  %15664 = vmatprep.mubr.msk.f32.mxu0 %vm17414_vm0, %v17415_v1 }
 0xd08   :  { %v5875_v12 = vpop.f32.mrb[56].mxu0  ;;  %16540 = vmatpush3.bf16.msra.mxu0 %v16539_v2  ;;  %v17335_v2 = vld [vmem:[#allocation2 + $0x278] sm:$0xff] }
 0xd09   :  { %v20075_v46 = vadd.f32 %v5875_v12, %v19803_v11  ;;  %15665 = vmatmul.mubr.msk.f32.gmra.mrb[152].mxu0 %vm956_vm1, %v17324_v13  ;;  %v15252_v60 = vpop.f32.mrb[57].mxu0  ;;  %16541 = vmatprep.subr.bf16.mxu0 %v17413_v0  ;;  %v17336_v13 = vld [vmem:[#allocation2 + $0x280] sm:$0xff] }
 0xd0a   :  { %15667 = vmatprep.mubr.msk.f32.mxu0 %vm17414_vm0, %v17415_v1 }
 0xd0b   :  { %v7313_v42 = vpop.f32.mrb[164].mxu1 }
 0xd0c   :  { %v5880_v41 = vpop.f32.mrb[60].mxu0  ;;  %v15702_v28 = vpop.f32.mrb[165].mxu1 }
 0xd0d   :  { %v20082_v52 = vadd.f32 %v5880_v41, %v19812_v43  ;;  %15668 = vmatmul.mubr.msk.f32.gmra.mrb[156].mxu0 %vm956_vm1, %v17325_v45  ;;  %v7316_v11 = vpop.f32.mrb[166].mxu1  ;;  %v15255_v9 = vpop.f32.mrb[61].mxu0 }
 0xd0e   :  { %v16542_v22 = vpack.c.bf16 %v7316_v11, %v7313_v42  ;;  %v15703_v18 = vpop.f32.mrb[167].mxu1  ;;  %15670 = vmatprep.mubr.msk.f32.mxu0 %vm17414_vm0, %v17415_v1 }
 0xd10   :  { %v5885_v17 = vpop.f32.mrb[62].mxu0  ;;  %16543 = vmatpush3.bf16.msra.mxu0 %v16542_v22 }
 0xd11   :  { %v20088_v33 = vadd.f32 %v5885_v17, %v19815_v8  ;;  %15671 = vmatmul.mubr.msk.f32.gmra.mrb[158].mxu0 %vm956_vm1, %v17326_v26  ;;  %v15258_v43 = vpop.f32.mrb[63].mxu0  ;;  %16544 = vmatprep.subr.bf16.mxu0 %v17413_v0 }
 0xd12   :  { %15673 = vmatprep.mubr.msk.f32.mxu0 %vm17414_vm0, %v17415_v1 }
 0xd13   :  { %v7321_v29 = vpop.f32.mrb[168].mxu1 }
 0xd14   :  { %v5890_v47 = vpop.f32.mrb[64].mxu0  ;;  %v15706_v49 = vpop.f32.mrb[169].mxu1 }
 0xd15   :  { %v20095_v36 = vadd.f32 %v5890_v47, %v19820_v35  ;;  %15674 = vmatmul.mubr.msk.f32.gmra.mrb[160].mxu0 %vm956_vm1, %v17327_v6  ;;  %v7324_v8 = vpop.f32.mrb[170].mxu1  ;;  %v15261_v59 = vpop.f32.mrb[65].mxu0 }
 0xd16   :  { %v16545_v55 = vpack.c.bf16 %v7324_v8, %v7321_v29  ;;  %v15707_v3 = vpop.f32.mrb[171].mxu1  ;;  %15730 = vmatprep.mubr.msk.f32.mxu0 %vm17414_vm0, %v17415_v1 }
 0xd18   :  { %v5895_v16 = vpop.f32.mrb[66].mxu0  ;;  %16546 = vmatpush3.bf16.msra.mxu0 %v16545_v55 }
 0xd19   :  { %v5915_v27 = vadd.f32 %v5895_v16, %v19825_v15  ;;  %v15264_v38 = vpop.f32.mrb[67].mxu0  ;;  %15728 = vmatprep.subr.mxu0 %v17415_v1 }
 0xd1b   :  { %v7329_v7 = vpop.f32.mrb[176].mxu1 }
 0xd1c   :  { %v5900_v35 = vpop.f32.mrb[68].mxu0  ;;  %v15710_v51 = vpop.f32.mrb[177].mxu1  ;;  %15729 = vmatpush3.msra.mxu0 %v7329_v7 }
 0xd1d   :  { %v5916_v30 = vadd.f32 %v5900_v35, %v19834_v40  ;;  %v7332_v5 = vpop.f32.mrb[178].mxu1  ;;  %15731 = vmatmul.mubr.msk.f32.vlgmr.msra.gmra.mrb[162].mxu0 %vm956_vm1, %v17328_v50  ;;  %v15267_v20 = vpop.f32.mrb[69].mxu0  ;;  %v17330_v40 = vld [vmem:[#allocation2 + $0x250] sm:$0xff] }
 0xd1e   :  { %v15711_v57 = vpop.f32.mrb[179].mxu1  ;;  %15733 = vmatprep.mubr.msk.f32.mxu0 %vm17414_vm0, %v17415_v1 }
 0xd20   :  { %v5905_v32 = vpop.f32.mrb[70].mxu0 }
 0xd21   :  { %v5917_v15 = vadd.f32 %v5905_v32, %v19840_v39  ;;  %15734 = vmatmul.mubr.msk.f32.gmra.mrb[164].mxu0 %vm956_vm1, %v17329_v37  ;;  %v15270_v4 = vpop.f32.mrb[71].mxu0 }
 0xd22   :  { %15736 = vmatprep.mubr.msk.f32.mxu0 %vm17414_vm0, %v17415_v1 }
 0xd25   :  { %15737 = vmatmul.mubr.msk.f32.gmra.mrb[166].mxu0 %vm956_vm1, %v17330_v40 }
 0xd26   :  { %15739 = vmatprep.mubr.msk.f32.mxu0 %vm17414_vm0, %v17415_v1 }
 0xd28   :  { %v6121_v61 = vpop.f32.mrb[72].mxu0 }
 0xd29   :  { %v6165_v19 = vadd.f32 %v6121_v61, %v20062_v63  ;;  %15740 = vmatmul.mubr.msk.f32.gmra.mrb[168].mxu0 %vm956_vm1, %v17331_v21  ;;  %v15327_v39 = vpop.f32.mrb[73].mxu0 }
 0xd2a   :  { %15742 = vmatprep.mubr.msk.f32.mxu0 %vm17414_vm0, %v17415_v1 }
 0xd2c   :  { %v6126_v14 = vpop.f32.mrb[74].mxu0 }
 0xd2d   :  { %v6166_v54 = vadd.f32 %v6126_v14, %v20069_v44  ;;  %15743 = vmatmul.mubr.msk.f32.gmra.mrb[170].mxu0 %vm956_vm1, %v17332_v25  ;;  %v15330_v62 = vpop.f32.mrb[75].mxu0  ;;  %v17334_v44 = vld [vmem:[#allocation2 + $0x270] sm:$0xff] }
 0xd2e   :  { %15745 = vmatprep.mubr.msk.f32.mxu0 %vm17414_vm0, %v17415_v1 }
 0xd30   :  { %v6131_v34 = vpop.f32.mrb[76].mxu0 }
 0xd31   :  { %v6167_v63 = vadd.f32 %v6131_v34, %v20075_v46  ;;  %15746 = vmatmul.mubr.msk.f32.gmra.mrb[172].mxu0 %vm956_vm1, %v17333_v24  ;;  %v15333_v48 = vpop.f32.mrb[77].mxu0 }
 0xd32   :  { %15748 = vmatprep.mubr.msk.f32.mxu0 %vm17414_vm0, %v17415_v1 }
 0xd34   :  { %v6136_v56 = vpop.f32.mrb[78].mxu0 }
 0xd35   :  { %v6168_v10 = vadd.f32 %v6136_v56, %v20082_v52  ;;  %15749 = vmatmul.mubr.msk.f32.gmra.mrb[174].mxu0 %vm956_vm1, %v17334_v44  ;;  %v15336_v31 = vpop.f32.mrb[79].mxu0 }
 0xd36   :  { %15751 = vmatprep.mubr.msk.f32.mxu0 %vm17414_vm0, %v17415_v1 }
 0xd38   :  { %v6141_v53 = vpop.f32.mrb[58].mxu0 }
 0xd39   :  { %v6169_v58 = vadd.f32 %v6141_v53, %v20088_v33  ;;  %15752 = vmatmul.mubr.msk.f32.gmra.mrb[176].mxu0 %vm956_vm1, %v17335_v2  ;;  %v15339_v23 = vpop.f32.mrb[59].mxu0 }
 0xd3a   :  { %15754 = vmatprep.mubr.msk.f32.mxu0 %vm17414_vm0, %v17415_v1 }
 0xd3c   :  { %v6146_v12 = vpop.f32.mrb[80].mxu0 }
 0xd3d   :  { %v6170_v46 = vadd.f32 %v6146_v12, %v20095_v36  ;;  %15755 = vmatmul.mubr.msk.f32.gmra.mrb[178].mxu0 %vm956_vm1, %v17336_v13  ;;  %v15342_v60 = vpop.f32.mrb[81].mxu0 }
 0xd40   :  { %v6151_v42 = vpop.f32.mrb[82].mxu0 }
 0xd41   :  { %v6171_v41 = vadd.f32 %v6151_v42, %v5915_v27  ;;  %v15345_v28 = vpop.f32.mrb[83].mxu0 }
 0xd42   :  { %v7590_v28 = vld [vmem:[#allocation5 + $0x20] sm:$0xff] }
 0xd43   :  { %15799 = vmatprep.mubr.msk.f32.mxu0 %vm956_vm1, %v7590_v28 }
 0xd44   :  { %v6156_v52 = vpop.f32.mrb[84].mxu0 }
 0xd45   :  { %v6172_v45 = vadd.f32 %v6156_v52, %v5916_v30  ;;  %v15348_v11 = vpop.f32.mrb[85].mxu0 }
 0xd48   :  { %v6161_v9 = vpop.f32.mrb[86].mxu0 }
 0xd49   :  { %v6173_v22 = vadd.f32 %v6161_v9, %v5917_v15  ;;  %v15351_v18 = vpop.f32.mrb[87].mxu0 }
 0xd50   :  { %v6377_v17 = vpop.f32.mrb[88].mxu0 }
 0xd51   :  { %v6421_v33 = vadd.f32 %v6377_v17, %v6165_v19  ;;  %v15408_v26 = vpop.f32.mrb[89].mxu0 }
 0xd54   :  { %v6382_v43 = vpop.f32.mrb[90].mxu0 }
 0xd55   :  { %v6422_v29 = vadd.f32 %v6382_v43, %v6166_v54  ;;  %v15411_v47 = vpop.f32.mrb[91].mxu0 }
 0xd58   :  { %v6387_v49 = vpop.f32.mrb[92].mxu0 }
 0xd59   :  { %v6423_v36 = vadd.f32 %v6387_v49, %v6167_v63  ;;  %v15414_v6 = vpop.f32.mrb[93].mxu0 }
 0xd5c   :  { %v6392_v8 = vpop.f32.mrb[94].mxu0 }
 0xd5d   :  { %v6424_v59 = vadd.f32 %v6392_v8, %v6168_v10  ;;  %v15417_v55 = vpop.f32.mrb[95].mxu0 }
 0xd60   :  { %v6397_v3 = vpop.f32.mrb[96].mxu0 }
 0xd61   :  { %v6425_v16 = vadd.f32 %v6397_v3, %v6169_v58  ;;  %v15420_v27 = vpop.f32.mrb[97].mxu0 }
 0xd64   :  { %v6402_v38 = vpop.f32.mrb[98].mxu0 }
 0xd65   :  { %v6426_v7 = vadd.f32 %v6402_v38, %v6170_v46  ;;  %v15423_v35 = vpop.f32.mrb[99].mxu0 }
 0xd68   :  { %v6407_v51 = vpop.f32.mrb[100].mxu0 }
 0xd69   :  { %v6427_v30 = vadd.f32 %v6407_v51, %v6171_v41  ;;  %v15426_v5 = vpop.f32.mrb[101].mxu0  ;;  %v7488_v41 = vld [vmem:[#allocation5] sm:$0xff] }
 0xd6a   :  { %15775 = vmatprep.mubr.msk.f32.mxu1 %vm956_vm1, %v7488_v41 }
 0xd6c   :  { %v6412_v50 = vpop.f32.mrb[102].mxu0 }
 0xd6d   :  { %v6428_v20 = vadd.f32 %v6412_v50, %v6172_v45  ;;  %v15429_v57 = vpop.f32.mrb[103].mxu0 }
 0xd70   :  { %v6417_v32 = vpop.f32.mrb[104].mxu0 }
 0xd71   :  { %v6429_v15 = vadd.f32 %v6417_v32, %v6173_v22  ;;  %v15432_v37 = vpop.f32.mrb[105].mxu0 }
 0xd78   :  { %v6633_v4 = vpop.f32.mrb[106].mxu0 }
 0xd79   :  { %v6677_v40 = vadd.f32 %v6633_v4, %v6421_v33  ;;  %v15489_v61 = vpop.f32.mrb[107].mxu0 }
 0xd7c   :  { %v6638_v19 = vpop.f32.mrb[108].mxu0 }
 0xd7d   :  { %v6678_v21 = vadd.f32 %v6638_v19, %v6422_v29  ;;  %v15492_v39 = vpop.f32.mrb[109].mxu0 }
 0xd80   :  { %v6643_v14 = vpop.f32.mrb[110].mxu0 }
 0xd81   :  { %v6679_v54 = vadd.f32 %v6643_v14, %v6423_v36  ;;  %v15495_v25 = vpop.f32.mrb[111].mxu0 }
 0xd84   :  { %v6648_v62 = vpop.f32.mrb[112].mxu0 }
 0xd85   :  { %v6680_v34 = vadd.f32 %v6648_v62, %v6424_v59  ;;  %v15498_v63 = vpop.f32.mrb[113].mxu0 }
 0xd88   :  { %v6653_v24 = vpop.f32.mrb[114].mxu0 }
 0xd89   :  { %v6681_v48 = vadd.f32 %v6653_v24, %v6425_v16  ;;  %v15501_v56 = vpop.f32.mrb[115].mxu0 }
 0xd8c   :  { %v6658_v10 = vpop.f32.mrb[116].mxu0 }
 0xd8d   :  { %v6682_v44 = vadd.f32 %v6658_v10, %v6426_v7  ;;  %v15504_v31 = vpop.f32.mrb[117].mxu0 }
 0xd90   :  { %v6663_v53 = vpop.f32.mrb[118].mxu0 }
 0xd91   :  { %v6683_v58 = vadd.f32 %v6663_v53, %v6427_v30  ;;  %v15507_v2 = vpop.f32.mrb[119].mxu0 }
 0xd94   :  { %v6668_v23 = vpop.f32.mrb[120].mxu0 }
 0xd95   :  { %v6684_v12 = vadd.f32 %v6668_v23, %v6428_v20  ;;  %v15510_v46 = vpop.f32.mrb[121].mxu0 }
 0xd98   :  { %v6673_v13 = vpop.f32.mrb[122].mxu0 }
 0xd99   :  { %v6685_v60 = vadd.f32 %v6673_v13, %v6429_v15  ;;  %v15513_v42 = vpop.f32.mrb[123].mxu0 }
 0xda0   :  { %v6889_v52 = vpop.f32.mrb[124].mxu0 }
 0xda1   :  { %v6933_v45 = vadd.f32 %v6889_v52, %v6677_v40  ;;  %v15570_v11 = vpop.f32.mrb[125].mxu0 }
 0xda4   :  { %v6894_v9 = vpop.f32.mrb[126].mxu0 }
 0xda5   :  { %v6934_v22 = vadd.f32 %v6894_v9, %v6678_v21  ;;  %v15573_v18 = vpop.f32.mrb[127].mxu0 }
 0xda8   :  { %v6899_v17 = vpop.f32.mrb[128].mxu0 }
 0xda9   :  { %v6935_v33 = vadd.f32 %v6899_v17, %v6679_v54  ;;  %v15576_v26 = vpop.f32.mrb[129].mxu0 }
 0xdac   :  { %v6904_v43 = vpop.f32.mrb[130].mxu0 }
 0xdad   :  { %v6936_v29 = vadd.f32 %v6904_v43, %v6680_v34  ;;  %v15579_v47 = vpop.f32.mrb[131].mxu0 }
 0xdb0   :  { %v6909_v49 = vpop.f32.mrb[132].mxu0 }
 0xdb1   :  { %v6937_v36 = vadd.f32 %v6909_v49, %v6681_v48  ;;  %v15582_v6 = vpop.f32.mrb[133].mxu0 }
 0xdb4   :  { %v6914_v8 = vpop.f32.mrb[134].mxu0 }
 0xdb5   :  { %v6938_v59 = vadd.f32 %v6914_v8, %v6682_v44  ;;  %v15585_v55 = vpop.f32.mrb[135].mxu0 }
 0xdb8   :  { %v6919_v3 = vpop.f32.mrb[136].mxu0 }
 0xdb9   :  { %v6939_v16 = vadd.f32 %v6919_v3, %v6683_v58  ;;  %v15588_v27 = vpop.f32.mrb[137].mxu0 }
 0xdbc   :  { %v6924_v38 = vpop.f32.mrb[138].mxu0 }
 0xdbd   :  { %v6940_v7 = vadd.f32 %v6924_v38, %v6684_v12  ;;  %v15591_v35 = vpop.f32.mrb[139].mxu0  ;;  %v20142_v12 = vld [vmem:[%s20794_s8] ss:$0 sm:$0xff] }
 0xdc0   :  { %v6929_v51 = vpop.f32.mrb[140].mxu0 }
 0xdc1   :  { %v6941_v30 = vadd.f32 %v6929_v51, %v6685_v60  ;;  %v15594_v5 = vpop.f32.mrb[141].mxu0 }
 0xdc8   :  { %v7145_v50 = vpop.f32.mrb[142].mxu0 }
 0xdc9   :  { %v7189_v20 = vadd.f32 %v7145_v50, %v6933_v45  ;;  %v15651_v57 = vpop.f32.mrb[143].mxu0 }
 0xdcc   :  { %v7150_v32 = vpop.f32.mrb[144].mxu0 }
 0xdcd   :  { %v7190_v15 = vadd.f32 %v7150_v32, %v6934_v22  ;;  %v15654_v37 = vpop.f32.mrb[145].mxu0 }
 0xdd0   :  { %v7155_v4 = vpop.f32.mrb[146].mxu0 }
 0xdd1   :  { %v7191_v40 = vadd.f32 %v7155_v4, %v6935_v33  ;;  %v15657_v61 = vpop.f32.mrb[147].mxu0 }
 0xdd4   :  { %v7160_v19 = vpop.f32.mrb[148].mxu0 }
 0xdd5   :  { %v7192_v21 = vadd.f32 %v7160_v19, %v6936_v29  ;;  %v15660_v39 = vpop.f32.mrb[149].mxu0 }
 0xdd8   :  { %v7165_v14 = vpop.f32.mrb[150].mxu0 }
 0xdd9   :  { %v7193_v54 = vadd.f32 %v7165_v14, %v6937_v36  ;;  %v15663_v25 = vpop.f32.mrb[151].mxu0 }
 0xddc   :  { %v7170_v62 = vpop.f32.mrb[152].mxu0 }
 0xddd   :  { %v7194_v34 = vadd.f32 %v7170_v62, %v6938_v59  ;;  %v15666_v63 = vpop.f32.mrb[153].mxu0 }
 0xde0   :  { %v7175_v24 = vpop.f32.mrb[156].mxu0 }
 0xde1   :  { %v7195_v48 = vadd.f32 %v7175_v24, %v6939_v16  ;;  %v15669_v56 = vpop.f32.mrb[157].mxu0 }
 0xde4   :  { %v7180_v10 = vpop.f32.mrb[158].mxu0 }
 0xde5   :  { %v7196_v44 = vadd.f32 %v7180_v10, %v6940_v7  ;;  %v15672_v31 = vpop.f32.mrb[159].mxu0 }
 0xde8   :  { %v7185_v53 = vpop.f32.mrb[160].mxu0 }
 0xde9   :  { %v20137_v58 = vadd.f32 %v7185_v53, %v6941_v30  ;;  %v15675_v2 = vpop.f32.mrb[161].mxu0  ;;  %v7489_v53 = vld [vmem:[#allocation5 + $0x8] sm:$0xff] }
 0xdea   :  { %v7591_v2 = vld [vmem:[#allocation5 + $0x28] sm:$0xff] }
 0xdf0   :  { %v7401_v23 = vpop.f32.mrb[162].mxu0 }
 0xdf1   :  { %v7445_v46 = vadd.f32 %v7401_v23, %v7189_v20  ;;  %v15732_v13 = vpop.f32.mrb[163].mxu0  ;;  %v7592_v23 = vld [vmem:[#allocation5 + $0x30] sm:$0xff] }
 0xdf2   :  { %v7696_v13 = vld [vmem:[#allocation5 + $0x40] sm:$0xff] }
 0xdf3   :  { %v7461_v60 = vadd.f32 %v20142_v12, %v7445_v46  ;;  %v7593_v46 = vld [vmem:[#allocation5 + $0x38] sm:$0xff] }
 0xdf4   :  { %v7406_v42 = vpop.f32.mrb[164].mxu0 }
 0xdf5   :  { %v7446_v41 = vadd.f32 %v7406_v42, %v7190_v15  ;;  %v15735_v28 = vpop.f32.mrb[165].mxu0  ;;  %v7470_v52 = vmul.f32 0.2, %v7461_v60  ;;  %v7697_v42 = vld [vmem:[#allocation5 + $0x48] sm:$0xff] }
 0xdf6   :  { %v7698_v28 = vld [vmem:[#allocation5 + $0x50] sm:$0xff] }
 0xdf7   :  { %v7462_v45 = vadd.f32 %v20142_v12, %v7446_v41  ;;  %v7479_v17 = vmax.f32 %v7461_v60, %v7470_v52  ;;  %v7802_v60 = vld [vmem:[#allocation5 + $0x60] sm:$0xff]  ;;  %v7803_v41 = vld [vmem:[#allocation5 + $0x68] sm:$0xff]  ;;  %v7804_v52 = vld [vmem:[#allocation5 + $0x70] sm:$0xff] }
 0xdf8   :  { %v7411_v11 = vpop.f32.mrb[166].mxu0 }
 0xdf9   :  { %v7471_v9 = vmul.f32 0.2, %v7462_v45  ;;  %v7447_v22 = vadd.f32 %v7411_v11, %v7191_v40  ;;  %v15738_v18 = vpop.f32.mrb[167].mxu0  ;;  %v7805_v11 = vld [vmem:[#allocation5 + $0x78] sm:$0xff] }
 0xdfa   :  { %v17213_v18 = vld [vmem:[%s20795_s9 + $0x28] sm:$0xff]  }
 0xdfb   :  { %v7480_v33 = vmax.f32 %v7462_v45, %v7471_v9  ;;  %v7463_v26 = vadd.f32 %v20142_v12, %v7447_v22  ;;  %v7699_v45 = vld [vmem:[#allocation5 + $0x58] sm:$0xff] }
 0xdfc   :  { %v7416_v43 = vpop.f32.mrb[168].mxu0  ;;  %v17211_v9 = vld [vmem:[%s20795_s9 + $0x20] sm:$0xff]  }
 0xdfd   :  { %v20147_v29 = vpack.c.bf16 %v7480_v33, %v7479_v17  ;;  %v7448_v47 = vadd.f32 %v7416_v43, %v7192_v21  ;;  %v15741_v49 = vpop.f32.mrb[169].mxu0  ;;  %v7472_v36 = vmul.f32 0.2, %v7463_v26  ;;  %v17212_v22 = vld [vmem:[%s20795_s9] sm:$0xff]   ;;  %v17214_v17 = vld [vmem:[%s20795_s9 + $0x8] sm:$0xff]   ;;  %v17215_v33 = vld [vmem:[%s20795_s9 + $0x30] sm:$0xff]  }
 0xdfe   :  { %v17217_v43 = vld [vmem:[%s20795_s9 + $0x38] sm:$0xff]  }
 0xdff   :  { %v7464_v6 = vadd.f32 %v20142_v12, %v7448_v47  ;;  %16548 = vmatprep.subr.bf16.mxu1 %v20147_v29  ;;  %16564 = vmatprep.subr.bf16.mxu0 %v20147_v29  ;;  %v7481_v16 = vmax.f32 %v7463_v26, %v7472_v36  ;;  %v17216_v26 = vld [vmem:[%s20795_s9 + $0x10] sm:$0xff]   ;;  %v17219_v47 = vld [vmem:[%s20795_s9 + $0x40] sm:$0xff]  }
 0xe00   :  { %v7421_v8 = vpop.f32.mrb[170].mxu0  ;;  %16550 = vmatpush3.bf16.msra.mxu1 %v20147_v29  ;;  %16566 = vmatpush3.bf16.msra.mxu0 %v20147_v29 }
 0xe01   :  { %v7473_v59 = vmul.f32 0.2, %v7464_v6  ;;  %v7449_v55 = vadd.f32 %v7421_v8, %v7193_v54  ;;  %v15744_v3 = vpop.f32.mrb[171].mxu0 }
 0xe03   :  { %v7482_v27 = vmax.f32 %v7464_v6, %v7473_v59  ;;  %v7465_v38 = vadd.f32 %v20142_v12, %v7449_v55 }
 0xe04   :  { %v7426_v7 = vpop.f32.mrb[172].mxu0 }
 0xe05   :  { %v20155_v35 = vpack.c.bf16 %v7482_v27, %v7481_v16  ;;  %v7450_v51 = vadd.f32 %v7426_v7, %v7194_v34  ;;  %v15747_v30 = vpop.f32.mrb[173].mxu0  ;;  %v7474_v5 = vmul.f32 0.2, %v7465_v38 }
 0xe07   :  { %v7466_v50 = vadd.f32 %v20142_v12, %v7450_v51  ;;  %16552 = vmatprep.subr.bf16.mxu1 %v20155_v35  ;;  %16568 = vmatprep.subr.bf16.mxu0 %v20155_v35  ;;  %v7483_v37 = vmax.f32 %v7465_v38, %v7474_v5 }
 0xe08   :  { %v7431_v20 = vpop.f32.mrb[174].mxu0  ;;  %16554 = vmatpush3.bf16.msra.mxu1 %v20155_v35  ;;  %16570 = vmatpush3.bf16.msra.mxu0 %v20155_v35 }
 0xe09   :  { %v7475_v57 = vmul.f32 0.2, %v7466_v50  ;;  %v7451_v32 = vadd.f32 %v7431_v20, %v7195_v48  ;;  %v15750_v15 = vpop.f32.mrb[175].mxu0 }
 0xe0b   :  { %v7484_v4 = vmax.f32 %v7466_v50, %v7475_v57  ;;  %v7467_v40 = vadd.f32 %v20142_v12, %v7451_v32 }
 0xe0c   :  { %v7436_v61 = vpop.f32.mrb[176].mxu0 }
 0xe0d   :  { %v16555_v19 = vpack.c.bf16 %v7484_v4, %v7483_v37  ;;  %v7452_v21 = vadd.f32 %v7436_v61, %v7196_v44  ;;  %v15753_v39 = vpop.f32.mrb[177].mxu0  ;;  %v7476_v14 = vmul.f32 0.2, %v7467_v40 }
 0xe0f   :  { %v7468_v54 = vadd.f32 %v20142_v12, %v7452_v21  ;;  %16556 = vmatprep.subr.bf16.mxu1 %v16555_v19  ;;  %16572 = vmatprep.subr.bf16.mxu0 %v16555_v19  ;;  %v7485_v24 = vmax.f32 %v7467_v40, %v7476_v14 }
 0xe10   :  { %v7441_v25 = vpop.f32.mrb[178].mxu0  ;;  %16558 = vmatpush3.bf16.msra.mxu1 %v16555_v19  ;;  %16574 = vmatpush3.bf16.msra.mxu0 %v16555_v19 }
 0xe11   :  { %v7477_v62 = vmul.f32 0.2, %v7468_v54  ;;  %v7453_v34 = vadd.f32 %v7441_v25, %v20137_v58  ;;  %v15756_v63 = vpop.f32.mrb[179].mxu0  ;;  %v7490_v58 = vld [vmem:[#allocation5 + $0x10] sm:$0xff] }
 0xe12   :  { %v17222_v63 = vld [vmem:[%s20795_s9 + $0x58] sm:$0xff]  }
 0xe13   :  { %v7486_v48 = vmax.f32 %v7468_v54, %v7477_v62  ;;  %v7469_v56 = vadd.f32 %v20142_v12, %v7453_v34  ;;  %v7491_v12 = vld [vmem:[#allocation5 + $0x18] sm:$0xff]  ;;  %v17220_v62 = vld [vmem:[%s20795_s9 + $0x48] sm:$0xff]   ;;  %v17221_v34 = vld [vmem:[%s20795_s9 + $0x50] sm:$0xff]  }
 0xe15   :  { %v16559_v10 = vpack.c.bf16 %v7486_v48, %v7485_v24  ;;  %v7478_v31 = vmul.f32 0.2, %v7469_v56  ;;  %v17223_v24 = vld [vmem:[%s20795_s9 + $0x60] sm:$0xff]   ;;  %v17224_v48 = vld [vmem:[%s20795_s9 + $0x68] sm:$0xff]  }
 0xe17   :  { %v7487_v44 = vmax.f32 %v7469_v56, %v7478_v31  ;;  %16560 = vmatprep.subr.bf16.mxu1 %v16559_v10  ;;  %16576 = vmatprep.subr.bf16.mxu0 %v16559_v10  ;;  %v17225_v56 = vld [vmem:[%s20795_s9 + $0x70] sm:$0xff]   ;;  %v17227_v31 = vld [vmem:[%s20795_s9 + $0xa0] sm:$0xff]  }
 0xe18   :  { %16562 = vmatpush3.bf16.msra.mxu1 %v16559_v10  ;;  %16578 = vmatpush3.bf16.msra.mxu0 %v16559_v10 }
 0xe19   :  { %15773 = vmatprep.subr.mxu1 %v7487_v44  ;;  %15797 = vmatprep.subr.mxu0 %v7487_v44 }
 0xe1c   :  { %15774 = vmatpush3.msra.mxu1 %v7487_v44  ;;  %15798 = vmatpush3.msra.mxu0 %v7487_v44 }
 0xe1d   :  { %16580 = vmatprep.subr.bf16.mxu1 %v20147_v29  ;;  %16596 = vmatprep.subr.bf16.mxu0 %v20147_v29 }
 0xe1e   :  { %15776 = vmatmul.mubr.msk.f32.vlgmr.msra.gmra.mrb[34].mxu1 %vm956_vm1, %v7489_v53  ;;  %15800 = vmatmul.mubr.msk.f32.vlgmr.msra.gmra.mrb[180].mxu0 %vm956_vm1, %v7591_v2  ;;  %v17229_v53 = vld [vmem:[%s20795_s9 + $0xb0] sm:$0xff]   ;;  %v17230_v2 = vld [vmem:[%s20795_s9 + $0xb8] sm:$0xff]  }
 0xe1f   :  { %16582 = vmatpush3.bf16.msra.mxu1 %v20147_v29  ;;  %16598 = vmatpush3.bf16.msra.mxu0 %v20147_v29  ;;  %v17218_v29 = vld [vmem:[%s20795_s9 + $0x18] sm:$0xff]  }
 0xe20   :  { %16584 = vmatprep.subr.bf16.mxu1 %v20155_v35  ;;  %16600 = vmatprep.subr.bf16.mxu0 %v20155_v35 }
 0xe21   :  { %15778 = vmatprep.mubr.msk.f32.mxu1 %vm956_vm1, %v7490_v58  ;;  %15802 = vmatprep.mubr.msk.f32.mxu0 %vm956_vm1, %v7592_v23  ;;  %v17231_v58 = vld [vmem:[%s20795_s9 + $0xc0] sm:$0xff]   ;;  %v17232_v23 = vld [vmem:[%s20795_s9 + $0xc8] sm:$0xff]  }
 0xe22   :  { %15779 = vmatmul.mubr.msk.f32.gmra.mrb[172].mxu1 %vm956_vm1, %v7491_v12  ;;  %15803 = vmatmul.mubr.msk.f32.gmra.mrb[182].mxu0 %vm956_vm1, %v7593_v46  ;;  %v17233_v12 = vld [vmem:[%s20795_s9 + $0xd0] sm:$0xff]   ;;  %v17234_v46 = vld [vmem:[%s20795_s9 + $0xd8] sm:$0xff]  }
 0xe23   :  { %16586 = vmatpush3.bf16.msra.mxu1 %v20155_v35  ;;  %16602 = vmatpush3.bf16.msra.mxu0 %v20155_v35 }
 0xe24   :  { %16588 = vmatprep.subr.bf16.mxu1 %v16555_v19  ;;  %16604 = vmatprep.subr.bf16.mxu0 %v16555_v19 }
 0xe25   :  { %15823 = vmatprep.mubr.msk.f32.mxu1 %vm956_vm1, %v7696_v13  ;;  %15847 = vmatprep.mubr.msk.f32.mxu0 %vm956_vm1, %v7802_v60  ;;  %v17235_v13 = vld [vmem:[%s20795_s9 + $0xe0] sm:$0xff]   ;;  %v17236_v60 = vld [vmem:[%s20795_s9 + $0xe8] sm:$0xff]  }
 0xe27   :  { %16590 = vmatpush3.bf16.msra.mxu1 %v16555_v19  ;;  %16606 = vmatpush3.bf16.msra.mxu0 %v16555_v19 }
 0xe28   :  { %16592 = vmatprep.subr.bf16.mxu1 %v16559_v10  ;;  %16608 = vmatprep.subr.bf16.mxu0 %v16559_v10 }
 0xe2b   :  { %16594 = vmatpush3.bf16.msra.mxu1 %v16559_v10  ;;  %16610 = vmatpush3.bf16.msra.mxu0 %v16559_v10  ;;  %v17226_v10 = vld [vmem:[%s20795_s9 + $0x78] sm:$0xff]  }
 0xe2c   :  { %15821 = vmatprep.subr.mxu1 %v7487_v44  ;;  %15845 = vmatprep.subr.mxu0 %v7487_v44 }
 0xe2f   :  { %15822 = vmatpush3.msra.mxu1 %v7487_v44  ;;  %15846 = vmatpush3.msra.mxu0 %v7487_v44  ;;  %v17228_v44 = vld [vmem:[%s20795_s9 + $0xa8] sm:$0xff]  }
 0xe30   :  { %15824 = vmatmul.mubr.msk.f32.vlgmr.msra.gmra.mrb[180].mxu1 %vm956_vm1, %v7697_v42  ;;  %15848 = vmatmul.mubr.msk.f32.vlgmr.msra.gmra.mrb[184].mxu0 %vm956_vm1, %v7803_v41  ;;  %v17237_v42 = vld [vmem:[%s20795_s9 + $0xf0] sm:$0xff]   ;;  %v17238_v41 = vld [vmem:[%s20795_s9 + $0xf8] sm:$0xff]  }
 0xe31   :  { %15826 = vmatprep.mubr.msk.f32.mxu1 %vm956_vm1, %v7698_v28  ;;  %15850 = vmatprep.mubr.msk.f32.mxu0 %vm956_vm1, %v7804_v52  ;;  %v20307_v28 = vld [vmem:[%s20788_s2 + $0x20] sm:$0xff] }
 0xe32   :  { %15865 = vmatprep.subr.bf16.mxu0 %v17211_v9  ;;  %15853 = vmatprep.subr.bf16.mxu1 %v17212_v22 }
 0xe33   :  { %15866 = vmatpush3.bf16.msra.mxu0 %v17211_v9  ;;  %15854 = vmatpush3.bf16.msra.mxu1 %v17212_v22 }
 0xe34   :  { %15827 = vmatmul.mubr.msk.f32.gmra.mrb[182].mxu1 %vm956_vm1, %v7699_v45  ;;  %15851 = vmatmul.mubr.msk.f32.gmra.mrb[186].mxu0 %vm956_vm1, %v7805_v11 }
 0xe35   :  { %15867 = vmatprep.subr.bf16.mxu0 %v17213_v18  ;;  %15855 = vmatprep.subr.bf16.mxu1 %v17214_v17 }
 0xe37   :  { %15868 = vmatpush3.bf16.msra.mxu0 %v17213_v18  ;;  %15856 = vmatpush3.bf16.msra.mxu1 %v17214_v17 }
 0xe38   :  { %15869 = vmatprep.subr.bf16.mxu0 %v17215_v33  ;;  %15857 = vmatprep.subr.bf16.mxu1 %v17216_v26 }
 0xe3b   :  { %15870 = vmatpush3.bf16.msra.mxu0 %v17215_v33  ;;  %15858 = vmatpush3.bf16.msra.mxu1 %v17216_v26 }
 0xe3c   :  { %15871 = vmatprep.subr.bf16.mxu0 %v17217_v43  ;;  %15859 = vmatprep.subr.bf16.mxu1 %v17218_v29 }
 0xe3f   :  { %15872 = vmatpush3.bf16.msra.mxu0 %v17217_v43  ;;  %15860 = vmatpush3.bf16.msra.mxu1 %v17218_v29 }
 0xe40   :  { %15905 = vmatprep.subr.bf16.mxu0 %v17219_v47 }
 0xef1   :  { %v15777_v49 = vpop.f32.mrb[34].mxu1  ;;  %v15801_v36 = vpop.f32.mrb[180].mxu0 }
 0xef2   :  { %v7692_v6 = vmax.f32 %v15777_v49, %v15801_v36  ;;  %v7570_v8 = vpop.f32.mrb[35].mxu1  ;;  %v7672_v59 = vpop.f32.mrb[181].mxu0  ;;  %v20314_v49 = vld [vmem:[%s20788_s2 + $0x28] sm:$0xff]  ;;  %v20319_v36 = vld [vmem:[%s20788_s2 + $0x30] sm:$0xff] }
 0xef3   :  { %v7691_v55 = vmax.f32 %v7570_v8, %v7672_v59  ;;  %v20333_v59 = vld [vmem:[%s20788_s2] sm:$0xff] }
 0xef5   :  { %v15780_v3 = vpop.f32.mrb[172].mxu1  ;;  %v15804_v16 = vpop.f32.mrb[182].mxu0 }
 0xef6   :  { %v7580_v27 = vpop.f32.mrb[173].mxu1  ;;  %v7694_v38 = vmax.f32 %v15780_v3, %v15804_v16  ;;  %v7682_v7 = vpop.f32.mrb[183].mxu0 }
 0xef7   :  { %v7693_v35 = vmax.f32 %v7580_v27, %v7682_v7 }
 0xf03   :  { %v15825_v51 = vpop.f32.mrb[180].mxu1  ;;  %v15849_v30 = vpop.f32.mrb[184].mxu0 }
 0xf04   :  { %v7798_v5 = vmax.f32 %v7692_v6, %v15825_v51  ;;  %v7778_v50 = vpop.f32.mrb[181].mxu1  ;;  %v7884_v20 = vpop.f32.mrb[185].mxu0  ;;  %v20328_v6 = vld [vmem:[%s20788_s2 + $0x38] sm:$0xff] }
 0xf05   :  { %v7797_v57 = vmax.f32 %v7691_v55, %v7778_v50  ;;  %v20356_v51 = vld [vmem:[%s20788_s2 + $0x18] sm:$0xff]  ;;  %v20375_v50 = vld [vmem:[%s20788_s2 + $0x50] sm:$0xff] }
 0xf06   :  { %v7904_v32 = vmax.f32 %v7798_v5, %v15849_v30  ;;  %v20361_v30 = vld [vmem:[%s20788_s2 + $0x40] sm:$0xff]  ;;  %v20370_v5 = vld [vmem:[%s20788_s2 + $0x48] sm:$0xff] }
 0xf07   :  { %v7903_v15 = vmax.f32 %v7797_v57, %v7884_v20  ;;  %v15828_v37 = vpop.f32.mrb[182].mxu1  ;;  %v15852_v4 = vpop.f32.mrb[186].mxu0  ;;  %v20384_v20 = vld [vmem:[%s20788_s2 + $0x58] sm:$0xff] }
 0xf08   :  { %v7800_v40 = vmax.f32 %v7694_v38, %v15828_v37  ;;  %v7788_v61 = vpop.f32.mrb[183].mxu1  ;;  %v7894_v19 = vpop.f32.mrb[187].mxu0  ;;  %v20342_v38 = vld [vmem:[%s20788_s2 + $0x8] sm:$0xff] }
 0xf09   :  { %v20215_v21 = vpack.c.bf16 %v7904_v32, %v7903_v15  ;;  %v7799_v39 = vmax.f32 %v7693_v35, %v7788_v61  ;;  %v20347_v35 = vld [vmem:[%s20788_s2 + $0x10] sm:$0xff]  ;;  %v20389_v32 = vld [vmem:[%s20788_s2 + $0x60] sm:$0xff] }
 0xf0a   :  { %v7906_v14 = vmax.f32 %v7800_v40, %v15852_v4 }
 0xf0b   :  { %v7905_v54 = vmax.f32 %v7799_v39, %v7894_v19  ;;  %15861 = vmatprep.mubr.msk.bf16.mxu1 %vm7941_vm2, %v20215_v21  ;;  %15873 = vmatprep.mubr.msk.bf16.mxu0 %vm7941_vm2, %v20215_v21  ;;  %v17239_v19 = vld [vmem:[%s20795_s9 + $0x80] sm:$0xff]   ;;  %v20401_v39 = vld [vmem:[%s20788_s2 + $0x68] sm:$0xff] }
 0xf0d   :  { %v20221_v25 = vpack.c.bf16 %v7906_v14, %v7905_v54  ;;  %v20406_v14 = vld [vmem:[%s20788_s2 + $0x70] sm:$0xff]  ;;  %v17240_v54 = vld [vmem:[%s20795_s9 + $0x88] sm:$0xff]  }
 0xf0f   :  { %15862 = vmatmul.mubr.msk.bf16.vlgmr.msra.gmra.mrb[184].mxu1 %vm7941_vm2, %v20221_v25  ;;  %15874 = vmatmul.mubr.msk.bf16.vlgmr.msra.gmra.mrb[188].mxu0 %vm7941_vm2, %v20221_v25 }
 0xf10   :  { %15906 = vmatpush3.bf16.msra.mxu0 %v17219_v47  ;;  %15913 = vmatprep.mubr.msk.bf16.mxu0 %vm7941_vm2, %v20215_v21 }
 0xf11   :  { %15907 = vmatprep.subr.bf16.mxu0 %v17220_v62  ;;  %15885 = vmatprep.mubr.msk.f32.mxu1 %vm8088_vm3, %v20307_v28 }
 0xf14   :  { %15908 = vmatpush3.bf16.msra.mxu0 %v17220_v62  ;;  %v20418_v62 = vld [vmem:[%s20788_s2 + $0x78] sm:$0xff] }
 0xf15   :  { %15909 = vmatprep.subr.bf16.mxu0 %v17221_v34 }
 0xf18   :  { %15910 = vmatpush3.bf16.msra.mxu0 %v17221_v34 }
 0xf19   :  { %15911 = vmatprep.subr.bf16.mxu0 %v17222_v63 }
 0xf1c   :  { %15912 = vmatpush3.bf16.msra.mxu0 %v17222_v63  ;;  %v17241_v63 = vld [vmem:[%s20795_s9 + $0x90] sm:$0xff]  }
 0xf1d   :  { %15931 = vmatprep.subr.bf16.mxu0 %v17223_v24 }
 0xf1f   :  { %15914 = vmatmul.mubr.msk.bf16.vlgmr.msra.gmra.mrb[192].mxu0 %vm7941_vm2, %v20221_v25 }
 0xf20   :  { %15932 = vmatpush3.bf16.msra.mxu0 %v17223_v24  ;;  %15939 = vmatprep.mubr.msk.bf16.mxu0 %vm7941_vm2, %v20215_v21 }
 0xf21   :  { %15933 = vmatprep.subr.bf16.mxu0 %v17224_v48 }
 0xf24   :  { %15934 = vmatpush3.bf16.msra.mxu0 %v17224_v48 }
 0xf25   :  { %15935 = vmatprep.subr.bf16.mxu0 %v17225_v56 }
 0xf28   :  { %15936 = vmatpush3.bf16.msra.mxu0 %v17225_v56 }
 0xf29   :  { %15937 = vmatprep.subr.bf16.mxu0 %v17226_v10 }
 0xf2c   :  { %15938 = vmatpush3.bf16.msra.mxu0 %v17226_v10 }
 0xf2d   :  { %15983 = vmatprep.subr.bf16.mxu0 %v17227_v31 }
 0xf2f   :  { %15940 = vmatmul.mubr.msk.bf16.vlgmr.msra.gmra.mrb[196].mxu0 %vm7941_vm2, %v20221_v25 }
 0xf30   :  { %15984 = vmatpush3.bf16.msra.mxu0 %v17227_v31  ;;  %15991 = vmatprep.mubr.msk.bf16.mxu0 %vm7941_vm2, %v20215_v21 }
 0xf31   :  { %15985 = vmatprep.subr.bf16.mxu0 %v17228_v44 }
 0xf34   :  { %15986 = vmatpush3.bf16.msra.mxu0 %v17228_v44  ;;  %v17242_v44 = vld [vmem:[%s20795_s9 + $0x98] sm:$0xff]  }
 0xf35   :  { %15987 = vmatprep.subr.bf16.mxu0 %v17229_v53 }
 0xf38   :  { %15988 = vmatpush3.bf16.msra.mxu0 %v17229_v53 }
 0xf39   :  { %15989 = vmatprep.subr.bf16.mxu0 %v17230_v2 }
 0xf3c   :  { %15990 = vmatpush3.bf16.msra.mxu0 %v17230_v2 }
 0xf3d   :  { %16009 = vmatprep.subr.bf16.mxu0 %v17231_v58 }
 0xf3f   :  { %15992 = vmatmul.mubr.msk.bf16.vlgmr.msra.gmra.mrb[200].mxu0 %vm7941_vm2, %v20221_v25 }
 0xf40   :  { %16010 = vmatpush3.bf16.msra.mxu0 %v17231_v58  ;;  %16017 = vmatprep.mubr.msk.bf16.mxu0 %vm7941_vm2, %v20215_v21 }
 0xf41   :  { %16011 = vmatprep.subr.bf16.mxu0 %v17232_v23 }
 0xf44   :  { %16012 = vmatpush3.bf16.msra.mxu0 %v17232_v23 }
 0xf45   :  { %16013 = vmatprep.subr.bf16.mxu0 %v17233_v12 }
 0xf48   :  { %16014 = vmatpush3.bf16.msra.mxu0 %v17233_v12 }
 0xf49   :  { %16015 = vmatprep.subr.bf16.mxu0 %v17234_v46 }
 0xf4c   :  { %16016 = vmatpush3.bf16.msra.mxu0 %v17234_v46 }
 0xf4d   :  { %16035 = vmatprep.subr.bf16.mxu0 %v17235_v13 }
 0xf4f   :  { %16018 = vmatmul.mubr.msk.bf16.vlgmr.msra.gmra.mrb[204].mxu0 %vm7941_vm2, %v20221_v25 }
 0xf50   :  { %16036 = vmatpush3.bf16.msra.mxu0 %v17235_v13  ;;  %16043 = vmatprep.mubr.msk.bf16.mxu0 %vm7941_vm2, %v20215_v21 }
 0xf51   :  { %16037 = vmatprep.subr.bf16.mxu0 %v17236_v60 }
 0xf54   :  { %16038 = vmatpush3.bf16.msra.mxu0 %v17236_v60 }
 0xf55   :  { %16039 = vmatprep.subr.bf16.mxu0 %v17237_v42 }
 0xf58   :  { %16040 = vmatpush3.bf16.msra.mxu0 %v17237_v42 }
 0xf59   :  { %16041 = vmatprep.subr.bf16.mxu0 %v17238_v41 }
 0xf5c   :  { %16042 = vmatpush3.bf16.msra.mxu0 %v17238_v41 }
 0xf5f   :  { %16044 = vmatmul.mubr.msk.bf16.vlgmr.msra.gmra.mrb[208].mxu0 %vm7941_vm2, %v20221_v25 }
 0xfe2   :  { %v15863_v52 = vpop.f32.mrb[184].mxu1  ;;  %v15875_v45 = vpop.f32.mrb[188].mxu0 }
 0xfe3   :  { %v7982_v11 = vpop.f32.mrb[185].mxu1  ;;  %v8068_v9 = vpop.f32.mrb[189].mxu0 }
 0xfe4   :  { %v15864_v22 = vpop.f32.mrb[186].mxu1  ;;  %v15876_v18 = vpop.f32.mrb[190].mxu0 }
 0xfe5   :  { %v16623_v17 = vpack.c.bf16 %v15864_v22, %v15863_v52  ;;  %v16615_v33 = vpack.c.bf16 %v15876_v18, %v15875_v45  ;;  %v7985_v26 = vpop.f32.mrb[187].mxu1  ;;  %v8071_v43 = vpop.f32.mrb[191].mxu0 }
 0xfe6   :  { %v16619_v29 = vpack.c.bf16 %v7985_v26, %v7982_v11  ;;  %v16611_v47 = vpack.c.bf16 %v8071_v43, %v8068_v9  ;;  %v20435_v11 = vld [vmem:[%s20788_s2 + $0x80] sm:$0xff]  ;;  %v20442_v43 = vld [vmem:[%s20788_s2 + $0x88] sm:$0xff] }
 0xfe8   :  { %16612 = vmatprep.subr.bf16.mxu1 %v16611_v47 }
 0xfe9   :  { %16614 = vmatpush3.bf16.msra.mxu1 %v16611_v47  ;;  %v20456_v47 = vld [vmem:[%s20788_s2 + $0x98] sm:$0xff] }
 0xfea   :  { %16616 = vmatprep.subr.bf16.mxu1 %v16615_v33 }
 0xfed   :  { %16618 = vmatpush3.bf16.msra.mxu1 %v16615_v33 }
 0xfee   :  { %16620 = vmatprep.subr.bf16.mxu1 %v16619_v29 }
 0xff0   :  { %15886 = vmatmul.mubr.msk.f32.vlgmr.msra.gmra.mrb[188].mxu1 %vm8088_vm3, %v20314_v49 }
 0xff1   :  { %16622 = vmatpush3.bf16.msra.mxu1 %v16619_v29  ;;  %15888 = vmatprep.mubr.msk.f32.mxu1 %vm8088_vm3, %v20319_v36  ;;  %v20447_v29 = vld [vmem:[%s20788_s2 + $0x90] sm:$0xff] }
 0xff2   :  { %v15915_v8 = vpop.f32.mrb[192].mxu0  ;;  %16624 = vmatprep.subr.bf16.mxu1 %v16623_v17 }
 0xff3   :  { %v8350_v55 = vpop.f32.mrb[193].mxu0 }
 0xff4   :  { %v15916_v3 = vpop.f32.mrb[194].mxu0  ;;  %15889 = vmatmul.mubr.msk.f32.gmra.mrb[190].mxu1 %vm8088_vm3, %v20328_v6 }
 0xff5   :  { %v16631_v16 = vpack.c.bf16 %v15916_v3, %v15915_v8  ;;  %v8353_v27 = vpop.f32.mrb[195].mxu0  ;;  %16626 = vmatpush3.bf16.msra.mxu1 %v16623_v17  ;;  %15899 = vmatprep.mubr.msk.f32.mxu1 %vm8088_vm3, %v20333_v59  ;;  %v20461_v8 = vld [vmem:[%s20788_s2 + $0xa0] sm:$0xff]  ;;  %v20475_v3 = vld [vmem:[%s20788_s2 + $0xb0] sm:$0xff] }
 0xff6   :  { %v16627_v7 = vpack.c.bf16 %v8353_v27, %v8350_v55  ;;  %v20470_v55 = vld [vmem:[%s20788_s2 + $0xa8] sm:$0xff]  ;;  %v20489_v27 = vld [vmem:[%s20788_s2 + $0xc0] sm:$0xff] }
 0xff8   :  { %16628 = vmatprep.subr.bf16.mxu1 %v16627_v7  ;;  %15900 = vmatmul.mubr.msk.f32.vlgmr.msra.gmra.mrb[188].mxu1 %vm8088_vm3, %v20342_v38 }
 0xff9   :  { %16630 = vmatpush3.bf16.msra.mxu1 %v16627_v7  ;;  %15902 = vmatprep.mubr.msk.f32.mxu1 %vm8088_vm3, %v20347_v35  ;;  %v20498_v7 = vld [vmem:[%s20788_s2 + $0xc8] sm:$0xff] }
 0xffa   :  { %16632 = vmatprep.subr.bf16.mxu1 %v16631_v16 }
 0xffc   :  { %15903 = vmatmul.mubr.msk.f32.gmra.mrb[190].mxu1 %vm8088_vm3, %v20356_v51 }
 0xffd   :  { %16634 = vmatpush3.bf16.msra.mxu1 %v16631_v16  ;;  %15925 = vmatprep.mubr.msk.f32.mxu1 %vm8088_vm3, %v20361_v30  ;;  %v20484_v16 = vld [vmem:[%s20788_s2 + $0xb8] sm:$0xff] }
0x1000   :  { %15926 = vmatmul.mubr.msk.f32.vlgmr.msra.gmra.mrb[188].mxu1 %vm8088_vm3, %v20370_v5 }
0x1001   :  { %15928 = vmatprep.mubr.msk.f32.mxu1 %vm8088_vm3, %v20375_v50 }
0x1002   :  { %v15941_v57 = vpop.f32.mrb[196].mxu0 }
0x1003   :  { %v8538_v15 = vpop.f32.mrb[197].mxu0 }
0x1004   :  { %v15942_v37 = vpop.f32.mrb[198].mxu0  ;;  %15929 = vmatmul.mubr.msk.f32.gmra.mrb[190].mxu1 %vm8088_vm3, %v20384_v20 }
0x1005   :  { %v16639_v4 = vpack.c.bf16 %v15942_v37, %v15941_v57  ;;  %v8541_v40 = vpop.f32.mrb[199].mxu0  ;;  %15951 = vmatprep.mubr.msk.f32.mxu1 %vm8088_vm3, %v20389_v32  ;;  %v20503_v57 = vld [vmem:[%s20788_s2 + $0xd0] sm:$0xff]  ;;  %v20517_v37 = vld [vmem:[%s20788_s2 + $0xe0] sm:$0xff] }
0x1006   :  { %v16635_v61 = vpack.c.bf16 %v8541_v40, %v8538_v15  ;;  %v20512_v15 = vld [vmem:[%s20788_s2 + $0xd8] sm:$0xff]  ;;  %v20529_v40 = vld [vmem:[%s20788_s2 + $0xe8] sm:$0xff] }
0x1008   :  { %16636 = vmatprep.subr.bf16.mxu1 %v16635_v61 }
0x1009   :  { %16638 = vmatpush3.bf16.msra.mxu1 %v16635_v61  ;;  %v20534_v61 = vld [vmem:[%s20788_s2 + $0xf0] sm:$0xff] }
0x100a   :  { %16640 = vmatprep.subr.bf16.mxu1 %v16639_v4 }
0x100d   :  { %16642 = vmatpush3.bf16.msra.mxu1 %v16639_v4  ;;  %v17243_v4 = vld [vmem:[%s20795_s9 + $0x100] sm:$0xff]  }
0x100e   :  { %15957 = vmatprep.subr.bf16.mxu1 %v17239_v19 }
0x1010   :  { %15952 = vmatmul.mubr.msk.f32.vlgmr.msra.gmra.mrb[188].mxu1 %vm8088_vm3, %v20401_v39 }
0x1011   :  { %15958 = vmatpush3.bf16.msra.mxu1 %v17239_v19  ;;  %15954 = vmatprep.mubr.msk.f32.mxu1 %vm8088_vm3, %v20406_v14  ;;  %v17244_v19 = vld [vmem:[%s20795_s9 + $0x108] sm:$0xff]  }
0x1012   :  { %v15993_v34 = vpop.f32.mrb[200].mxu0  ;;  %15959 = vmatprep.subr.bf16.mxu1 %v17240_v54 }
0x1013   :  { %v8914_v24 = vpop.f32.mrb[201].mxu0 }
0x1014   :  { %15955 = vmatmul.mubr.msk.f32.gmra.mrb[190].mxu1 %vm8088_vm3, %v20418_v62  ;;  %v15994_v48 = vpop.f32.mrb[202].mxu0 }
0x1015   :  { %v16655_v56 = vpack.c.bf16 %v15994_v48, %v15993_v34  ;;  %15960 = vmatpush3.bf16.msra.mxu1 %v17240_v54  ;;  %15965 = vmatprep.mubr.msk.bf16.mxu1 %vm7941_vm2, %v20215_v21  ;;  %v8917_v10 = vpop.f32.mrb[203].mxu0  ;;  %v20546_v54 = vld [vmem:[%s20788_s2 + $0xf8] sm:$0xff]  ;;  %v17245_v34 = vld [vmem:[%s20795_s9 + $0x110] sm:$0xff]  }
0x1016   :  { %v16651_v31 = vpack.c.bf16 %v8917_v10, %v8914_v24  ;;  %15961 = vmatprep.subr.bf16.mxu1 %v17241_v63  ;;  %v20563_v24 = vld [vmem:[%s20788_s2 + $0x100] sm:$0xff] }
0x1019   :  { %15962 = vmatpush3.bf16.msra.mxu1 %v17241_v63  ;;  %v17246_v63 = vld [vmem:[%s20795_s9 + $0x118] sm:$0xff]  }
0x101a   :  { %15963 = vmatprep.subr.bf16.mxu1 %v17242_v44 }
0x101d   :  { %15964 = vmatpush3.bf16.msra.mxu1 %v17242_v44 }
0x1020   :  { %15966 = vmatmul.mubr.msk.bf16.vlgmr.msra.gmra.mrb[192].mxu1 %vm7941_vm2, %v20221_v25 }
0x1021   :  { %15977 = vmatprep.mubr.msk.f32.mxu1 %vm8088_vm3, %v20435_v11 }
0x1022   :  { %v16019_v53 = vpop.f32.mrb[204].mxu0 }
0x1023   :  { %v9102_v2 = vpop.f32.mrb[205].mxu0 }
0x1024   :  { %v16020_v58 = vpop.f32.mrb[206].mxu0 }
0x1025   :  { %v16663_v23 = vpack.c.bf16 %v16020_v58, %v16019_v53  ;;  %v9105_v12 = vpop.f32.mrb[207].mxu0  ;;  %v20575_v53 = vld [vmem:[%s20788_s2 + $0x110] sm:$0xff]  ;;  %v17247_v58 = vld [vmem:[%s20797_s11] sm:$0xff]  }
0x1026   :  { %v16659_v46 = vpack.c.bf16 %v9105_v12, %v9102_v2  ;;  %v20584_v2 = vld [vmem:[%s20788_s2 + $0x118] sm:$0xff]  ;;  %16087 = vmatprep.subr.bf16.mxu0 %v17247_v58  ;;  %v17249_v12 = vld [vmem:[%s20797_s11 + $0x8] sm:$0xff]  }
0x1027   :  { %16088 = vmatpush3.bf16.msra.mxu0 %v17247_v58  ;;  %v17254_v58 = vld [vmem:[%s20797_s11 + $0x38] sm:$0xff]  }
0x1028   :  { %16093 = vmatprep.subr.bf16.mxu0 %v17249_v12 }
0x1032   :  { %v16045_v13 = vpop.f32.mrb[208].mxu0 }
0x1033   :  { %v9290_v60 = vpop.f32.mrb[209].mxu0 }
0x1034   :  { %v16046_v42 = vpop.f32.mrb[210].mxu0 }
0x1035   :  { %v16671_v41 = vpack.c.bf16 %v16046_v42, %v16045_v13  ;;  %v9293_v52 = vpop.f32.mrb[211].mxu0  ;;  %v12953_v13 = vld [vmem:[%s20796_s10] ss:$0 sm:$0xff] }
0x1036   :  { %v16667_v45 = vpack.c.bf16 %v9293_v52, %v9290_v60 }
0x10f3   :  { %v15967_v9 = vpop.f32.mrb[192].mxu1 }
0x10f4   :  { %v8726_v22 = vpop.f32.mrb[193].mxu1 }
0x10f5   :  { %v15968_v18 = vpop.f32.mrb[194].mxu1 }
0x10f6   :  { %v16647_v17 = vpack.c.bf16 %v15968_v18, %v15967_v9  ;;  %v8729_v33 = vpop.f32.mrb[195].mxu1 }
0x10f7   :  { %v16643_v26 = vpack.c.bf16 %v8729_v33, %v8726_v22 }
0x10f9   :  { %16644 = vmatprep.subr.bf16.mxu1 %v16643_v26 }
0x10fa   :  { %16646 = vmatpush3.bf16.msra.mxu1 %v16643_v26 }
0x10fb   :  { %16648 = vmatprep.subr.bf16.mxu1 %v16647_v17 }
0x10fe   :  { %16650 = vmatpush3.bf16.msra.mxu1 %v16647_v17 }
0x10ff   :  { %16652 = vmatprep.subr.bf16.mxu1 %v16651_v31 }
0x1101   :  { %15978 = vmatmul.mubr.msk.f32.vlgmr.msra.gmra.mrb[188].mxu1 %vm8088_vm3, %v20442_v43 }
0x1102   :  { %16654 = vmatpush3.bf16.msra.mxu1 %v16651_v31  ;;  %15980 = vmatprep.mubr.msk.f32.mxu1 %vm8088_vm3, %v20447_v29 }
0x1103   :  { %16656 = vmatprep.subr.bf16.mxu1 %v16655_v56 }
0x1105   :  { %15981 = vmatmul.mubr.msk.f32.gmra.mrb[190].mxu1 %vm8088_vm3, %v20456_v47 }
0x1106   :  { %16658 = vmatpush3.bf16.msra.mxu1 %v16655_v56  ;;  %16003 = vmatprep.mubr.msk.f32.mxu1 %vm8088_vm3, %v20461_v8 }
0x1107   :  { %16660 = vmatprep.subr.bf16.mxu1 %v16659_v46 }
0x1109   :  { %16004 = vmatmul.mubr.msk.f32.vlgmr.msra.gmra.mrb[188].mxu1 %vm8088_vm3, %v20470_v55 }
0x110a   :  { %16662 = vmatpush3.bf16.msra.mxu1 %v16659_v46  ;;  %16006 = vmatprep.mubr.msk.f32.mxu1 %vm8088_vm3, %v20475_v3  ;;  %v17250_v46 = vld [vmem:[%s20797_s11 + $0x18] sm:$0xff]  }
0x110b   :  { %16664 = vmatprep.subr.bf16.mxu1 %v16663_v23 }
0x110d   :  { %16007 = vmatmul.mubr.msk.f32.gmra.mrb[190].mxu1 %vm8088_vm3, %v20484_v16 }
0x110e   :  { %16666 = vmatpush3.bf16.msra.mxu1 %v16663_v23  ;;  %16029 = vmatprep.mubr.msk.f32.mxu1 %vm8088_vm3, %v20489_v27  ;;  %v17248_v23 = vld [vmem:[%s20797_s11 + $0x10] sm:$0xff]  }
0x110f   :  { %16668 = vmatprep.subr.bf16.mxu1 %v16667_v45 }
0x1111   :  { %16030 = vmatmul.mubr.msk.f32.vlgmr.msra.gmra.mrb[188].mxu1 %vm8088_vm3, %v20498_v7 }
0x1112   :  { %16670 = vmatpush3.bf16.msra.mxu1 %v16667_v45  ;;  %16032 = vmatprep.mubr.msk.f32.mxu1 %vm8088_vm3, %v20503_v57 }
0x1113   :  { %16672 = vmatprep.subr.bf16.mxu1 %v16671_v41 }
0x1115   :  { %16033 = vmatmul.mubr.msk.f32.gmra.mrb[190].mxu1 %vm8088_vm3, %v20512_v15 }
0x1116   :  { %16674 = vmatpush3.bf16.msra.mxu1 %v16671_v41  ;;  %16055 = vmatprep.mubr.msk.f32.mxu1 %vm8088_vm3, %v20517_v37 }
0x1117   :  { %16061 = vmatprep.subr.bf16.mxu1 %v17243_v4 }
0x1119   :  { %16056 = vmatmul.mubr.msk.f32.vlgmr.msra.gmra.mrb[188].mxu1 %vm8088_vm3, %v20529_v40 }
0x111a   :  { %16062 = vmatpush3.bf16.msra.mxu1 %v17243_v4  ;;  %16058 = vmatprep.mubr.msk.f32.mxu1 %vm8088_vm3, %v20534_v61 }
0x111b   :  { %16063 = vmatprep.subr.bf16.mxu1 %v17244_v19 }
0x111d   :  { %16059 = vmatmul.mubr.msk.f32.gmra.mrb[190].mxu1 %vm8088_vm3, %v20546_v54 }
0x111e   :  { %16064 = vmatpush3.bf16.msra.mxu1 %v17244_v19  ;;  %16069 = vmatprep.mubr.msk.bf16.mxu1 %vm7941_vm2, %v20215_v21 }
0x111f   :  { %16065 = vmatprep.subr.bf16.mxu1 %v17245_v34 }
0x1122   :  { %16066 = vmatpush3.bf16.msra.mxu1 %v17245_v34 }
0x1123   :  { %16067 = vmatprep.subr.bf16.mxu1 %v17246_v63 }
0x1126   :  { %16068 = vmatpush3.bf16.msra.mxu1 %v17246_v63 }
0x1129   :  { %16070 = vmatmul.mubr.msk.bf16.vlgmr.msra.gmra.mrb[196].mxu1 %vm7941_vm2, %v20221_v25  ;;  %v20570_v25 = vld [vmem:[%s20788_s2 + $0x108] sm:$0xff] }
0x112a   :  { %16081 = vmatprep.mubr.msk.f32.mxu1 %vm8088_vm3, %v20563_v24 }
0x11fc   :  { %v16071_v21 = vpop.f32.mrb[196].mxu1 }
0x11fd   :  { %v9478_v48 = vpop.f32.mrb[197].mxu1 }
0x11fe   :  { %v16072_v56 = vpop.f32.mrb[198].mxu1 }
0x11ff   :  { %v16679_v10 = vpack.c.bf16 %v16072_v56, %v16071_v21  ;;  %v9481_v31 = vpop.f32.mrb[199].mxu1 }
0x1200   :  { %v16675_v44 = vpack.c.bf16 %v9481_v31, %v9478_v48  ;;  %v17252_v31 = vld [vmem:[%s20797_s11 + $0x28] sm:$0xff]  }
0x1202   :  { %16676 = vmatprep.subr.bf16.mxu1 %v16675_v44 }
0x1203   :  { %16678 = vmatpush3.bf16.msra.mxu1 %v16675_v44  ;;  %v17253_v44 = vld [vmem:[%s20797_s11 + $0x30] sm:$0xff]  }
0x1204   :  { %16680 = vmatprep.subr.bf16.mxu1 %v16679_v10 }
0x1207   :  { %16682 = vmatpush3.bf16.msra.mxu1 %v16679_v10  ;;  %v17251_v10 = vld [vmem:[%s20797_s11 + $0x20] sm:$0xff]  }
0x1208   :  { %16127 = vmatprep.subr.bf16.mxu1 %v17248_v23 }
0x120a   :  { %16082 = vmatmul.mubr.msk.f32.vlgmr.msra.gmra.mrb[188].mxu1 %vm8088_vm3, %v20570_v25 }
0x120b   :  { %16084 = vmatprep.mubr.msk.f32.mxu1 %vm8088_vm3, %v20575_v53  ;;  %16128 = vmatpush3.bf16.msra.mxu1 %v17248_v23 }
0x120c   :  { %16147 = vmatprep.subr.bf16.mxu1 %v17250_v46 }
0x120e   :  { %16085 = vmatmul.mubr.msk.f32.gmra.mrb[190].mxu1 %vm8088_vm3, %v20584_v2 }
0x12dd   :  { %v16083_v60 = vpop.f32.mrb[188].mxu1 }
0x12de   :  { %v9607_v42 = vadd.f32 %v16083_v60, %v12953_v13  ;;  %v9576_v41 = vpop.f32.mrb[189].mxu1 }
0x12df   :  { %v9606_v52 = vadd.f32 %v12953_v13, %v9576_v41 }
0x12e0   :  { %v9611_v45 = vmul.f32 0.2, %v9607_v42 }
0x12e1   :  { %v9610_v9 = vmul.f32 0.2, %v9606_v52  ;;  %v16086_v22 = vpop.f32.mrb[190].mxu1 }
0x12e2   :  { %v9615_v18 = vmax.f32 %v9607_v42, %v9611_v45  ;;  %v9609_v17 = vadd.f32 %v16086_v22, %v12953_v13  ;;  %v9586_v33 = vpop.f32.mrb[191].mxu1 }
0x12e3   :  { %v9614_v26 = vmax.f32 %v9606_v52, %v9610_v9  ;;  %v9608_v4 = vadd.f32 %v12953_v13, %v9586_v33 }
0x12e4   :  { %v9613_v19 = vmul.f32 0.2, %v9609_v17 }
0x12e5   :  { %v9618_v34 = vpack.c.bf16 %v9615_v18, %v9614_v26  ;;  %v9612_v63 = vmul.f32 0.2, %v9608_v4 }
0x12e6   :  { %v9617_v21 = vmax.f32 %v9609_v17, %v9613_v19 }
0x12e7   :  { %v9616_v48 = vmax.f32 %v9608_v4, %v9612_v63  ;;  %16089 = vmatprep.mubr.msk.bf16.mxu0 %vm9628_vm4, %v9618_v34  ;;  %16129 = vmatprep.mubr.msk.bf16.mxu1 %vm9628_vm4, %v9618_v34 }
0x12e9   :  { %v9619_v56 = vpack.c.bf16 %v9617_v21, %v9616_v48 }
0x12eb   :  { %16090 = vmatmul.mubr.msk.bf16.vlgmr.msra.gmra.mrb[212].mxu0 %vm9628_vm4, %v9619_v56  ;;  %16130 = vmatmul.mubr.msk.bf16.vlgmr.msra.gmra.mrb[200].mxu1 %vm9628_vm4, %v9619_v56 }
0x12ec   :  { %16095 = vmatprep.mubr.msk.bf16.mxu0 %vm9628_vm4, %v9618_v34  ;;  %16149 = vmatprep.mubr.msk.bf16.mxu1 %vm9628_vm4, %v9618_v34 }
0x12ed   :  { %16094 = vmatpush3.bf16.msra.mxu0 %v17249_v12  ;;  %16148 = vmatpush3.bf16.msra.mxu1 %v17250_v46 }
0x12ee   :  { %16167 = vmatprep.subr.bf16.mxu1 %v17251_v10 }
0x12f3   :  { %16096 = vmatmul.mubr.msk.bf16.vlgmr.msra.gmra.mrb[216].mxu0 %vm9628_vm4, %v9619_v56  ;;  %16150 = vmatmul.mubr.msk.bf16.vlgmr.msra.gmra.mrb[204].mxu1 %vm9628_vm4, %v9619_v56 }
0x12f4   :  { %16169 = vmatprep.mubr.msk.bf16.mxu1 %vm9628_vm4, %v9618_v34  ;;  %16168 = vmatpush3.bf16.msra.mxu1 %v17251_v10 }
0x12f5   :  { %16187 = vmatprep.subr.bf16.mxu1 %v17252_v31  ;;  %16107 = vmatprep.mubr.msk.f32.mxu0 %vm8088_vm3, %v20307_v28  ;;  %v17255_v28 = vld [vmem:[%s20797_s11 + $0x40] sm:$0xff]  }
0x12fb   :  { %16170 = vmatmul.mubr.msk.bf16.vlgmr.msra.gmra.mrb[208].mxu1 %vm9628_vm4, %v9619_v56 }
0x12fc   :  { %16189 = vmatprep.mubr.msk.bf16.mxu1 %vm9628_vm4, %v9618_v34  ;;  %16188 = vmatpush3.bf16.msra.mxu1 %v17252_v31 }
0x12fd   :  { %16207 = vmatprep.subr.bf16.mxu1 %v17253_v44 }
0x1303   :  { %16190 = vmatmul.mubr.msk.bf16.vlgmr.msra.gmra.mrb[212].mxu1 %vm9628_vm4, %v9619_v56 }
0x1304   :  { %16209 = vmatprep.mubr.msk.bf16.mxu1 %vm9628_vm4, %v9618_v34  ;;  %16208 = vmatpush3.bf16.msra.mxu1 %v17253_v44 }
0x1305   :  { %16227 = vmatprep.subr.bf16.mxu1 %v17254_v58 }
0x130b   :  { %16210 = vmatmul.mubr.msk.bf16.vlgmr.msra.gmra.mrb[216].mxu1 %vm9628_vm4, %v9619_v56 }
0x130c   :  { %16229 = vmatprep.mubr.msk.bf16.mxu1 %vm9628_vm4, %v9618_v34  ;;  %16228 = vmatpush3.bf16.msra.mxu1 %v17254_v58 }
0x130d   :  { %16247 = vmatprep.subr.bf16.mxu1 %v17255_v28 }
0x1313   :  { %16230 = vmatmul.mubr.msk.bf16.vlgmr.msra.gmra.mrb[220].mxu1 %vm9628_vm4, %v9619_v56 }
0x1314   :  { %16249 = vmatprep.mubr.msk.bf16.mxu1 %vm9628_vm4, %v9618_v34  ;;  %16248 = vmatpush3.bf16.msra.mxu1 %v17255_v28 }
0x1315   :  { %16755 = vmatprep.subr.bf16.mxu1 %v17413_v0 }
0x131b   :  { %16250 = vmatmul.mubr.msk.bf16.vlgmr.msra.gmra.mrb[224].mxu1 %vm9628_vm4, %v9619_v56 }
0x131c   :  { %16275 = vmatprep.mubr.msk.f32.mxu1 %vm17414_vm0, %v17415_v1 }
0x13be   :  { %v16091_v23 = vpop.f32.mrb[212].mxu0  ;;  %v16131_v12 = vpop.f32.mrb[200].mxu1 }
0x13bf   :  { %v9669_v46 = vpop.f32.mrb[213].mxu0  ;;  %v9955_v13 = vpop.f32.mrb[201].mxu1 }
0x13c0   :  { %v16092_v60 = vpop.f32.mrb[214].mxu0  ;;  %v16132_v42 = vpop.f32.mrb[202].mxu1 }
0x13c1   :  { %v16695_v41 = vpack.c.bf16 %v16092_v60, %v16091_v23  ;;  %v16703_v52 = vpack.c.bf16 %v16132_v42, %v16131_v12  ;;  %v9672_v45 = vpop.f32.mrb[215].mxu0  ;;  %v9958_v9 = vpop.f32.mrb[203].mxu1 }
0x13c2   :  { %v16691_v22 = vpack.c.bf16 %v9672_v45, %v9669_v46  ;;  %v16699_v18 = vpack.c.bf16 %v9958_v9, %v9955_v13 }
0x13c6   :  { %v16097_v17 = vpop.f32.mrb[216].mxu0  ;;  %v16151_v33 = vpop.f32.mrb[204].mxu1 }
0x13c7   :  { %v9727_v26 = vpop.f32.mrb[217].mxu0  ;;  %v10102_v4 = vpop.f32.mrb[205].mxu1 }
0x13c8   :  { %v16098_v19 = vpop.f32.mrb[218].mxu0  ;;  %v16152_v34 = vpop.f32.mrb[206].mxu1 }
0x13c9   :  { %v16687_v63 = vpack.c.bf16 %v16098_v19, %v16097_v17  ;;  %v16711_v21 = vpack.c.bf16 %v16152_v34, %v16151_v33  ;;  %v9730_v48 = vpop.f32.mrb[219].mxu0  ;;  %v10105_v56 = vpop.f32.mrb[207].mxu1 }
0x13ca   :  { %v16683_v10 = vpack.c.bf16 %v9730_v48, %v9727_v26  ;;  %v16707_v31 = vpack.c.bf16 %v10105_v56, %v10102_v4  ;;  %v13042_v48 = vld [vmem:[%s20799_s13 + $0x10] sm:$0xff] }
0x13cc   :  { %16684 = vmatprep.subr.bf16.mxu0 %v16683_v10 }
0x13cd   :  { %16686 = vmatpush3.bf16.msra.mxu0 %v16683_v10 }
0x13ce   :  { %16688 = vmatprep.subr.bf16.mxu0 %v16687_v63  ;;  %v16171_v44 = vpop.f32.mrb[208].mxu1 }
0x13cf   :  { %v10249_v58 = vpop.f32.mrb[209].mxu1 }
0x13d0   :  { %v16172_v28 = vpop.f32.mrb[210].mxu1 }
0x13d1   :  { %v16719_v23 = vpack.c.bf16 %v16172_v28, %v16171_v44  ;;  %16690 = vmatpush3.bf16.msra.mxu0 %v16687_v63  ;;  %v10252_v12 = vpop.f32.mrb[211].mxu1 }
0x13d2   :  { %v16715_v46 = vpack.c.bf16 %v10252_v12, %v10249_v58  ;;  %16692 = vmatprep.subr.bf16.mxu0 %v16691_v22  ;;  %v13044_v12 = vld [vmem:[%s20790_s4 + $0x6] sm:$0x3] }
0x13d4   :  { %16108 = vmatmul.mubr.msk.f32.vlgmr.msra.gmra.mrb[154].mxu0 %vm8088_vm3, %v20314_v49 }
0x13d5   :  { %16694 = vmatpush3.bf16.msra.mxu0 %v16691_v22  ;;  %16110 = vmatprep.mubr.msk.f32.mxu0 %vm8088_vm3, %v20319_v36 }
0x13d6   :  { %16696 = vmatprep.subr.bf16.mxu0 %v16695_v41  ;;  %v16191_v13 = vpop.f32.mrb[212].mxu1 }
0x13d7   :  { %v10396_v60 = vpop.f32.mrb[213].mxu1 }
0x13d8   :  { %16111 = vmatmul.mubr.msk.f32.gmra.mrb[220].mxu0 %vm8088_vm3, %v20328_v6  ;;  %v16192_v42 = vpop.f32.mrb[214].mxu1 }
0x13d9   :  { %v16727_v45 = vpack.c.bf16 %v16192_v42, %v16191_v13  ;;  %16698 = vmatpush3.bf16.msra.mxu0 %v16695_v41  ;;  %v10399_v9 = vpop.f32.mrb[215].mxu1  ;;  %16121 = vmatprep.mubr.msk.f32.mxu0 %vm8088_vm3, %v20333_v59 }
0x13da   :  { %v16723_v17 = vpack.c.bf16 %v10399_v9, %v10396_v60  ;;  %16700 = vmatprep.subr.bf16.mxu0 %v16699_v18  ;;  %v13048_v9 = vld [vmem:[%s20800_s14] ss:$0 sm:$0xff] }
0x13dc   :  { %16122 = vmatmul.mubr.msk.f32.vlgmr.msra.gmra.mrb[154].mxu0 %vm8088_vm3, %v20342_v38 }
0x13dd   :  { %16702 = vmatpush3.bf16.msra.mxu0 %v16699_v18  ;;  %16124 = vmatprep.mubr.msk.f32.mxu0 %vm8088_vm3, %v20347_v35 }
0x13de   :  { %16704 = vmatprep.subr.bf16.mxu0 %v16703_v52  ;;  %v16211_v49 = vpop.f32.mrb[216].mxu1 }
0x13df   :  { %v10543_v36 = vpop.f32.mrb[217].mxu1 }
0x13e0   :  { %16125 = vmatmul.mubr.msk.f32.gmra.mrb[220].mxu0 %vm8088_vm3, %v20356_v51  ;;  %v16212_v6 = vpop.f32.mrb[218].mxu1 }
0x13e1   :  { %v16735_v41 = vpack.c.bf16 %v16212_v6, %v16211_v49  ;;  %16706 = vmatpush3.bf16.msra.mxu0 %v16703_v52  ;;  %v10546_v22 = vpop.f32.mrb[219].mxu1  ;;  %16141 = vmatprep.mubr.msk.f32.mxu0 %vm8088_vm3, %v20361_v30 }
0x13e2   :  { %v16731_v59 = vpack.c.bf16 %v10546_v22, %v10543_v36  ;;  %16708 = vmatprep.subr.bf16.mxu0 %v16707_v31 }
0x13e4   :  { %16142 = vmatmul.mubr.msk.f32.vlgmr.msra.gmra.mrb[154].mxu0 %vm8088_vm3, %v20370_v5 }
0x13e5   :  { %16710 = vmatpush3.bf16.msra.mxu0 %v16707_v31  ;;  %16144 = vmatprep.mubr.msk.f32.mxu0 %vm8088_vm3, %v20375_v50 }
0x13e6   :  { %16712 = vmatprep.subr.bf16.mxu0 %v16711_v21  ;;  %v16231_v38 = vpop.f32.mrb[220].mxu1 }
0x13e7   :  { %v10690_v35 = vpop.f32.mrb[221].mxu1 }
0x13e8   :  { %16145 = vmatmul.mubr.msk.f32.gmra.mrb[220].mxu0 %vm8088_vm3, %v20384_v20  ;;  %v16232_v51 = vpop.f32.mrb[222].mxu1 }
0x13e9   :  { %v16743_v52 = vpack.c.bf16 %v16232_v51, %v16231_v38  ;;  %16714 = vmatpush3.bf16.msra.mxu0 %v16711_v21  ;;  %v10693_v18 = vpop.f32.mrb[223].mxu1  ;;  %16161 = vmatprep.mubr.msk.f32.mxu0 %vm8088_vm3, %v20389_v32  ;;  %v13040_v21 = vld [vmem:[%s20790_s4 + $0x4] sm:$0x3] }
0x13ea   :  { %v16739_v30 = vpack.c.bf16 %v10693_v18, %v10690_v35  ;;  %16716 = vmatprep.subr.bf16.mxu0 %v16715_v46 }
0x13ec   :  { %16162 = vmatmul.mubr.msk.f32.vlgmr.msra.gmra.mrb[154].mxu0 %vm8088_vm3, %v20401_v39  ;;  %v13033_v39 = vld [vmem:[%s20798_s12] ss:$0 sm:$0xff] }
0x13ed   :  { %16718 = vmatpush3.bf16.msra.mxu0 %v16715_v46  ;;  %16164 = vmatprep.mubr.msk.f32.mxu0 %vm8088_vm3, %v20406_v14  ;;  %v13046_v46 = vld [vmem:[%s20799_s13 + $0x18] sm:$0xff] }
0x13ee   :  { %16720 = vmatprep.subr.bf16.mxu0 %v16719_v23  ;;  %v16251_v5 = vpop.f32.mrb[224].mxu1 }
0x13ef   :  { %v10837_v50 = vpop.f32.mrb[225].mxu1 }
0x13f0   :  { %16165 = vmatmul.mubr.msk.f32.gmra.mrb[220].mxu0 %vm8088_vm3, %v20418_v62  ;;  %v16252_v20 = vpop.f32.mrb[226].mxu1 }
0x13f1   :  { %v16751_v33 = vpack.c.bf16 %v16252_v20, %v16251_v5  ;;  %16722 = vmatpush3.bf16.msra.mxu0 %v16719_v23  ;;  %v10840_v26 = vpop.f32.mrb[227].mxu1  ;;  %16181 = vmatprep.mubr.msk.f32.mxu0 %vm8088_vm3, %v20435_v11 }
0x13f2   :  { %v16747_v32 = vpack.c.bf16 %v10840_v26, %v10837_v50  ;;  %16724 = vmatprep.subr.bf16.mxu0 %v16723_v17 }
0x13f4   :  { %16182 = vmatmul.mubr.msk.f32.vlgmr.msra.gmra.mrb[154].mxu0 %vm8088_vm3, %v20442_v43 }
0x13f5   :  { %16726 = vmatpush3.bf16.msra.mxu0 %v16723_v17  ;;  %16184 = vmatprep.mubr.msk.f32.mxu0 %vm8088_vm3, %v20447_v29 }
0x13f6   :  { %16728 = vmatprep.subr.bf16.mxu0 %v16727_v45 }
0x13f8   :  { %16185 = vmatmul.mubr.msk.f32.gmra.mrb[220].mxu0 %vm8088_vm3, %v20456_v47 }
0x13f9   :  { %16730 = vmatpush3.bf16.msra.mxu0 %v16727_v45  ;;  %16201 = vmatprep.mubr.msk.f32.mxu0 %vm8088_vm3, %v20461_v8 }
0x13fa   :  { %16732 = vmatprep.subr.bf16.mxu0 %v16731_v59 }
0x13fc   :  { %16202 = vmatmul.mubr.msk.f32.vlgmr.msra.gmra.mrb[154].mxu0 %vm8088_vm3, %v20470_v55 }
0x13fd   :  { %16734 = vmatpush3.bf16.msra.mxu0 %v16731_v59  ;;  %16204 = vmatprep.mubr.msk.f32.mxu0 %vm8088_vm3, %v20475_v3 }
0x13fe   :  { %16736 = vmatprep.subr.bf16.mxu0 %v16735_v41 }
0x1400   :  { %16205 = vmatmul.mubr.msk.f32.gmra.mrb[220].mxu0 %vm8088_vm3, %v20484_v16 }
0x1401   :  { %16738 = vmatpush3.bf16.msra.mxu0 %v16735_v41  ;;  %16221 = vmatprep.mubr.msk.f32.mxu0 %vm8088_vm3, %v20489_v27 }
0x1402   :  { %16740 = vmatprep.subr.bf16.mxu0 %v16739_v30 }
0x1404   :  { %16222 = vmatmul.mubr.msk.f32.vlgmr.msra.gmra.mrb[154].mxu0 %vm8088_vm3, %v20498_v7 }
0x1405   :  { %16742 = vmatpush3.bf16.msra.mxu0 %v16739_v30  ;;  %16224 = vmatprep.mubr.msk.f32.mxu0 %vm8088_vm3, %v20503_v57 }
0x1406   :  { %16744 = vmatprep.subr.bf16.mxu0 %v16743_v52 }
0x1408   :  { %16225 = vmatmul.mubr.msk.f32.gmra.mrb[220].mxu0 %vm8088_vm3, %v20512_v15 }
0x1409   :  { %16746 = vmatpush3.bf16.msra.mxu0 %v16743_v52  ;;  %16241 = vmatprep.mubr.msk.f32.mxu0 %vm8088_vm3, %v20517_v37 }
0x140a   :  { %16748 = vmatprep.subr.bf16.mxu0 %v16747_v32 }
0x140c   :  { %16242 = vmatmul.mubr.msk.f32.vlgmr.msra.gmra.mrb[154].mxu0 %vm8088_vm3, %v20529_v40 }
0x140d   :  { %16750 = vmatpush3.bf16.msra.mxu0 %v16747_v32  ;;  %16244 = vmatprep.mubr.msk.f32.mxu0 %vm8088_vm3, %v20534_v61 }
0x140e   :  { %16752 = vmatprep.subr.bf16.mxu0 %v16751_v33 }
0x1410   :  { %16245 = vmatmul.mubr.msk.f32.gmra.mrb[220].mxu0 %vm8088_vm3, %v20546_v54 }
0x1411   :  { %16754 = vmatpush3.bf16.msra.mxu0 %v16751_v33  ;;  %16261 = vmatprep.mubr.msk.f32.mxu0 %vm8088_vm3, %v20563_v24  ;;  %v10960_v24 = vld [vmem:[%s20790_s4] sm:$0x3] }
0x1412   :  { %16294 = vmatprep.subr.mxu0 %v17415_v1 }
0x1414   :  { %16262 = vmatmul.mubr.msk.f32.vlgmr.msra.gmra.mrb[154].mxu0 %vm8088_vm3, %v20570_v25  ;;  %v13035_v25 = vld [vmem:[%s20790_s4 + $0x2] sm:$0x3]  ;;  %s17416_s4 = smov [#allocation7]  }
0x1415   :  { %16264 = vmatprep.mubr.msk.f32.mxu0 %vm8088_vm3, %v20575_v53  ;;  %v11034_v53 = vld [vmem:[%s20799_s13] sm:$0xff]  ;;  %s11577_s8 = sshll.u32 %s17416_s4, 4  ;;  %s11578_s8 = int_to_ptr.vmem [resolvable:$true] %s11577_s8 }
0x1416   :  { %16295 = vmatpush3.msra.mxu0 %v11034_v53  ;;  %p17386_p3 = scmp.lt.s32.totalorder %s11578_s8, %s11578_s8 }
0x1417   :  { %16310 = vmatprep.subr.mxu0 %v17415_v1 }
0x1418   :  { %16265 = vmatmul.mubr.msk.f32.gmra.mrb[220].mxu0 %vm8088_vm3, %v20584_v2  ;;  %v13037_v2 = vld [vmem:[%s20799_s13 + $0x8] sm:$0xff]  ;;  %s17381_s13 = scalar_lea.vmem %s11578_s8, 32 }
0x1419   :  { %16296 = vmatprep.mubr.msk.f32.mxu0 %vm17414_vm0, %v17415_v1  ;;  %p17382_p2 = scmp.ne.s32.totalorder %s11578_s8, %s17381_s13  ;;  %p17387_p4 = scmp.lt.s32.totalorder %s17381_s13, %s17381_s13 }
0x141b   :  { %p17388_p5 = por %p17387_p4, %p17386_p3 }
0x141d   :  { %p17389_p6 = pnand %p17388_p5, %p17382_p2 }
0x14e7   :  { %v16263_v14 = vpop.f32.mrb[154].mxu0 }
0x14e8   :  { %v10949_v62 = vadd.f32 %v16263_v14, %v13033_v39  ;;  %v10918_v11 = vpop.f32.mrb[155].mxu0 }
0x14e9   :  { %v10948_v43 = vadd.f32 %v13033_v39, %v10918_v11 }
0x14ea   :  { %v10953_v29 = vmul.f32 0.2, %v10949_v62 }
0x14eb   :  { %v10952_v47 = vmul.f32 0.2, %v10948_v43  ;;  %v16266_v8 = vpop.f32.mrb[220].mxu0 }
0x14ec   :  { %v10957_v55 = vmax.f32 %v10949_v62, %v10953_v29  ;;  %v10951_v3 = vadd.f32 %v16266_v8, %v13033_v39  ;;  %v10928_v16 = vpop.f32.mrb[221].mxu0 }
0x14ed   :  { %v10956_v27 = vmax.f32 %v10948_v43, %v10952_v47  ;;  %v10950_v7 = vadd.f32 %v13033_v39, %v10928_v16 }
0x14ee   :  { %v10955_v57 = vmul.f32 0.2, %v10951_v3 }
0x14ef   :  { %v16756_v15 = vpack.c.bf16 %v10957_v55, %v10956_v27  ;;  %v10954_v37 = vmul.f32 0.2, %v10950_v7 }
0x14f0   :  { %v10959_v40 = vmax.f32 %v10951_v3, %v10955_v57 }
0x14f1   :  { %v10958_v61 = vmax.f32 %v10950_v7, %v10954_v37  ;;  %16757 = vmatpush3.bf16.msra.mxu1 %v16756_v15 }
0x14f2   :  { %16758 = vmatprep.subr.bf16.mxu1 %v17413_v0 }
0x14f3   :  { %v16759_v54 = vpack.c.bf16 %v10959_v40, %v10958_v61 }
0x14f5   :  { %16760 = vmatpush3.bf16.msra.mxu1 %v16759_v54 }
0x14f6   :  { %16761 = vmatprep.subr.bf16.mxu1 %v17413_v0 }
0x14f8   :  { %16276 = vmatmul.mubr.msk.f32.vlgmr.msra.gmra.mrb[174].mxu1 %vm8088_vm3, %v10960_v24 }
0x14f9   :  { %16763 = vmatpush3.bf16.msra.mxu1 %v16756_v15  ;;  %16286 = vmatprep.mubr.msk.f32.mxu1 %vm17414_vm0, %v17415_v1 }
0x14fa   :  { %16764 = vmatprep.subr.bf16.mxu1 %v17413_v0 }
0x14fd   :  { %16766 = vmatpush3.bf16.msra.mxu1 %v16759_v54 }
0x14fe   :  { %16289 = vmatprep.subr.mxu1 %v17415_v1 }
0x1500   :  { %16287 = vmatmul.mubr.msk.f32.vlgmr.msra.gmra.mrb[228].mxu1 %vm8088_vm3, %v13035_v25 }
0x1501   :  { %16291 = vmatprep.mubr.msk.f32.mxu1 %vm17414_vm0, %v17415_v1  ;;  %16290 = vmatpush3.msra.mxu1 %v13037_v2 }
0x1502   :  { %16767 = vmatprep.subr.bf16.mxu1 %v17413_v0 }
0x15cb   :  { %v11030_v4 = vpop.f32.mrb[174].mxu1 }
0x15cc   :  { %v16277_v19 = vpop.f32.mrb[175].mxu1  ;;  %16297 = vmatmul.mubr.msk.f32.vlgmr.msra.gmra.mrb[222].mxu0 %vm11112_vm5, %v11030_v4 }
0x15cd   :  { %16312 = vmatprep.mubr.msk.f32.mxu0 %vm17414_vm0, %v17415_v1  ;;  %16311 = vmatpush3.msra.mxu0 %v13042_v48 }
0x15ce   :  { %16773 = vmatprep.subr.bf16.mxu0 %v17413_v0 }
0x15d3   :  { %v11106_v34 = vpop.f32.mrb[228].mxu1 }
0x15d4   :  { %16292 = vmatmul.mubr.msk.f32.vlgmr.msra.gmra.mrb[230].mxu1 %vm11112_vm5, %v11106_v34  ;;  %v16288_v63 = vpop.f32.mrb[229].mxu1 }
0x15d5   :  { %16769 = vmatpush3.bf16.msra.mxu1 %v16756_v15  ;;  %16307 = vmatprep.mubr.msk.f32.mxu1 %vm17414_vm0, %v17415_v1 }
0x15d6   :  { %16770 = vmatprep.subr.bf16.mxu1 %v17413_v0 }
0x15d9   :  { %16772 = vmatpush3.bf16.msra.mxu1 %v16759_v54 }
0x15da   :  { %16326 = vmatprep.subr.mxu1 %v17415_v1 }
0x15dc   :  { %16308 = vmatmul.mubr.msk.f32.vlgmr.msra.gmra.mrb[232].mxu1 %vm8088_vm3, %v13040_v21 }
0x15dd   :  { %16328 = vmatprep.mubr.msk.f32.mxu1 %vm17414_vm0, %v17415_v1  ;;  %16327 = vmatpush3.msra.mxu1 %v13046_v46 }
0x169f   :  { %v11255_v56 = vpop.f32.mrb[222].mxu0 }
0x16a0   :  { %v16298_v10 = vpop.f32.mrb[223].mxu0 }
0x16a7   :  { %v11182_v31 = vpop.f32.mrb[230].mxu1 }
0x16a8   :  { %v11256_v44 = vadd.f32 %v11255_v56, %v11182_v31  ;;  %v16293_v58 = vpop.f32.mrb[231].mxu1 }
0x16af   :  { %v11330_v28 = vpop.f32.mrb[232].mxu1 }
0x16b0   :  { %16313 = vmatmul.mubr.msk.f32.vlgmr.msra.gmra.mrb[224].mxu0 %vm11112_vm5, %v11330_v28  ;;  %v16309_v23 = vpop.f32.mrb[233].mxu1 }
0x16b1   :  { %16775 = vmatpush3.bf16.msra.mxu0 %v16756_v15  ;;  %16323 = vmatprep.mubr.msk.f32.mxu0 %vm17414_vm0, %v17415_v1 }
0x16b2   :  { %16776 = vmatprep.subr.bf16.mxu0 %v17413_v0 }
0x16b5   :  { %16778 = vmatpush3.bf16.msra.mxu0 %v16759_v54 }
0x16b8   :  { %16324 = vmatmul.mubr.msk.f32.vlgmr.msra.gmra.mrb[226].mxu0 %vm8088_vm3, %v13044_v12 }
0x1783   :  { %v11405_v13 = vpop.f32.mrb[224].mxu0 }
0x1784   :  { %v11409_v60 = vadd.f32 %v11405_v13, %v11256_v44  ;;  %v16314_v42 = vpop.f32.mrb[225].mxu0 }
0x178b   :  { %v11481_v45 = vpop.f32.mrb[226].mxu0 }
0x178c   :  { %16329 = vmatmul.mubr.msk.f32.vlgmr.msra.gmra.mrb[234].mxu1 %vm11112_vm5, %v11481_v45  ;;  %v16325_v1 = vpop.f32.mrb[227].mxu0 }
0x185f   :  { %v11556_v0 = vpop.f32.mrb[234].mxu1 }
0x1860   :  { %v11560_v17 = vadd.f32 %v11556_v0, %v11409_v60  ;;  %v16330_v49 = vpop.f32.mrb[235].mxu1 }
0x1862   :  { %v11568_v36 = vadd.f32 %v13048_v9, %v11560_v17 }
0x1864   :  { %11570 = vst.msk [vmem:[#allocation7] sm:$0x3] %vm11569_vm6, %v11568_v36 }
0x1865   :  { %17392 = shalt.err (!%p17389_p6)
}
0x1866   :  { %s17393_s16 = scalar_lea.hbm %s20801_s15, 32 }
0x1867   :  { %p17394_p7 = scmp.ne.s32.totalorder %s20801_s15, %s17393_s16  ;;  %p17397_p8 = scmp.lt.u32.totalorder %s17393_s16, %s20801_s15 }
0x1869   :  { %p17399_p9 = pnand %p17397_p8, %p17394_p7 }
0x186b   :  { %17402 = shalt.err (!%p17399_p9)
}
0x186c   :  { %11580 = dma.vmem_to_hbm [thread:$0]  %s11578_s8, 32, %s20801_s15, [#allocation4]  }
0x186d   :  { %17407 = dma.done.wait [#allocation4], 32  }
0x186e   :  { %17408 = vsyncadd [#allocation4], 4294967264 }
0x186f   :  { %11584 = vsyncpa [#allocation3], 1 }
0x1870   :  { %11585 = vsyncpa [#allocation6], 1 }
0x1871   :  { %11586 = vsyncpa [#allocation4], 1 }

</bundles_post_ra>
